<compile_context>
chip_gen: v6e
topology: v6e:2x2x1
jax: 0.10.0
libtpu: 0.0.40
codegen_flags: <defaults>
</compile_context>

<pallas_src>
import functools

import numpy as np
import jax
import jax.numpy as jnp
from jax import lax
from jax.experimental import pallas as pl
from jax.experimental.pallas import tpu as pltpu

EPS = 1e-5
CP = 128        # padded lane (channel / K) width
KSIZE = 5
STRIDE = 2


def _conv_size(s, k=KSIZE, stride=STRIDE):
    return (s - (k - 1) - 1) // stride + 1


def _round_up(x, m):
    return (x + m - 1) // m * m


# ----------------------------------------------------------------------------
# Fused whole-network kernel (one grid step == one image)
# ----------------------------------------------------------------------------
def _dqn_fused_kernel(p1_ref, w1_ref, sh1_ref,
                      s2_ref, w2_ref, sh2_ref,
                      s3_ref, w3_ref, sh3_ref,
                      wh_ref, bh_ref, o_ref):
    f32 = jnp.float32
    bf16 = jnp.bfloat16

    # ---- layer 1: single matmul on pre-im2col'ed (padded) input patches ----
    x = p1_ref[0]                                              # [M1p, 128] bf16
    a1 = jnp.dot(x, w1_ref[...], preferred_element_type=f32)
    a1 = jnp.maximum(a1 + sh1_ref[...], 0.0).astype(bf16)      # [M1p, 128]

    # ---- conv layer = 25 (gather-matmul + tap-weight matmul), accumulated ---
    def conv_taps(act, s_ref, w_ref, sh_ref):
        n_taps, m_out, _ = s_ref.shape
        acc = jnp.zeros((m_out, CP), f32)
        for p in range(n_taps):                                # static unroll
            g = jnp.dot(s_ref[p], act, preferred_element_type=f32)
            acc = acc + jnp.dot(g.astype(bf16), w_ref[p],
                                preferred_element_type=f32)
        return jnp.maximum(acc + sh_ref[...], 0.0).astype(bf16)

    a2 = conv_taps(a1, s2_ref, w2_ref, sh2_ref)                # [M2, 128]
    a3 = conv_taps(a2, s3_ref, w3_ref, sh3_ref)                # [M3, 128]

    # ---- linear head: sum over the M3 spatial positions ---------------------
    h = bh_ref[...].astype(f32)                                # [1, 128]
    for hw in range(wh_ref.shape[0]):
        h = h + jnp.dot(a3[hw:hw + 1, :], wh_ref[hw],
                        preferred_element_type=f32)
    # lane-dense (8,128) output slab; real logits live in [0, :2]
    o_ref[0] = jnp.broadcast_to(h, (o_ref.shape[1], CP)).astype(o_ref.dtype)


# ----------------------------------------------------------------------------
# One-time parameter packing (BN fold, lane padding, selection matrices)
# ----------------------------------------------------------------------------
def _make_selection(hin, win):
    ho, wo = _conv_size(hin), _conv_size(win)
    s = np.zeros((KSIZE * KSIZE, ho * wo, hin * win), np.float32)
    for kh in range(KSIZE):
        for kw in range(KSIZE):
            p = kh * KSIZE + kw
            for oh in range(ho):
                for ow in range(wo):
                    s[p, oh * wo + ow,
                      (STRIDE * oh + kh) * win + (STRIDE * ow + kw)] = 1.0
    return s


def _fold_bn(b, gamma, beta, rmean, rvar):
    scale = gamma / jnp.sqrt(rvar + EPS)
    shift = (b - rmean) * scale + beta
    return scale, shift


def _pack_conv1(w, b, gamma, beta, rmean, rvar):
    cout, cin, k, _ = w.shape
    scale, shift = _fold_bn(b, gamma, beta, rmean, rvar)
    wf = (w * scale[:, None, None, None]).reshape(cout, cin * k * k).T   # [K, cout]
    w1 = jnp.zeros((CP, CP), jnp.float32).at[:cin * k * k, :cout].set(wf)
    sh = jnp.zeros((1, CP), jnp.float32).at[0, :cout].set(shift)
    return w1.astype(jnp.bfloat16), sh


def _pack_conv_taps(w, b, gamma, beta, rmean, rvar):
    cout, cin, k, _ = w.shape
    scale, shift = _fold_bn(b, gamma, beta, rmean, rvar)
    wt = jnp.transpose(w * scale[:, None, None, None], (2, 3, 1, 0))     # [k,k,cin,cout]
    wt = wt.reshape(k * k, cin, cout)
    wk = jnp.zeros((k * k, CP, CP), jnp.float32).at[:, :cin, :cout].set(wt)
    sh = jnp.zeros((1, CP), jnp.float32).at[0, :cout].set(shift)
    return wk.astype(jnp.bfloat16), sh


def _pack_head(w_head, b_head, sp):
    nout, feat = w_head.shape
    cin = feat // sp
    # torch .view(N,-1) order is (c, h, w) -> feature index = c*sp + hw
    wr = jnp.transpose(w_head.reshape(nout, cin, sp), (2, 1, 0))         # [sp,cin,nout]
    wh = jnp.zeros((sp, CP, CP), jnp.float32).at[:, :cin, :nout].set(wr)
    bh = jnp.zeros((1, CP), jnp.float32).at[0, :nout].set(b_head)
    return wh.astype(jnp.bfloat16), bh


def prepare_dqn(params, h, w):
    """One-time packing of weights (BN folded, bf16, lane-padded) and the constant
    per-tap selection matrices used for in-kernel im2col."""
    h1, w1 = _conv_size(h), _conv_size(w)
    h2, w2 = _conv_size(h1), _conv_size(w1)
    h3, w3 = _conv_size(h2), _conv_size(w2)
    m1, m1p = h1 * w1, _round_up(h1 * w1, 8)

    s2 = np.zeros((KSIZE * KSIZE, h2 * w2, m1p), np.float32)
    s2[:, :, :m1] = _make_selection(h1, w1)
    s3 = _make_selection(h2, w2)

    w1k, sh1 = _pack_conv1(*params["layer1"])
    w2k, sh2 = _pack_conv_taps(*params["layer2"])
    w3k, sh3 = _pack_conv_taps(*params["layer3"])
    whk, bhk = _pack_head(*params["head"], sp=h3 * w3)

    return dict(w1=w1k, sh1=sh1,
                s2=jnp.asarray(s2, jnp.bfloat16), w2=w2k, sh2=sh2,
                s3=jnp.asarray(s3, jnp.bfloat16), w3=w3k, sh3=sh3,
                wh=whk, bh=bhk)


# ----------------------------------------------------------------------------
# Forward pass
# ----------------------------------------------------------------------------
def _im2col_input(x_nchw):
    n, c, hin, win = x_nchw.shape
    ho, wo = _conv_size(hin), _conv_size(win)
    cols = []
    for ci in range(c):                       # column order (cin, kh, kw) like torch
        for kh in range(KSIZE):
            for kw in range(KSIZE):
                cols.append(x_nchw[:, ci,
                                   kh:kh + STRIDE * (ho - 1) + 1:STRIDE,
                                   kw:kw + STRIDE * (wo - 1) + 1:STRIDE])
    p = jnp.stack(cols, axis=-1)              # [N, Ho, Wo, C*k*k]
    return p.reshape(n, ho * wo, c * KSIZE * KSIZE)


@jax.jit
def dqn_forward(x_nchw, packed):
    n = x_nchw.shape[0]
    patches = _im2col_input(x_nchw)                               # [N, M1, 75]
    m1, k1 = patches.shape[1], patches.shape[2]
    m1p = packed["s2"].shape[2]
    patches = jnp.pad(patches, ((0, 0), (0, m1p - m1), (0, CP - k1)))
    patches = patches.astype(jnp.bfloat16)

    n_taps, m2, _ = packed["s2"].shape
    m3 = packed["s3"].shape[1]
    sp = packed["wh"].shape[0]

    flops = int(2 * n * (m1p * CP * CP
                         + n_taps * (m2 * m1p * CP + m2 * CP * CP)
                         + n_taps * (m3 * m2 * CP + m3 * CP * CP)
                         + sp * CP * CP))
    bytes_accessed = int(sum(int(np.prod(v.shape)) * v.dtype.itemsize
                             for v in packed.values())
                         + patches.size * 2 + n * 8 * CP * 4)

    grid_spec = pltpu.PrefetchScalarGridSpec(
        num_scalar_prefetch=0,
        grid=(n,),
        in_specs=[
            pl.BlockSpec((1, m1p, CP), lambda i: (i, 0, 0)),        # patches (per image)
            pl.BlockSpec((CP, CP), lambda i: (0, 0)),               # w1 (BN-folded)
            pl.BlockSpec((1, CP), lambda i: (0, 0)),                # shift1
            pl.BlockSpec((n_taps, m2, m1p), lambda i: (0, 0, 0)),   # S2 selection
            pl.BlockSpec((n_taps, CP, CP), lambda i: (0, 0, 0)),    # w2 per-tap
            pl.BlockSpec((1, CP), lambda i: (0, 0)),                # shift2
            pl.BlockSpec((n_taps, m3, m2), lambda i: (0, 0, 0)),    # S3 selection
            pl.BlockSpec((n_taps, CP, CP), lambda i: (0, 0, 0)),    # w3 per-tap
            pl.BlockSpec((1, CP), lambda i: (0, 0)),                # shift3
            pl.BlockSpec((sp, CP, CP), lambda i: (0, 0, 0)),        # head weight
            pl.BlockSpec((1, CP), lambda i: (0, 0)),                # head bias
        ],
        out_specs=pl.BlockSpec((1, 8, CP), lambda i: (i, 0, 0)),
    )

    out = pl.pallas_call(
        _dqn_fused_kernel,
        out_shape=jax.ShapeDtypeStruct((n, 8, CP), jnp.float32),
        grid_spec=grid_spec,
        compiler_params=pltpu.CompilerParams(
            dimension_semantics=("parallel",)),
        cost_estimate=pl.CostEstimate(
            flops=flops, transcendentals=0, bytes_accessed=bytes_accessed),
    )(patches, packed["w1"], packed["sh1"],
      packed["s2"], packed["w2"], packed["sh2"],
      packed["s3"], packed["w3"], packed["sh3"],
      packed["wh"], packed["bh"])

    return out[:, 0, :2]                                           # [N, 2] logits


# ----------------------------------------------------------------------------
# Pure-JAX f32 reference (lax.conv) for correctness check
# ----------------------------------------------------------------------------
def _ref_layer(x, w, b, gamma, beta, rmean, rvar):
    y = lax.conv_general_dilated(
        x, w, (STRIDE, STRIDE), "VALID",
        dimension_numbers=("NCHW", "OIHW", "NCHW"))
    y = y + b[None, :, None, None]
    y = (y - rmean[None, :, None, None]) / jnp.sqrt(rvar[None, :, None, None] + EPS)
    y = y * gamma[None, :, None, None] + beta[None, :, None, None]
    return jnp.maximum(y, 0.0)


def dqn_forward_ref(x, params):
    y = _ref_layer(x, *params["layer1"])
    y = _ref_layer(y, *params["layer2"])
    y = _ref_layer(y, *params["layer3"])
    y = y.reshape(y.shape[0], -1)
    w_head, b_head = params["head"]
    return y @ w_head.T + b_head


# ----------------------------------------------------------------------------
# Deterministic parameter construction
# ----------------------------------------------------------------------------
def make_params(key, h, w):
    k1, k2, k3, khead = jax.random.split(key, 4)

    def conv_layer(k, cin, cout):
        kw_, kb, kg, kbt, km, kv = jax.random.split(k, 6)
        weight = jax.random.normal(kw_, (cout, cin, KSIZE, KSIZE), jnp.float32) * 0.05
        bias = jax.random.normal(kb, (cout,), jnp.float32) * 0.05
        gamma = 1.0 + 0.1 * jax.random.normal(kg, (cout,), jnp.float32)
        beta = 0.1 * jax.random.normal(kbt, (cout,), jnp.float32)
        rmean = 0.1 * jax.random.normal(km, (cout,), jnp.float32)
        rvar = 1.0 + 0.1 * jax.random.uniform(kv, (cout,), jnp.float32)
        return (weight, bias, gamma, beta, rmean, rvar)

    convw = _conv_size(_conv_size(_conv_size(w)))
    convh = _conv_size(_conv_size(_conv_size(h)))
    feat = convw * convh * 32
    kh1, kh2 = jax.random.split(khead)
    return {
        "layer1": conv_layer(k1, 3, 16),
        "layer2": conv_layer(k2, 16, 32),
        "layer3": conv_layer(k3, 32, 32),
        "head": (jax.random.normal(kh1, (2, feat), jnp.float32) * 0.05,
                 jax.random.normal(kh2, (2,), jnp.float32) * 0.05),
    }


if __name__ == "__main__":
    H = W = 40      # conv stack -> 2x2 spatial, head in-features = 128
    N = 2
    key = jax.random.PRNGKey(0)
    kx, kp = jax.random.split(key)
    x = jax.random.normal(kx, (N, 3, H, W), jnp.float32)
    params = make_params(kp, H, W)

    packed = prepare_dqn(params, H, W)          # one-time weight / constant packing
    out = jax.block_until_ready(dqn_forward(x, packed))

    ref = jax.block_until_ready(dqn_forward_ref(x, params))
    assert out.shape == (N, 2), out.shape
    assert jnp.allclose(out, ref, atol=3e-2, rtol=3e-2), (out, ref)

    print("KERNEL_OK")
</pallas_src>

<mosaic_0001>
module attributes {stable_mosaic.version = 11 : i64} {
  func.func @_dqn_fused_kernel(%arg0: i32, %arg1: memref<1x328x128xbf16, #tpu.memory_space<vmem>>, %arg2: memref<128x128xbf16, #tpu.memory_space<vmem>>, %arg3: memref<1x128xf32, #tpu.memory_space<vmem>>, %arg4: memref<25x49x328xbf16, #tpu.memory_space<vmem>>, %arg5: memref<25x128x128xbf16, #tpu.memory_space<vmem>>, %arg6: memref<1x128xf32, #tpu.memory_space<vmem>>, %arg7: memref<25x4x49xbf16, #tpu.memory_space<vmem>>, %arg8: memref<25x128x128xbf16, #tpu.memory_space<vmem>>, %arg9: memref<1x128xf32, #tpu.memory_space<vmem>>, %arg10: memref<4x128x128xbf16, #tpu.memory_space<vmem>>, %arg11: memref<1x128xf32, #tpu.memory_space<vmem>>, %arg12: memref<1x8x128xf32, #tpu.memory_space<vmem>>) attributes {dimension_semantics = [#tpu.dimension_semantics<parallel>], iteration_bounds = array<i64: 2>, scalar_prefetch = 0 : i64, scratch_operands = 0 : i64, tpu.core_type = #tpu.core_type<tc>, window_params = [{transform_indices = @transform_0, window_bounds = array<i64: 1, 328, 128>}, {pipeline_mode = #tpu.pipeline_mode<synchronous>, transform_indices = @transform_1, window_bounds = array<i64: 128, 128>}, {pipeline_mode = #tpu.pipeline_mode<synchronous>, transform_indices = @transform_2, window_bounds = array<i64: 1, 128>}, {pipeline_mode = #tpu.pipeline_mode<synchronous>, transform_indices = @transform_3, window_bounds = array<i64: 25, 49, 328>}, {pipeline_mode = #tpu.pipeline_mode<synchronous>, transform_indices = @transform_4, window_bounds = array<i64: 25, 128, 128>}, {pipeline_mode = #tpu.pipeline_mode<synchronous>, transform_indices = @transform_5, window_bounds = array<i64: 1, 128>}, {pipeline_mode = #tpu.pipeline_mode<synchronous>, transform_indices = @transform_6, window_bounds = array<i64: 25, 4, 49>}, {pipeline_mode = #tpu.pipeline_mode<synchronous>, transform_indices = @transform_7, window_bounds = array<i64: 25, 128, 128>}, {pipeline_mode = #tpu.pipeline_mode<synchronous>, transform_indices = @transform_8, window_bounds = array<i64: 1, 128>}, {pipeline_mode = #tpu.pipeline_mode<synchronous>, transform_indices = @transform_9, window_bounds = array<i64: 4, 128, 128>}, {pipeline_mode = #tpu.pipeline_mode<synchronous>, transform_indices = @transform_10, window_bounds = array<i64: 1, 128>}, {transform_indices = @transform_11, window_bounds = array<i64: 1, 8, 128>}]} {
    %c0 = arith.constant 0 : index
    %c0_0 = arith.constant 0 : index
    %c0_1 = arith.constant 0 : index
    %0 = vector.load %arg1[%c0, %c0_0, %c0_1] : memref<1x328x128xbf16, #tpu.memory_space<vmem>>, vector<1x328x128xbf16>
    %1 = vector.shape_cast %0 : vector<1x328x128xbf16> to vector<328x128xbf16>
    %c0_2 = arith.constant 0 : index
    %c0_3 = arith.constant 0 : index
    %2 = vector.load %arg2[%c0_2, %c0_3] : memref<128x128xbf16, #tpu.memory_space<vmem>>, vector<128x128xbf16>
    %cst = arith.constant dense<0.000000e+00> : vector<328x128xf32>
    %3 = tpu.matmul %1, %2, %cst {dimension_numbers = #tpu.dot_dimension_numbers<[1], [0], [0], [1], [0, 0, 1, 1], [], []>} : vector<328x128xbf16>, vector<128x128xbf16>, vector<328x128xf32> -> vector<328x128xf32>
    %c0_4 = arith.constant 0 : index
    %c0_5 = arith.constant 0 : index
    %4 = vector.load %arg3[%c0_4, %c0_5] : memref<1x128xf32, #tpu.memory_space<vmem>>, vector<1x128xf32>
    %5 = vector.broadcast %4 : vector<1x128xf32> to vector<328x128xf32>
    %6 = arith.addf %3, %5 : vector<328x128xf32>
    %cst_6 = arith.constant 0.000000e+00 : f32
    %7 = vector.broadcast %cst_6 : f32 to vector<328x128xf32>
    %8 = arith.maximumf %6, %7 : vector<328x128xf32>
    %9 = arith.truncf %8 : vector<328x128xf32> to vector<328x128xbf16>
    %cst_7 = arith.constant 0.000000e+00 : f32
    %10 = vector.broadcast %cst_7 : f32 to vector<49x128xf32>
    %c0_8 = arith.constant 0 : index
    %c0_9 = arith.constant 0 : index
    %c0_10 = arith.constant 0 : index
    %11 = vector.load %arg4[%c0_8, %c0_9, %c0_10] : memref<25x49x328xbf16, #tpu.memory_space<vmem>>, vector<1x49x328xbf16>
    %12 = vector.shape_cast %11 : vector<1x49x328xbf16> to vector<49x328xbf16>
    %cst_11 = arith.constant dense<0.000000e+00> : vector<49x128xf32>
    %13 = tpu.matmul %12, %9, %cst_11 {dimension_numbers = #tpu.dot_dimension_numbers<[1], [0], [0], [1], [0, 0, 1, 1], [], []>} : vector<49x328xbf16>, vector<328x128xbf16>, vector<49x128xf32> -> vector<49x128xf32>
    %14 = arith.truncf %13 : vector<49x128xf32> to vector<49x128xbf16>
    %c0_12 = arith.constant 0 : index
    %c0_13 = arith.constant 0 : index
    %c0_14 = arith.constant 0 : index
    %15 = vector.load %arg5[%c0_12, %c0_13, %c0_14] : memref<25x128x128xbf16, #tpu.memory_space<vmem>>, vector<1x128x128xbf16>
    %16 = vector.shape_cast %15 : vector<1x128x128xbf16> to vector<128x128xbf16>
    %cst_15 = arith.constant dense<0.000000e+00> : vector<49x128xf32>
    %17 = tpu.matmul %14, %16, %cst_15 {dimension_numbers = #tpu.dot_dimension_numbers<[1], [0], [0], [1], [0, 0, 1, 1], [], []>} : vector<49x128xbf16>, vector<128x128xbf16>, vector<49x128xf32> -> vector<49x128xf32>
    %18 = arith.addf %10, %17 : vector<49x128xf32>
    %c1 = arith.constant 1 : index
    %c0_16 = arith.constant 0 : index
    %c0_17 = arith.constant 0 : index
    %19 = vector.load %arg4[%c1, %c0_16, %c0_17] : memref<25x49x328xbf16, #tpu.memory_space<vmem>>, vector<1x49x328xbf16>
    %20 = vector.shape_cast %19 : vector<1x49x328xbf16> to vector<49x328xbf16>
    %cst_18 = arith.constant dense<0.000000e+00> : vector<49x128xf32>
    %21 = tpu.matmul %20, %9, %cst_18 {dimension_numbers = #tpu.dot_dimension_numbers<[1], [0], [0], [1], [0, 0, 1, 1], [], []>} : vector<49x328xbf16>, vector<328x128xbf16>, vector<49x128xf32> -> vector<49x128xf32>
    %22 = arith.truncf %21 : vector<49x128xf32> to vector<49x128xbf16>
    %c1_19 = arith.constant 1 : index
    %c0_20 = arith.constant 0 : index
    %c0_21 = arith.constant 0 : index
    %23 = vector.load %arg5[%c1_19, %c0_20, %c0_21] : memref<25x128x128xbf16, #tpu.memory_space<vmem>>, vector<1x128x128xbf16>
    %24 = vector.shape_cast %23 : vector<1x128x128xbf16> to vector<128x128xbf16>
    %cst_22 = arith.constant dense<0.000000e+00> : vector<49x128xf32>
    %25 = tpu.matmul %22, %24, %cst_22 {dimension_numbers = #tpu.dot_dimension_numbers<[1], [0], [0], [1], [0, 0, 1, 1], [], []>} : vector<49x128xbf16>, vector<128x128xbf16>, vector<49x128xf32> -> vector<49x128xf32>
    %26 = arith.addf %18, %25 : vector<49x128xf32>
    %c2 = arith.constant 2 : index
    %c0_23 = arith.constant 0 : index
    %c0_24 = arith.constant 0 : index
    %27 = vector.load %arg4[%c2, %c0_23, %c0_24] : memref<25x49x328xbf16, #tpu.memory_space<vmem>>, vector<1x49x328xbf16>
    %28 = vector.shape_cast %27 : vector<1x49x328xbf16> to vector<49x328xbf16>
    %cst_25 = arith.constant dense<0.000000e+00> : vector<49x128xf32>
    %29 = tpu.matmul %28, %9, %cst_25 {dimension_numbers = #tpu.dot_dimension_numbers<[1], [0], [0], [1], [0, 0, 1, 1], [], []>} : vector<49x328xbf16>, vector<328x128xbf16>, vector<49x128xf32> -> vector<49x128xf32>
    %30 = arith.truncf %29 : vector<49x128xf32> to vector<49x128xbf16>
    %c2_26 = arith.constant 2 : index
    %c0_27 = arith.constant 0 : index
    %c0_28 = arith.constant 0 : index
    %31 = vector.load %arg5[%c2_26, %c0_27, %c0_28] : memref<25x128x128xbf16, #tpu.memory_space<vmem>>, vector<1x128x128xbf16>
    %32 = vector.shape_cast %31 : vector<1x128x128xbf16> to vector<128x128xbf16>
    %cst_29 = arith.constant dense<0.000000e+00> : vector<49x128xf32>
    %33 = tpu.matmul %30, %32, %cst_29 {dimension_numbers = #tpu.dot_dimension_numbers<[1], [0], [0], [1], [0, 0, 1, 1], [], []>} : vector<49x128xbf16>, vector<128x128xbf16>, vector<49x128xf32> -> vector<49x128xf32>
    %34 = arith.addf %26, %33 : vector<49x128xf32>
    %c3 = arith.constant 3 : index
    %c0_30 = arith.constant 0 : index
    %c0_31 = arith.constant 0 : index
    %35 = vector.load %arg4[%c3, %c0_30, %c0_31] : memref<25x49x328xbf16, #tpu.memory_space<vmem>>, vector<1x49x328xbf16>
    %36 = vector.shape_cast %35 : vector<1x49x328xbf16> to vector<49x328xbf16>
    %cst_32 = arith.constant dense<0.000000e+00> : vector<49x128xf32>
    %37 = tpu.matmul %36, %9, %cst_32 {dimension_numbers = #tpu.dot_dimension_numbers<[1], [0], [0], [1], [0, 0, 1, 1], [], []>} : vector<49x328xbf16>, vector<328x128xbf16>, vector<49x128xf32> -> vector<49x128xf32>
    %38 = arith.truncf %37 : vector<49x128xf32> to vector<49x128xbf16>
    %c3_33 = arith.constant 3 : index
    %c0_34 = arith.constant 0 : index
    %c0_35 = arith.constant 0 : index
    %39 = vector.load %arg5[%c3_33, %c0_34, %c0_35] : memref<25x128x128xbf16, #tpu.memory_space<vmem>>, vector<1x128x128xbf16>
    %40 = vector.shape_cast %39 : vector<1x128x128xbf16> to vector<128x128xbf16>
    %cst_36 = arith.constant dense<0.000000e+00> : vector<49x128xf32>
    %41 = tpu.matmul %38, %40, %cst_36 {dimension_numbers = #tpu.dot_dimension_numbers<[1], [0], [0], [1], [0, 0, 1, 1], [], []>} : vector<49x128xbf16>, vector<128x128xbf16>, vector<49x128xf32> -> vector<49x128xf32>
    %42 = arith.addf %34, %41 : vector<49x128xf32>
    %c4 = arith.constant 4 : index
    %c0_37 = arith.constant 0 : index
    %c0_38 = arith.constant 0 : index
    %43 = vector.load %arg4[%c4, %c0_37, %c0_38] : memref<25x49x328xbf16, #tpu.memory_space<vmem>>, vector<1x49x328xbf16>
    %44 = vector.shape_cast %43 : vector<1x49x328xbf16> to vector<49x328xbf16>
    %cst_39 = arith.constant dense<0.000000e+00> : vector<49x128xf32>
    %45 = tpu.matmul %44, %9, %cst_39 {dimension_numbers = #tpu.dot_dimension_numbers<[1], [0], [0], [1], [0, 0, 1, 1], [], []>} : vector<49x328xbf16>, vector<328x128xbf16>, vector<49x128xf32> -> vector<49x128xf32>
    %46 = arith.truncf %45 : vector<49x128xf32> to vector<49x128xbf16>
    %c4_40 = arith.constant 4 : index
    %c0_41 = arith.constant 0 : index
    %c0_42 = arith.constant 0 : index
    %47 = vector.load %arg5[%c4_40, %c0_41, %c0_42] : memref<25x128x128xbf16, #tpu.memory_space<vmem>>, vector<1x128x128xbf16>
    %48 = vector.shape_cast %47 : vector<1x128x128xbf16> to vector<128x128xbf16>
    %cst_43 = arith.constant dense<0.000000e+00> : vector<49x128xf32>
    %49 = tpu.matmul %46, %48, %cst_43 {dimension_numbers = #tpu.dot_dimension_numbers<[1], [0], [0], [1], [0, 0, 1, 1], [], []>} : vector<49x128xbf16>, vector<128x128xbf16>, vector<49x128xf32> -> vector<49x128xf32>
    %50 = arith.addf %42, %49 : vector<49x128xf32>
    %c5 = arith.constant 5 : index
    %c0_44 = arith.constant 0 : index
    %c0_45 = arith.constant 0 : index
    %51 = vector.load %arg4[%c5, %c0_44, %c0_45] : memref<25x49x328xbf16, #tpu.memory_space<vmem>>, vector<1x49x328xbf16>
    %52 = vector.shape_cast %51 : vector<1x49x328xbf16> to vector<49x328xbf16>
    %cst_46 = arith.constant dense<0.000000e+00> : vector<49x128xf32>
    %53 = tpu.matmul %52, %9, %cst_46 {dimension_numbers = #tpu.dot_dimension_numbers<[1], [0], [0], [1], [0, 0, 1, 1], [], []>} : vector<49x328xbf16>, vector<328x128xbf16>, vector<49x128xf32> -> vector<49x128xf32>
    %54 = arith.truncf %53 : vector<49x128xf32> to vector<49x128xbf16>
    %c5_47 = arith.constant 5 : index
    %c0_48 = arith.constant 0 : index
    %c0_49 = arith.constant 0 : index
    %55 = vector.load %arg5[%c5_47, %c0_48, %c0_49] : memref<25x128x128xbf16, #tpu.memory_space<vmem>>, vector<1x128x128xbf16>
    %56 = vector.shape_cast %55 : vector<1x128x128xbf16> to vector<128x128xbf16>
    %cst_50 = arith.constant dense<0.000000e+00> : vector<49x128xf32>
    %57 = tpu.matmul %54, %56, %cst_50 {dimension_numbers = #tpu.dot_dimension_numbers<[1], [0], [0], [1], [0, 0, 1, 1], [], []>} : vector<49x128xbf16>, vector<128x128xbf16>, vector<49x128xf32> -> vector<49x128xf32>
    %58 = arith.addf %50, %57 : vector<49x128xf32>
    %c6 = arith.constant 6 : index
    %c0_51 = arith.constant 0 : index
    %c0_52 = arith.constant 0 : index
    %59 = vector.load %arg4[%c6, %c0_51, %c0_52] : memref<25x49x328xbf16, #tpu.memory_space<vmem>>, vector<1x49x328xbf16>
    %60 = vector.shape_cast %59 : vector<1x49x328xbf16> to vector<49x328xbf16>
    %cst_53 = arith.constant dense<0.000000e+00> : vector<49x128xf32>
    %61 = tpu.matmul %60, %9, %cst_53 {dimension_numbers = #tpu.dot_dimension_numbers<[1], [0], [0], [1], [0, 0, 1, 1], [], []>} : vector<49x328xbf16>, vector<328x128xbf16>, vector<49x128xf32> -> vector<49x128xf32>
    %62 = arith.truncf %61 : vector<49x128xf32> to vector<49x128xbf16>
    %c6_54 = arith.constant 6 : index
    %c0_55 = arith.constant 0 : index
    %c0_56 = arith.constant 0 : index
    %63 = vector.load %arg5[%c6_54, %c0_55, %c0_56] : memref<25x128x128xbf16, #tpu.memory_space<vmem>>, vector<1x128x128xbf16>
    %64 = vector.shape_cast %63 : vector<1x128x128xbf16> to vector<128x128xbf16>
    %cst_57 = arith.constant dense<0.000000e+00> : vector<49x128xf32>
    %65 = tpu.matmul %62, %64, %cst_57 {dimension_numbers = #tpu.dot_dimension_numbers<[1], [0], [0], [1], [0, 0, 1, 1], [], []>} : vector<49x128xbf16>, vector<128x128xbf16>, vector<49x128xf32> -> vector<49x128xf32>
    %66 = arith.addf %58, %65 : vector<49x128xf32>
    %c7 = arith.constant 7 : index
    %c0_58 = arith.constant 0 : index
    %c0_59 = arith.constant 0 : index
    %67 = vector.load %arg4[%c7, %c0_58, %c0_59] : memref<25x49x328xbf16, #tpu.memory_space<vmem>>, vector<1x49x328xbf16>
    %68 = vector.shape_cast %67 : vector<1x49x328xbf16> to vector<49x328xbf16>
    %cst_60 = arith.constant dense<0.000000e+00> : vector<49x128xf32>
    %69 = tpu.matmul %68, %9, %cst_60 {dimension_numbers = #tpu.dot_dimension_numbers<[1], [0], [0], [1], [0, 0, 1, 1], [], []>} : vector<49x328xbf16>, vector<328x128xbf16>, vector<49x128xf32> -> vector<49x128xf32>
    %70 = arith.truncf %69 : vector<49x128xf32> to vector<49x128xbf16>
    %c7_61 = arith.constant 7 : index
    %c0_62 = arith.constant 0 : index
    %c0_63 = arith.constant 0 : index
    %71 = vector.load %arg5[%c7_61, %c0_62, %c0_63] : memref<25x128x128xbf16, #tpu.memory_space<vmem>>, vector<1x128x128xbf16>
    %72 = vector.shape_cast %71 : vector<1x128x128xbf16> to vector<128x128xbf16>
    %cst_64 = arith.constant dense<0.000000e+00> : vector<49x128xf32>
    %73 = tpu.matmul %70, %72, %cst_64 {dimension_numbers = #tpu.dot_dimension_numbers<[1], [0], [0], [1], [0, 0, 1, 1], [], []>} : vector<49x128xbf16>, vector<128x128xbf16>, vector<49x128xf32> -> vector<49x128xf32>
    %74 = arith.addf %66, %73 : vector<49x128xf32>
    %c8 = arith.constant 8 : index
    %c0_65 = arith.constant 0 : index
    %c0_66 = arith.constant 0 : index
    %75 = vector.load %arg4[%c8, %c0_65, %c0_66] : memref<25x49x328xbf16, #tpu.memory_space<vmem>>, vector<1x49x328xbf16>
    %76 = vector.shape_cast %75 : vector<1x49x328xbf16> to vector<49x328xbf16>
    %cst_67 = arith.constant dense<0.000000e+00> : vector<49x128xf32>
    %77 = tpu.matmul %76, %9, %cst_67 {dimension_numbers = #tpu.dot_dimension_numbers<[1], [0], [0], [1], [0, 0, 1, 1], [], []>} : vector<49x328xbf16>, vector<328x128xbf16>, vector<49x128xf32> -> vector<49x128xf32>
    %78 = arith.truncf %77 : vector<49x128xf32> to vector<49x128xbf16>
    %c8_68 = arith.constant 8 : index
    %c0_69 = arith.constant 0 : index
    %c0_70 = arith.constant 0 : index
    %79 = vector.load %arg5[%c8_68, %c0_69, %c0_70] : memref<25x128x128xbf16, #tpu.memory_space<vmem>>, vector<1x128x128xbf16>
    %80 = vector.shape_cast %79 : vector<1x128x128xbf16> to vector<128x128xbf16>
    %cst_71 = arith.constant dense<0.000000e+00> : vector<49x128xf32>
    %81 = tpu.matmul %78, %80, %cst_71 {dimension_numbers = #tpu.dot_dimension_numbers<[1], [0], [0], [1], [0, 0, 1, 1], [], []>} : vector<49x128xbf16>, vector<128x128xbf16>, vector<49x128xf32> -> vector<49x128xf32>
    %82 = arith.addf %74, %81 : vector<49x128xf32>
    %c9 = arith.constant 9 : index
    %c0_72 = arith.constant 0 : index
    %c0_73 = arith.constant 0 : index
    %83 = vector.load %arg4[%c9, %c0_72, %c0_73] : memref<25x49x328xbf16, #tpu.memory_space<vmem>>, vector<1x49x328xbf16>
    %84 = vector.shape_cast %83 : vector<1x49x328xbf16> to vector<49x328xbf16>
    %cst_74 = arith.constant dense<0.000000e+00> : vector<49x128xf32>
    %85 = tpu.matmul %84, %9, %cst_74 {dimension_numbers = #tpu.dot_dimension_numbers<[1], [0], [0], [1], [0, 0, 1, 1], [], []>} : vector<49x328xbf16>, vector<328x128xbf16>, vector<49x128xf32> -> vector<49x128xf32>
    %86 = arith.truncf %85 : vector<49x128xf32> to vector<49x128xbf16>
    %c9_75 = arith.constant 9 : index
    %c0_76 = arith.constant 0 : index
    %c0_77 = arith.constant 0 : index
    %87 = vector.load %arg5[%c9_75, %c0_76, %c0_77] : memref<25x128x128xbf16, #tpu.memory_space<vmem>>, vector<1x128x128xbf16>
    %88 = vector.shape_cast %87 : vector<1x128x128xbf16> to vector<128x128xbf16>
    %cst_78 = arith.constant dense<0.000000e+00> : vector<49x128xf32>
    %89 = tpu.matmul %86, %88, %cst_78 {dimension_numbers = #tpu.dot_dimension_numbers<[1], [0], [0], [1], [0, 0, 1, 1], [], []>} : vector<49x128xbf16>, vector<128x128xbf16>, vector<49x128xf32> -> vector<49x128xf32>
    %90 = arith.addf %82, %89 : vector<49x128xf32>
    %c10 = arith.constant 10 : index
    %c0_79 = arith.constant 0 : index
    %c0_80 = arith.constant 0 : index
    %91 = vector.load %arg4[%c10, %c0_79, %c0_80] : memref<25x49x328xbf16, #tpu.memory_space<vmem>>, vector<1x49x328xbf16>
    %92 = vector.shape_cast %91 : vector<1x49x328xbf16> to vector<49x328xbf16>
    %cst_81 = arith.constant dense<0.000000e+00> : vector<49x128xf32>
    %93 = tpu.matmul %92, %9, %cst_81 {dimension_numbers = #tpu.dot_dimension_numbers<[1], [0], [0], [1], [0, 0, 1, 1], [], []>} : vector<49x328xbf16>, vector<328x128xbf16>, vector<49x128xf32> -> vector<49x128xf32>
    %94 = arith.truncf %93 : vector<49x128xf32> to vector<49x128xbf16>
    %c10_82 = arith.constant 10 : index
    %c0_83 = arith.constant 0 : index
    %c0_84 = arith.constant 0 : index
    %95 = vector.load %arg5[%c10_82, %c0_83, %c0_84] : memref<25x128x128xbf16, #tpu.memory_space<vmem>>, vector<1x128x128xbf16>
    %96 = vector.shape_cast %95 : vector<1x128x128xbf16> to vector<128x128xbf16>
    %cst_85 = arith.constant dense<0.000000e+00> : vector<49x128xf32>
    %97 = tpu.matmul %94, %96, %cst_85 {dimension_numbers = #tpu.dot_dimension_numbers<[1], [0], [0], [1], [0, 0, 1, 1], [], []>} : vector<49x128xbf16>, vector<128x128xbf16>, vector<49x128xf32> -> vector<49x128xf32>
    %98 = arith.addf %90, %97 : vector<49x128xf32>
    %c11 = arith.constant 11 : index
    %c0_86 = arith.constant 0 : index
    %c0_87 = arith.constant 0 : index
    %99 = vector.load %arg4[%c11, %c0_86, %c0_87] : memref<25x49x328xbf16, #tpu.memory_space<vmem>>, vector<1x49x328xbf16>
    %100 = vector.shape_cast %99 : vector<1x49x328xbf16> to vector<49x328xbf16>
    %cst_88 = arith.constant dense<0.000000e+00> : vector<49x128xf32>
    %101 = tpu.matmul %100, %9, %cst_88 {dimension_numbers = #tpu.dot_dimension_numbers<[1], [0], [0], [1], [0, 0, 1, 1], [], []>} : vector<49x328xbf16>, vector<328x128xbf16>, vector<49x128xf32> -> vector<49x128xf32>
    %102 = arith.truncf %101 : vector<49x128xf32> to vector<49x128xbf16>
    %c11_89 = arith.constant 11 : index
    %c0_90 = arith.constant 0 : index
    %c0_91 = arith.constant 0 : index
    %103 = vector.load %arg5[%c11_89, %c0_90, %c0_91] : memref<25x128x128xbf16, #tpu.memory_space<vmem>>, vector<1x128x128xbf16>
    %104 = vector.shape_cast %103 : vector<1x128x128xbf16> to vector<128x128xbf16>
    %cst_92 = arith.constant dense<0.000000e+00> : vector<49x128xf32>
    %105 = tpu.matmul %102, %104, %cst_92 {dimension_numbers = #tpu.dot_dimension_numbers<[1], [0], [0], [1], [0, 0, 1, 1], [], []>} : vector<49x128xbf16>, vector<128x128xbf16>, vector<49x128xf32> -> vector<49x128xf32>
    %106 = arith.addf %98, %105 : vector<49x128xf32>
    %c12 = arith.constant 12 : index
    %c0_93 = arith.constant 0 : index
    %c0_94 = arith.constant 0 : index
    %107 = vector.load %arg4[%c12, %c0_93, %c0_94] : memref<25x49x328xbf16, #tpu.memory_space<vmem>>, vector<1x49x328xbf16>
    %108 = vector.shape_cast %107 : vector<1x49x328xbf16> to vector<49x328xbf16>
    %cst_95 = arith.constant dense<0.000000e+00> : vector<49x128xf32>
    %109 = tpu.matmul %108, %9, %cst_95 {dimension_numbers = #tpu.dot_dimension_numbers<[1], [0], [0], [1], [0, 0, 1, 1], [], []>} : vector<49x328xbf16>, vector<328x128xbf16>, vector<49x128xf32> -> vector<49x128xf32>
    %110 = arith.truncf %109 : vector<49x128xf32> to vector<49x128xbf16>
    %c12_96 = arith.constant 12 : index
    %c0_97 = arith.constant 0 : index
    %c0_98 = arith.constant 0 : index
    %111 = vector.load %arg5[%c12_96, %c0_97, %c0_98] : memref<25x128x128xbf16, #tpu.memory_space<vmem>>, vector<1x128x128xbf16>
    %112 = vector.shape_cast %111 : vector<1x128x128xbf16> to vector<128x128xbf16>
    %cst_99 = arith.constant dense<0.000000e+00> : vector<49x128xf32>
    %113 = tpu.matmul %110, %112, %cst_99 {dimension_numbers = #tpu.dot_dimension_numbers<[1], [0], [0], [1], [0, 0, 1, 1], [], []>} : vector<49x128xbf16>, vector<128x128xbf16>, vector<49x128xf32> -> vector<49x128xf32>
    %114 = arith.addf %106, %113 : vector<49x128xf32>
    %c13 = arith.constant 13 : index
    %c0_100 = arith.constant 0 : index
    %c0_101 = arith.constant 0 : index
    %115 = vector.load %arg4[%c13, %c0_100, %c0_101] : memref<25x49x328xbf16, #tpu.memory_space<vmem>>, vector<1x49x328xbf16>
    %116 = vector.shape_cast %115 : vector<1x49x328xbf16> to vector<49x328xbf16>
    %cst_102 = arith.constant dense<0.000000e+00> : vector<49x128xf32>
    %117 = tpu.matmul %116, %9, %cst_102 {dimension_numbers = #tpu.dot_dimension_numbers<[1], [0], [0], [1], [0, 0, 1, 1], [], []>} : vector<49x328xbf16>, vector<328x128xbf16>, vector<49x128xf32> -> vector<49x128xf32>
    %118 = arith.truncf %117 : vector<49x128xf32> to vector<49x128xbf16>
    %c13_103 = arith.constant 13 : index
    %c0_104 = arith.constant 0 : index
    %c0_105 = arith.constant 0 : index
    %119 = vector.load %arg5[%c13_103, %c0_104, %c0_105] : memref<25x128x128xbf16, #tpu.memory_space<vmem>>, vector<1x128x128xbf16>
    %120 = vector.shape_cast %119 : vector<1x128x128xbf16> to vector<128x128xbf16>
    %cst_106 = arith.constant dense<0.000000e+00> : vector<49x128xf32>
    %121 = tpu.matmul %118, %120, %cst_106 {dimension_numbers = #tpu.dot_dimension_numbers<[1], [0], [0], [1], [0, 0, 1, 1], [], []>} : vector<49x128xbf16>, vector<128x128xbf16>, vector<49x128xf32> -> vector<49x128xf32>
    %122 = arith.addf %114, %121 : vector<49x128xf32>
    %c14 = arith.constant 14 : index
    %c0_107 = arith.constant 0 : index
    %c0_108 = arith.constant 0 : index
    %123 = vector.load %arg4[%c14, %c0_107, %c0_108] : memref<25x49x328xbf16, #tpu.memory_space<vmem>>, vector<1x49x328xbf16>
    %124 = vector.shape_cast %123 : vector<1x49x328xbf16> to vector<49x328xbf16>
    %cst_109 = arith.constant dense<0.000000e+00> : vector<49x128xf32>
    %125 = tpu.matmul %124, %9, %cst_109 {dimension_numbers = #tpu.dot_dimension_numbers<[1], [0], [0], [1], [0, 0, 1, 1], [], []>} : vector<49x328xbf16>, vector<328x128xbf16>, vector<49x128xf32> -> vector<49x128xf32>
    %126 = arith.truncf %125 : vector<49x128xf32> to vector<49x128xbf16>
    %c14_110 = arith.constant 14 : index
    %c0_111 = arith.constant 0 : index
    %c0_112 = arith.constant 0 : index
    %127 = vector.load %arg5[%c14_110, %c0_111, %c0_112] : memref<25x128x128xbf16, #tpu.memory_space<vmem>>, vector<1x128x128xbf16>
    %128 = vector.shape_cast %127 : vector<1x128x128xbf16> to vector<128x128xbf16>
    %cst_113 = arith.constant dense<0.000000e+00> : vector<49x128xf32>
    %129 = tpu.matmul %126, %128, %cst_113 {dimension_numbers = #tpu.dot_dimension_numbers<[1], [0], [0], [1], [0, 0, 1, 1], [], []>} : vector<49x128xbf16>, vector<128x128xbf16>, vector<49x128xf32> -> vector<49x128xf32>
    %130 = arith.addf %122, %129 : vector<49x128xf32>
    %c15 = arith.constant 15 : index
    %c0_114 = arith.constant 0 : index
    %c0_115 = arith.constant 0 : index
    %131 = vector.load %arg4[%c15, %c0_114, %c0_115] : memref<25x49x328xbf16, #tpu.memory_space<vmem>>, vector<1x49x328xbf16>
    %132 = vector.shape_cast %131 : vector<1x49x328xbf16> to vector<49x328xbf16>
    %cst_116 = arith.constant dense<0.000000e+00> : vector<49x128xf32>
    %133 = tpu.matmul %132, %9, %cst_116 {dimension_numbers = #tpu.dot_dimension_numbers<[1], [0], [0], [1], [0, 0, 1, 1], [], []>} : vector<49x328xbf16>, vector<328x128xbf16>, vector<49x128xf32> -> vector<49x128xf32>
    %134 = arith.truncf %133 : vector<49x128xf32> to vector<49x128xbf16>
    %c15_117 = arith.constant 15 : index
    %c0_118 = arith.constant 0 : index
    %c0_119 = arith.constant 0 : index
    %135 = vector.load %arg5[%c15_117, %c0_118, %c0_119] : memref<25x128x128xbf16, #tpu.memory_space<vmem>>, vector<1x128x128xbf16>
    %136 = vector.shape_cast %135 : vector<1x128x128xbf16> to vector<128x128xbf16>
    %cst_120 = arith.constant dense<0.000000e+00> : vector<49x128xf32>
    %137 = tpu.matmul %134, %136, %cst_120 {dimension_numbers = #tpu.dot_dimension_numbers<[1], [0], [0], [1], [0, 0, 1, 1], [], []>} : vector<49x128xbf16>, vector<128x128xbf16>, vector<49x128xf32> -> vector<49x128xf32>
    %138 = arith.addf %130, %137 : vector<49x128xf32>
    %c16 = arith.constant 16 : index
    %c0_121 = arith.constant 0 : index
    %c0_122 = arith.constant 0 : index
    %139 = vector.load %arg4[%c16, %c0_121, %c0_122] : memref<25x49x328xbf16, #tpu.memory_space<vmem>>, vector<1x49x328xbf16>
    %140 = vector.shape_cast %139 : vector<1x49x328xbf16> to vector<49x328xbf16>
    %cst_123 = arith.constant dense<0.000000e+00> : vector<49x128xf32>
    %141 = tpu.matmul %140, %9, %cst_123 {dimension_numbers = #tpu.dot_dimension_numbers<[1], [0], [0], [1], [0, 0, 1, 1], [], []>} : vector<49x328xbf16>, vector<328x128xbf16>, vector<49x128xf32> -> vector<49x128xf32>
    %142 = arith.truncf %141 : vector<49x128xf32> to vector<49x128xbf16>
    %c16_124 = arith.constant 16 : index
    %c0_125 = arith.constant 0 : index
    %c0_126 = arith.constant 0 : index
    %143 = vector.load %arg5[%c16_124, %c0_125, %c0_126] : memref<25x128x128xbf16, #tpu.memory_space<vmem>>, vector<1x128x128xbf16>
    %144 = vector.shape_cast %143 : vector<1x128x128xbf16> to vector<128x128xbf16>
    %cst_127 = arith.constant dense<0.000000e+00> : vector<49x128xf32>
    %145 = tpu.matmul %142, %144, %cst_127 {dimension_numbers = #tpu.dot_dimension_numbers<[1], [0], [0], [1], [0, 0, 1, 1], [], []>} : vector<49x128xbf16>, vector<128x128xbf16>, vector<49x128xf32> -> vector<49x128xf32>
    %146 = arith.addf %138, %145 : vector<49x128xf32>
    %c17 = arith.constant 17 : index
    %c0_128 = arith.constant 0 : index
    %c0_129 = arith.constant 0 : index
    %147 = vector.load %arg4[%c17, %c0_128, %c0_129] : memref<25x49x328xbf16, #tpu.memory_space<vmem>>, vector<1x49x328xbf16>
    %148 = vector.shape_cast %147 : vector<1x49x328xbf16> to vector<49x328xbf16>
    %cst_130 = arith.constant dense<0.000000e+00> : vector<49x128xf32>
    %149 = tpu.matmul %148, %9, %cst_130 {dimension_numbers = #tpu.dot_dimension_numbers<[1], [0], [0], [1], [0, 0, 1, 1], [], []>} : vector<49x328xbf16>, vector<328x128xbf16>, vector<49x128xf32> -> vector<49x128xf32>
    %150 = arith.truncf %149 : vector<49x128xf32> to vector<49x128xbf16>
    %c17_131 = arith.constant 17 : index
    %c0_132 = arith.constant 0 : index
    %c0_133 = arith.constant 0 : index
    %151 = vector.load %arg5[%c17_131, %c0_132, %c0_133] : memref<25x128x128xbf16, #tpu.memory_space<vmem>>, vector<1x128x128xbf16>
    %152 = vector.shape_cast %151 : vector<1x128x128xbf16> to vector<128x128xbf16>
    %cst_134 = arith.constant dense<0.000000e+00> : vector<49x128xf32>
    %153 = tpu.matmul %150, %152, %cst_134 {dimension_numbers = #tpu.dot_dimension_numbers<[1], [0], [0], [1], [0, 0, 1, 1], [], []>} : vector<49x128xbf16>, vector<128x128xbf16>, vector<49x128xf32> -> vector<49x128xf32>
    %154 = arith.addf %146, %153 : vector<49x128xf32>
    %c18 = arith.constant 18 : index
    %c0_135 = arith.constant 0 : index
    %c0_136 = arith.constant 0 : index
    %155 = vector.load %arg4[%c18, %c0_135, %c0_136] : memref<25x49x328xbf16, #tpu.memory_space<vmem>>, vector<1x49x328xbf16>
    %156 = vector.shape_cast %155 : vector<1x49x328xbf16> to vector<49x328xbf16>
    %cst_137 = arith.constant dense<0.000000e+00> : vector<49x128xf32>
    %157 = tpu.matmul %156, %9, %cst_137 {dimension_numbers = #tpu.dot_dimension_numbers<[1], [0], [0], [1], [0, 0, 1, 1], [], []>} : vector<49x328xbf16>, vector<328x128xbf16>, vector<49x128xf32> -> vector<49x128xf32>
    %158 = arith.truncf %157 : vector<49x128xf32> to vector<49x128xbf16>
    %c18_138 = arith.constant 18 : index
    %c0_139 = arith.constant 0 : index
    %c0_140 = arith.constant 0 : index
    %159 = vector.load %arg5[%c18_138, %c0_139, %c0_140] : memref<25x128x128xbf16, #tpu.memory_space<vmem>>, vector<1x128x128xbf16>
    %160 = vector.shape_cast %159 : vector<1x128x128xbf16> to vector<128x128xbf16>
    %cst_141 = arith.constant dense<0.000000e+00> : vector<49x128xf32>
    %161 = tpu.matmul %158, %160, %cst_141 {dimension_numbers = #tpu.dot_dimension_numbers<[1], [0], [0], [1], [0, 0, 1, 1], [], []>} : vector<49x128xbf16>, vector<128x128xbf16>, vector<49x128xf32> -> vector<49x128xf32>
    %162 = arith.addf %154, %161 : vector<49x128xf32>
    %c19 = arith.constant 19 : index
    %c0_142 = arith.constant 0 : index
    %c0_143 = arith.constant 0 : index
    %163 = vector.load %arg4[%c19, %c0_142, %c0_143] : memref<25x49x328xbf16, #tpu.memory_space<vmem>>, vector<1x49x328xbf16>
    %164 = vector.shape_cast %163 : vector<1x49x328xbf16> to vector<49x328xbf16>
    %cst_144 = arith.constant dense<0.000000e+00> : vector<49x128xf32>
    %165 = tpu.matmul %164, %9, %cst_144 {dimension_numbers = #tpu.dot_dimension_numbers<[1], [0], [0], [1], [0, 0, 1, 1], [], []>} : vector<49x328xbf16>, vector<328x128xbf16>, vector<49x128xf32> -> vector<49x128xf32>
    %166 = arith.truncf %165 : vector<49x128xf32> to vector<49x128xbf16>
    %c19_145 = arith.constant 19 : index
    %c0_146 = arith.constant 0 : index
    %c0_147 = arith.constant 0 : index
    %167 = vector.load %arg5[%c19_145, %c0_146, %c0_147] : memref<25x128x128xbf16, #tpu.memory_space<vmem>>, vector<1x128x128xbf16>
    %168 = vector.shape_cast %167 : vector<1x128x128xbf16> to vector<128x128xbf16>
    %cst_148 = arith.constant dense<0.000000e+00> : vector<49x128xf32>
    %169 = tpu.matmul %166, %168, %cst_148 {dimension_numbers = #tpu.dot_dimension_numbers<[1], [0], [0], [1], [0, 0, 1, 1], [], []>} : vector<49x128xbf16>, vector<128x128xbf16>, vector<49x128xf32> -> vector<49x128xf32>
    %170 = arith.addf %162, %169 : vector<49x128xf32>
    %c20 = arith.constant 20 : index
    %c0_149 = arith.constant 0 : index
    %c0_150 = arith.constant 0 : index
    %171 = vector.load %arg4[%c20, %c0_149, %c0_150] : memref<25x49x328xbf16, #tpu.memory_space<vmem>>, vector<1x49x328xbf16>
    %172 = vector.shape_cast %171 : vector<1x49x328xbf16> to vector<49x328xbf16>
    %cst_151 = arith.constant dense<0.000000e+00> : vector<49x128xf32>
    %173 = tpu.matmul %172, %9, %cst_151 {dimension_numbers = #tpu.dot_dimension_numbers<[1], [0], [0], [1], [0, 0, 1, 1], [], []>} : vector<49x328xbf16>, vector<328x128xbf16>, vector<49x128xf32> -> vector<49x128xf32>
    %174 = arith.truncf %173 : vector<49x128xf32> to vector<49x128xbf16>
    %c20_152 = arith.constant 20 : index
    %c0_153 = arith.constant 0 : index
    %c0_154 = arith.constant 0 : index
    %175 = vector.load %arg5[%c20_152, %c0_153, %c0_154] : memref<25x128x128xbf16, #tpu.memory_space<vmem>>, vector<1x128x128xbf16>
    %176 = vector.shape_cast %175 : vector<1x128x128xbf16> to vector<128x128xbf16>
    %cst_155 = arith.constant dense<0.000000e+00> : vector<49x128xf32>
    %177 = tpu.matmul %174, %176, %cst_155 {dimension_numbers = #tpu.dot_dimension_numbers<[1], [0], [0], [1], [0, 0, 1, 1], [], []>} : vector<49x128xbf16>, vector<128x128xbf16>, vector<49x128xf32> -> vector<49x128xf32>
    %178 = arith.addf %170, %177 : vector<49x128xf32>
    %c21 = arith.constant 21 : index
    %c0_156 = arith.constant 0 : index
    %c0_157 = arith.constant 0 : index
    %179 = vector.load %arg4[%c21, %c0_156, %c0_157] : memref<25x49x328xbf16, #tpu.memory_space<vmem>>, vector<1x49x328xbf16>
    %180 = vector.shape_cast %179 : vector<1x49x328xbf16> to vector<49x328xbf16>
    %cst_158 = arith.constant dense<0.000000e+00> : vector<49x128xf32>
    %181 = tpu.matmul %180, %9, %cst_158 {dimension_numbers = #tpu.dot_dimension_numbers<[1], [0], [0], [1], [0, 0, 1, 1], [], []>} : vector<49x328xbf16>, vector<328x128xbf16>, vector<49x128xf32> -> vector<49x128xf32>
    %182 = arith.truncf %181 : vector<49x128xf32> to vector<49x128xbf16>
    %c21_159 = arith.constant 21 : index
    %c0_160 = arith.constant 0 : index
    %c0_161 = arith.constant 0 : index
    %183 = vector.load %arg5[%c21_159, %c0_160, %c0_161] : memref<25x128x128xbf16, #tpu.memory_space<vmem>>, vector<1x128x128xbf16>
    %184 = vector.shape_cast %183 : vector<1x128x128xbf16> to vector<128x128xbf16>
    %cst_162 = arith.constant dense<0.000000e+00> : vector<49x128xf32>
    %185 = tpu.matmul %182, %184, %cst_162 {dimension_numbers = #tpu.dot_dimension_numbers<[1], [0], [0], [1], [0, 0, 1, 1], [], []>} : vector<49x128xbf16>, vector<128x128xbf16>, vector<49x128xf32> -> vector<49x128xf32>
    %186 = arith.addf %178, %185 : vector<49x128xf32>
    %c22 = arith.constant 22 : index
    %c0_163 = arith.constant 0 : index
    %c0_164 = arith.constant 0 : index
    %187 = vector.load %arg4[%c22, %c0_163, %c0_164] : memref<25x49x328xbf16, #tpu.memory_space<vmem>>, vector<1x49x328xbf16>
    %188 = vector.shape_cast %187 : vector<1x49x328xbf16> to vector<49x328xbf16>
    %cst_165 = arith.constant dense<0.000000e+00> : vector<49x128xf32>
    %189 = tpu.matmul %188, %9, %cst_165 {dimension_numbers = #tpu.dot_dimension_numbers<[1], [0], [0], [1], [0, 0, 1, 1], [], []>} : vector<49x328xbf16>, vector<328x128xbf16>, vector<49x128xf32> -> vector<49x128xf32>
    %190 = arith.truncf %189 : vector<49x128xf32> to vector<49x128xbf16>
    %c22_166 = arith.constant 22 : index
    %c0_167 = arith.constant 0 : index
    %c0_168 = arith.constant 0 : index
    %191 = vector.load %arg5[%c22_166, %c0_167, %c0_168] : memref<25x128x128xbf16, #tpu.memory_space<vmem>>, vector<1x128x128xbf16>
    %192 = vector.shape_cast %191 : vector<1x128x128xbf16> to vector<128x128xbf16>
    %cst_169 = arith.constant dense<0.000000e+00> : vector<49x128xf32>
    %193 = tpu.matmul %190, %192, %cst_169 {dimension_numbers = #tpu.dot_dimension_numbers<[1], [0], [0], [1], [0, 0, 1, 1], [], []>} : vector<49x128xbf16>, vector<128x128xbf16>, vector<49x128xf32> -> vector<49x128xf32>
    %194 = arith.addf %186, %193 : vector<49x128xf32>
    %c23 = arith.constant 23 : index
    %c0_170 = arith.constant 0 : index
    %c0_171 = arith.constant 0 : index
    %195 = vector.load %arg4[%c23, %c0_170, %c0_171] : memref<25x49x328xbf16, #tpu.memory_space<vmem>>, vector<1x49x328xbf16>
    %196 = vector.shape_cast %195 : vector<1x49x328xbf16> to vector<49x328xbf16>
    %cst_172 = arith.constant dense<0.000000e+00> : vector<49x128xf32>
    %197 = tpu.matmul %196, %9, %cst_172 {dimension_numbers = #tpu.dot_dimension_numbers<[1], [0], [0], [1], [0, 0, 1, 1], [], []>} : vector<49x328xbf16>, vector<328x128xbf16>, vector<49x128xf32> -> vector<49x128xf32>
    %198 = arith.truncf %197 : vector<49x128xf32> to vector<49x128xbf16>
    %c23_173 = arith.constant 23 : index
    %c0_174 = arith.constant 0 : index
    %c0_175 = arith.constant 0 : index
    %199 = vector.load %arg5[%c23_173, %c0_174, %c0_175] : memref<25x128x128xbf16, #tpu.memory_space<vmem>>, vector<1x128x128xbf16>
    %200 = vector.shape_cast %199 : vector<1x128x128xbf16> to vector<128x128xbf16>
    %cst_176 = arith.constant dense<0.000000e+00> : vector<49x128xf32>
    %201 = tpu.matmul %198, %200, %cst_176 {dimension_numbers = #tpu.dot_dimension_numbers<[1], [0], [0], [1], [0, 0, 1, 1], [], []>} : vector<49x128xbf16>, vector<128x128xbf16>, vector<49x128xf32> -> vector<49x128xf32>
    %202 = arith.addf %194, %201 : vector<49x128xf32>
    %c24 = arith.constant 24 : index
    %c0_177 = arith.constant 0 : index
    %c0_178 = arith.constant 0 : index
    %203 = vector.load %arg4[%c24, %c0_177, %c0_178] : memref<25x49x328xbf16, #tpu.memory_space<vmem>>, vector<1x49x328xbf16>
    %204 = vector.shape_cast %203 : vector<1x49x328xbf16> to vector<49x328xbf16>
    %cst_179 = arith.constant dense<0.000000e+00> : vector<49x128xf32>
    %205 = tpu.matmul %204, %9, %cst_179 {dimension_numbers = #tpu.dot_dimension_numbers<[1], [0], [0], [1], [0, 0, 1, 1], [], []>} : vector<49x328xbf16>, vector<328x128xbf16>, vector<49x128xf32> -> vector<49x128xf32>
    %206 = arith.truncf %205 : vector<49x128xf32> to vector<49x128xbf16>
    %c24_180 = arith.constant 24 : index
    %c0_181 = arith.constant 0 : index
    %c0_182 = arith.constant 0 : index
    %207 = vector.load %arg5[%c24_180, %c0_181, %c0_182] : memref<25x128x128xbf16, #tpu.memory_space<vmem>>, vector<1x128x128xbf16>
    %208 = vector.shape_cast %207 : vector<1x128x128xbf16> to vector<128x128xbf16>
    %cst_183 = arith.constant dense<0.000000e+00> : vector<49x128xf32>
    %209 = tpu.matmul %206, %208, %cst_183 {dimension_numbers = #tpu.dot_dimension_numbers<[1], [0], [0], [1], [0, 0, 1, 1], [], []>} : vector<49x128xbf16>, vector<128x128xbf16>, vector<49x128xf32> -> vector<49x128xf32>
    %210 = arith.addf %202, %209 : vector<49x128xf32>
    %c0_184 = arith.constant 0 : index
    %c0_185 = arith.constant 0 : index
    %211 = vector.load %arg6[%c0_184, %c0_185] : memref<1x128xf32, #tpu.memory_space<vmem>>, vector<1x128xf32>
    %212 = vector.broadcast %211 : vector<1x128xf32> to vector<49x128xf32>
    %213 = arith.addf %210, %212 : vector<49x128xf32>
    %cst_186 = arith.constant 0.000000e+00 : f32
    %214 = vector.broadcast %cst_186 : f32 to vector<49x128xf32>
    %215 = arith.maximumf %213, %214 : vector<49x128xf32>
    %216 = arith.truncf %215 : vector<49x128xf32> to vector<49x128xbf16>
    %cst_187 = arith.constant 0.000000e+00 : f32
    %217 = vector.broadcast %cst_187 : f32 to vector<4x128xf32>
    %c0_188 = arith.constant 0 : index
    %c0_189 = arith.constant 0 : index
    %c0_190 = arith.constant 0 : index
    %218 = vector.load %arg7[%c0_188, %c0_189, %c0_190] : memref<25x4x49xbf16, #tpu.memory_space<vmem>>, vector<1x4x49xbf16>
    %219 = vector.shape_cast %218 : vector<1x4x49xbf16> to vector<4x49xbf16>
    %cst_191 = arith.constant dense<0.000000e+00> : vector<4x128xf32>
    %220 = tpu.matmul %219, %216, %cst_191 {dimension_numbers = #tpu.dot_dimension_numbers<[1], [0], [0], [1], [0, 0, 1, 1], [], []>} : vector<4x49xbf16>, vector<49x128xbf16>, vector<4x128xf32> -> vector<4x128xf32>
    %221 = arith.truncf %220 : vector<4x128xf32> to vector<4x128xbf16>
    %c0_192 = arith.constant 0 : index
    %c0_193 = arith.constant 0 : index
    %c0_194 = arith.constant 0 : index
    %222 = vector.load %arg8[%c0_192, %c0_193, %c0_194] : memref<25x128x128xbf16, #tpu.memory_space<vmem>>, vector<1x128x128xbf16>
    %223 = vector.shape_cast %222 : vector<1x128x128xbf16> to vector<128x128xbf16>
    %cst_195 = arith.constant dense<0.000000e+00> : vector<4x128xf32>
    %224 = tpu.matmul %221, %223, %cst_195 {dimension_numbers = #tpu.dot_dimension_numbers<[1], [0], [0], [1], [0, 0, 1, 1], [], []>} : vector<4x128xbf16>, vector<128x128xbf16>, vector<4x128xf32> -> vector<4x128xf32>
    %225 = arith.addf %217, %224 : vector<4x128xf32>
    %c1_196 = arith.constant 1 : index
    %c0_197 = arith.constant 0 : index
    %c0_198 = arith.constant 0 : index
    %226 = vector.load %arg7[%c1_196, %c0_197, %c0_198] : memref<25x4x49xbf16, #tpu.memory_space<vmem>>, vector<1x4x49xbf16>
    %227 = vector.shape_cast %226 : vector<1x4x49xbf16> to vector<4x49xbf16>
    %cst_199 = arith.constant dense<0.000000e+00> : vector<4x128xf32>
    %228 = tpu.matmul %227, %216, %cst_199 {dimension_numbers = #tpu.dot_dimension_numbers<[1], [0], [0], [1], [0, 0, 1, 1], [], []>} : vector<4x49xbf16>, vector<49x128xbf16>, vector<4x128xf32> -> vector<4x128xf32>
    %229 = arith.truncf %228 : vector<4x128xf32> to vector<4x128xbf16>
    %c1_200 = arith.constant 1 : index
    %c0_201 = arith.constant 0 : index
    %c0_202 = arith.constant 0 : index
    %230 = vector.load %arg8[%c1_200, %c0_201, %c0_202] : memref<25x128x128xbf16, #tpu.memory_space<vmem>>, vector<1x128x128xbf16>
    %231 = vector.shape_cast %230 : vector<1x128x128xbf16> to vector<128x128xbf16>
    %cst_203 = arith.constant dense<0.000000e+00> : vector<4x128xf32>
    %232 = tpu.matmul %229, %231, %cst_203 {dimension_numbers = #tpu.dot_dimension_numbers<[1], [0], [0], [1], [0, 0, 1, 1], [], []>} : vector<4x128xbf16>, vector<128x128xbf16>, vector<4x128xf32> -> vector<4x128xf32>
    %233 = arith.addf %225, %232 : vector<4x128xf32>
    %c2_204 = arith.constant 2 : index
    %c0_205 = arith.constant 0 : index
    %c0_206 = arith.constant 0 : index
    %234 = vector.load %arg7[%c2_204, %c0_205, %c0_206] : memref<25x4x49xbf16, #tpu.memory_space<vmem>>, vector<1x4x49xbf16>
    %235 = vector.shape_cast %234 : vector<1x4x49xbf16> to vector<4x49xbf16>
    %cst_207 = arith.constant dense<0.000000e+00> : vector<4x128xf32>
    %236 = tpu.matmul %235, %216, %cst_207 {dimension_numbers = #tpu.dot_dimension_numbers<[1], [0], [0], [1], [0, 0, 1, 1], [], []>} : vector<4x49xbf16>, vector<49x128xbf16>, vector<4x128xf32> -> vector<4x128xf32>
    %237 = arith.truncf %236 : vector<4x128xf32> to vector<4x128xbf16>
    %c2_208 = arith.constant 2 : index
    %c0_209 = arith.constant 0 : index
    %c0_210 = arith.constant 0 : index
    %238 = vector.load %arg8[%c2_208, %c0_209, %c0_210] : memref<25x128x128xbf16, #tpu.memory_space<vmem>>, vector<1x128x128xbf16>
    %239 = vector.shape_cast %238 : vector<1x128x128xbf16> to vector<128x128xbf16>
    %cst_211 = arith.constant dense<0.000000e+00> : vector<4x128xf32>
    %240 = tpu.matmul %237, %239, %cst_211 {dimension_numbers = #tpu.dot_dimension_numbers<[1], [0], [0], [1], [0, 0, 1, 1], [], []>} : vector<4x128xbf16>, vector<128x128xbf16>, vector<4x128xf32> -> vector<4x128xf32>
    %241 = arith.addf %233, %240 : vector<4x128xf32>
    %c3_212 = arith.constant 3 : index
    %c0_213 = arith.constant 0 : index
    %c0_214 = arith.constant 0 : index
    %242 = vector.load %arg7[%c3_212, %c0_213, %c0_214] : memref<25x4x49xbf16, #tpu.memory_space<vmem>>, vector<1x4x49xbf16>
    %243 = vector.shape_cast %242 : vector<1x4x49xbf16> to vector<4x49xbf16>
    %cst_215 = arith.constant dense<0.000000e+00> : vector<4x128xf32>
    %244 = tpu.matmul %243, %216, %cst_215 {dimension_numbers = #tpu.dot_dimension_numbers<[1], [0], [0], [1], [0, 0, 1, 1], [], []>} : vector<4x49xbf16>, vector<49x128xbf16>, vector<4x128xf32> -> vector<4x128xf32>
    %245 = arith.truncf %244 : vector<4x128xf32> to vector<4x128xbf16>
    %c3_216 = arith.constant 3 : index
    %c0_217 = arith.constant 0 : index
    %c0_218 = arith.constant 0 : index
    %246 = vector.load %arg8[%c3_216, %c0_217, %c0_218] : memref<25x128x128xbf16, #tpu.memory_space<vmem>>, vector<1x128x128xbf16>
    %247 = vector.shape_cast %246 : vector<1x128x128xbf16> to vector<128x128xbf16>
    %cst_219 = arith.constant dense<0.000000e+00> : vector<4x128xf32>
    %248 = tpu.matmul %245, %247, %cst_219 {dimension_numbers = #tpu.dot_dimension_numbers<[1], [0], [0], [1], [0, 0, 1, 1], [], []>} : vector<4x128xbf16>, vector<128x128xbf16>, vector<4x128xf32> -> vector<4x128xf32>
    %249 = arith.addf %241, %248 : vector<4x128xf32>
    %c4_220 = arith.constant 4 : index
    %c0_221 = arith.constant 0 : index
    %c0_222 = arith.constant 0 : index
    %250 = vector.load %arg7[%c4_220, %c0_221, %c0_222] : memref<25x4x49xbf16, #tpu.memory_space<vmem>>, vector<1x4x49xbf16>
    %251 = vector.shape_cast %250 : vector<1x4x49xbf16> to vector<4x49xbf16>
    %cst_223 = arith.constant dense<0.000000e+00> : vector<4x128xf32>
    %252 = tpu.matmul %251, %216, %cst_223 {dimension_numbers = #tpu.dot_dimension_numbers<[1], [0], [0], [1], [0, 0, 1, 1], [], []>} : vector<4x49xbf16>, vector<49x128xbf16>, vector<4x128xf32> -> vector<4x128xf32>
    %253 = arith.truncf %252 : vector<4x128xf32> to vector<4x128xbf16>
    %c4_224 = arith.constant 4 : index
    %c0_225 = arith.constant 0 : index
    %c0_226 = arith.constant 0 : index
    %254 = vector.load %arg8[%c4_224, %c0_225, %c0_226] : memref<25x128x128xbf16, #tpu.memory_space<vmem>>, vector<1x128x128xbf16>
    %255 = vector.shape_cast %254 : vector<1x128x128xbf16> to vector<128x128xbf16>
    %cst_227 = arith.constant dense<0.000000e+00> : vector<4x128xf32>
    %256 = tpu.matmul %253, %255, %cst_227 {dimension_numbers = #tpu.dot_dimension_numbers<[1], [0], [0], [1], [0, 0, 1, 1], [], []>} : vector<4x128xbf16>, vector<128x128xbf16>, vector<4x128xf32> -> vector<4x128xf32>
    %257 = arith.addf %249, %256 : vector<4x128xf32>
    %c5_228 = arith.constant 5 : index
    %c0_229 = arith.constant 0 : index
    %c0_230 = arith.constant 0 : index
    %258 = vector.load %arg7[%c5_228, %c0_229, %c0_230] : memref<25x4x49xbf16, #tpu.memory_space<vmem>>, vector<1x4x49xbf16>
    %259 = vector.shape_cast %258 : vector<1x4x49xbf16> to vector<4x49xbf16>
    %cst_231 = arith.constant dense<0.000000e+00> : vector<4x128xf32>
    %260 = tpu.matmul %259, %216, %cst_231 {dimension_numbers = #tpu.dot_dimension_numbers<[1], [0], [0], [1], [0, 0, 1, 1], [], []>} : vector<4x49xbf16>, vector<49x128xbf16>, vector<4x128xf32> -> vector<4x128xf32>
    %261 = arith.truncf %260 : vector<4x128xf32> to vector<4x128xbf16>
    %c5_232 = arith.constant 5 : index
    %c0_233 = arith.constant 0 : index
    %c0_234 = arith.constant 0 : index
    %262 = vector.load %arg8[%c5_232, %c0_233, %c0_234] : memref<25x128x128xbf16, #tpu.memory_space<vmem>>, vector<1x128x128xbf16>
    %263 = vector.shape_cast %262 : vector<1x128x128xbf16> to vector<128x128xbf16>
    %cst_235 = arith.constant dense<0.000000e+00> : vector<4x128xf32>
    %264 = tpu.matmul %261, %263, %cst_235 {dimension_numbers = #tpu.dot_dimension_numbers<[1], [0], [0], [1], [0, 0, 1, 1], [], []>} : vector<4x128xbf16>, vector<128x128xbf16>, vector<4x128xf32> -> vector<4x128xf32>
    %265 = arith.addf %257, %264 : vector<4x128xf32>
    %c6_236 = arith.constant 6 : index
    %c0_237 = arith.constant 0 : index
    %c0_238 = arith.constant 0 : index
    %266 = vector.load %arg7[%c6_236, %c0_237, %c0_238] : memref<25x4x49xbf16, #tpu.memory_space<vmem>>, vector<1x4x49xbf16>
    %267 = vector.shape_cast %266 : vector<1x4x49xbf16> to vector<4x49xbf16>
    %cst_239 = arith.constant dense<0.000000e+00> : vector<4x128xf32>
    %268 = tpu.matmul %267, %216, %cst_239 {dimension_numbers = #tpu.dot_dimension_numbers<[1], [0], [0], [1], [0, 0, 1, 1], [], []>} : vector<4x49xbf16>, vector<49x128xbf16>, vector<4x128xf32> -> vector<4x128xf32>
    %269 = arith.truncf %268 : vector<4x128xf32> to vector<4x128xbf16>
    %c6_240 = arith.constant 6 : index
    %c0_241 = arith.constant 0 : index
    %c0_242 = arith.constant 0 : index
    %270 = vector.load %arg8[%c6_240, %c0_241, %c0_242] : memref<25x128x128xbf16, #tpu.memory_space<vmem>>, vector<1x128x128xbf16>
    %271 = vector.shape_cast %270 : vector<1x128x128xbf16> to vector<128x128xbf16>
    %cst_243 = arith.constant dense<0.000000e+00> : vector<4x128xf32>
    %272 = tpu.matmul %269, %271, %cst_243 {dimension_numbers = #tpu.dot_dimension_numbers<[1], [0], [0], [1], [0, 0, 1, 1], [], []>} : vector<4x128xbf16>, vector<128x128xbf16>, vector<4x128xf32> -> vector<4x128xf32>
    %273 = arith.addf %265, %272 : vector<4x128xf32>
    %c7_244 = arith.constant 7 : index
    %c0_245 = arith.constant 0 : index
    %c0_246 = arith.constant 0 : index
    %274 = vector.load %arg7[%c7_244, %c0_245, %c0_246] : memref<25x4x49xbf16, #tpu.memory_space<vmem>>, vector<1x4x49xbf16>
    %275 = vector.shape_cast %274 : vector<1x4x49xbf16> to vector<4x49xbf16>
    %cst_247 = arith.constant dense<0.000000e+00> : vector<4x128xf32>
    %276 = tpu.matmul %275, %216, %cst_247 {dimension_numbers = #tpu.dot_dimension_numbers<[1], [0], [0], [1], [0, 0, 1, 1], [], []>} : vector<4x49xbf16>, vector<49x128xbf16>, vector<4x128xf32> -> vector<4x128xf32>
    %277 = arith.truncf %276 : vector<4x128xf32> to vector<4x128xbf16>
    %c7_248 = arith.constant 7 : index
    %c0_249 = arith.constant 0 : index
    %c0_250 = arith.constant 0 : index
    %278 = vector.load %arg8[%c7_248, %c0_249, %c0_250] : memref<25x128x128xbf16, #tpu.memory_space<vmem>>, vector<1x128x128xbf16>
    %279 = vector.shape_cast %278 : vector<1x128x128xbf16> to vector<128x128xbf16>
    %cst_251 = arith.constant dense<0.000000e+00> : vector<4x128xf32>
    %280 = tpu.matmul %277, %279, %cst_251 {dimension_numbers = #tpu.dot_dimension_numbers<[1], [0], [0], [1], [0, 0, 1, 1], [], []>} : vector<4x128xbf16>, vector<128x128xbf16>, vector<4x128xf32> -> vector<4x128xf32>
    %281 = arith.addf %273, %280 : vector<4x128xf32>
    %c8_252 = arith.constant 8 : index
    %c0_253 = arith.constant 0 : index
    %c0_254 = arith.constant 0 : index
    %282 = vector.load %arg7[%c8_252, %c0_253, %c0_254] : memref<25x4x49xbf16, #tpu.memory_space<vmem>>, vector<1x4x49xbf16>
    %283 = vector.shape_cast %282 : vector<1x4x49xbf16> to vector<4x49xbf16>
    %cst_255 = arith.constant dense<0.000000e+00> : vector<4x128xf32>
    %284 = tpu.matmul %283, %216, %cst_255 {dimension_numbers = #tpu.dot_dimension_numbers<[1], [0], [0], [1], [0, 0, 1, 1], [], []>} : vector<4x49xbf16>, vector<49x128xbf16>, vector<4x128xf32> -> vector<4x128xf32>
    %285 = arith.truncf %284 : vector<4x128xf32> to vector<4x128xbf16>
    %c8_256 = arith.constant 8 : index
    %c0_257 = arith.constant 0 : index
    %c0_258 = arith.constant 0 : index
    %286 = vector.load %arg8[%c8_256, %c0_257, %c0_258] : memref<25x128x128xbf16, #tpu.memory_space<vmem>>, vector<1x128x128xbf16>
    %287 = vector.shape_cast %286 : vector<1x128x128xbf16> to vector<128x128xbf16>
    %cst_259 = arith.constant dense<0.000000e+00> : vector<4x128xf32>
    %288 = tpu.matmul %285, %287, %cst_259 {dimension_numbers = #tpu.dot_dimension_numbers<[1], [0], [0], [1], [0, 0, 1, 1], [], []>} : vector<4x128xbf16>, vector<128x128xbf16>, vector<4x128xf32> -> vector<4x128xf32>
    %289 = arith.addf %281, %288 : vector<4x128xf32>
    %c9_260 = arith.constant 9 : index
    %c0_261 = arith.constant 0 : index
    %c0_262 = arith.constant 0 : index
    %290 = vector.load %arg7[%c9_260, %c0_261, %c0_262] : memref<25x4x49xbf16, #tpu.memory_space<vmem>>, vector<1x4x49xbf16>
    %291 = vector.shape_cast %290 : vector<1x4x49xbf16> to vector<4x49xbf16>
    %cst_263 = arith.constant dense<0.000000e+00> : vector<4x128xf32>
    %292 = tpu.matmul %291, %216, %cst_263 {dimension_numbers = #tpu.dot_dimension_numbers<[1], [0], [0], [1], [0, 0, 1, 1], [], []>} : vector<4x49xbf16>, vector<49x128xbf16>, vector<4x128xf32> -> vector<4x128xf32>
    %293 = arith.truncf %292 : vector<4x128xf32> to vector<4x128xbf16>
    %c9_264 = arith.constant 9 : index
    %c0_265 = arith.constant 0 : index
    %c0_266 = arith.constant 0 : index
    %294 = vector.load %arg8[%c9_264, %c0_265, %c0_266] : memref<25x128x128xbf16, #tpu.memory_space<vmem>>, vector<1x128x128xbf16>
    %295 = vector.shape_cast %294 : vector<1x128x128xbf16> to vector<128x128xbf16>
    %cst_267 = arith.constant dense<0.000000e+00> : vector<4x128xf32>
    %296 = tpu.matmul %293, %295, %cst_267 {dimension_numbers = #tpu.dot_dimension_numbers<[1], [0], [0], [1], [0, 0, 1, 1], [], []>} : vector<4x128xbf16>, vector<128x128xbf16>, vector<4x128xf32> -> vector<4x128xf32>
    %297 = arith.addf %289, %296 : vector<4x128xf32>
    %c10_268 = arith.constant 10 : index
    %c0_269 = arith.constant 0 : index
    %c0_270 = arith.constant 0 : index
    %298 = vector.load %arg7[%c10_268, %c0_269, %c0_270] : memref<25x4x49xbf16, #tpu.memory_space<vmem>>, vector<1x4x49xbf16>
    %299 = vector.shape_cast %298 : vector<1x4x49xbf16> to vector<4x49xbf16>
    %cst_271 = arith.constant dense<0.000000e+00> : vector<4x128xf32>
    %300 = tpu.matmul %299, %216, %cst_271 {dimension_numbers = #tpu.dot_dimension_numbers<[1], [0], [0], [1], [0, 0, 1, 1], [], []>} : vector<4x49xbf16>, vector<49x128xbf16>, vector<4x128xf32> -> vector<4x128xf32>
    %301 = arith.truncf %300 : vector<4x128xf32> to vector<4x128xbf16>
    %c10_272 = arith.constant 10 : index
    %c0_273 = arith.constant 0 : index
    %c0_274 = arith.constant 0 : index
    %302 = vector.load %arg8[%c10_272, %c0_273, %c0_274] : memref<25x128x128xbf16, #tpu.memory_space<vmem>>, vector<1x128x128xbf16>
    %303 = vector.shape_cast %302 : vector<1x128x128xbf16> to vector<128x128xbf16>
    %cst_275 = arith.constant dense<0.000000e+00> : vector<4x128xf32>
    %304 = tpu.matmul %301, %303, %cst_275 {dimension_numbers = #tpu.dot_dimension_numbers<[1], [0], [0], [1], [0, 0, 1, 1], [], []>} : vector<4x128xbf16>, vector<128x128xbf16>, vector<4x128xf32> -> vector<4x128xf32>
    %305 = arith.addf %297, %304 : vector<4x128xf32>
    %c11_276 = arith.constant 11 : index
    %c0_277 = arith.constant 0 : index
    %c0_278 = arith.constant 0 : index
    %306 = vector.load %arg7[%c11_276, %c0_277, %c0_278] : memref<25x4x49xbf16, #tpu.memory_space<vmem>>, vector<1x4x49xbf16>
    %307 = vector.shape_cast %306 : vector<1x4x49xbf16> to vector<4x49xbf16>
    %cst_279 = arith.constant dense<0.000000e+00> : vector<4x128xf32>
    %308 = tpu.matmul %307, %216, %cst_279 {dimension_numbers = #tpu.dot_dimension_numbers<[1], [0], [0], [1], [0, 0, 1, 1], [], []>} : vector<4x49xbf16>, vector<49x128xbf16>, vector<4x128xf32> -> vector<4x128xf32>
    %309 = arith.truncf %308 : vector<4x128xf32> to vector<4x128xbf16>
    %c11_280 = arith.constant 11 : index
    %c0_281 = arith.constant 0 : index
    %c0_282 = arith.constant 0 : index
    %310 = vector.load %arg8[%c11_280, %c0_281, %c0_282] : memref<25x128x128xbf16, #tpu.memory_space<vmem>>, vector<1x128x128xbf16>
    %311 = vector.shape_cast %310 : vector<1x128x128xbf16> to vector<128x128xbf16>
    %cst_283 = arith.constant dense<0.000000e+00> : vector<4x128xf32>
    %312 = tpu.matmul %309, %311, %cst_283 {dimension_numbers = #tpu.dot_dimension_numbers<[1], [0], [0], [1], [0, 0, 1, 1], [], []>} : vector<4x128xbf16>, vector<128x128xbf16>, vector<4x128xf32> -> vector<4x128xf32>
    %313 = arith.addf %305, %312 : vector<4x128xf32>
    %c12_284 = arith.constant 12 : index
    %c0_285 = arith.constant 0 : index
    %c0_286 = arith.constant 0 : index
    %314 = vector.load %arg7[%c12_284, %c0_285, %c0_286] : memref<25x4x49xbf16, #tpu.memory_space<vmem>>, vector<1x4x49xbf16>
    %315 = vector.shape_cast %314 : vector<1x4x49xbf16> to vector<4x49xbf16>
    %cst_287 = arith.constant dense<0.000000e+00> : vector<4x128xf32>
    %316 = tpu.matmul %315, %216, %cst_287 {dimension_numbers = #tpu.dot_dimension_numbers<[1], [0], [0], [1], [0, 0, 1, 1], [], []>} : vector<4x49xbf16>, vector<49x128xbf16>, vector<4x128xf32> -> vector<4x128xf32>
    %317 = arith.truncf %316 : vector<4x128xf32> to vector<4x128xbf16>
    %c12_288 = arith.constant 12 : index
    %c0_289 = arith.constant 0 : index
    %c0_290 = arith.constant 0 : index
    %318 = vector.load %arg8[%c12_288, %c0_289, %c0_290] : memref<25x128x128xbf16, #tpu.memory_space<vmem>>, vector<1x128x128xbf16>
    %319 = vector.shape_cast %318 : vector<1x128x128xbf16> to vector<128x128xbf16>
    %cst_291 = arith.constant dense<0.000000e+00> : vector<4x128xf32>
    %320 = tpu.matmul %317, %319, %cst_291 {dimension_numbers = #tpu.dot_dimension_numbers<[1], [0], [0], [1], [0, 0, 1, 1], [], []>} : vector<4x128xbf16>, vector<128x128xbf16>, vector<4x128xf32> -> vector<4x128xf32>
    %321 = arith.addf %313, %320 : vector<4x128xf32>
    %c13_292 = arith.constant 13 : index
    %c0_293 = arith.constant 0 : index
    %c0_294 = arith.constant 0 : index
    %322 = vector.load %arg7[%c13_292, %c0_293, %c0_294] : memref<25x4x49xbf16, #tpu.memory_space<vmem>>, vector<1x4x49xbf16>
    %323 = vector.shape_cast %322 : vector<1x4x49xbf16> to vector<4x49xbf16>
    %cst_295 = arith.constant dense<0.000000e+00> : vector<4x128xf32>
    %324 = tpu.matmul %323, %216, %cst_295 {dimension_numbers = #tpu.dot_dimension_numbers<[1], [0], [0], [1], [0, 0, 1, 1], [], []>} : vector<4x49xbf16>, vector<49x128xbf16>, vector<4x128xf32> -> vector<4x128xf32>
    %325 = arith.truncf %324 : vector<4x128xf32> to vector<4x128xbf16>
    %c13_296 = arith.constant 13 : index
    %c0_297 = arith.constant 0 : index
    %c0_298 = arith.constant 0 : index
    %326 = vector.load %arg8[%c13_296, %c0_297, %c0_298] : memref<25x128x128xbf16, #tpu.memory_space<vmem>>, vector<1x128x128xbf16>
    %327 = vector.shape_cast %326 : vector<1x128x128xbf16> to vector<128x128xbf16>
    %cst_299 = arith.constant dense<0.000000e+00> : vector<4x128xf32>
    %328 = tpu.matmul %325, %327, %cst_299 {dimension_numbers = #tpu.dot_dimension_numbers<[1], [0], [0], [1], [0, 0, 1, 1], [], []>} : vector<4x128xbf16>, vector<128x128xbf16>, vector<4x128xf32> -> vector<4x128xf32>
    %329 = arith.addf %321, %328 : vector<4x128xf32>
    %c14_300 = arith.constant 14 : index
    %c0_301 = arith.constant 0 : index
    %c0_302 = arith.constant 0 : index
    %330 = vector.load %arg7[%c14_300, %c0_301, %c0_302] : memref<25x4x49xbf16, #tpu.memory_space<vmem>>, vector<1x4x49xbf16>
    %331 = vector.shape_cast %330 : vector<1x4x49xbf16> to vector<4x49xbf16>
    %cst_303 = arith.constant dense<0.000000e+00> : vector<4x128xf32>
    %332 = tpu.matmul %331, %216, %cst_303 {dimension_numbers = #tpu.dot_dimension_numbers<[1], [0], [0], [1], [0, 0, 1, 1], [], []>} : vector<4x49xbf16>, vector<49x128xbf16>, vector<4x128xf32> -> vector<4x128xf32>
    %333 = arith.truncf %332 : vector<4x128xf32> to vector<4x128xbf16>
    %c14_304 = arith.constant 14 : index
    %c0_305 = arith.constant 0 : index
    %c0_306 = arith.constant 0 : index
    %334 = vector.load %arg8[%c14_304, %c0_305, %c0_306] : memref<25x128x128xbf16, #tpu.memory_space<vmem>>, vector<1x128x128xbf16>
    %335 = vector.shape_cast %334 : vector<1x128x128xbf16> to vector<128x128xbf16>
    %cst_307 = arith.constant dense<0.000000e+00> : vector<4x128xf32>
    %336 = tpu.matmul %333, %335, %cst_307 {dimension_numbers = #tpu.dot_dimension_numbers<[1], [0], [0], [1], [0, 0, 1, 1], [], []>} : vector<4x128xbf16>, vector<128x128xbf16>, vector<4x128xf32> -> vector<4x128xf32>
    %337 = arith.addf %329, %336 : vector<4x128xf32>
    %c15_308 = arith.constant 15 : index
    %c0_309 = arith.constant 0 : index
    %c0_310 = arith.constant 0 : index
    %338 = vector.load %arg7[%c15_308, %c0_309, %c0_310] : memref<25x4x49xbf16, #tpu.memory_space<vmem>>, vector<1x4x49xbf16>
    %339 = vector.shape_cast %338 : vector<1x4x49xbf16> to vector<4x49xbf16>
    %cst_311 = arith.constant dense<0.000000e+00> : vector<4x128xf32>
    %340 = tpu.matmul %339, %216, %cst_311 {dimension_numbers = #tpu.dot_dimension_numbers<[1], [0], [0], [1], [0, 0, 1, 1], [], []>} : vector<4x49xbf16>, vector<49x128xbf16>, vector<4x128xf32> -> vector<4x128xf32>
    %341 = arith.truncf %340 : vector<4x128xf32> to vector<4x128xbf16>
    %c15_312 = arith.constant 15 : index
    %c0_313 = arith.constant 0 : index
    %c0_314 = arith.constant 0 : index
    %342 = vector.load %arg8[%c15_312, %c0_313, %c0_314] : memref<25x128x128xbf16, #tpu.memory_space<vmem>>, vector<1x128x128xbf16>
    %343 = vector.shape_cast %342 : vector<1x128x128xbf16> to vector<128x128xbf16>
    %cst_315 = arith.constant dense<0.000000e+00> : vector<4x128xf32>
    %344 = tpu.matmul %341, %343, %cst_315 {dimension_numbers = #tpu.dot_dimension_numbers<[1], [0], [0], [1], [0, 0, 1, 1], [], []>} : vector<4x128xbf16>, vector<128x128xbf16>, vector<4x128xf32> -> vector<4x128xf32>
    %345 = arith.addf %337, %344 : vector<4x128xf32>
    %c16_316 = arith.constant 16 : index
    %c0_317 = arith.constant 0 : index
    %c0_318 = arith.constant 0 : index
    %346 = vector.load %arg7[%c16_316, %c0_317, %c0_318] : memref<25x4x49xbf16, #tpu.memory_space<vmem>>, vector<1x4x49xbf16>
    %347 = vector.shape_cast %346 : vector<1x4x49xbf16> to vector<4x49xbf16>
    %cst_319 = arith.constant dense<0.000000e+00> : vector<4x128xf32>
    %348 = tpu.matmul %347, %216, %cst_319 {dimension_numbers = #tpu.dot_dimension_numbers<[1], [0], [0], [1], [0, 0, 1, 1], [], []>} : vector<4x49xbf16>, vector<49x128xbf16>, vector<4x128xf32> -> vector<4x128xf32>
    %349 = arith.truncf %348 : vector<4x128xf32> to vector<4x128xbf16>
    %c16_320 = arith.constant 16 : index
    %c0_321 = arith.constant 0 : index
    %c0_322 = arith.constant 0 : index
    %350 = vector.load %arg8[%c16_320, %c0_321, %c0_322] : memref<25x128x128xbf16, #tpu.memory_space<vmem>>, vector<1x128x128xbf16>
    %351 = vector.shape_cast %350 : vector<1x128x128xbf16> to vector<128x128xbf16>
    %cst_323 = arith.constant dense<0.000000e+00> : vector<4x128xf32>
    %352 = tpu.matmul %349, %351, %cst_323 {dimension_numbers = #tpu.dot_dimension_numbers<[1], [0], [0], [1], [0, 0, 1, 1], [], []>} : vector<4x128xbf16>, vector<128x128xbf16>, vector<4x128xf32> -> vector<4x128xf32>
    %353 = arith.addf %345, %352 : vector<4x128xf32>
    %c17_324 = arith.constant 17 : index
    %c0_325 = arith.constant 0 : index
    %c0_326 = arith.constant 0 : index
    %354 = vector.load %arg7[%c17_324, %c0_325, %c0_326] : memref<25x4x49xbf16, #tpu.memory_space<vmem>>, vector<1x4x49xbf16>
    %355 = vector.shape_cast %354 : vector<1x4x49xbf16> to vector<4x49xbf16>
    %cst_327 = arith.constant dense<0.000000e+00> : vector<4x128xf32>
    %356 = tpu.matmul %355, %216, %cst_327 {dimension_numbers = #tpu.dot_dimension_numbers<[1], [0], [0], [1], [0, 0, 1, 1], [], []>} : vector<4x49xbf16>, vector<49x128xbf16>, vector<4x128xf32> -> vector<4x128xf32>
    %357 = arith.truncf %356 : vector<4x128xf32> to vector<4x128xbf16>
    %c17_328 = arith.constant 17 : index
    %c0_329 = arith.constant 0 : index
    %c0_330 = arith.constant 0 : index
    %358 = vector.load %arg8[%c17_328, %c0_329, %c0_330] : memref<25x128x128xbf16, #tpu.memory_space<vmem>>, vector<1x128x128xbf16>
    %359 = vector.shape_cast %358 : vector<1x128x128xbf16> to vector<128x128xbf16>
    %cst_331 = arith.constant dense<0.000000e+00> : vector<4x128xf32>
    %360 = tpu.matmul %357, %359, %cst_331 {dimension_numbers = #tpu.dot_dimension_numbers<[1], [0], [0], [1], [0, 0, 1, 1], [], []>} : vector<4x128xbf16>, vector<128x128xbf16>, vector<4x128xf32> -> vector<4x128xf32>
    %361 = arith.addf %353, %360 : vector<4x128xf32>
    %c18_332 = arith.constant 18 : index
    %c0_333 = arith.constant 0 : index
    %c0_334 = arith.constant 0 : index
    %362 = vector.load %arg7[%c18_332, %c0_333, %c0_334] : memref<25x4x49xbf16, #tpu.memory_space<vmem>>, vector<1x4x49xbf16>
    %363 = vector.shape_cast %362 : vector<1x4x49xbf16> to vector<4x49xbf16>
    %cst_335 = arith.constant dense<0.000000e+00> : vector<4x128xf32>
    %364 = tpu.matmul %363, %216, %cst_335 {dimension_numbers = #tpu.dot_dimension_numbers<[1], [0], [0], [1], [0, 0, 1, 1], [], []>} : vector<4x49xbf16>, vector<49x128xbf16>, vector<4x128xf32> -> vector<4x128xf32>
    %365 = arith.truncf %364 : vector<4x128xf32> to vector<4x128xbf16>
    %c18_336 = arith.constant 18 : index
    %c0_337 = arith.constant 0 : index
    %c0_338 = arith.constant 0 : index
    %366 = vector.load %arg8[%c18_336, %c0_337, %c0_338] : memref<25x128x128xbf16, #tpu.memory_space<vmem>>, vector<1x128x128xbf16>
    %367 = vector.shape_cast %366 : vector<1x128x128xbf16> to vector<128x128xbf16>
    %cst_339 = arith.constant dense<0.000000e+00> : vector<4x128xf32>
    %368 = tpu.matmul %365, %367, %cst_339 {dimension_numbers = #tpu.dot_dimension_numbers<[1], [0], [0], [1], [0, 0, 1, 1], [], []>} : vector<4x128xbf16>, vector<128x128xbf16>, vector<4x128xf32> -> vector<4x128xf32>
    %369 = arith.addf %361, %368 : vector<4x128xf32>
    %c19_340 = arith.constant 19 : index
    %c0_341 = arith.constant 0 : index
    %c0_342 = arith.constant 0 : index
    %370 = vector.load %arg7[%c19_340, %c0_341, %c0_342] : memref<25x4x49xbf16, #tpu.memory_space<vmem>>, vector<1x4x49xbf16>
    %371 = vector.shape_cast %370 : vector<1x4x49xbf16> to vector<4x49xbf16>
    %cst_343 = arith.constant dense<0.000000e+00> : vector<4x128xf32>
    %372 = tpu.matmul %371, %216, %cst_343 {dimension_numbers = #tpu.dot_dimension_numbers<[1], [0], [0], [1], [0, 0, 1, 1], [], []>} : vector<4x49xbf16>, vector<49x128xbf16>, vector<4x128xf32> -> vector<4x128xf32>
    %373 = arith.truncf %372 : vector<4x128xf32> to vector<4x128xbf16>
    %c19_344 = arith.constant 19 : index
    %c0_345 = arith.constant 0 : index
    %c0_346 = arith.constant 0 : index
    %374 = vector.load %arg8[%c19_344, %c0_345, %c0_346] : memref<25x128x128xbf16, #tpu.memory_space<vmem>>, vector<1x128x128xbf16>
    %375 = vector.shape_cast %374 : vector<1x128x128xbf16> to vector<128x128xbf16>
    %cst_347 = arith.constant dense<0.000000e+00> : vector<4x128xf32>
    %376 = tpu.matmul %373, %375, %cst_347 {dimension_numbers = #tpu.dot_dimension_numbers<[1], [0], [0], [1], [0, 0, 1, 1], [], []>} : vector<4x128xbf16>, vector<128x128xbf16>, vector<4x128xf32> -> vector<4x128xf32>
    %377 = arith.addf %369, %376 : vector<4x128xf32>
    %c20_348 = arith.constant 20 : index
    %c0_349 = arith.constant 0 : index
    %c0_350 = arith.constant 0 : index
    %378 = vector.load %arg7[%c20_348, %c0_349, %c0_350] : memref<25x4x49xbf16, #tpu.memory_space<vmem>>, vector<1x4x49xbf16>
    %379 = vector.shape_cast %378 : vector<1x4x49xbf16> to vector<4x49xbf16>
    %cst_351 = arith.constant dense<0.000000e+00> : vector<4x128xf32>
    %380 = tpu.matmul %379, %216, %cst_351 {dimension_numbers = #tpu.dot_dimension_numbers<[1], [0], [0], [1], [0, 0, 1, 1], [], []>} : vector<4x49xbf16>, vector<49x128xbf16>, vector<4x128xf32> -> vector<4x128xf32>
    %381 = arith.truncf %380 : vector<4x128xf32> to vector<4x128xbf16>
    %c20_352 = arith.constant 20 : index
    %c0_353 = arith.constant 0 : index
    %c0_354 = arith.constant 0 : index
    %382 = vector.load %arg8[%c20_352, %c0_353, %c0_354] : memref<25x128x128xbf16, #tpu.memory_space<vmem>>, vector<1x128x128xbf16>
    %383 = vector.shape_cast %382 : vector<1x128x128xbf16> to vector<128x128xbf16>
    %cst_355 = arith.constant dense<0.000000e+00> : vector<4x128xf32>
    %384 = tpu.matmul %381, %383, %cst_355 {dimension_numbers = #tpu.dot_dimension_numbers<[1], [0], [0], [1], [0, 0, 1, 1], [], []>} : vector<4x128xbf16>, vector<128x128xbf16>, vector<4x128xf32> -> vector<4x128xf32>
    %385 = arith.addf %377, %384 : vector<4x128xf32>
    %c21_356 = arith.constant 21 : index
    %c0_357 = arith.constant 0 : index
    %c0_358 = arith.constant 0 : index
    %386 = vector.load %arg7[%c21_356, %c0_357, %c0_358] : memref<25x4x49xbf16, #tpu.memory_space<vmem>>, vector<1x4x49xbf16>
    %387 = vector.shape_cast %386 : vector<1x4x49xbf16> to vector<4x49xbf16>
    %cst_359 = arith.constant dense<0.000000e+00> : vector<4x128xf32>
    %388 = tpu.matmul %387, %216, %cst_359 {dimension_numbers = #tpu.dot_dimension_numbers<[1], [0], [0], [1], [0, 0, 1, 1], [], []>} : vector<4x49xbf16>, vector<49x128xbf16>, vector<4x128xf32> -> vector<4x128xf32>
    %389 = arith.truncf %388 : vector<4x128xf32> to vector<4x128xbf16>
    %c21_360 = arith.constant 21 : index
    %c0_361 = arith.constant 0 : index
    %c0_362 = arith.constant 0 : index
    %390 = vector.load %arg8[%c21_360, %c0_361, %c0_362] : memref<25x128x128xbf16, #tpu.memory_space<vmem>>, vector<1x128x128xbf16>
    %391 = vector.shape_cast %390 : vector<1x128x128xbf16> to vector<128x128xbf16>
    %cst_363 = arith.constant dense<0.000000e+00> : vector<4x128xf32>
    %392 = tpu.matmul %389, %391, %cst_363 {dimension_numbers = #tpu.dot_dimension_numbers<[1], [0], [0], [1], [0, 0, 1, 1], [], []>} : vector<4x128xbf16>, vector<128x128xbf16>, vector<4x128xf32> -> vector<4x128xf32>
    %393 = arith.addf %385, %392 : vector<4x128xf32>
    %c22_364 = arith.constant 22 : index
    %c0_365 = arith.constant 0 : index
    %c0_366 = arith.constant 0 : index
    %394 = vector.load %arg7[%c22_364, %c0_365, %c0_366] : memref<25x4x49xbf16, #tpu.memory_space<vmem>>, vector<1x4x49xbf16>
    %395 = vector.shape_cast %394 : vector<1x4x49xbf16> to vector<4x49xbf16>
    %cst_367 = arith.constant dense<0.000000e+00> : vector<4x128xf32>
    %396 = tpu.matmul %395, %216, %cst_367 {dimension_numbers = #tpu.dot_dimension_numbers<[1], [0], [0], [1], [0, 0, 1, 1], [], []>} : vector<4x49xbf16>, vector<49x128xbf16>, vector<4x128xf32> -> vector<4x128xf32>
    %397 = arith.truncf %396 : vector<4x128xf32> to vector<4x128xbf16>
    %c22_368 = arith.constant 22 : index
    %c0_369 = arith.constant 0 : index
    %c0_370 = arith.constant 0 : index
    %398 = vector.load %arg8[%c22_368, %c0_369, %c0_370] : memref<25x128x128xbf16, #tpu.memory_space<vmem>>, vector<1x128x128xbf16>
    %399 = vector.shape_cast %398 : vector<1x128x128xbf16> to vector<128x128xbf16>
    %cst_371 = arith.constant dense<0.000000e+00> : vector<4x128xf32>
    %400 = tpu.matmul %397, %399, %cst_371 {dimension_numbers = #tpu.dot_dimension_numbers<[1], [0], [0], [1], [0, 0, 1, 1], [], []>} : vector<4x128xbf16>, vector<128x128xbf16>, vector<4x128xf32> -> vector<4x128xf32>
    %401 = arith.addf %393, %400 : vector<4x128xf32>
    %c23_372 = arith.constant 23 : index
    %c0_373 = arith.constant 0 : index
    %c0_374 = arith.constant 0 : index
    %402 = vector.load %arg7[%c23_372, %c0_373, %c0_374] : memref<25x4x49xbf16, #tpu.memory_space<vmem>>, vector<1x4x49xbf16>
    %403 = vector.shape_cast %402 : vector<1x4x49xbf16> to vector<4x49xbf16>
    %cst_375 = arith.constant dense<0.000000e+00> : vector<4x128xf32>
    %404 = tpu.matmul %403, %216, %cst_375 {dimension_numbers = #tpu.dot_dimension_numbers<[1], [0], [0], [1], [0, 0, 1, 1], [], []>} : vector<4x49xbf16>, vector<49x128xbf16>, vector<4x128xf32> -> vector<4x128xf32>
    %405 = arith.truncf %404 : vector<4x128xf32> to vector<4x128xbf16>
    %c23_376 = arith.constant 23 : index
    %c0_377 = arith.constant 0 : index
    %c0_378 = arith.constant 0 : index
    %406 = vector.load %arg8[%c23_376, %c0_377, %c0_378] : memref<25x128x128xbf16, #tpu.memory_space<vmem>>, vector<1x128x128xbf16>
    %407 = vector.shape_cast %406 : vector<1x128x128xbf16> to vector<128x128xbf16>
    %cst_379 = arith.constant dense<0.000000e+00> : vector<4x128xf32>
    %408 = tpu.matmul %405, %407, %cst_379 {dimension_numbers = #tpu.dot_dimension_numbers<[1], [0], [0], [1], [0, 0, 1, 1], [], []>} : vector<4x128xbf16>, vector<128x128xbf16>, vector<4x128xf32> -> vector<4x128xf32>
    %409 = arith.addf %401, %408 : vector<4x128xf32>
    %c24_380 = arith.constant 24 : index
    %c0_381 = arith.constant 0 : index
    %c0_382 = arith.constant 0 : index
    %410 = vector.load %arg7[%c24_380, %c0_381, %c0_382] : memref<25x4x49xbf16, #tpu.memory_space<vmem>>, vector<1x4x49xbf16>
    %411 = vector.shape_cast %410 : vector<1x4x49xbf16> to vector<4x49xbf16>
    %cst_383 = arith.constant dense<0.000000e+00> : vector<4x128xf32>
    %412 = tpu.matmul %411, %216, %cst_383 {dimension_numbers = #tpu.dot_dimension_numbers<[1], [0], [0], [1], [0, 0, 1, 1], [], []>} : vector<4x49xbf16>, vector<49x128xbf16>, vector<4x128xf32> -> vector<4x128xf32>
    %413 = arith.truncf %412 : vector<4x128xf32> to vector<4x128xbf16>
    %c24_384 = arith.constant 24 : index
    %c0_385 = arith.constant 0 : index
    %c0_386 = arith.constant 0 : index
    %414 = vector.load %arg8[%c24_384, %c0_385, %c0_386] : memref<25x128x128xbf16, #tpu.memory_space<vmem>>, vector<1x128x128xbf16>
    %415 = vector.shape_cast %414 : vector<1x128x128xbf16> to vector<128x128xbf16>
    %cst_387 = arith.constant dense<0.000000e+00> : vector<4x128xf32>
    %416 = tpu.matmul %413, %415, %cst_387 {dimension_numbers = #tpu.dot_dimension_numbers<[1], [0], [0], [1], [0, 0, 1, 1], [], []>} : vector<4x128xbf16>, vector<128x128xbf16>, vector<4x128xf32> -> vector<4x128xf32>
    %417 = arith.addf %409, %416 : vector<4x128xf32>
    %c0_388 = arith.constant 0 : index
    %c0_389 = arith.constant 0 : index
    %418 = vector.load %arg9[%c0_388, %c0_389] : memref<1x128xf32, #tpu.memory_space<vmem>>, vector<1x128xf32>
    %419 = vector.broadcast %418 : vector<1x128xf32> to vector<4x128xf32>
    %420 = arith.addf %417, %419 : vector<4x128xf32>
    %cst_390 = arith.constant 0.000000e+00 : f32
    %421 = vector.broadcast %cst_390 : f32 to vector<4x128xf32>
    %422 = arith.maximumf %420, %421 : vector<4x128xf32>
    %423 = arith.truncf %422 : vector<4x128xf32> to vector<4x128xbf16>
    %c0_391 = arith.constant 0 : index
    %c0_392 = arith.constant 0 : index
    %424 = vector.load %arg11[%c0_391, %c0_392] : memref<1x128xf32, #tpu.memory_space<vmem>>, vector<1x128xf32>
    %425 = vector.extract_strided_slice %423 {offsets = [0, 0], sizes = [1, 128], strides = [1, 1]} : vector<4x128xbf16> to vector<1x128xbf16>
    %c0_393 = arith.constant 0 : index
    %c0_394 = arith.constant 0 : index
    %c0_395 = arith.constant 0 : index
    %426 = vector.load %arg10[%c0_393, %c0_394, %c0_395] : memref<4x128x128xbf16, #tpu.memory_space<vmem>>, vector<1x128x128xbf16>
    %427 = vector.shape_cast %426 : vector<1x128x128xbf16> to vector<128x128xbf16>
    %cst_396 = arith.constant dense<0.000000e+00> : vector<1x128xf32>
    %428 = tpu.matmul %425, %427, %cst_396 {dimension_numbers = #tpu.dot_dimension_numbers<[1], [0], [0], [1], [0, 0, 1, 1], [], []>} : vector<1x128xbf16>, vector<128x128xbf16>, vector<1x128xf32> -> vector<1x128xf32>
    %429 = arith.addf %424, %428 : vector<1x128xf32>
    %430 = vector.extract_strided_slice %423 {offsets = [1, 0], sizes = [1, 128], strides = [1, 1]} : vector<4x128xbf16> to vector<1x128xbf16>
    %c1_397 = arith.constant 1 : index
    %c0_398 = arith.constant 0 : index
    %c0_399 = arith.constant 0 : index
    %431 = vector.load %arg10[%c1_397, %c0_398, %c0_399] : memref<4x128x128xbf16, #tpu.memory_space<vmem>>, vector<1x128x128xbf16>
    %432 = vector.shape_cast %431 : vector<1x128x128xbf16> to vector<128x128xbf16>
    %cst_400 = arith.constant dense<0.000000e+00> : vector<1x128xf32>
    %433 = tpu.matmul %430, %432, %cst_400 {dimension_numbers = #tpu.dot_dimension_numbers<[1], [0], [0], [1], [0, 0, 1, 1], [], []>} : vector<1x128xbf16>, vector<128x128xbf16>, vector<1x128xf32> -> vector<1x128xf32>
    %434 = arith.addf %429, %433 : vector<1x128xf32>
    %435 = vector.extract_strided_slice %423 {offsets = [2, 0], sizes = [1, 128], strides = [1, 1]} : vector<4x128xbf16> to vector<1x128xbf16>
    %c2_401 = arith.constant 2 : index
    %c0_402 = arith.constant 0 : index
    %c0_403 = arith.constant 0 : index
    %436 = vector.load %arg10[%c2_401, %c0_402, %c0_403] : memref<4x128x128xbf16, #tpu.memory_space<vmem>>, vector<1x128x128xbf16>
    %437 = vector.shape_cast %436 : vector<1x128x128xbf16> to vector<128x128xbf16>
    %cst_404 = arith.constant dense<0.000000e+00> : vector<1x128xf32>
    %438 = tpu.matmul %435, %437, %cst_404 {dimension_numbers = #tpu.dot_dimension_numbers<[1], [0], [0], [1], [0, 0, 1, 1], [], []>} : vector<1x128xbf16>, vector<128x128xbf16>, vector<1x128xf32> -> vector<1x128xf32>
    %439 = arith.addf %434, %438 : vector<1x128xf32>
    %440 = vector.extract_strided_slice %423 {offsets = [3, 0], sizes = [1, 128], strides = [1, 1]} : vector<4x128xbf16> to vector<1x128xbf16>
    %c3_405 = arith.constant 3 : index
    %c0_406 = arith.constant 0 : index
    %c0_407 = arith.constant 0 : index
    %441 = vector.load %arg10[%c3_405, %c0_406, %c0_407] : memref<4x128x128xbf16, #tpu.memory_space<vmem>>, vector<1x128x128xbf16>
    %442 = vector.shape_cast %441 : vector<1x128x128xbf16> to vector<128x128xbf16>
    %cst_408 = arith.constant dense<0.000000e+00> : vector<1x128xf32>
    %443 = tpu.matmul %440, %442, %cst_408 {dimension_numbers = #tpu.dot_dimension_numbers<[1], [0], [0], [1], [0, 0, 1, 1], [], []>} : vector<1x128xbf16>, vector<128x128xbf16>, vector<1x128xf32> -> vector<1x128xf32>
    %444 = arith.addf %439, %443 : vector<1x128xf32>
    %445 = vector.shape_cast %444 : vector<1x128xf32> to vector<1x128xf32>
    %446 = vector.broadcast %445 : vector<1x128xf32> to vector<8x128xf32>
    %c0_409 = arith.constant 0 : index
    %c0_410 = arith.constant 0 : index
    %c0_411 = arith.constant 0 : index
    %447 = vector.load %arg12[%c0_409, %c0_410, %c0_411] : memref<1x8x128xf32, #tpu.memory_space<vmem>>, vector<1x8x128xf32>
    %448 = vector.shape_cast %447 : vector<1x8x128xf32> to vector<8x128xf32>
    %449 = vector.shape_cast %446 : vector<8x128xf32> to vector<1x8x128xf32>
    tpu.vector_store %arg12[%c0_409, %c0_410, %c0_411], %449 {strides = array<i32>} : memref<1x8x128xf32, #tpu.memory_space<vmem>>, vector<1x8x128xf32>,
    return
  }
  func.func @transform_0(%arg0: i32) -> (i32, i32, i32) {
    %c0_i32 = arith.constant 0 : i32
    %c0_i32_0 = arith.constant 0 : i32
    %c0_i32_1 = arith.constant 0 : i32
    return %arg0, %c0_i32, %c0_i32_0 : i32, i32, i32
  }
  func.func @transform_1(%arg0: i32) -> (i32, i32) {
    %c0_i32 = arith.constant 0 : i32
    %c0_i32_0 = arith.constant 0 : i32
    %c0_i32_1 = arith.constant 0 : i32
    return %c0_i32, %c0_i32_0 : i32, i32
  }
  func.func @transform_2(%arg0: i32) -> (i32, i32) {
    %c0_i32 = arith.constant 0 : i32
    %c0_i32_0 = arith.constant 0 : i32
    %c0_i32_1 = arith.constant 0 : i32
    return %c0_i32, %c0_i32_0 : i32, i32
  }
  func.func @transform_3(%arg0: i32) -> (i32, i32, i32) {
    %c0_i32 = arith.constant 0 : i32
    %c0_i32_0 = arith.constant 0 : i32
    %c0_i32_1 = arith.constant 0 : i32
    %c0_i32_2 = arith.constant 0 : i32
    return %c0_i32, %c0_i32_0, %c0_i32_1 : i32, i32, i32
  }
  func.func @transform_4(%arg0: i32) -> (i32, i32, i32) {
    %c0_i32 = arith.constant 0 : i32
    %c0_i32_0 = arith.constant 0 : i32
    %c0_i32_1 = arith.constant 0 : i32
    %c0_i32_2 = arith.constant 0 : i32
    return %c0_i32, %c0_i32_0, %c0_i32_1 : i32, i32, i32
  }
  func.func @transform_5(%arg0: i32) -> (i32, i32) {
    %c0_i32 = arith.constant 0 : i32
    %c0_i32_0 = arith.constant 0 : i32
    %c0_i32_1 = arith.constant 0 : i32
    return %c0_i32, %c0_i32_0 : i32, i32
  }
  func.func @transform_6(%arg0: i32) -> (i32, i32, i32) {
    %c0_i32 = arith.constant 0 : i32
    %c0_i32_0 = arith.constant 0 : i32
    %c0_i32_1 = arith.constant 0 : i32
    %c0_i32_2 = arith.constant 0 : i32
    return %c0_i32, %c0_i32_0, %c0_i32_1 : i32, i32, i32
  }
  func.func @transform_7(%arg0: i32) -> (i32, i32, i32) {
    %c0_i32 = arith.constant 0 : i32
    %c0_i32_0 = arith.constant 0 : i32
    %c0_i32_1 = arith.constant 0 : i32
    %c0_i32_2 = arith.constant 0 : i32
    return %c0_i32, %c0_i32_0, %c0_i32_1 : i32, i32, i32
  }
  func.func @transform_8(%arg0: i32) -> (i32, i32) {
    %c0_i32 = arith.constant 0 : i32
    %c0_i32_0 = arith.constant 0 : i32
    %c0_i32_1 = arith.constant 0 : i32
    return %c0_i32, %c0_i32_0 : i32, i32
  }
  func.func @transform_9(%arg0: i32) -> (i32, i32, i32) {
    %c0_i32 = arith.constant 0 : i32
    %c0_i32_0 = arith.constant 0 : i32
    %c0_i32_1 = arith.constant 0 : i32
    %c0_i32_2 = arith.constant 0 : i32
    return %c0_i32, %c0_i32_0, %c0_i32_1 : i32, i32, i32
  }
  func.func @transform_10(%arg0: i32) -> (i32, i32) {
    %c0_i32 = arith.constant 0 : i32
    %c0_i32_0 = arith.constant 0 : i32
    %c0_i32_1 = arith.constant 0 : i32
    return %c0_i32, %c0_i32_0 : i32, i32
  }
  func.func @transform_11(%arg0: i32) -> (i32, i32, i32) {
    %c0_i32 = arith.constant 0 : i32
    %c0_i32_0 = arith.constant 0 : i32
    %c0_i32_1 = arith.constant 0 : i32
    return %arg0, %c0_i32, %c0_i32_0 : i32, i32, i32
  }
}

</mosaic_0001>

<bundles_post_ra>
// kernel: dqn_forward.1
= control target key start
LH: loop header
LB: loop body
LE: loop exit
PB: predicated region body
PF: predicated region fallthrough
CT: control target
= control target key end

     0   :  { %s20943_s17 = smov 0   ;;  %s25287_s0 = inlined_call_operand.vmem [shape: bf16[2,328,128], index: 0, kind: input, shape index: {}]   ;;  %s25288_s1 = inlined_call_operand.vmem [shape: bf16[128,128], index: 1, kind: input, shape index: {}]   ;;  %s25289_s2 = inlined_call_operand.vmem [shape: f32[1,128], index: 2, kind: input, shape index: {}]   ;;  %s25290_s3 = inlined_call_operand.vmem [shape: bf16[25,49,328], index: 3, kind: input, shape index: {}]   ;;  %s25291_s4 = inlined_call_operand.vmem [shape: bf16[25,128,128], index: 4, kind: input, shape index: {}]   ;;  %s25292_s5 = inlined_call_operand.vmem [shape: f32[1,128], index: 5, kind: input, shape index: {}]   ;;  %s25293_s6 = inlined_call_operand.vmem [shape: bf16[25,4,49], index: 6, kind: input, shape index: {}]   ;;  %s25294_s7 = inlined_call_operand.vmem [shape: bf16[25,128,128], index: 7, kind: input, shape index: {}]   ;;  %s25295_s8 = inlined_call_operand.vmem [shape: f32[1,128], index: 8, kind: input, shape index: {}]   ;;  %s25296_s9 = inlined_call_operand.vmem [shape: bf16[4,128,128], index: 9, kind: input, shape index: {}]   ;;  %s25297_s10 = inlined_call_operand.vmem [shape: f32[1,128], index: 10, kind: input, shape index: {}]   ;;  %s25298_s11 = inlined_call_operand.vmem [shape: f32[2,8,128], index: 11, kind: output, shape index: {}]  }
   0x1 LB: > { %s13954_s18 = sadd.s32 4294967295, %s20878_s17   ;;  %p13958_p0 = scmp.ge.s32.totalorder %s20878_s17, 1  ;;  %s20878_s17 = sphi %s20943_s17, %s21_s17  }
   0x2   : > { %p337_p1 = scmp.lt.s32.totalorder %s20878_s17, 3 }
   0x4   : > { %p338_p2 = pnand %p13958_p0, %p337_p1 }
   0x6   : > { %341 = sbr.rel (%p338_p2) target bundleno = 9270 (0x2436), region = 64 }
   0xb   : > { %v20035_v0 = vld [vmem:[%s25288_s1 + $0x38] sm:$0xff]   ;;  %v25299_v1 = vmov 0.0   ;;  %v20036_v2 = vld [vmem:[%s25288_s1 + $0x30] sm:$0xff]   ;;  %vm20881_vm0 = vmmov 0   ;;  %p376_p3 = scmp.lt.s32.totalorder %s13954_s18, 1  ;;  %v20037_v3 = vld [vmem:[%s25288_s1 + $0x28] sm:$0xff]  }
   0xc   : > { %17968 = vmatprep.subr.bf16.mxu0 %v25299_v1  ;;  %17984 = vmatprep.mubr.msk.bf16.mxu0 %vm20881_vm0, %v25299_v1  ;;  %v20038_v4 = vld [vmem:[%s25288_s1 + $0x20] sm:$0xff]   ;;  %v20039_v5 = vld [vmem:[%s25288_s1 + $0x18] sm:$0xff]   ;;  %v20040_v6 = vld [vmem:[%s25288_s1 + $0x10] sm:$0xff]   ;;  %vm966_vm1 = vcmask 1043456   ;;  %vm953_vm2 = vcmask 588800   ;;  %vm9653_vm3 = vcmask 1040384  }
   0xd   : > { %17969 = vmatpush3.bf16.msra.mxu0 %v20035_v0  ;;  %s25369_s18 = smov (!%p376_p3, %s13954_s18), 1  ;;  %v20041_v7 = vld [vmem:[%s25288_s1 + $0x8] sm:$0xff]   ;;  %v20042_v8 = vld [vmem:[%s25288_s1] sm:$0xff]   ;;  %vm9649_vm4 = vcmask 400384  }
   0xe   : > { %17970 = vmatprep.subr.bf16.mxu0 %v25299_v1  ;;  %s20023_s25 = smul.u32 164, %s25369_s18  ;;  %v21057_v30 = vld [vmem:[%s25289_s2] ss:$0 sm:$0xff]  ;;  %s13960_s15 = sshll.u32 %s25369_s18, 3 }
   0xf   : > { %s384_s20 = scalar_lea.vmem %s25298_s11, %s13960_s15 }
  0x10   : > { %s20971_s28 = scalar_lea.vmem %s25287_s0, %s20023_s25 }
  0x11   : > { %17971 = vmatpush3.bf16.msra.mxu0 %v20036_v2  ;;  %v20043_v9 = vld [vmem:[%s20971_s28] sm:$0xff]   ;;  %v20044_v10 = vld [vmem:[%s20971_s28 + $0x8] sm:$0xff]   ;;  %v20045_v11 = vld [vmem:[%s20971_s28 + $0x10] sm:$0xff]  }
  0x12   : > { %17972 = vmatprep.subr.bf16.mxu0 %v25299_v1  ;;  %v20046_v12 = vld [vmem:[%s20971_s28 + $0x18] sm:$0xff]   ;;  %v20047_v13 = vld [vmem:[%s20971_s28 + $0x20] sm:$0xff]   ;;  %v20048_v14 = vld [vmem:[%s20971_s28 + $0x28] sm:$0xff]  }
  0x13   : > { %v20049_v15 = vld [vmem:[%s20971_s28 + $0x30] sm:$0xff]   ;;  %v20050_v16 = vld [vmem:[%s20971_s28 + $0x38] sm:$0xff]   ;;  %v20051_v17 = vld [vmem:[%s20971_s28 + $0x40] sm:$0xff]  }
  0x14   : > { %v20052_v18 = vld [vmem:[%s20971_s28 + $0x48] sm:$0xff]   ;;  %v20053_v19 = vld [vmem:[%s20971_s28 + $0x50] sm:$0xff]   ;;  %v20054_v20 = vld [vmem:[%s20971_s28 + $0x58] sm:$0xff]  }
  0x15   : > { %17973 = vmatpush3.bf16.msra.mxu0 %v20037_v3  ;;  %v20055_v21 = vld [vmem:[%s20971_s28 + $0x60] sm:$0xff]   ;;  %v20056_v22 = vld [vmem:[%s20971_s28 + $0x68] sm:$0xff]   ;;  %v20057_v23 = vld [vmem:[%s20971_s28 + $0x70] sm:$0xff]  }
  0x16   : > { %17974 = vmatprep.subr.bf16.mxu0 %v25299_v1  ;;  %v20058_v24 = vld [vmem:[%s20971_s28 + $0x78] sm:$0xff]   ;;  %v20059_v25 = vld [vmem:[%s20971_s28 + $0x80] sm:$0xff]   ;;  %v20060_v26 = vld [vmem:[%s20971_s28 + $0x88] sm:$0xff]  }
  0x17   : > { %v20061_v27 = vld [vmem:[%s20971_s28 + $0x90] sm:$0xff]   ;;  %v20062_v28 = vld [vmem:[%s20971_s28 + $0x98] sm:$0xff]   ;;  %v20063_v29 = vld [vmem:[%s20971_s28 + $0xa0] ss:$0 sps:$4 sm:$0xff]  }
  0x19   : > { %17975 = vmatpush3.bf16.msra.mxu0 %v20038_v4  ;;  %v20066_v4 = vld [vmem:[%s25290_s3 + $0x4] ss:$12 sps:$4 sm:$0xff]  }
  0x1a   : > { %17976 = vmatprep.subr.bf16.mxu0 %v25299_v1  ;;  %1002 = vmatprep.mubr.bf16.mxu1 %v20066_v4 }
  0x1d   : > { %17977 = vmatpush3.bf16.msra.mxu0 %v20039_v5 }
  0x1e   : > { %17978 = vmatprep.subr.bf16.mxu0 %v25299_v1 }
  0x21   : > { %17979 = vmatpush3.bf16.msra.mxu0 %v20040_v6  ;;  %v20069_v6 = vld [vmem:[%s25290_s3 + $0xac] ss:$12 sps:$4 sm:$0xff]  }
  0x22   : > { %17980 = vmatprep.subr.bf16.mxu0 %v25299_v1 }
  0x25   : > { %17981 = vmatpush3.bf16.msra.mxu0 %v20041_v7 }
  0x26   : > { %17982 = vmatprep.subr.bf16.mxu0 %v25299_v1 }
  0x29   : > { %17983 = vmatpush3.bf16.msra.mxu0 %v20042_v8 }
  0x2c   : > { %17985 = vmatmul.mubr.bf16.vlgmr.msra.gmra.mxu0 %v20043_v9 }
  0x2d   : > { %17988 = vmatprep.mubr.msk.bf16.mxu0 %vm20881_vm0, %v25299_v1 }
  0x34   : > { %17989 = vmatmul.mubr.bf16.gmra.mxu0 %v20044_v10 }
  0x35   : > { %17992 = vmatprep.mubr.msk.bf16.mxu0 %vm20881_vm0, %v25299_v1 }
  0x3c   : > { %17993 = vmatmul.mubr.bf16.gmra.mxu0 %v20045_v11 }
  0x3d   : > { %17996 = vmatprep.mubr.msk.bf16.mxu0 %vm20881_vm0, %v25299_v1 }
  0x44   : > { %17997 = vmatmul.mubr.bf16.gmra.mxu0 %v20046_v12 }
  0x45   : > { %18000 = vmatprep.mubr.msk.bf16.mxu0 %vm20881_vm0, %v25299_v1 }
  0x4c   : > { %18001 = vmatmul.mubr.bf16.gmra.mxu0 %v20047_v13 }
  0x4d   : > { %18004 = vmatprep.mubr.msk.bf16.mxu0 %vm20881_vm0, %v25299_v1 }
  0x54   : > { %18005 = vmatmul.mubr.bf16.gmra.mxu0 %v20048_v14 }
  0x55   : > { %18008 = vmatprep.mubr.msk.bf16.mxu0 %vm20881_vm0, %v25299_v1 }
  0x5c   : > { %18009 = vmatmul.mubr.bf16.gmra.mxu0 %v20049_v15 }
  0x5d   : > { %18012 = vmatprep.mubr.msk.bf16.mxu0 %vm20881_vm0, %v25299_v1 }
  0x64   : > { %18013 = vmatmul.mubr.bf16.gmra.mxu0 %v20050_v16 }
  0x65   : > { %18016 = vmatprep.mubr.msk.bf16.mxu0 %vm20881_vm0, %v25299_v1 }
  0x6c   : > { %18017 = vmatmul.mubr.bf16.gmra.mxu0 %v20051_v17 }
  0x6d   : > { %18020 = vmatprep.mubr.msk.bf16.mxu0 %vm20881_vm0, %v25299_v1 }
  0x74   : > { %18021 = vmatmul.mubr.bf16.gmra.mxu0 %v20052_v18 }
  0x75   : > { %18024 = vmatprep.mubr.msk.bf16.mxu0 %vm20881_vm0, %v25299_v1 }
  0x7c   : > { %18025 = vmatmul.mubr.bf16.gmra.mxu0 %v20053_v19 }
  0x7d   : > { %18028 = vmatprep.mubr.msk.bf16.mxu0 %vm20881_vm0, %v25299_v1 }
  0x84   : > { %18029 = vmatmul.mubr.bf16.gmra.mxu0 %v20054_v20 }
  0x85   : > { %18032 = vmatprep.mubr.msk.bf16.mxu0 %vm20881_vm0, %v25299_v1 }
  0x8c   : > { %18033 = vmatmul.mubr.bf16.gmra.mxu0 %v20055_v21 }
  0x8d   : > { %18036 = vmatprep.mubr.msk.bf16.mxu0 %vm20881_vm0, %v25299_v1 }
  0x94   : > { %18037 = vmatmul.mubr.bf16.gmra.mxu0 %v20056_v22 }
  0x95   : > { %18040 = vmatprep.mubr.msk.bf16.mxu0 %vm20881_vm0, %v25299_v1 }
  0x9c   : > { %18041 = vmatmul.mubr.bf16.gmra.mxu0 %v20057_v23 }
  0x9d   : > { %18044 = vmatprep.mubr.msk.bf16.mxu0 %vm20881_vm0, %v25299_v1 }
  0xa4   : > { %18045 = vmatmul.mubr.bf16.gmra.mxu0 %v20058_v24 }
  0xa5   : > { %18048 = vmatprep.mubr.msk.bf16.mxu0 %vm20881_vm0, %v25299_v1 }
  0xac   : > { %18049 = vmatmul.mubr.bf16.gmra.mxu0 %v20059_v25 }
  0xad   : > { %18052 = vmatprep.mubr.msk.bf16.mxu0 %vm20881_vm0, %v25299_v1 }
  0xb4   : > { %18053 = vmatmul.mubr.bf16.gmra.mxu0 %v20060_v26 }
  0xb5   : > { %18056 = vmatprep.mubr.msk.bf16.mxu0 %vm20881_vm0, %v25299_v1 }
  0xbc   : > { %18057 = vmatmul.mubr.bf16.gmra.mxu0 %v20061_v27 }
  0xbd   : > { %18060 = vmatprep.mubr.msk.bf16.mxu0 %vm20881_vm0, %v25299_v1 }
  0xc4   : > { %18061 = vmatmul.mubr.bf16.gmra.mxu0 %v20062_v28 }
  0xc5   : > { %18064 = vmatprep.mubr.msk.bf16.mxu0 %vm20881_vm0, %v25299_v1 }
  0xcc   : > { %18065 = vmatmul.mubr.bf16.gmra.mxu0 %v20063_v29 }
  0xcd   : > { %1687 = vmatprep.mubr.bf16.mxu0 %v20069_v6 }
  0xec   : > { %v656_v31 = vpop.f32.mrf.mxu0 }
  0xed   : > { %v657_v33 = vadd.f32 %v21057_v30, %v656_v31 }
  0xee   : > { %v17986_v32 = vpop.f32.mrf.mxu0 }
  0xef   : > { %v822_v37 = vmax.f32 %v657_v33, 0.0 }
  0xf0   : > { %v659_v34 = vpop.f32.mrf.mxu0 }
  0xf1   : > { %v660_v35 = vadd.f32 %v21057_v30, %v659_v34 }
  0xf2   : > { %v17987_v36 = vpop.f32.mrf.mxu0 }
  0xf3   : > { %v823_v38 = vmax.f32 %v660_v35, 0.0 }
  0xf4   : > { %v664_v39 = vpop.f32.mrf.mxu0 }
  0xf5   : > { %v21061_v40 = vpack.c.bf16 %v823_v38, %v822_v37  ;;  %v665_v42 = vadd.f32 %v21057_v30, %v664_v39 }
  0xf6   : > { %v17990_v41 = vpop.f32.mrf.mxu0 }
  0xf7   : > { %v824_v46 = vmax.f32 %v665_v42, 0.0 }
  0xf8   : > { %v667_v43 = vpop.f32.mrf.mxu0 }
  0xf9   : > { %v668_v44 = vadd.f32 %v21057_v30, %v667_v43 }
  0xfa   : > { %v17991_v45 = vpop.f32.mrf.mxu0 }
  0xfb   : > { %v825_v47 = vmax.f32 %v668_v44, 0.0 }
  0xfc   : > { %v672_v48 = vpop.f32.mrf.mxu0 }
  0xfd   : > { %v21065_v49 = vpack.c.bf16 %v825_v47, %v824_v46  ;;  %v673_v50 = vadd.f32 %v21057_v30, %v672_v48 }
  0xfe   : > { %v17994_v51 = vpop.f32.mrf.mxu0 }
  0xff   : > { %v826_v52 = vmax.f32 %v673_v50, 0.0 }
 0x100   : > { %v675_v53 = vpop.f32.mrf.mxu0 }
 0x101   : > { %v676_v54 = vadd.f32 %v21057_v30, %v675_v53 }
 0x102   : > { %v17995_v55 = vpop.f32.mrf.mxu0 }
 0x103   : > { %v827_v56 = vmax.f32 %v676_v54, 0.0 }
 0x104   : > { %v680_v57 = vpop.f32.mrf.mxu0 }
 0x105   : > { %v21069_v58 = vpack.c.bf16 %v827_v56, %v826_v52  ;;  %v681_v59 = vadd.f32 %v21057_v30, %v680_v57 }
 0x106   : > { %v17998_v60 = vpop.f32.mrf.mxu0 }
 0x107   : > { %v828_v61 = vmax.f32 %v681_v59, 0.0 }
 0x108   : > { %v683_v62 = vpop.f32.mrf.mxu0 }
 0x109   : > { %v684_v63 = vadd.f32 %v21057_v30, %v683_v62 }
 0x10a   : > { %v17999_v0 = vpop.f32.mrf.mxu0 }
 0x10b   : > { %v829_v2 = vmax.f32 %v684_v63, 0.0 }
 0x10c   : > { %v688_v3 = vpop.f32.mrf.mxu0 }
 0x10d   : > { %v21076_v5 = vpack.c.bf16 %v829_v2, %v828_v61  ;;  %v689_v8 = vadd.f32 %v21057_v30, %v688_v3 }
 0x10e   : > { %v18002_v7 = vpop.f32.mrf.mxu0 }
 0x10f   : > { %v830_v12 = vmax.f32 %v689_v8, 0.0 }
 0x110   : > { %v691_v9 = vpop.f32.mrf.mxu0 }
 0x111   : > { %v692_v10 = vadd.f32 %v21057_v30, %v691_v9 }
 0x112   : > { %v18003_v11 = vpop.f32.mrf.mxu0 }
 0x113   : > { %v831_v13 = vmax.f32 %v692_v10, 0.0 }
 0x114   : > { %v696_v14 = vpop.f32.mrf.mxu0 }
 0x115   : > { %v21083_v15 = vpack.c.bf16 %v831_v13, %v830_v12  ;;  %v697_v17 = vadd.f32 %v21057_v30, %v696_v14 }
 0x116   : > { %v18006_v16 = vpop.f32.mrf.mxu0 }
 0x117   : > { %v832_v21 = vmax.f32 %v697_v17, 0.0 }
 0x118   : > { %v699_v18 = vpop.f32.mrf.mxu0 }
 0x119   : > { %v700_v19 = vadd.f32 %v21057_v30, %v699_v18 }
 0x11a   : > { %v18007_v20 = vpop.f32.mrf.mxu0 }
 0x11b   : > { %v833_v22 = vmax.f32 %v700_v19, 0.0 }
 0x11c   : > { %v704_v23 = vpop.f32.mrf.mxu0 }
 0x11d   : > { %v21087_v24 = vpack.c.bf16 %v833_v22, %v832_v21  ;;  %v705_v26 = vadd.f32 %v21057_v30, %v704_v23 }
 0x11e   : > { %v18010_v25 = vpop.f32.mrf.mxu0 }
 0x11f   : > { %v834_v31 = vmax.f32 %v705_v26, 0.0 }
 0x120   : > { %v707_v27 = vpop.f32.mrf.mxu0 }
 0x121   : > { %v708_v28 = vadd.f32 %v21057_v30, %v707_v27 }
 0x122   : > { %v18011_v29 = vpop.f32.mrf.mxu0 }
 0x123   : > { %v835_v32 = vmax.f32 %v708_v28, 0.0 }
 0x124   : > { %v712_v33 = vpop.f32.mrf.mxu0 }
 0x125   : > { %v21091_v34 = vpack.c.bf16 %v835_v32, %v834_v31  ;;  %v713_v36 = vadd.f32 %v21057_v30, %v712_v33 }
 0x126   : > { %v18014_v35 = vpop.f32.mrf.mxu0 }
 0x127   : > { %v836_v41 = vmax.f32 %v713_v36, 0.0 }
 0x128   : > { %v715_v37 = vpop.f32.mrf.mxu0 }
 0x129   : > { %v716_v38 = vadd.f32 %v21057_v30, %v715_v37 }
 0x12a   : > { %v18015_v39 = vpop.f32.mrf.mxu0 }
 0x12b   : > { %v837_v42 = vmax.f32 %v716_v38, 0.0 }
 0x12c   : > { %v720_v43 = vpop.f32.mrf.mxu0 }
 0x12d   : > { %v21095_v44 = vpack.c.bf16 %v837_v42, %v836_v41  ;;  %v721_v46 = vadd.f32 %v21057_v30, %v720_v43 }
 0x12e   : > { %v18018_v45 = vpop.f32.mrf.mxu0 }
 0x12f   : > { %v838_v51 = vmax.f32 %v721_v46, 0.0 }
 0x130   : > { %v723_v47 = vpop.f32.mrf.mxu0 }
 0x131   : > { %v724_v48 = vadd.f32 %v21057_v30, %v723_v47 }
 0x132   : > { %v18019_v50 = vpop.f32.mrf.mxu0 }
 0x133   : > { %v839_v52 = vmax.f32 %v724_v48, 0.0 }
 0x134   : > { %v728_v53 = vpop.f32.mrf.mxu0 }
 0x135   : > { %v21099_v54 = vpack.c.bf16 %v839_v52, %v838_v51  ;;  %v729_v56 = vadd.f32 %v21057_v30, %v728_v53 }
 0x136   : > { %v18022_v55 = vpop.f32.mrf.mxu0 }
 0x137   : > { %v840_v61 = vmax.f32 %v729_v56, 0.0 }
 0x138   : > { %v731_v57 = vpop.f32.mrf.mxu0 }
 0x139   : > { %v732_v59 = vadd.f32 %v21057_v30, %v731_v57 }
 0x13a   : > { %v18023_v60 = vpop.f32.mrf.mxu0 }
 0x13b   : > { %v841_v62 = vmax.f32 %v732_v59, 0.0 }
 0x13c   : > { %v736_v63 = vpop.f32.mrf.mxu0 }
 0x13d   : > { %v21103_v0 = vpack.c.bf16 %v841_v62, %v840_v61  ;;  %v21134_v61 = vld [vmem:[%s25289_s2] ss:$0 sm:$0xff] }
 0x13e   : > { %v18026_v2 = vpop.f32.mrf.mxu0 }
 0x140   : > { %v739_v3 = vpop.f32.mrf.mxu0 }
 0x141   : > { %v740_v2 = vadd.f32 %v21134_v61, %v739_v3 }
 0x142   : > { %v18027_v4 = vpop.f32.mrf.mxu0 }
 0x144   : > { %v744_v6 = vpop.f32.mrf.mxu0 }
 0x145   : > { %v745_v52 = vadd.f32 %v21057_v30, %v744_v6 }
 0x146   : > { %v18030_v7 = vpop.f32.mrf.mxu0 }
 0x147   : > { %v844_v4 = vmax.f32 %v745_v52, 0.0 }
 0x148   : > { %v747_v8 = vpop.f32.mrf.mxu0 }
 0x149   : > { %v748_v55 = vadd.f32 %v21057_v30, %v747_v8 }
 0x14a   : > { %v18031_v9 = vpop.f32.mrf.mxu0 }
 0x14b   : > { %v845_v6 = vmax.f32 %v748_v55, 0.0 }
 0x14c   : > { %v752_v10 = vpop.f32.mrf.mxu0 }
 0x14d   : > { %v753_v45 = vadd.f32 %v21057_v30, %v752_v10 }
 0x14e   : > { %v18034_v11 = vpop.f32.mrf.mxu0 }
 0x14f   : > { %v846_v56 = vmax.f32 %v753_v45, 0.0  ;;  %v843_v11 = vmax.f32 %v740_v2, 0.0  ;;  %v20076_v2 = vld [vmem:[%s25291_s4 + $0xa0] sm:$0xff]  }
 0x150   : > { %v755_v12 = vpop.f32.mrf.mxu0 }
 0x151   : > { %v756_v46 = vadd.f32 %v21057_v30, %v755_v12 }
 0x152   : > { %v18035_v13 = vpop.f32.mrf.mxu0 }
 0x153   : > { %v847_v57 = vmax.f32 %v756_v46, 0.0 }
 0x154   : > { %v760_v14 = vpop.f32.mrf.mxu0 }
 0x155   : > { %v761_v39 = vadd.f32 %v21057_v30, %v760_v14  ;;  %v21138_v7 = vpack.c.bf16 %v847_v57, %v846_v56  ;;  %v20074_v57 = vld [vmem:[%s25290_s3 + $0x18] ss:$12 sps:$4 sm:$0xff]  }
 0x156   : > { %v18038_v16 = vpop.f32.mrf.mxu0 }
 0x157   : > { %v848_v50 = vmax.f32 %v761_v39, 0.0 }
 0x158   : > { %v763_v17 = vpop.f32.mrf.mxu0 }
 0x159   : > { %v764_v36 = vadd.f32 %v21057_v30, %v763_v17 }
 0x15a   : > { %v18039_v18 = vpop.f32.mrf.mxu0 }
 0x15b   : > { %v849_v47 = vmax.f32 %v764_v36, 0.0 }
 0x15c   : > { %v768_v19 = vpop.f32.mrf.mxu0 }
 0x15d   : > { %v769_v23 = vadd.f32 %v21057_v30, %v768_v19  ;;  %v21125_v59 = vpack.c.bf16 %v849_v47, %v848_v50 }
 0x15e   : > { %v18042_v20 = vpop.f32.mrf.mxu0 }
 0x15f   : > { %v850_v29 = vmax.f32 %v769_v23, 0.0 }
 0x160   : > { %v771_v21 = vpop.f32.mrf.mxu0 }
 0x161   : > { %v772_v25 = vadd.f32 %v21057_v30, %v771_v21 }
 0x162   : > { %v18043_v22 = vpop.f32.mrf.mxu0 }
 0x163   : > { %v851_v31 = vmax.f32 %v772_v25, 0.0 }
 0x164   : > { %v776_v26 = vpop.f32.mrf.mxu0 }
 0x165   : > { %v777_v28 = vadd.f32 %v21057_v30, %v776_v26  ;;  %v21115_v48 = vpack.c.bf16 %v851_v31, %v850_v29  ;;  %v20070_v31 = vld [vmem:[%s25291_s4 + $0xb8] sm:$0xff]  }
 0x166   : > { %v18046_v27 = vpop.f32.mrf.mxu0 }
 0x167   : > { %v852_v37 = vmax.f32 %v777_v28, 0.0 }
 0x168   : > { %v779_v32 = vpop.f32.mrf.mxu0 }
 0x169   : > { %v780_v33 = vadd.f32 %v21057_v30, %v779_v32  ;;  %v737_v30 = vadd.f32 %v21134_v61, %v736_v63  ;;  %v21144_v63 = vpack.c.bf16 %v845_v6, %v844_v4  ;;  %v20077_v4 = vld [vmem:[%s25290_s3 + $0x34] ss:$12 sps:$4 sm:$0xff]  }
 0x16a   : > { %v18047_v35 = vpop.f32.mrf.mxu0 }
 0x16b   : > { %v853_v38 = vmax.f32 %v780_v33, 0.0  ;;  %v842_v10 = vmax.f32 %v737_v30, 0.0  ;;  %v20064_v33 = vld [vmem:[%s25290_s3] ss:$12 sps:$4 sm:$0xff]   ;;  %v20067_v35 = vld [vmem:[%s25290_s3 + $0xa8] ss:$12 sps:$4 sm:$0xff]  }
 0x16c   : > { %v784_v41 = vpop.f32.mrf.mxu0 }
 0x16d   : > { %v21111_v42 = vpack.c.bf16 %v853_v38, %v852_v37  ;;  %v21150_v13 = vpack.c.bf16 %v843_v11, %v842_v10  ;;  %v21153_v14 = vadd.f32 %v21134_v61, %v784_v41  ;;  %v20072_v37 = vld [vmem:[%s25290_s3 + $0x1c] ss:$12 sps:$4 sm:$0xff]  }
 0x16e   : > { %v18050_v43 = vpop.f32.mrf.mxu0  ;;  %v896_v10 = vld [vmem:[%s25290_s3 + $0x48] sm:$0x11] }
 0x16f   : > { %16057 = vmatprep.subr.bf16.mxu1 %v21111_v42  ;;  %16179 = vmatprep.subr.bf16.mxu0 %v21111_v42  ;;  %v854_v19 = vmax.f32 %v21153_v14, 0.0  ;;  %v20071_v43 = vld [vmem:[%s25291_s4 + $0xb0] sm:$0xff]  }
 0x170   : > { %v787_v51 = vpop.f32.mrf.mxu0  ;;  %16058 = vmatpush3.bf16.msra.mxu1 %v21095_v44  ;;  %16180 = vmatpush3.bf16.msra.mxu0 %v21095_v44  ;;  %v20086_v14 = vld [vmem:[%s25290_s3 + $0x8] ss:$12 sps:$4 sm:$0xff]  }
 0x171   : > { %16059 = vmatprep.subr.bf16.mxu1 %v21115_v48  ;;  %16181 = vmatprep.subr.bf16.mxu0 %v21115_v48  ;;  %v21156_v16 = vadd.f32 %v21134_v61, %v787_v51 }
 0x172   : > { %v18051_v53 = vpop.f32.mrf.mxu0 }
 0x173   : > { %v855_v20 = vmax.f32 %v21156_v16, 0.0  ;;  %v20075_v53 = vld [vmem:[%s25291_s4 + $0xa8] sm:$0xff]   ;;  %v20085_v16 = vld [vmem:[%s25291_s4 + $0x80] sm:$0xff]  }
 0x174   : > { %v792_v60 = vpop.f32.mrf.mxu0  ;;  %16060 = vmatpush3.bf16.msra.mxu1 %v21091_v34  ;;  %16182 = vmatpush3.bf16.msra.mxu0 %v21091_v34 }
 0x175   : > { %16061 = vmatprep.subr.bf16.mxu1 %v21125_v59  ;;  %16183 = vmatprep.subr.bf16.mxu0 %v21125_v59  ;;  %v21165_v21 = vadd.f32 %v21134_v61, %v792_v60 }
 0x176   : > { %v18054_v62 = vpop.f32.mrf.mxu0 }
 0x177   : > { %v856_v26 = vmax.f32 %v21165_v21, 0.0  ;;  %v14000_v21 = vcombine.low %v896_v10, %v896_v10 }
 0x178   : > { %v795_v8 = vpop.f32.mrf.mxu0  ;;  %16062 = vmatpush3.bf16.msra.mxu1 %v21087_v24  ;;  %16184 = vmatpush3.bf16.msra.mxu0 %v21087_v24 }
 0x179   : > { %16063 = vmatprep.subr.bf16.mxu1 %v21138_v7  ;;  %16185 = vmatprep.subr.bf16.mxu0 %v21138_v7  ;;  %v21168_v22 = vadd.f32 %v21134_v61, %v795_v8  ;;  %v20080_v8 = vld [vmem:[%s25291_s4 + $0x98] sm:$0xff]  }
 0x17a   : > { %v18055_v9 = vpop.f32.mrf.mxu0 }
 0x17b   : > { %v857_v27 = vmax.f32 %v21168_v22, 0.0  ;;  %v20079_v9 = vld [vmem:[%s25290_s3 + $0x30] ss:$12 sps:$4 sm:$0xff]  }
 0x17c   : > { %v800_v12 = vpop.f32.mrf.mxu0  ;;  %16064 = vmatpush3.bf16.msra.mxu1 %v21083_v15  ;;  %16186 = vmatpush3.bf16.msra.mxu0 %v21083_v15  ;;  %v20089_v22 = vld [vmem:[%s25290_s3 + $0x50] ss:$0 sps:$4 sm:$0x11]  }
 0x17d   : > { %16065 = vmatprep.subr.bf16.mxu1 %v21144_v63  ;;  %16187 = vmatprep.subr.bf16.mxu0 %v21144_v63  ;;  %v801_v28 = vadd.f32 %v21134_v61, %v800_v12  ;;  %v21239_v11 = vpack.c.bf16 %v857_v27, %v856_v26  ;;  %v20081_v12 = vld [vmem:[%s25291_s4 + $0x90] sm:$0xff]   ;;  %v20095_v27 = vld [vmem:[%s25290_s3 + $0x6c] ss:$12 sps:$4 sm:$0xff]  }
 0x17e   : > { %v18058_v3 = vpop.f32.mrf.mxu0  ;;  %v20093_v26 = vld [vmem:[%s25290_s3 + $0x70] ss:$12 sps:$4 sm:$0xff]  }
 0x17f   : > { %v858_v38 = vmax.f32 %v801_v28, 0.0  ;;  %v14001_v3 = vcombine.high %v896_v10, %v896_v10  ;;  %v20096_v28 = vld [vmem:[%s25290_s3 + $0x88] ss:$12 sps:$4 sm:$0xff]  }
 0x180   : > { %v803_v17 = vpop.f32.mrf.mxu0  ;;  %16066 = vmatpush3.bf16.msra.mxu1 %v21076_v5  ;;  %16188 = vmatpush3.bf16.msra.mxu0 %v21076_v5 }
 0x181   : > { %16067 = vmatprep.subr.bf16.mxu1 %v21150_v13  ;;  %16189 = vmatprep.subr.bf16.mxu0 %v21150_v13  ;;  %v804_v50 = vadd.f32 %v21134_v61, %v803_v17  ;;  %v21250_v17 = vpack.c.bf16 %v855_v20, %v854_v19  ;;  %v20087_v19 = vld [vmem:[%s25290_s3 + $0x20] ss:$12 sps:$4 sm:$0xff]   ;;  %v20088_v20 = vld [vmem:[%s25290_s3 + $0x38] ss:$12 sps:$4 sm:$0xff]  }
 0x182   : > { %v18059_v18 = vpop.f32.mrf.mxu0 }
 0x183   : > { %v20084_v18 = vld [vmem:[%s25291_s4 + $0x88] sm:$0xff]  }
 0x184   : > { %v808_v23 = vpop.f32.mrf.mxu0  ;;  %16068 = vmatpush3.bf16.msra.mxu1 %v21069_v58  ;;  %16190 = vmatpush3.bf16.msra.mxu0 %v21069_v58 }
 0x185   : > { %16069 = vmatprep.subr.bf16.mxu1 %v21103_v0  ;;  %16191 = vmatprep.subr.bf16.mxu0 %v21103_v0  ;;  %v809_v29 = vadd.f32 %v21134_v61, %v808_v23  ;;  %v20092_v23 = vld [vmem:[%s25290_s3 + $0x58] ss:$12 sps:$4 sm:$0xff]  }
 0x186   : > { %v18062_v25 = vpop.f32.mrf.mxu0 }
 0x187   : > { %v860_v39 = vmax.f32 %v809_v29, 0.0  ;;  %v20090_v25 = vld [vmem:[%s25290_s3 + $0x54] ss:$12 sps:$4 sm:$0xff]  }
 0x188   : > { %v811_v32 = vpop.f32.mrf.mxu0  ;;  %16070 = vmatpush3.bf16.msra.mxu1 %v21065_v49  ;;  %16192 = vmatpush3.bf16.msra.mxu0 %v21065_v49  ;;  %v14019_v29 = vld [vmem:[%s25290_s3 + $0x9c] sm:$0x11] }
 0x189   : > { %16071 = vmatprep.subr.bf16.mxu1 %v21099_v54  ;;  %16193 = vmatprep.subr.bf16.mxu0 %v21099_v54  ;;  %v812_v41 = vadd.f32 %v21134_v61, %v811_v32  ;;  %v14031_v32 = vcombine.high %v14019_v29, %v14019_v29 }
 0x18a   : > { %v18063_v36 = vpop.f32.mrf.mxu0 }
 0x18b   : > { %v861_v51 = vmax.f32 %v812_v41, 0.0  ;;  %v20102_v36 = vld [vmem:[%s25290_s3 + $0x74] ss:$12 sps:$4 sm:$0xff]  }
 0x18c   : > { %v816_v45 = vpop.f32.mrf.mxu0  ;;  %16072 = vmatpush3.bf16.msra.mxu1 %v21061_v40  ;;  %16194 = vmatpush3.bf16.msra.mxu0 %v21061_v40  ;;  %v20106_v41 = vld [vmem:[%s25291_s4 + $0x70] sm:$0xff]  }
 0x18d   : > { %v817_v46 = vadd.f32 %v21134_v61, %v816_v45  ;;  %18170 = vmatprep.subr.bf16.mxu0 %v20070_v31  ;;  %v859_v61 = vmax.f32 %v804_v50, 0.0  ;;  %v21210_v30 = vpack.c.bf16 %v861_v51, %v860_v39  ;;  %v20105_v39 = vld [vmem:[%s25291_s4 + $0x78] sm:$0xff]   ;;  %v20108_v45 = vld [vmem:[%s25291_s4 + $0x60] sm:$0xff]   ;;  %v20111_v50 = vld [vmem:[%s25291_s4 + $0x48] sm:$0xff]  }
 0x18e   : > { %v18066_v47 = vpop.f32.mrf.mxu0  ;;  %v20112_v51 = vld [vmem:[%s25291_s4 + $0x40] sm:$0xff]  }
 0x18f   : > { %v862_v52 = vmax.f32 %v817_v46, 0.0  ;;  %1003 = vmatmul.mubr.bf16.vlgmr.msra.gmra.mxu1 %v20064_v33  ;;  %1688 = vmatmul.mubr.bf16.vlgmr.msra.gmra.mxu0 %v20067_v35  ;;  %v21226_v6 = vpack.c.bf16 %v859_v61, %v858_v38  ;;  %v14030_v33 = vcombine.low %v14019_v29, %v14019_v29  ;;  %v20101_v35 = vld [vmem:[%s25290_s3 + $0x5c] ss:$12 sps:$4 sm:$0xff]   ;;  %v20104_v38 = vld [vmem:[%s25290_s3 + $0xa4] ss:$0 sps:$4 sm:$0x11]  }
 0x190   : > { %v819_v55 = vpop.f32.mrf.mxu0  ;;  %18171 = vmatpush3.bf16.msra.mxu0 %v20070_v31  ;;  %1010 = vmatprep.mubr.bf16.mxu1 %v20072_v37  ;;  %v20098_v31 = vld [vmem:[%s25290_s3 + $0x84] ss:$12 sps:$4 sm:$0xff]   ;;  %v20103_v37 = vld [vmem:[%s25290_s3 + $0x8c] ss:$12 sps:$4 sm:$0xff]  }
 0x191   : > { %v21205_v56 = vpack.c.bf16 %v862_v52, %v862_v52  ;;  %18172 = vmatprep.subr.bf16.mxu0 %v20071_v43  ;;  %v20109_v46 = vld [vmem:[%s25291_s4 + $0x58] sm:$0xff]   ;;  %v20110_v47 = vld [vmem:[%s25291_s4 + $0x50] sm:$0xff]  }
 0x192   : > { %v18067_v60 = vpop.f32.mrf.mxu0  ;;  %v21370_v52 = vld [vmem:[%s25291_s4 + $0x38] sm:$0xff]  }
 0x193   : > { %19998 = vmatprep.subr.msk.bf16.mxu1 %vm966_vm1, %v21205_v56  ;;  %v21216_v62 = vsel %vm966_vm1, %v21205_v56, 0 }
 0x194   : > { %18069 = vmatpush3.bf16.msra.mxu1 %v21216_v62  ;;  %18173 = vmatpush3.bf16.msra.mxu0 %v20071_v43  ;;  %v20107_v43 = vld [vmem:[%s25291_s4 + $0x68] sm:$0xff]  }
 0x195   : > { %18070 = vmatprep.subr.bf16.mxu1 %v21210_v30  ;;  %18174 = vmatprep.subr.bf16.mxu0 %v20075_v53 }
 0x197   : > { %1011 = vmatmul.mubr.bf16.gmra.mxu1 %v20074_v57 }
 0x198   : > { %18071 = vmatpush3.bf16.msra.mxu1 %v21210_v30  ;;  %18175 = vmatpush3.bf16.msra.mxu0 %v20075_v53 }
 0x199   : > { %18072 = vmatprep.subr.bf16.mxu1 %v21226_v6  ;;  %18176 = vmatprep.subr.bf16.mxu0 %v20076_v2 }
 0x19a   : > { %1018 = vmatprep.mubr.bf16.mxu1 %v20077_v4 }
 0x19c   : > { %18073 = vmatpush3.bf16.msra.mxu1 %v21226_v6  ;;  %18177 = vmatpush3.bf16.msra.mxu0 %v20076_v2 }
 0x19d   : > { %18074 = vmatprep.subr.bf16.mxu1 %v21239_v11  ;;  %18178 = vmatprep.subr.bf16.mxu0 %v20080_v8 }
 0x19f   : > { %1019 = vmatmul.mubr.bf16.gmra.mxu1 %v20079_v9 }
 0x1a0   : > { %18075 = vmatpush3.bf16.msra.mxu1 %v21239_v11  ;;  %18179 = vmatpush3.bf16.msra.mxu0 %v20080_v8 }
 0x1a1   : > { %18076 = vmatprep.subr.bf16.mxu1 %v21250_v17  ;;  %18180 = vmatprep.subr.bf16.mxu0 %v20081_v12 }
 0x1a2   : > { %1026 = vmatprep.mubr.bf16.mxu1 %v14001_v3 }
 0x1a4   : > { %18077 = vmatpush3.bf16.msra.mxu1 %v21250_v17  ;;  %18181 = vmatpush3.bf16.msra.mxu0 %v20081_v12 }
 0x1a5   : > { %16106 = vmatprep.subr.bf16.mxu1 %v21111_v42  ;;  %18182 = vmatprep.subr.bf16.mxu0 %v20084_v18 }
 0x1a7   : > { %1027 = vmatmul.mubr.bf16.gmra.mxu1 %v14000_v21  ;;  %v20121_v21 = vld [vmem:[%s25290_s3 + $0xc4] ss:$12 sps:$4 sm:$0xff]  }
 0x1a8   : > { %18183 = vmatpush3.bf16.msra.mxu0 %v20084_v18  ;;  %18078 = vmatprep.mubr.msk.bf16.mxu1 %vm953_vm2, %v20086_v14 }
 0x1a9   : > { %18184 = vmatprep.subr.bf16.mxu0 %v20085_v16  ;;  %1695 = vmatprep.mubr.bf16.mxu0 %v20121_v21 }
 0x1ac   : > { %18185 = vmatpush3.bf16.msra.mxu0 %v20085_v16  ;;  %v20123_v16 = vld [vmem:[%s25290_s3 + $0xc0] ss:$12 sps:$4 sm:$0xff]  }
 0x1ad   : > { %20001 = vmatprep.subr.msk.bf16.mxu0 %vm966_vm1, %v21205_v56  ;;  %1696 = vmatmul.mubr.bf16.gmra.mxu0 %v20123_v16 }
 0x1af   : > { %18079 = vmatmul.mubr.msk.bf16.vlgmr.msra.gmra.mxu1 %vm953_vm2, %v20087_v19 }
 0x1b0   : > { %16107 = vmatpush3.bf16.msra.mxu1 %v21095_v44  ;;  %18082 = vmatprep.mubr.msk.bf16.mxu1 %vm953_vm2, %v20088_v20 }
 0x1b1   : > { %16108 = vmatprep.subr.bf16.mxu1 %v21115_v48 }
 0x1b4   : > { %16109 = vmatpush3.bf16.msra.mxu1 %v21091_v34 }
 0x1b5   : > { %16110 = vmatprep.subr.bf16.mxu1 %v21125_v59 }
 0x1b7   : > { %18083 = vmatmul.mubr.msk.bf16.gmra.mxu1 %vm953_vm2, %v20089_v22 }
 0x1b8   : > { %16111 = vmatpush3.bf16.msra.mxu1 %v21087_v24  ;;  %1232 = vmatprep.mubr.bf16.mxu1 %v20092_v23 }
 0x1b9   : > { %16112 = vmatprep.subr.bf16.mxu1 %v21138_v7 }
 0x1bc   : > { %16113 = vmatpush3.bf16.msra.mxu1 %v21083_v15 }
 0x1bd   : > { %16114 = vmatprep.subr.bf16.mxu1 %v21144_v63 }
 0x1c0   : > { %16115 = vmatpush3.bf16.msra.mxu1 %v21076_v5 }
 0x1c1   : > { %16116 = vmatprep.subr.bf16.mxu1 %v21150_v13 }
 0x1c4   : > { %16117 = vmatpush3.bf16.msra.mxu1 %v21069_v58 }
 0x1c5   : > { %16118 = vmatprep.subr.bf16.mxu1 %v21103_v0 }
 0x1c8   : > { %16119 = vmatpush3.bf16.msra.mxu1 %v21065_v49 }
 0x1c9   : > { %16120 = vmatprep.subr.bf16.mxu1 %v21099_v54 }
 0x1cc   : > { %16121 = vmatpush3.bf16.msra.mxu1 %v21061_v40 }
 0x1cd   : > { %19999 = vmatprep.subr.msk.bf16.mxu1 %vm966_vm1, %v21205_v56 }
 0x1cf   : > { %1233 = vmatmul.mubr.bf16.vlgmr.msra.gmra.mxu1 %v20090_v25 }
 0x1d0   : > { %18087 = vmatpush3.bf16.msra.mxu1 %v21216_v62  ;;  %1240 = vmatprep.mubr.bf16.mxu1 %v20093_v26  ;;  %v20126_v26 = vld [vmem:[%s25290_s3 + $0xdc] ss:$12 sps:$4 sm:$0xff]  }
 0x1d1   : > { %18088 = vmatprep.subr.bf16.mxu1 %v21210_v30  ;;  %1703 = vmatprep.mubr.bf16.mxu0 %v20126_v26 }
 0x1d4   : > { %18089 = vmatpush3.bf16.msra.mxu1 %v21210_v30 }
 0x1d5   : > { %18090 = vmatprep.subr.bf16.mxu1 %v21226_v6 }
 0x1d7   : > { %1241 = vmatmul.mubr.bf16.gmra.mxu1 %v20095_v27  ;;  %v20128_v27 = vld [vmem:[%s25290_s3 + $0xd8] ss:$12 sps:$4 sm:$0xff]  }
 0x1d8   : > { %18091 = vmatpush3.bf16.msra.mxu1 %v21226_v6  ;;  %1248 = vmatprep.mubr.bf16.mxu1 %v20096_v28 }
 0x1d9   : > { %18092 = vmatprep.subr.bf16.mxu1 %v21239_v11  ;;  %1704 = vmatmul.mubr.bf16.gmra.mxu0 %v20128_v27 }
 0x1dc   : > { %18093 = vmatpush3.bf16.msra.mxu1 %v21239_v11 }
 0x1dd   : > { %18094 = vmatprep.subr.bf16.mxu1 %v21250_v17 }
 0x1df   : > { %1249 = vmatmul.mubr.bf16.gmra.mxu1 %v20098_v31 }
 0x1e0   : > { %18095 = vmatpush3.bf16.msra.mxu1 %v21250_v17  ;;  %1256 = vmatprep.mubr.bf16.mxu1 %v14031_v32 }
 0x1e1   : > { %18104 = vmatprep.subr.bf16.mxu1 %v20105_v39 }
 0x1e7   : > { %1257 = vmatmul.mubr.bf16.gmra.mxu1 %v14030_v33 }
 0x1e8   : > { %18096 = vmatprep.mubr.msk.bf16.mxu1 %vm953_vm2, %v20101_v35 }
 0x1ef   : > { %18097 = vmatmul.mubr.msk.bf16.vlgmr.msra.gmra.mxu1 %vm953_vm2, %v20102_v36  ;;  %v14081_v36 = vld [vmem:[%s25290_s3 + $0xf0] sm:$0x11] }
 0x1f0   : > { %18100 = vmatprep.mubr.msk.bf16.mxu1 %vm953_vm2, %v20103_v37  ;;  %18105 = vmatpush3.bf16.msra.mxu1 %v20105_v39 }
 0x1f1   : > { %18106 = vmatprep.subr.bf16.mxu1 %v20106_v41 }
 0x1f4   : > { %18107 = vmatpush3.bf16.msra.mxu1 %v20106_v41 }
 0x1f5   : > { %18108 = vmatprep.subr.bf16.mxu1 %v20107_v43 }
 0x1f7   : > { %18101 = vmatmul.mubr.msk.bf16.gmra.mxu1 %vm953_vm2, %v20104_v38  ;;  %v14093_v38 = vcombine.high %v14081_v36, %v14081_v36 }
 0x1f8   : > { %18109 = vmatpush3.bf16.msra.mxu1 %v20107_v43  ;;  %v14092_v43 = vcombine.low %v14081_v36, %v14081_v36 }
 0x1f9   : > { %18110 = vmatprep.subr.bf16.mxu1 %v20108_v45  ;;  %1711 = vmatprep.mubr.bf16.mxu0 %v14093_v38 }
 0x1fa   : > { %1712 = vmatmul.mubr.bf16.gmra.mxu0 %v14092_v43 }
 0x1fc   : > { %18111 = vmatpush3.bf16.msra.mxu1 %v20108_v45 }
 0x1fd   : > { %18112 = vmatprep.subr.bf16.mxu1 %v20109_v46 }
 0x200   : > { %18113 = vmatpush3.bf16.msra.mxu1 %v20109_v46 }
 0x201   : > { %18114 = vmatprep.subr.bf16.mxu1 %v20110_v47 }
 0x204   : > { %18115 = vmatpush3.bf16.msra.mxu1 %v20110_v47 }
 0x205   : > { %18116 = vmatprep.subr.bf16.mxu1 %v20111_v50 }
 0x208   : > { %18117 = vmatpush3.bf16.msra.mxu1 %v20111_v50 }
 0x209   : > { %18118 = vmatprep.subr.bf16.mxu1 %v20112_v51 }
 0x20c   : > { %18119 = vmatpush3.bf16.msra.mxu1 %v20112_v51 }
 0x20d   : > { %18128 = vmatprep.subr.bf16.mxu1 %v21370_v52 }
 0x24f   : > { %v16073_v53 = vpop.f32.mrf.mxu1 }
 0x251   : > { %v16074_v55 = vpop.f32.mrf.mxu1 }
 0x252   : > { %v16075_v57 = vadd.f32 %v16074_v55, %v16073_v53 }
 0x253   : > { %v16076_v60 = vpop.f32.mrf.mxu1 }
 0x255   : > { %v16077_v61 = vpop.f32.mrf.mxu1 }
 0x256   : > { %v16078_v39 = vadd.f32 %v16077_v61, %v16076_v60 }
 0x257   : > { %v16079_v2 = vpop.f32.mrf.mxu1 }
 0x259   : > { %v16080_v4 = vpop.f32.mrf.mxu1 }
 0x25a   : > { %v16081_v8 = vadd.f32 %v16080_v4, %v16079_v2 }
 0x25b   : > { %v16082_v9 = vpop.f32.mrf.mxu1 }
 0x25d   : > { %v16083_v10 = vpop.f32.mrf.mxu1 }
 0x25e   : > { %v16084_v33 = vadd.f32 %v16083_v10, %v16082_v9 }
 0x25f   : > { %v16085_v12 = vpop.f32.mrf.mxu1 }
 0x261   : > { %v16086_v3 = vpop.f32.mrf.mxu1 }
 0x262   : > { %v16087_v18 = vadd.f32 %v16086_v3, %v16085_v12 }
 0x263   : > { %v16088_v14 = vpop.f32.mrf.mxu1 }
 0x265   : > { %v16089_v19 = vpop.f32.mrf.mxu1 }
 0x266   : > { %v16090_v61 = vadd.f32 %v16089_v19, %v16088_v14 }
 0x267   : > { %v16091_v20 = vpop.f32.mrf.mxu1 }
 0x269   : > { %v16092_v22 = vpop.f32.mrf.mxu1 }
 0x26a   : > { %v16093_v23 = vadd.f32 %v16092_v22, %v16091_v20 }
 0x26b   : > { %v16094_v25 = vpop.f32.mrf.mxu1 }
 0x26d   : > { %v16095_v28 = vpop.f32.mrf.mxu1 }
 0x26f   : > { %v18080_v29 = vpop.f32.mrf.mxu1 }
 0x270   : > { %v21385_v31 = vadd.f32 %v18080_v29, %v16081_v8 }
 0x271   : > { %v1068_v32 = vpop.f32.mrf.mxu1 }
 0x272   : > { %v21387_v35 = vadd.f32 %v16075_v57, %v1068_v32 }
 0x273   : > { %v18081_v37 = vpop.f32.mrf.mxu1 }
 0x274   : > { %v21392_v41 = vadd.f32 %v18081_v37, %v16084_v33 }
 0x275   : > { %v1071_v45 = vpop.f32.mrf.mxu1 }
 0x276   : > { %v1099_v46 = vpack.c.bf16 %v21392_v41, %v21385_v31  ;;  %v21396_v47 = vadd.f32 %v16078_v39, %v1071_v45  ;;  %v20125_v31 = vld [vmem:[%s25290_s3 + $0xc8] ss:$12 sps:$4 sm:$0xff]   ;;  %v20129_v41 = vld [vmem:[%s25290_s3 + $0xe0] ss:$12 sps:$4 sm:$0xff]  }
 0x277   : > { %v18084_v50 = vpop.f32.mrf.mxu1 }
 0x278   : > { %v1098_v51 = vpack.c.bf16 %v21396_v47, %v21387_v35  ;;  %v21400_v53 = vadd.f32 %v18084_v50, %v16093_v23 }
 0x279   : > { %v1084_v55 = vpop.f32.mrf.mxu1 }
 0x27a   : > { %v21402_v57 = vadd.f32 %v16087_v18, %v1084_v55 }
 0x27b   : > { %v18085_v60 = vpop.f32.mrf.mxu1 }
 0x27d   : > { %v1087_v2 = vpop.f32.mrf.mxu1 }
 0x27e   : > { %v21404_v4 = vadd.f32 %v16090_v61, %v1087_v2 }
 0x280   : > { %v1100_v8 = vpack.c.bf16 %v21404_v4, %v21402_v57  ;;  %v20136_v57 = vld [vmem:[%s25291_s4 + $0xf8] sm:$0xff]  }
 0x281   : > { %v20133_v4 = vld [vmem:[%s25290_s3 + $0xfc] ss:$12 sps:$4 sm:$0xff]  }
 0x28f   : > { %v16122_v9 = vpop.f32.mrf.mxu1 }
 0x291   : > { %v16123_v10 = vpop.f32.mrf.mxu1 }
 0x292   : > { %v16124_v36 = vadd.f32 %v16123_v10, %v16122_v9 }
 0x293   : > { %v16125_v12 = vpop.f32.mrf.mxu1 }
 0x295   : > { %v16126_v3 = vpop.f32.mrf.mxu1 }
 0x296   : > { %v16127_v37 = vadd.f32 %v16126_v3, %v16125_v12 }
 0x297   : > { %v16128_v21 = vpop.f32.mrf.mxu1 }
 0x299   : > { %v16129_v16 = vpop.f32.mrf.mxu1 }
 0x29a   : > { %v16130_v38 = vadd.f32 %v16129_v16, %v16128_v21  ;;  %v20115_v21 = vld [vmem:[%s25291_s4 + $0x28] sm:$0xff]  }
 0x29b   : > { %v16131_v20 = vpop.f32.mrf.mxu1 }
 0x29d   : > { %v16132_v22 = vpop.f32.mrf.mxu1 }
 0x29e   : > { %v16133_v33 = vadd.f32 %v16132_v22, %v16131_v20 }
 0x29f   : > { %v16134_v23 = vpop.f32.mrf.mxu1 }
 0x2a1   : > { %v16135_v25 = vpop.f32.mrf.mxu1 }
 0x2a2   : > { %v16136_v9 = vadd.f32 %v16135_v25, %v16134_v23  ;;  %v20116_v23 = vld [vmem:[%s25291_s4 + $0x20] sm:$0xff]   ;;  %v20118_v25 = vld [vmem:[%s25291_s4 + $0x10] sm:$0xff]  }
 0x2a3   : > { %v16137_v18 = vpop.f32.mrf.mxu1 }
 0x2a5   : > { %v16138_v26 = vpop.f32.mrf.mxu1 }
 0x2a6   : > { %v16139_v10 = vadd.f32 %v16138_v26, %v16137_v18  ;;  %v20119_v18 = vld [vmem:[%s25291_s4 + $0x8] sm:$0xff]   ;;  %v20124_v26 = vld [vmem:[%s25290_s3 + $0xb0] ss:$12 sps:$4 sm:$0xff]  }
 0x2a7   : > { %v16140_v27 = vpop.f32.mrf.mxu1 }
 0x2a9   : > { %v16141_v14 = vpop.f32.mrf.mxu1 }
 0x2ab   : > { %v16143_v19 = vpop.f32.mrf.mxu1 }
 0x2ac   : > { %v20114_v19 = vld [vmem:[%s25291_s4 + $0x30] sm:$0xff]  }
 0x2ad   : > { %v16144_v28 = vpop.f32.mrf.mxu1 }
 0x2ae   : > { %v16142_v28 = vadd.f32 %v16141_v14, %v16140_v27  ;;  %v1101_v27 = vpack.c.bf16 %v21400_v53, %v21400_v53  ;;  %v20135_v53 = vld [vmem:[%s25290_s3 + $0x100] ss:$12 sps:$4 sm:$0xff]  }
 0x2af   : > { %v18098_v29 = vpop.f32.mrf.mxu1  ;;  %v20138_v14 = vld [vmem:[%s25291_s4 + $0xe8] sm:$0xff]  }
 0x2b0   : > { %v1307_v50 = vadd.f32 %v18098_v29, %v16130_v38 }
 0x2b1   : > { %v1298_v32 = vpop.f32.mrf.mxu1 }
 0x2b2   : > { %v1299_v45 = vadd.f32 %v16124_v36, %v1298_v32  ;;  %v20141_v36 = vld [vmem:[%s25291_s4 + $0xd0] sm:$0xff]  }
 0x2b3   : > { %v18099_v35 = vpop.f32.mrf.mxu1 }
 0x2b4   : > { %v1310_v39 = vadd.f32 %v18099_v35, %v16133_v33  ;;  %v20139_v33 = vld [vmem:[%s25291_s4 + $0xe0] sm:$0xff]   ;;  %v20140_v35 = vld [vmem:[%s25291_s4 + $0xd8] sm:$0xff]  }
 0x2b5   : > { %v1301_v43 = vpop.f32.mrf.mxu1 }
 0x2b6   : > { %v1302_v47 = vadd.f32 %v16127_v37, %v1301_v43  ;;  %v1329_v61 = vpack.c.bf16 %v1310_v39, %v1307_v50  ;;  %v16195_v37 = vpop.f32.mrf.mxu0  ;;  %v20142_v39 = vld [vmem:[%s25291_s4 + $0xc8] sm:$0xff]   ;;  %v20143_v50 = vld [vmem:[%s25291_s4 + $0xc0] sm:$0xff]  }
 0x2b7   : > { %v18102_v55 = vpop.f32.mrf.mxu1 }
 0x2b8   : > { %v1328_v60 = vpack.c.bf16 %v1302_v47, %v1299_v45  ;;  %v1323_v12 = vadd.f32 %v18102_v55, %v16142_v28  ;;  %v16196_v38 = vpop.f32.mrf.mxu0 }
 0x2b9   : > { %v1314_v2 = vpop.f32.mrf.mxu1  ;;  %v21510_v45 = vadd.f32 %v16196_v38, %v16195_v37 }
 0x2ba   : > { %18120 = vmatprep.mubr.bf16.mxu1 %v1328_v60  ;;  %v1315_v16 = vadd.f32 %v16136_v9, %v1314_v2  ;;  %v1331_v32 = vpack.c.bf16 %v1323_v12, %v1323_v12  ;;  %v21508_v43 = vpop.f32.mrf.mxu0 }
 0x2bb   : > { %v18103_v20 = vpop.f32.mrf.mxu1  ;;  %18121 = vmatmul.mubr.bf16.vlgmr.msra.gmra.mxu1 %v1329_v61 }
 0x2bc   : > { %18129 = vmatpush3.bf16.msra.mxu1 %v21370_v52  ;;  %v20117_v52 = vld [vmem:[%s25291_s4 + $0x18] sm:$0xff]   ;;  %v16199_v47 = vpop.f32.mrf.mxu0 }
 0x2bd   : > { %v1317_v3 = vpop.f32.mrf.mxu1  ;;  %18130 = vmatprep.subr.bf16.mxu1 %v20114_v19 }
 0x2be   : > { %v1318_v22 = vadd.f32 %v16139_v10, %v1317_v3  ;;  %v16201_v55 = vpop.f32.mrf.mxu0 }
 0x2c0   : > { %v1330_v29 = vpack.c.bf16 %v1318_v22, %v1315_v16  ;;  %18131 = vmatpush3.bf16.msra.mxu1 %v20114_v19  ;;  %v16202_v60 = vpop.f32.mrf.mxu0 }
 0x2c1   : > { %18132 = vmatprep.subr.bf16.mxu1 %v20115_v21  ;;  %v16203_v61 = vadd.f32 %v16202_v60, %v16201_v55 }
 0x2c2   : > { %18124 = vmatprep.mubr.bf16.mxu1 %v1330_v29  ;;  %v16204_v2 = vpop.f32.mrf.mxu0 }
 0x2c3   : > { %18125 = vmatmul.mubr.bf16.gmra.mxu1 %v1331_v32  ;;  %v20144_v32 = vld [vmem:[%s25290_s3 + $0x118] ss:$12 sps:$4 sm:$0xff]  }
 0x2c4   : > { %18133 = vmatpush3.bf16.msra.mxu1 %v20115_v21  ;;  %18144 = vmatprep.mubr.bf16.mxu1 %v1098_v51  ;;  %v20120_v51 = vld [vmem:[%s25291_s4] sm:$0xff]   ;;  %v16205_v19 = vpop.f32.mrf.mxu0 }
 0x2c5   : > { %18134 = vmatprep.subr.bf16.mxu1 %v20116_v23 }
 0x2c6   : > { %v16207_v28 = vpop.f32.mrf.mxu0 }
 0x2c8   : > { %18135 = vmatpush3.bf16.msra.mxu1 %v20116_v23  ;;  %v16208_v20 = vpop.f32.mrf.mxu0  ;;  %v20146_v23 = vld [vmem:[%s25290_s3 + $0x114] ss:$12 sps:$4 sm:$0xff]  }
 0x2c9   : > { %18136 = vmatprep.subr.bf16.mxu1 %v20117_v52  ;;  %v16209_v12 = vadd.f32 %v16208_v20, %v16207_v28 }
 0x2ca   : > { %v16210_v9 = vpop.f32.mrf.mxu0 }
 0x2cc   : > { %18137 = vmatpush3.bf16.msra.mxu1 %v20117_v52  ;;  %v16211_v10 = vpop.f32.mrf.mxu0  ;;  %v20149_v52 = vld [vmem:[%s25290_s3 + $0x130] ss:$12 sps:$4 sm:$0xff]  }
 0x2cd   : > { %18138 = vmatprep.subr.bf16.mxu1 %v20118_v25 }
 0x2ce   : > { %v16213_v3 = vpop.f32.mrf.mxu0 }
 0x2d0   : > { %18139 = vmatpush3.bf16.msra.mxu1 %v20118_v25  ;;  %v16214_v21 = vpop.f32.mrf.mxu0  ;;  %v20151_v25 = vld [vmem:[%s25290_s3 + $0x12c] ss:$12 sps:$4 sm:$0xff]  }
 0x2d1   : > { %18140 = vmatprep.subr.bf16.mxu1 %v20119_v18  ;;  %v16215_v16 = vadd.f32 %v16214_v21, %v16213_v3 }
 0x2d2   : > { %v16216_v22 = vpop.f32.mrf.mxu0 }
 0x2d4   : > { %18141 = vmatpush3.bf16.msra.mxu1 %v20119_v18  ;;  %v16217_v29 = vpop.f32.mrf.mxu0  ;;  %v14135_v18 = vld [vmem:[%s25290_s3 + $0x144] sm:$0x11] }
 0x2d5   : > { %18142 = vmatprep.subr.bf16.mxu1 %v20120_v51  ;;  %v16206_v29 = vadd.f32 %v16205_v19, %v16204_v2 }
 0x2d8   : > { %18143 = vmatpush3.bf16.msra.mxu1 %v20120_v51  ;;  %v14147_v51 = vcombine.high %v14135_v18, %v14135_v18 }
 0x2d9   : > { %20000 = vmatprep.subr.msk.bf16.mxu1 %vm966_vm1, %v21205_v56 }
 0x2db   : > { %18145 = vmatmul.mubr.bf16.vlgmr.msra.gmra.mxu1 %v1099_v46  ;;  %v20130_v46 = vld [vmem:[%s25290_s3 + $0xf8] ss:$0 sps:$4 sm:$0x11]  }
 0x2dc   : > { %18148 = vmatprep.mubr.bf16.mxu1 %v1100_v8  ;;  %18153 = vmatpush3.bf16.msra.mxu1 %v21216_v62  ;;  %v20137_v8 = vld [vmem:[%s25291_s4 + $0xf0] sm:$0xff]  }
 0x2dd   : > { %18154 = vmatprep.subr.bf16.mxu1 %v21210_v30 }
 0x2e0   : > { %18155 = vmatpush3.bf16.msra.mxu1 %v21210_v30 }
 0x2e1   : > { %18156 = vmatprep.subr.bf16.mxu1 %v21226_v6 }
 0x2e3   : > { %18149 = vmatmul.mubr.bf16.gmra.mxu1 %v1101_v27 }
 0x2e4   : > { %18157 = vmatpush3.bf16.msra.mxu1 %v21226_v6  ;;  %18162 = vmatprep.mubr.msk.bf16.mxu1 %vm953_vm2, %v20124_v26  ;;  %v14146_v26 = vcombine.low %v14135_v18, %v14135_v18 }
 0x2e5   : > { %18158 = vmatprep.subr.bf16.mxu1 %v21239_v11 }
 0x2e8   : > { %18159 = vmatpush3.bf16.msra.mxu1 %v21239_v11 }
 0x2e9   : > { %18160 = vmatprep.subr.bf16.mxu1 %v21250_v17 }
 0x2ec   : > { %18161 = vmatpush3.bf16.msra.mxu1 %v21250_v17 }
 0x2ed   : > { %16240 = vmatprep.subr.bf16.mxu1 %v21111_v42 }
 0x2ef   : > { %18163 = vmatmul.mubr.msk.bf16.vlgmr.msra.gmra.mxu1 %vm953_vm2, %v20125_v31 }
 0x2f0   : > { %16241 = vmatpush3.bf16.msra.mxu1 %v21095_v44  ;;  %18166 = vmatprep.mubr.msk.bf16.mxu1 %vm953_vm2, %v20129_v41 }
 0x2f1   : > { %16242 = vmatprep.subr.bf16.mxu1 %v21115_v48 }
 0x2f4   : > { %16243 = vmatpush3.bf16.msra.mxu1 %v21091_v34 }
 0x2f5   : > { %16244 = vmatprep.subr.bf16.mxu1 %v21125_v59 }
 0x2f7   : > { %18167 = vmatmul.mubr.msk.bf16.gmra.mxu1 %vm953_vm2, %v20130_v46 }
 0x2f8   : > { %16245 = vmatpush3.bf16.msra.mxu1 %v21087_v24  ;;  %2037 = vmatprep.mubr.bf16.mxu1 %v20135_v53 }
 0x2f9   : > { %16246 = vmatprep.subr.bf16.mxu1 %v21138_v7 }
 0x2fc   : > { %16247 = vmatpush3.bf16.msra.mxu1 %v21083_v15 }
 0x2fd   : > { %16248 = vmatprep.subr.bf16.mxu1 %v21144_v63 }
 0x300   : > { %16249 = vmatpush3.bf16.msra.mxu1 %v21076_v5 }
 0x301   : > { %16250 = vmatprep.subr.bf16.mxu1 %v21150_v13 }
 0x304   : > { %16251 = vmatpush3.bf16.msra.mxu1 %v21069_v58 }
 0x305   : > { %16252 = vmatprep.subr.bf16.mxu1 %v21103_v0 }
 0x308   : > { %16253 = vmatpush3.bf16.msra.mxu1 %v21065_v49 }
 0x309   : > { %16254 = vmatprep.subr.bf16.mxu1 %v21099_v54 }
 0x30c   : > { %16255 = vmatpush3.bf16.msra.mxu1 %v21061_v40 }
 0x30d   : > { %18212 = vmatprep.subr.bf16.mxu1 %v20136_v57 }
 0x30f   : > { %2038 = vmatmul.mubr.bf16.vlgmr.msra.gmra.mxu1 %v20133_v4 }
 0x310   : > { %18213 = vmatpush3.bf16.msra.mxu1 %v20136_v57  ;;  %2045 = vmatprep.mubr.bf16.mxu1 %v20144_v32 }
 0x311   : > { %18214 = vmatprep.subr.bf16.mxu1 %v20137_v8 }
 0x314   : > { %18215 = vmatpush3.bf16.msra.mxu1 %v20137_v8 }
 0x315   : > { %18216 = vmatprep.subr.bf16.mxu1 %v20138_v14 }
 0x317   : > { %2046 = vmatmul.mubr.bf16.gmra.mxu1 %v20146_v23  ;;  %v16200_v23 = vadd.f32 %v16199_v47, %v21508_v43 }
 0x318   : > { %18217 = vmatpush3.bf16.msra.mxu1 %v20138_v14  ;;  %2053 = vmatprep.mubr.bf16.mxu1 %v20149_v52 }
 0x319   : > { %18218 = vmatprep.subr.bf16.mxu1 %v20139_v33 }
 0x31c   : > { %18219 = vmatpush3.bf16.msra.mxu1 %v20139_v33 }
 0x31d   : > { %18220 = vmatprep.subr.bf16.mxu1 %v20140_v35 }
 0x31f   : > { %2054 = vmatmul.mubr.bf16.gmra.mxu1 %v20151_v25 }
 0x320   : > { %18221 = vmatpush3.bf16.msra.mxu1 %v20140_v35  ;;  %2061 = vmatprep.mubr.bf16.mxu1 %v14147_v51 }
 0x321   : > { %18222 = vmatprep.subr.bf16.mxu1 %v20141_v36 }
 0x324   : > { %18223 = vmatpush3.bf16.msra.mxu1 %v20141_v36 }
 0x325   : > { %18224 = vmatprep.subr.bf16.mxu1 %v20142_v39 }
 0x327   : > { %2062 = vmatmul.mubr.bf16.gmra.mxu1 %v14146_v26 }
 0x328   : > { %18225 = vmatpush3.bf16.msra.mxu1 %v20142_v39 }
 0x329   : > { %18226 = vmatprep.subr.bf16.mxu1 %v20143_v50 }
 0x32c   : > { %18227 = vmatpush3.bf16.msra.mxu1 %v20143_v50 }
 0x32d   : > { %20002 = vmatprep.subr.msk.bf16.mxu1 %vm966_vm1, %v21205_v56 }
 0x37b   : > { %v18122_v27 = vpop.f32.mrf.mxu1 }
 0x37d   : > { %v1431_v31 = vpop.f32.mrf.mxu1 }
 0x37f   : > { %v18123_v41 = vpop.f32.mrf.mxu1 }
 0x381   : > { %v21532_v46 = vpop.f32.mrf.mxu1 }
 0x383   : > { %v18126_v53 = vpop.f32.mrf.mxu1 }
 0x385   : > { %v1447_v57 = vpop.f32.mrf.mxu1 }
 0x387   : > { %v18127_v4 = vpop.f32.mrf.mxu1 }
 0x388   : > { %v16212_v4 = vadd.f32 %v16211_v10, %v16210_v9  ;;  %v20148_v9 = vld [vmem:[%s25290_s3 + $0x11c] ss:$12 sps:$4 sm:$0xff]   ;;  %v20152_v10 = vld [vmem:[%s25290_s3 + $0x134] ss:$12 sps:$4 sm:$0xff]  }
 0x389   : > { %v21534_v8 = vpop.f32.mrf.mxu1 }
 0x39b   : > { %v18146_v14 = vpop.f32.mrf.mxu1 }
 0x39c   : > { %v21536_v33 = vadd.f32 %v18146_v14, %v18122_v27 }
 0x39d   : > { %v1543_v35 = vpop.f32.mrf.mxu1 }
 0x39e   : > { %v21538_v36 = vadd.f32 %v1543_v35, %v1431_v31  ;;  %v20159_v35 = vld [vmem:[%s25291_s4 + $0x138] sm:$0xff]  }
 0x39f   : > { %v18147_v37 = vpop.f32.mrf.mxu1 }
 0x3a0   : > { %v21540_v38 = vadd.f32 %v18147_v37, %v18123_v41  ;;  %v20156_v37 = vld [vmem:[%s25290_s3 + $0x150] ss:$12 sps:$4 sm:$0xff]  }
 0x3a1   : > { %v21542_v39 = vpop.f32.mrf.mxu1 }
 0x3a3   : > { %v18150_v50 = vpop.f32.mrf.mxu1 }
 0x3a4   : > { %v21544_v55 = vadd.f32 %v18150_v50, %v18126_v53  ;;  %v20160_v50 = vld [vmem:[%s25291_s4 + $0x130] sm:$0xff]  }
 0x3a5   : > { %v1559_v60 = vpop.f32.mrf.mxu1 }
 0x3a6   : > { %v21546_v28 = vadd.f32 %v1559_v60, %v1447_v57  ;;  %v20161_v60 = vld [vmem:[%s25291_s4 + $0x128] sm:$0xff]  }
 0x3a7   : > { %v18151_v20 = vpop.f32.mrf.mxu1 }
 0x3a8   : > { %v20162_v20 = vld [vmem:[%s25291_s4 + $0x120] sm:$0xff]  }
 0x3a9   : > { %v21548_v3 = vpop.f32.mrf.mxu1 }
 0x3af   : > { %v18164_v21 = vpop.f32.mrf.mxu1 }
 0x3b0   : > { %v1762_v52 = vadd.f32 %v18164_v21, %v16203_v61  ;;  %v20163_v21 = vld [vmem:[%s25291_s4 + $0x118] sm:$0xff]  }
 0x3b1   : > { %v1753_v22 = vpop.f32.mrf.mxu1 }
 0x3b2   : > { %v1754_v51 = vadd.f32 %v21510_v45, %v1753_v22  ;;  %v20147_v45 = vld [vmem:[%s25290_s3 + $0x104] ss:$12 sps:$4 sm:$0xff]  }
 0x3b3   : > { %v18165_v32 = vpop.f32.mrf.mxu1  ;;  %v20164_v22 = vld [vmem:[%s25291_s4 + $0x110] sm:$0xff]  }
 0x3b4   : > { %v1765_v25 = vadd.f32 %v18165_v32, %v16206_v29 }
 0x3b5   : > { %v1756_v18 = vpop.f32.mrf.mxu1 }
 0x3b6   : > { %v1784_v26 = vpack.c.bf16 %v1765_v25, %v1762_v52  ;;  %v1757_v27 = vadd.f32 %v16200_v23, %v1756_v18  ;;  %v20165_v23 = vld [vmem:[%s25291_s4 + $0x108] sm:$0xff]  }
 0x3b7   : > { %v18168_v31 = vpop.f32.mrf.mxu1 }
 0x3b8   : > { %v1783_v41 = vpack.c.bf16 %v1757_v27, %v1754_v51  ;;  %v1778_v2 = vadd.f32 %v18168_v31, %v16215_v16  ;;  %v20158_v16 = vld [vmem:[%s25290_s3 + $0x154] ss:$12 sps:$4 sm:$0xff]  }
 0x3b9   : > { %v1769_v53 = vpop.f32.mrf.mxu1  ;;  %v20166_v51 = vld [vmem:[%s25291_s4 + $0x100] sm:$0xff]  }
 0x3ba   : > { %18186 = vmatprep.mubr.bf16.mxu0 %v1783_v41  ;;  %v1770_v47 = vadd.f32 %v16209_v12, %v1769_v53  ;;  %v1786_v14 = vpack.c.bf16 %v1778_v2, %v1778_v2  ;;  %v20153_v12 = vld [vmem:[%s25290_s3 + $0x14c] ss:$0 sps:$4 sm:$0x11]  }
 0x3bb   : > { %v18169_v57 = vpop.f32.mrf.mxu1  ;;  %18187 = vmatmul.mubr.bf16.vlgmr.msra.gmra.mxu0 %v1784_v26 }
 0x3bc   : > { %18195 = vmatpush3.bf16.msra.mxu0 %v21216_v62 }
 0x3bd   : > { %18196 = vmatprep.subr.bf16.mxu0 %v21210_v30  ;;  %v1772_v43 = vpop.f32.mrf.mxu1 }
 0x3be   : > { %v1773_v61 = vadd.f32 %v16212_v4, %v1772_v43 }
 0x3c0   : > { %v1785_v19 = vpack.c.bf16 %v1773_v61, %v1770_v47  ;;  %18197 = vmatpush3.bf16.msra.mxu0 %v21210_v30 }
 0x3c1   : > { %18198 = vmatprep.subr.bf16.mxu0 %v21226_v6 }
 0x3c2   : > { %18190 = vmatprep.mubr.bf16.mxu0 %v1785_v19 }
 0x3c3   : > { %18191 = vmatmul.mubr.bf16.gmra.mxu0 %v1786_v14 }
 0x3c4   : > { %18199 = vmatpush3.bf16.msra.mxu0 %v21226_v6  ;;  %18204 = vmatprep.mubr.msk.bf16.mxu0 %vm953_vm2, %v20147_v45 }
 0x3c5   : > { %18200 = vmatprep.subr.bf16.mxu0 %v21239_v11 }
 0x3c8   : > { %18201 = vmatpush3.bf16.msra.mxu0 %v21239_v11 }
 0x3c9   : > { %18202 = vmatprep.subr.bf16.mxu0 %v21250_v17 }
 0x3cc   : > { %18203 = vmatpush3.bf16.msra.mxu0 %v21250_v17 }
 0x3cd   : > { %16301 = vmatprep.subr.bf16.mxu0 %v21111_v42 }
 0x3cf   : > { %18205 = vmatmul.mubr.msk.bf16.vlgmr.msra.gmra.mxu0 %vm953_vm2, %v20148_v9  ;;  %v16256_v29 = vpop.f32.mrf.mxu1 }
 0x3d0   : > { %16302 = vmatpush3.bf16.msra.mxu0 %v21095_v44  ;;  %18208 = vmatprep.mubr.msk.bf16.mxu0 %vm953_vm2, %v20152_v10  ;;  %v20169_v10 = vld [vmem:[%s25290_s3 + $0x16c] ss:$12 sps:$4 sm:$0xff]  }
 0x3d1   : > { %16303 = vmatprep.subr.bf16.mxu0 %v21115_v48  ;;  %v16257_v32 = vpop.f32.mrf.mxu1 }
 0x3d2   : > { %v16258_v25 = vadd.f32 %v16257_v32, %v16256_v29 }
 0x3d3   : > { %v16259_v52 = vpop.f32.mrf.mxu1 }
 0x3d4   : > { %16304 = vmatpush3.bf16.msra.mxu0 %v21091_v34 }
 0x3d5   : > { %16305 = vmatprep.subr.bf16.mxu0 %v21125_v59  ;;  %v16260_v18 = vpop.f32.mrf.mxu1 }
 0x3d7   : > { %18209 = vmatmul.mubr.msk.bf16.gmra.mxu0 %vm953_vm2, %v20153_v12  ;;  %v16262_v26 = vpop.f32.mrf.mxu1  ;;  %v20167_v12 = vld [vmem:[%s25290_s3 + $0x168] ss:$12 sps:$4 sm:$0xff]  }
 0x3d8   : > { %16306 = vmatpush3.bf16.msra.mxu0 %v21087_v24  ;;  %2387 = vmatprep.mubr.bf16.mxu0 %v20158_v16  ;;  %v20174_v16 = vld [vmem:[%s25290_s3 + $0x184] ss:$12 sps:$4 sm:$0xff]  }
 0x3d9   : > { %16307 = vmatprep.subr.bf16.mxu0 %v21138_v7  ;;  %v16263_v27 = vpop.f32.mrf.mxu1 }
 0x3da   : > { %v16264_v31 = vadd.f32 %v16263_v27, %v16262_v26 }
 0x3db   : > { %v16265_v41 = vpop.f32.mrf.mxu1 }
 0x3dc   : > { %16308 = vmatpush3.bf16.msra.mxu0 %v21083_v15 }
 0x3dd   : > { %16309 = vmatprep.subr.bf16.mxu0 %v21144_v63  ;;  %v16266_v53 = vpop.f32.mrf.mxu1 }
 0x3df   : > { %v16268_v57 = vpop.f32.mrf.mxu1 }
 0x3e0   : > { %16310 = vmatpush3.bf16.msra.mxu0 %v21076_v5 }
 0x3e1   : > { %16311 = vmatprep.subr.bf16.mxu0 %v21150_v13  ;;  %v16269_v4 = vpop.f32.mrf.mxu1 }
 0x3e2   : > { %v16270_v47 = vadd.f32 %v16269_v4, %v16268_v57 }
 0x3e3   : > { %v16271_v2 = vpop.f32.mrf.mxu1 }
 0x3e4   : > { %16312 = vmatpush3.bf16.msra.mxu0 %v21069_v58 }
 0x3e5   : > { %16313 = vmatprep.subr.bf16.mxu0 %v21103_v0  ;;  %v16272_v43 = vpop.f32.mrf.mxu1 }
 0x3e7   : > { %v16274_v61 = vpop.f32.mrf.mxu1 }
 0x3e8   : > { %16314 = vmatpush3.bf16.msra.mxu0 %v21065_v49 }
 0x3e9   : > { %16315 = vmatprep.subr.bf16.mxu0 %v21099_v54  ;;  %v16275_v19 = vpop.f32.mrf.mxu1 }
 0x3ea   : > { %v16276_v45 = vadd.f32 %v16275_v19, %v16274_v61 }
 0x3eb   : > { %v16277_v14 = vpop.f32.mrf.mxu1 }
 0x3ec   : > { %16316 = vmatpush3.bf16.msra.mxu0 %v21061_v40  ;;  %v16267_v14 = vadd.f32 %v16266_v53, %v16265_v41 }
 0x3ed   : > { %18254 = vmatprep.subr.bf16.mxu0 %v20159_v35  ;;  %v16278_v9 = vpop.f32.mrf.mxu1 }
 0x3ef   : > { %2388 = vmatmul.mubr.bf16.vlgmr.msra.gmra.mxu0 %v20156_v37  ;;  %v14189_v37 = vld [vmem:[%s25290_s3 + $0x198] sm:$0x11] }
 0x3f0   : > { %18255 = vmatpush3.bf16.msra.mxu0 %v20159_v35  ;;  %2395 = vmatprep.mubr.bf16.mxu0 %v20169_v10  ;;  %v20172_v35 = vld [vmem:[%s25290_s3 + $0x180] ss:$12 sps:$4 sm:$0xff]   ;;  %v16261_v10 = vadd.f32 %v16260_v18, %v16259_v52 }
 0x3f1   : > { %18256 = vmatprep.subr.bf16.mxu0 %v20160_v50 }
 0x3f4   : > { %18257 = vmatpush3.bf16.msra.mxu0 %v20160_v50  ;;  %v14201_v50 = vcombine.high %v14189_v37, %v14189_v37 }
 0x3f5   : > { %18258 = vmatprep.subr.bf16.mxu0 %v20161_v60 }
 0x3f7   : > { %2396 = vmatmul.mubr.bf16.gmra.mxu0 %v20167_v12 }
 0x3f8   : > { %18259 = vmatpush3.bf16.msra.mxu0 %v20161_v60  ;;  %2403 = vmatprep.mubr.bf16.mxu0 %v20174_v16  ;;  %v14200_v60 = vcombine.low %v14189_v37, %v14189_v37 }
 0x3f9   : > { %18260 = vmatprep.subr.bf16.mxu0 %v20162_v20 }
 0x3fc   : > { %18261 = vmatpush3.bf16.msra.mxu0 %v20162_v20 }
 0x3fd   : > { %18262 = vmatprep.subr.bf16.mxu0 %v20163_v21 }
 0x3ff   : > { %2404 = vmatmul.mubr.bf16.gmra.mxu0 %v20172_v35 }
 0x400   : > { %18263 = vmatpush3.bf16.msra.mxu0 %v20163_v21  ;;  %2411 = vmatprep.mubr.bf16.mxu0 %v14201_v50 }
 0x401   : > { %18264 = vmatprep.subr.bf16.mxu0 %v20164_v22 }
 0x404   : > { %18265 = vmatpush3.bf16.msra.mxu0 %v20164_v22 }
 0x405   : > { %18266 = vmatprep.subr.bf16.mxu0 %v20165_v23 }
 0x407   : > { %2412 = vmatmul.mubr.bf16.gmra.mxu0 %v14200_v60 }
 0x408   : > { %18267 = vmatpush3.bf16.msra.mxu0 %v20165_v23 }
 0x409   : > { %18268 = vmatprep.subr.bf16.mxu0 %v20166_v51 }
 0x40c   : > { %18269 = vmatpush3.bf16.msra.mxu0 %v20166_v51 }
 0x40d   : > { %20003 = vmatprep.subr.msk.bf16.mxu0 %vm966_vm1, %v21205_v56 }
 0x47b   : > { %v18188_v20 = vpop.f32.mrf.mxu0 }
 0x47c   : > { %v21641_v21 = vadd.f32 %v18188_v20, %v21536_v33 }
 0x47d   : > { %v1886_v22 = vpop.f32.mrf.mxu0 }
 0x47e   : > { %v21644_v29 = vadd.f32 %v1886_v22, %v21538_v36  ;;  %v16273_v22 = vadd.f32 %v16272_v43, %v16271_v2  ;;  %v20171_v2 = vld [vmem:[%s25290_s3 + $0x170] ss:$12 sps:$4 sm:$0xff]   ;;  %v20175_v43 = vld [vmem:[%s25290_s3 + $0x188] ss:$12 sps:$4 sm:$0xff]  }
 0x47f   : > { %v18189_v32 = vpop.f32.mrf.mxu0 }
 0x480   : > { %v21647_v23 = vadd.f32 %v18189_v32, %v21540_v38 }
 0x481   : > { %v21649_v51 = vpop.f32.mrf.mxu0 }
 0x483   : > { %v18192_v26 = vpop.f32.mrf.mxu0 }
 0x484   : > { %v21652_v27 = vadd.f32 %v18192_v26, %v21544_v55  ;;  %v20182_v26 = vld [vmem:[%s25291_s4 + $0x178] sm:$0xff]  }
 0x485   : > { %v1902_v57 = vpop.f32.mrf.mxu0 }
 0x486   : > { %v21655_v4 = vadd.f32 %v1902_v57, %v21546_v28  ;;  %v20179_v57 = vld [vmem:[%s25290_s3 + $0x1a4] ss:$12 sps:$4 sm:$0xff]  }
 0x487   : > { %v18193_v33 = vpop.f32.mrf.mxu0 }
 0x488   : > { %v20183_v33 = vld [vmem:[%s25291_s4 + $0x170] sm:$0xff]  }
 0x489   : > { %v21657_v61 = vpop.f32.mrf.mxu0 }
 0x48f   : > { %v18206_v19 = vpop.f32.mrf.mxu0 }
 0x490   : > { %v2112_v38 = vadd.f32 %v18206_v19, %v16264_v31  ;;  %v20184_v19 = vld [vmem:[%s25291_s4 + $0x168] sm:$0xff]  }
 0x491   : > { %v2103_v36 = vpop.f32.mrf.mxu0 }
 0x492   : > { %v2104_v35 = vadd.f32 %v16258_v25, %v2103_v36  ;;  %v20170_v25 = vld [vmem:[%s25290_s3 + $0x158] ss:$12 sps:$4 sm:$0xff]  }
 0x493   : > { %v18207_v9 = vpop.f32.mrf.mxu0  ;;  %v20185_v36 = vld [vmem:[%s25291_s4 + $0x160] sm:$0xff]  }
 0x494   : > { %v2115_v12 = vadd.f32 %v18207_v9, %v16267_v14  ;;  %v20186_v14 = vld [vmem:[%s25291_s4 + $0x158] sm:$0xff]   ;;  %v20187_v9 = vld [vmem:[%s25291_s4 + $0x150] sm:$0xff]  }
 0x495   : > { %v2106_v16 = vpop.f32.mrf.mxu0 }
 0x496   : > { %v2134_v37 = vpack.c.bf16 %v2115_v12, %v2112_v38  ;;  %v2107_v50 = vadd.f32 %v16261_v10, %v2106_v16  ;;  %v20188_v12 = vld [vmem:[%s25291_s4 + $0x148] sm:$0xff]  }
 0x497   : > { %v18210_v55 = vpop.f32.mrf.mxu0 }
 0x498   : > { %v2133_v60 = vpack.c.bf16 %v2107_v50, %v2104_v35  ;;  %v2128_v32 = vadd.f32 %v18210_v55, %v16276_v45  ;;  %v20181_v45 = vld [vmem:[%s25290_s3 + $0x1a8] ss:$12 sps:$4 sm:$0xff]   ;;  %v20189_v50 = vld [vmem:[%s25291_s4 + $0x140] sm:$0xff]  }
 0x499   : > { %v2119_v20 = vpop.f32.mrf.mxu0 }
 0x49a   : > { %18228 = vmatprep.mubr.bf16.mxu1 %v2133_v60  ;;  %v2120_v52 = vadd.f32 %v16270_v47, %v2119_v20  ;;  %v2136_v53 = vpack.c.bf16 %v2128_v32, %v2128_v32  ;;  %v20176_v47 = vld [vmem:[%s25290_s3 + $0x1a0] ss:$0 sps:$4 sm:$0x11]  }
 0x49b   : > { %v18211_v28 = vpop.f32.mrf.mxu0  ;;  %18229 = vmatmul.mubr.bf16.vlgmr.msra.gmra.mxu1 %v2134_v37 }
 0x49c   : > { %18237 = vmatpush3.bf16.msra.mxu1 %v21216_v62 }
 0x49d   : > { %18238 = vmatprep.subr.bf16.mxu1 %v21210_v30  ;;  %v2122_v41 = vpop.f32.mrf.mxu0 }
 0x49e   : > { %v2123_v18 = vadd.f32 %v16273_v22, %v2122_v41 }
 0x4a0   : > { %v2135_v31 = vpack.c.bf16 %v2123_v18, %v2120_v52  ;;  %18239 = vmatpush3.bf16.msra.mxu1 %v21210_v30 }
 0x4a1   : > { %18240 = vmatprep.subr.bf16.mxu1 %v21226_v6 }
 0x4a2   : > { %18232 = vmatprep.mubr.bf16.mxu1 %v2135_v31 }
 0x4a3   : > { %18233 = vmatmul.mubr.bf16.gmra.mxu1 %v2136_v53 }
 0x4a4   : > { %18241 = vmatpush3.bf16.msra.mxu1 %v21226_v6  ;;  %18246 = vmatprep.mubr.msk.bf16.mxu1 %vm953_vm2, %v20170_v25 }
 0x4a5   : > { %18242 = vmatprep.subr.bf16.mxu1 %v21239_v11 }
 0x4a8   : > { %18243 = vmatpush3.bf16.msra.mxu1 %v21239_v11 }
 0x4a9   : > { %18244 = vmatprep.subr.bf16.mxu1 %v21250_v17 }
 0x4ac   : > { %18245 = vmatpush3.bf16.msra.mxu1 %v21250_v17 }
 0x4ad   : > { %16362 = vmatprep.subr.bf16.mxu1 %v21111_v42 }
 0x4af   : > { %18247 = vmatmul.mubr.msk.bf16.vlgmr.msra.gmra.mxu1 %vm953_vm2, %v20171_v2  ;;  %v16317_v10 = vpop.f32.mrf.mxu0 }
 0x4b0   : > { %16363 = vmatpush3.bf16.msra.mxu1 %v21095_v44  ;;  %18250 = vmatprep.mubr.msk.bf16.mxu1 %vm953_vm2, %v20175_v43 }
 0x4b1   : > { %16364 = vmatprep.subr.bf16.mxu1 %v21115_v48  ;;  %v16318_v38 = vpop.f32.mrf.mxu0 }
 0x4b2   : > { %v16319_v35 = vadd.f32 %v16318_v38, %v16317_v10 }
 0x4b3   : > { %v16320_v16 = vpop.f32.mrf.mxu0 }
 0x4b4   : > { %16365 = vmatpush3.bf16.msra.mxu1 %v21091_v34 }
 0x4b5   : > { %16366 = vmatprep.subr.bf16.mxu1 %v21125_v59  ;;  %v16321_v37 = vpop.f32.mrf.mxu0 }
 0x4b7   : > { %18251 = vmatmul.mubr.msk.bf16.gmra.mxu1 %vm953_vm2, %v20176_v47  ;;  %v16323_v55 = vpop.f32.mrf.mxu0 }
 0x4b8   : > { %16367 = vmatpush3.bf16.msra.mxu1 %v21087_v24  ;;  %2737 = vmatprep.mubr.bf16.mxu1 %v20181_v45  ;;  %v20190_v45 = vld [vmem:[%s25290_s3 + $0x1c0] ss:$12 sps:$4 sm:$0xff]  }
 0x4b9   : > { %16368 = vmatprep.subr.bf16.mxu1 %v21138_v7  ;;  %v16324_v60 = vpop.f32.mrf.mxu0 }
 0x4ba   : > { %v16325_v20 = vadd.f32 %v16324_v60, %v16323_v55 }
 0x4bb   : > { %v16326_v28 = vpop.f32.mrf.mxu0 }
 0x4bc   : > { %16369 = vmatpush3.bf16.msra.mxu1 %v21083_v15 }
 0x4bd   : > { %16370 = vmatprep.subr.bf16.mxu1 %v21144_v63  ;;  %v16327_v22 = vpop.f32.mrf.mxu0 }
 0x4bf   : > { %v16329_v32 = vpop.f32.mrf.mxu0 }
 0x4c0   : > { %16371 = vmatpush3.bf16.msra.mxu1 %v21076_v5 }
 0x4c1   : > { %16372 = vmatprep.subr.bf16.mxu1 %v21150_v13  ;;  %v16330_v41 = vpop.f32.mrf.mxu0 }
 0x4c2   : > { %v16331_v31 = vadd.f32 %v16330_v41, %v16329_v32 }
 0x4c3   : > { %v16332_v52 = vpop.f32.mrf.mxu0 }
 0x4c4   : > { %16373 = vmatpush3.bf16.msra.mxu1 %v21069_v58 }
 0x4c5   : > { %16374 = vmatprep.subr.bf16.mxu1 %v21103_v0  ;;  %v16333_v18 = vpop.f32.mrf.mxu0 }
 0x4c7   : > { %v16335_v25 = vpop.f32.mrf.mxu0 }
 0x4c8   : > { %16375 = vmatpush3.bf16.msra.mxu1 %v21065_v49 }
 0x4c9   : > { %16376 = vmatprep.subr.bf16.mxu1 %v21099_v54  ;;  %v16336_v53 = vpop.f32.mrf.mxu0 }
 0x4ca   : > { %v16337_v2 = vadd.f32 %v16336_v53, %v16335_v25 }
 0x4cb   : > { %v16338_v43 = vpop.f32.mrf.mxu0 }
 0x4cc   : > { %16377 = vmatpush3.bf16.msra.mxu1 %v21061_v40 }
 0x4cd   : > { %18296 = vmatprep.subr.bf16.mxu1 %v20182_v26  ;;  %v16339_v47 = vpop.f32.mrf.mxu0 }
 0x4cf   : > { %2738 = vmatmul.mubr.bf16.vlgmr.msra.gmra.mxu1 %v20179_v57  ;;  %v20197_v57 = vld [vmem:[%s25290_s3 + $0x1d8] ss:$12 sps:$4 sm:$0xff]  }
 0x4d0   : > { %18297 = vmatpush3.bf16.msra.mxu1 %v20182_v26  ;;  %v20192_v26 = vld [vmem:[%s25290_s3 + $0x1bc] ss:$12 sps:$4 sm:$0xff]   ;;  %2745 = vmatprep.mubr.bf16.mxu1 %v20190_v45  ;;  %v16328_v45 = vadd.f32 %v16327_v22, %v16326_v28 }
 0x4d1   : > { %18298 = vmatprep.subr.bf16.mxu1 %v20183_v33 }
 0x4d4   : > { %18299 = vmatpush3.bf16.msra.mxu1 %v20183_v33  ;;  %v20195_v33 = vld [vmem:[%s25290_s3 + $0x1d4] ss:$12 sps:$4 sm:$0xff]  }
 0x4d5   : > { %18300 = vmatprep.subr.bf16.mxu1 %v20184_v19 }
 0x4d7   : > { %2746 = vmatmul.mubr.bf16.gmra.mxu1 %v20192_v26 }
 0x4d8   : > { %18301 = vmatpush3.bf16.msra.mxu1 %v20184_v19  ;;  %2753 = vmatprep.mubr.bf16.mxu1 %v20197_v57  ;;  %v14243_v19 = vld [vmem:[%s25290_s3 + $0x1ec] sm:$0x11]  ;;  %v16322_v57 = vadd.f32 %v16321_v37, %v16320_v16 }
 0x4d9   : > { %18302 = vmatprep.subr.bf16.mxu1 %v20185_v36 }
 0x4dc   : > { %18303 = vmatpush3.bf16.msra.mxu1 %v20185_v36  ;;  %v14255_v36 = vcombine.high %v14243_v19, %v14243_v19 }
 0x4dd   : > { %18304 = vmatprep.subr.bf16.mxu1 %v20186_v14 }
 0x4df   : > { %2754 = vmatmul.mubr.bf16.gmra.mxu1 %v20195_v33 }
 0x4e0   : > { %18305 = vmatpush3.bf16.msra.mxu1 %v20186_v14  ;;  %v14254_v14 = vcombine.low %v14243_v19, %v14243_v19  ;;  %2761 = vmatprep.mubr.bf16.mxu1 %v14255_v36 }
 0x4e1   : > { %18306 = vmatprep.subr.bf16.mxu1 %v20187_v9 }
 0x4e4   : > { %18307 = vmatpush3.bf16.msra.mxu1 %v20187_v9 }
 0x4e5   : > { %18308 = vmatprep.subr.bf16.mxu1 %v20188_v12 }
 0x4e7   : > { %2762 = vmatmul.mubr.bf16.gmra.mxu1 %v14254_v14 }
 0x4e8   : > { %18309 = vmatpush3.bf16.msra.mxu1 %v20188_v12 }
 0x4e9   : > { %18310 = vmatprep.subr.bf16.mxu1 %v20189_v50 }
 0x4ec   : > { %18311 = vmatpush3.bf16.msra.mxu1 %v20189_v50 }
 0x4ed   : > { %20004 = vmatprep.subr.msk.bf16.mxu1 %vm966_vm1, %v21205_v56 }
 0x55b   : > { %v18230_v9 = vpop.f32.mrf.mxu1 }
 0x55c   : > { %v21748_v10 = vadd.f32 %v18230_v9, %v21641_v21 }
 0x55d   : > { %v2236_v38 = vpop.f32.mrf.mxu1 }
 0x55e   : > { %v21751_v12 = vadd.f32 %v2236_v38, %v21644_v29 }
 0x55f   : > { %v18231_v50 = vpop.f32.mrf.mxu1 }
 0x560   : > { %v21754_v55 = vadd.f32 %v18231_v50, %v21647_v23 }
 0x561   : > { %v21756_v60 = vpop.f32.mrf.mxu1 }
 0x563   : > { %v18234_v32 = vpop.f32.mrf.mxu1 }
 0x564   : > { %v21759_v41 = vadd.f32 %v18234_v32, %v21652_v27  ;;  %v16334_v32 = vadd.f32 %v16333_v18, %v16332_v52  ;;  %v20194_v52 = vld [vmem:[%s25290_s3 + $0x1c4] ss:$12 sps:$4 sm:$0xff]   ;;  %v20198_v18 = vld [vmem:[%s25290_s3 + $0x1dc] ss:$12 sps:$4 sm:$0xff]  }
 0x565   : > { %v2252_v25 = vpop.f32.mrf.mxu1 }
 0x566   : > { %v21762_v53 = vadd.f32 %v2252_v25, %v21655_v4 }
 0x567   : > { %v18235_v21 = vpop.f32.mrf.mxu1 }
 0x568   : > { %v20205_v21 = vld [vmem:[%s25291_s4 + $0x1b8] sm:$0xff]  }
 0x569   : > { %v21764_v43 = vpop.f32.mrf.mxu1 }
 0x56f   : > { %v18248_v47 = vpop.f32.mrf.mxu1 }
 0x570   : > { %v2462_v23 = vadd.f32 %v18248_v47, %v16325_v20  ;;  %v20202_v47 = vld [vmem:[%s25290_s3 + $0x1f8] ss:$12 sps:$4 sm:$0xff]  }
 0x571   : > { %v2453_v29 = vpop.f32.mrf.mxu1 }
 0x572   : > { %v2454_v36 = vadd.f32 %v16319_v35, %v2453_v29  ;;  %v20193_v35 = vld [vmem:[%s25290_s3 + $0x1ac] ss:$12 sps:$4 sm:$0xff]   ;;  %v20206_v29 = vld [vmem:[%s25291_s4 + $0x1b0] sm:$0xff]  }
 0x573   : > { %v18249_v26 = vpop.f32.mrf.mxu1 }
 0x574   : > { %v2465_v33 = vadd.f32 %v18249_v26, %v16328_v45  ;;  %v20207_v45 = vld [vmem:[%s25291_s4 + $0x1a8] sm:$0xff]   ;;  %v20208_v26 = vld [vmem:[%s25291_s4 + $0x1a0] sm:$0xff]  }
 0x575   : > { %v2456_v19 = vpop.f32.mrf.mxu1 }
 0x576   : > { %v2484_v14 = vpack.c.bf16 %v2465_v33, %v2462_v23  ;;  %v2457_v9 = vadd.f32 %v16322_v57, %v2456_v19  ;;  %v20209_v57 = vld [vmem:[%s25291_s4 + $0x198] sm:$0xff]   ;;  %v20210_v23 = vld [vmem:[%s25291_s4 + $0x190] sm:$0xff]  }
 0x577   : > { %v18252_v27 = vpop.f32.mrf.mxu1 }
 0x578   : > { %v2483_v38 = vpack.c.bf16 %v2457_v9, %v2454_v36  ;;  %v2478_v25 = vadd.f32 %v18252_v27, %v16337_v2  ;;  %v20204_v2 = vld [vmem:[%s25290_s3 + $0x1fc] ss:$12 sps:$4 sm:$0xff]  }
 0x579   : > { %v2469_v50 = vpop.f32.mrf.mxu1  ;;  %v20211_v36 = vld [vmem:[%s25291_s4 + $0x188] sm:$0xff]  }
 0x57a   : > { %18270 = vmatprep.mubr.bf16.mxu0 %v2483_v38  ;;  %v2470_v16 = vadd.f32 %v16331_v31, %v2469_v50  ;;  %v2486_v22 = vpack.c.bf16 %v2478_v25, %v2478_v25  ;;  %v20199_v31 = vld [vmem:[%s25290_s3 + $0x1f4] ss:$0 sps:$4 sm:$0x11]   ;;  %v20212_v38 = vld [vmem:[%s25291_s4 + $0x180] sm:$0xff]  }
 0x57b   : > { %v18253_v4 = vpop.f32.mrf.mxu1  ;;  %18271 = vmatmul.mubr.bf16.vlgmr.msra.gmra.mxu0 %v2484_v14 }
 0x57c   : > { %18279 = vmatpush3.bf16.msra.mxu0 %v21216_v62 }
 0x57d   : > { %18280 = vmatprep.subr.bf16.mxu0 %v21210_v30  ;;  %v2472_v28 = vpop.f32.mrf.mxu1 }
 0x57e   : > { %v2473_v37 = vadd.f32 %v16334_v32, %v2472_v28 }
 0x580   : > { %v2485_v20 = vpack.c.bf16 %v2473_v37, %v2470_v16  ;;  %18281 = vmatpush3.bf16.msra.mxu0 %v21210_v30 }
 0x581   : > { %18282 = vmatprep.subr.bf16.mxu0 %v21226_v6 }
 0x582   : > { %18274 = vmatprep.mubr.bf16.mxu0 %v2485_v20 }
 0x583   : > { %18275 = vmatmul.mubr.bf16.gmra.mxu0 %v2486_v22 }
 0x584   : > { %18283 = vmatpush3.bf16.msra.mxu0 %v21226_v6  ;;  %18288 = vmatprep.mubr.msk.bf16.mxu0 %vm953_vm2, %v20193_v35 }
 0x585   : > { %18284 = vmatprep.subr.bf16.mxu0 %v21239_v11 }
 0x588   : > { %18285 = vmatpush3.bf16.msra.mxu0 %v21239_v11 }
 0x589   : > { %18286 = vmatprep.subr.bf16.mxu0 %v21250_v17 }
 0x58c   : > { %18287 = vmatpush3.bf16.msra.mxu0 %v21250_v17 }
 0x58d   : > { %16423 = vmatprep.subr.bf16.mxu0 %v21111_v42 }
 0x58f   : > { %18289 = vmatmul.mubr.msk.bf16.vlgmr.msra.gmra.mxu0 %vm953_vm2, %v20194_v52  ;;  %v16378_v33 = vpop.f32.mrf.mxu1 }
 0x590   : > { %16424 = vmatpush3.bf16.msra.mxu0 %v21095_v44  ;;  %18292 = vmatprep.mubr.msk.bf16.mxu0 %vm953_vm2, %v20198_v18 }
 0x591   : > { %16425 = vmatprep.subr.bf16.mxu0 %v21115_v48  ;;  %v16379_v19 = vpop.f32.mrf.mxu1 }
 0x592   : > { %v16380_v9 = vadd.f32 %v16379_v19, %v16378_v33 }
 0x593   : > { %v16381_v14 = vpop.f32.mrf.mxu1 }
 0x594   : > { %16426 = vmatpush3.bf16.msra.mxu0 %v21091_v34 }
 0x595   : > { %16427 = vmatprep.subr.bf16.mxu0 %v21125_v59  ;;  %v16382_v27 = vpop.f32.mrf.mxu1 }
 0x597   : > { %18293 = vmatmul.mubr.msk.bf16.gmra.mxu0 %vm953_vm2, %v20199_v31  ;;  %v16384_v50 = vpop.f32.mrf.mxu1 }
 0x598   : > { %16428 = vmatpush3.bf16.msra.mxu0 %v21087_v24  ;;  %3087 = vmatprep.mubr.bf16.mxu0 %v20204_v2 }
 0x599   : > { %16429 = vmatprep.subr.bf16.mxu0 %v21138_v7  ;;  %v16385_v4 = vpop.f32.mrf.mxu1 }
 0x59a   : > { %v16386_v32 = vadd.f32 %v16385_v4, %v16384_v50 }
 0x59b   : > { %v16387_v25 = vpop.f32.mrf.mxu1 }
 0x59c   : > { %16430 = vmatpush3.bf16.msra.mxu0 %v21083_v15 }
 0x59d   : > { %16431 = vmatprep.subr.bf16.mxu0 %v21144_v63  ;;  %v16388_v28 = vpop.f32.mrf.mxu1 }
 0x59f   : > { %v16390_v16 = vpop.f32.mrf.mxu1 }
 0x5a0   : > { %16432 = vmatpush3.bf16.msra.mxu0 %v21076_v5 }
 0x5a1   : > { %16433 = vmatprep.subr.bf16.mxu0 %v21150_v13  ;;  %v16391_v37 = vpop.f32.mrf.mxu1 }
 0x5a2   : > { %v16392_v22 = vadd.f32 %v16391_v37, %v16390_v16 }
 0x5a3   : > { %v16393_v20 = vpop.f32.mrf.mxu1 }
 0x5a4   : > { %16434 = vmatpush3.bf16.msra.mxu0 %v21069_v58 }
 0x5a5   : > { %16435 = vmatprep.subr.bf16.mxu0 %v21103_v0  ;;  %v16394_v35 = vpop.f32.mrf.mxu1 }
 0x5a7   : > { %v16396_v52 = vpop.f32.mrf.mxu1 }
 0x5a8   : > { %16436 = vmatpush3.bf16.msra.mxu0 %v21065_v49 }
 0x5a9   : > { %16437 = vmatprep.subr.bf16.mxu0 %v21099_v54  ;;  %v16397_v18 = vpop.f32.mrf.mxu1 }
 0x5aa   : > { %v16398_v31 = vadd.f32 %v16397_v18, %v16396_v52 }
 0x5ab   : > { %v16399_v2 = vpop.f32.mrf.mxu1 }
 0x5ac   : > { %16438 = vmatpush3.bf16.msra.mxu0 %v21061_v40 }
 0x5ad   : > { %18338 = vmatprep.subr.bf16.mxu0 %v20205_v21 }
 0x5af   : > { %3088 = vmatmul.mubr.bf16.vlgmr.msra.gmra.mxu0 %v20202_v47  ;;  %v20215_v47 = vld [vmem:[%s25290_s3 + $0x214] ss:$12 sps:$4 sm:$0xff]  }
 0x5b0   : > { %18339 = vmatpush3.bf16.msra.mxu0 %v20205_v21  ;;  %v16400_v21 = vpop.f32.mrf.mxu1  ;;  %3095 = vmatprep.mubr.bf16.mxu0 %v20215_v47 }
 0x5b1   : > { %18340 = vmatprep.subr.bf16.mxu0 %v20206_v29 }
 0x5b4   : > { %18341 = vmatpush3.bf16.msra.mxu0 %v20206_v29  ;;  %v20213_v29 = vld [vmem:[%s25290_s3 + $0x210] ss:$12 sps:$4 sm:$0xff]  }
 0x5b5   : > { %18342 = vmatprep.subr.bf16.mxu0 %v20207_v45 }
 0x5b7   : > { %3096 = vmatmul.mubr.bf16.gmra.mxu0 %v20213_v29 }
 0x5b8   : > { %18343 = vmatpush3.bf16.msra.mxu0 %v20207_v45  ;;  %v20220_v45 = vld [vmem:[%s25290_s3 + $0x22c] ss:$12 sps:$4 sm:$0xff]  }
 0x5b9   : > { %18344 = vmatprep.subr.bf16.mxu0 %v20208_v26  ;;  %3103 = vmatprep.mubr.bf16.mxu0 %v20220_v45  ;;  %v16389_v45 = vadd.f32 %v16388_v28, %v16387_v25 }
 0x5bc   : > { %18345 = vmatpush3.bf16.msra.mxu0 %v20208_v26  ;;  %v20218_v26 = vld [vmem:[%s25290_s3 + $0x228] ss:$12 sps:$4 sm:$0xff]  }
 0x5bd   : > { %18346 = vmatprep.subr.bf16.mxu0 %v20209_v57 }
 0x5bf   : > { %3104 = vmatmul.mubr.bf16.gmra.mxu0 %v20218_v26 }
 0x5c0   : > { %18347 = vmatpush3.bf16.msra.mxu0 %v20209_v57  ;;  %v14297_v57 = vld [vmem:[%s25290_s3 + $0x240] sm:$0x11] }
 0x5c1   : > { %18348 = vmatprep.subr.bf16.mxu0 %v20210_v23  ;;  %v14308_v33 = vcombine.low %v14297_v57, %v14297_v57 }
 0x5c4   : > { %18349 = vmatpush3.bf16.msra.mxu0 %v20210_v23  ;;  %v14309_v23 = vcombine.high %v14297_v57, %v14297_v57  ;;  %v16383_v57 = vadd.f32 %v16382_v27, %v16381_v14 }
 0x5c5   : > { %18350 = vmatprep.subr.bf16.mxu0 %v20211_v36 }
 0x5c6   : > { %3111 = vmatprep.mubr.bf16.mxu0 %v14309_v23 }
 0x5c7   : > { %3112 = vmatmul.mubr.bf16.gmra.mxu0 %v14308_v33 }
 0x5c8   : > { %18351 = vmatpush3.bf16.msra.mxu0 %v20211_v36 }
 0x5c9   : > { %18352 = vmatprep.subr.bf16.mxu0 %v20212_v38 }
 0x5cc   : > { %18353 = vmatpush3.bf16.msra.mxu0 %v20212_v38 }
 0x5cd   : > { %20005 = vmatprep.subr.msk.bf16.mxu0 %vm966_vm1, %v21205_v56 }
 0x63b   : > { %v18272_v19 = vpop.f32.mrf.mxu0 }
 0x63c   : > { %v21855_v36 = vadd.f32 %v18272_v19, %v21748_v10 }
 0x63d   : > { %v2586_v38 = vpop.f32.mrf.mxu0 }
 0x63e   : > { %v21858_v50 = vadd.f32 %v2586_v38, %v21751_v12 }
 0x63f   : > { %v18273_v4 = vpop.f32.mrf.mxu0 }
 0x640   : > { %v21861_v16 = vadd.f32 %v18273_v4, %v21754_v55 }
 0x641   : > { %v21863_v37 = vpop.f32.mrf.mxu0 }
 0x642   : > { %25301 = vst [vmem:[#allocation2_spill] sm:$0xff] %v21863_v37 }
 0x643   : > { %v18276_v52 = vpop.f32.mrf.mxu0 }
 0x644   : > { %v21866_v18 = vadd.f32 %v18276_v52, %v21759_v41 }
 0x645   : > { %v2602_v2 = vpop.f32.mrf.mxu0 }
 0x646   : > { %v21869_v21 = vadd.f32 %v2602_v2, %v21762_v53  ;;  %v16395_v2 = vadd.f32 %v16394_v35, %v16393_v20  ;;  %v20221_v20 = vld [vmem:[%s25290_s3 + $0x230] ss:$12 sps:$4 sm:$0xff]   ;;  %v20222_v35 = vld [vmem:[%s25290_s3 + $0x248] ss:$0 sps:$4 sm:$0x11]  }
 0x647   : > { %v18277_v10 = vpop.f32.mrf.mxu0 }
 0x649   : > { %v21871_v47 = vpop.f32.mrf.mxu0 }
 0x64f   : > { %v18290_v29 = vpop.f32.mrf.mxu0 }
 0x650   : > { %v2812_v55 = vadd.f32 %v18290_v29, %v16386_v32  ;;  %v20225_v29 = vld [vmem:[%s25290_s3 + $0x24c] ss:$12 sps:$4 sm:$0xff]  }
 0x651   : > { %v2803_v12 = vpop.f32.mrf.mxu0 }
 0x652   : > { %v2804_v19 = vadd.f32 %v16380_v9, %v2803_v12  ;;  %v20216_v9 = vld [vmem:[%s25290_s3 + $0x200] ss:$12 sps:$4 sm:$0xff]   ;;  %v20229_v12 = vld [vmem:[%s25291_s4 + $0x1f0] sm:$0xff]  }
 0x653   : > { %v18291_v26 = vpop.f32.mrf.mxu0 }
 0x654   : > { %v2815_v23 = vadd.f32 %v18291_v26, %v16389_v45  ;;  %v20230_v45 = vld [vmem:[%s25291_s4 + $0x1e8] sm:$0xff]   ;;  %v20231_v26 = vld [vmem:[%s25291_s4 + $0x1e0] sm:$0xff]  }
 0x655   : > { %v2806_v33 = vpop.f32.mrf.mxu0 }
 0x656   : > { %v2834_v38 = vpack.c.bf16 %v2815_v23, %v2812_v55  ;;  %v2807_v4 = vadd.f32 %v16383_v57, %v2806_v33  ;;  %v20232_v57 = vld [vmem:[%s25291_s4 + $0x1d8] sm:$0xff]   ;;  %v20233_v55 = vld [vmem:[%s25291_s4 + $0x1d0] sm:$0xff]  }
 0x657   : > { %v18294_v41 = vpop.f32.mrf.mxu0 }
 0x658   : > { %v2833_v52 = vpack.c.bf16 %v2807_v4, %v2804_v19  ;;  %v2828_v10 = vadd.f32 %v18294_v41, %v16398_v31  ;;  %v20228_v31 = vld [vmem:[%s25291_s4 + $0x1f8] sm:$0xff]   ;;  %v20234_v19 = vld [vmem:[%s25291_s4 + $0x1c8] sm:$0xff]  }
 0x659   : > { %v2819_v1 = vpop.f32.mrf.mxu0 }
 0x65a   : > { %18312 = vmatprep.mubr.bf16.mxu1 %v2833_v52  ;;  %v2820_v14 = vadd.f32 %v16392_v22, %v2819_v1  ;;  %v2836_v28 = vpack.c.bf16 %v2828_v10, %v2828_v10  ;;  %v20217_v1 = vld [vmem:[%s25290_s3 + $0x218] ss:$12 sps:$4 sm:$0xff]   ;;  %v20227_v22 = vld [vmem:[%s25290_s3 + $0x250] ss:$12 sps:$4 sm:$0xff]  }
 0x65b   : > { %v18295_v53 = vpop.f32.mrf.mxu0  ;;  %18313 = vmatmul.mubr.bf16.vlgmr.msra.gmra.mxu1 %v2834_v38  ;;  %v20235_v52 = vld [vmem:[%s25291_s4 + $0x1c0] sm:$0xff]  }
 0x65c   : > { %18321 = vmatpush3.bf16.msra.mxu1 %v21216_v62 }
 0x65d   : > { %18322 = vmatprep.subr.bf16.mxu1 %v21210_v30  ;;  %v2822_v25 = vpop.f32.mrf.mxu0 }
 0x65e   : > { %v2823_v27 = vadd.f32 %v16395_v2, %v2822_v25 }
 0x660   : > { %v2835_v32 = vpack.c.bf16 %v2823_v27, %v2820_v14  ;;  %18323 = vmatpush3.bf16.msra.mxu1 %v21210_v30 }
 0x661   : > { %18324 = vmatprep.subr.bf16.mxu1 %v21226_v6 }
 0x662   : > { %18316 = vmatprep.mubr.bf16.mxu1 %v2835_v32 }
 0x663   : > { %18317 = vmatmul.mubr.bf16.gmra.mxu1 %v2836_v28 }
 0x664   : > { %18325 = vmatpush3.bf16.msra.mxu1 %v21226_v6  ;;  %18330 = vmatprep.mubr.msk.bf16.mxu1 %vm953_vm2, %v20216_v9 }
 0x665   : > { %18326 = vmatprep.subr.bf16.mxu1 %v21239_v11 }
 0x668   : > { %18327 = vmatpush3.bf16.msra.mxu1 %v21239_v11 }
 0x669   : > { %18328 = vmatprep.subr.bf16.mxu1 %v21250_v17 }
 0x66c   : > { %18329 = vmatpush3.bf16.msra.mxu1 %v21250_v17 }
 0x66d   : > { %16484 = vmatprep.subr.bf16.mxu1 %v21111_v42 }
 0x66f   : > { %18331 = vmatmul.mubr.msk.bf16.vlgmr.msra.gmra.mxu1 %vm953_vm2, %v20217_v1  ;;  %v16439_v23 = vpop.f32.mrf.mxu0 }
 0x670   : > { %16485 = vmatpush3.bf16.msra.mxu1 %v21095_v44  ;;  %18334 = vmatprep.mubr.msk.bf16.mxu1 %vm953_vm2, %v20221_v20 }
 0x671   : > { %16486 = vmatprep.subr.bf16.mxu1 %v21115_v48  ;;  %v16440_v33 = vpop.f32.mrf.mxu0 }
 0x672   : > { %v16441_v4 = vadd.f32 %v16440_v33, %v16439_v23 }
 0x673   : > { %v16442_v38 = vpop.f32.mrf.mxu0 }
 0x674   : > { %16487 = vmatpush3.bf16.msra.mxu1 %v21091_v34 }
 0x675   : > { %16488 = vmatprep.subr.bf16.mxu1 %v21125_v59  ;;  %v16443_v41 = vpop.f32.mrf.mxu0 }
 0x677   : > { %18335 = vmatmul.mubr.msk.bf16.gmra.mxu1 %vm953_vm2, %v20222_v35  ;;  %v16445_v53 = vpop.f32.mrf.mxu0 }
 0x678   : > { %16489 = vmatpush3.bf16.msra.mxu1 %v21087_v24  ;;  %3437 = vmatprep.mubr.bf16.mxu1 %v20227_v22 }
 0x679   : > { %16490 = vmatprep.subr.bf16.mxu1 %v21138_v7  ;;  %v16446_v2 = vpop.f32.mrf.mxu0 }
 0x67a   : > { %v16447_v10 = vadd.f32 %v16446_v2, %v16445_v53 }
 0x67b   : > { %v16448_v25 = vpop.f32.mrf.mxu0 }
 0x67c   : > { %16491 = vmatpush3.bf16.msra.mxu1 %v21083_v15 }
 0x67d   : > { %16492 = vmatprep.subr.bf16.mxu1 %v21144_v63  ;;  %v16449_v14 = vpop.f32.mrf.mxu0 }
 0x67f   : > { %v16451_v27 = vpop.f32.mrf.mxu0 }
 0x680   : > { %16493 = vmatpush3.bf16.msra.mxu1 %v21076_v5 }
 0x681   : > { %16494 = vmatprep.subr.bf16.mxu1 %v21150_v13  ;;  %v16452_v32 = vpop.f32.mrf.mxu0 }
 0x682   : > { %v16453_v1 = vadd.f32 %v16452_v32, %v16451_v27 }
 0x683   : > { %v16454_v9 = vpop.f32.mrf.mxu0 }
 0x684   : > { %16495 = vmatpush3.bf16.msra.mxu1 %v21069_v58 }
 0x685   : > { %16496 = vmatprep.subr.bf16.mxu1 %v21103_v0  ;;  %v16455_v28 = vpop.f32.mrf.mxu0 }
 0x687   : > { %v16457_v20 = vpop.f32.mrf.mxu0 }
 0x688   : > { %16497 = vmatpush3.bf16.msra.mxu1 %v21065_v49 }
 0x689   : > { %16498 = vmatprep.subr.bf16.mxu1 %v21099_v54  ;;  %v16458_v35 = vpop.f32.mrf.mxu0 }
 0x68a   : > { %v16459_v22 = vadd.f32 %v16458_v35, %v16457_v20 }
 0x68c   : > { %16499 = vmatpush3.bf16.msra.mxu1 %v21061_v40 }
 0x68d   : > { %18380 = vmatprep.subr.bf16.mxu1 %v20228_v31 }
 0x68f   : > { %3438 = vmatmul.mubr.bf16.vlgmr.msra.gmra.mxu1 %v20225_v29 }
 0x690   : > { %18381 = vmatpush3.bf16.msra.mxu1 %v20228_v31  ;;  %v16460_v31 = vpop.f32.mrf.mxu0 }
 0x691   : > { %18382 = vmatprep.subr.bf16.mxu1 %v20229_v12 }
 0x692   : > { %v16461_v29 = vpop.f32.mrf.mxu0 }
 0x694   : > { %18383 = vmatpush3.bf16.msra.mxu1 %v20229_v12  ;;  %v20238_v12 = vld [vmem:[%s25290_s3 + $0x268] ss:$12 sps:$4 sm:$0xff]  }
 0x695   : > { %18384 = vmatprep.subr.bf16.mxu1 %v20230_v45  ;;  %3445 = vmatprep.mubr.bf16.mxu1 %v20238_v12 }
 0x698   : > { %18385 = vmatpush3.bf16.msra.mxu1 %v20230_v45  ;;  %v20236_v45 = vld [vmem:[%s25290_s3 + $0x264] ss:$12 sps:$4 sm:$0xff]  }
 0x699   : > { %18386 = vmatprep.subr.bf16.mxu1 %v20231_v26  ;;  %3446 = vmatmul.mubr.bf16.gmra.mxu1 %v20236_v45 }
 0x69c   : > { %18387 = vmatpush3.bf16.msra.mxu1 %v20231_v26  ;;  %v20243_v26 = vld [vmem:[%s25290_s3 + $0x280] ss:$12 sps:$4 sm:$0xff]  }
 0x69d   : > { %18388 = vmatprep.subr.bf16.mxu1 %v20232_v57  ;;  %3453 = vmatprep.mubr.bf16.mxu1 %v20243_v26 }
 0x6a0   : > { %18389 = vmatpush3.bf16.msra.mxu1 %v20232_v57  ;;  %v20241_v57 = vld [vmem:[%s25290_s3 + $0x27c] ss:$12 sps:$4 sm:$0xff]  }
 0x6a1   : > { %18390 = vmatprep.subr.bf16.mxu1 %v20233_v55  ;;  %3454 = vmatmul.mubr.bf16.gmra.mxu1 %v20241_v57  ;;  %v16450_v57 = vadd.f32 %v16449_v14, %v16448_v25 }
 0x6a4   : > { %18391 = vmatpush3.bf16.msra.mxu1 %v20233_v55  ;;  %v14351_v55 = vld [vmem:[%s25290_s3 + $0x294] sm:$0x11] }
 0x6a5   : > { %18392 = vmatprep.subr.bf16.mxu1 %v20234_v19  ;;  %v14363_v23 = vcombine.high %v14351_v55, %v14351_v55  ;;  %v14362_v33 = vcombine.low %v14351_v55, %v14351_v55 }
 0x6a7   : > { %3461 = vmatprep.mubr.bf16.mxu1 %v14363_v23  ;;  %v16444_v23 = vadd.f32 %v16443_v41, %v16442_v38 }
 0x6a8   : > { %18393 = vmatpush3.bf16.msra.mxu1 %v20234_v19 }
 0x6a9   : > { %18394 = vmatprep.subr.bf16.mxu1 %v20235_v52  ;;  %3462 = vmatmul.mubr.bf16.gmra.mxu1 %v14362_v33 }
 0x6ac   : > { %18395 = vmatpush3.bf16.msra.mxu1 %v20235_v52 }
 0x6ad   : > { %20006 = vmatprep.subr.msk.bf16.mxu1 %vm966_vm1, %v21205_v56 }
 0x71b   : > { %v18314_v19 = vpop.f32.mrf.mxu1 }
 0x71c   : > { %v21962_v52 = vadd.f32 %v18314_v19, %v21855_v36 }
 0x71d   : > { %v2936_v53 = vpop.f32.mrf.mxu1 }
 0x71e   : > { %v21965_v2 = vadd.f32 %v2936_v53, %v21858_v50 }
 0x71f   : > { %v18315_v27 = vpop.f32.mrf.mxu1 }
 0x720   : > { %v21968_v32 = vadd.f32 %v18315_v27, %v21861_v16 }
 0x721   : > { %v21970_v20 = vpop.f32.mrf.mxu1 }
 0x722   : > { %25302 = vst [vmem:[#allocation3_spill] sm:$0xff] %v21970_v20 }
 0x723   : > { %v18318_v35 = vpop.f32.mrf.mxu1 }
 0x724   : > { %v21973_v31 = vadd.f32 %v18318_v35, %v21866_v18 }
 0x725   : > { %v2952_v29 = vpop.f32.mrf.mxu1 }
 0x726   : > { %v21976_v12 = vadd.f32 %v2952_v29, %v21869_v21  ;;  %v16456_v29 = vadd.f32 %v16455_v28, %v16454_v9  ;;  %v20244_v9 = vld [vmem:[%s25290_s3 + $0x284] ss:$12 sps:$4 sm:$0xff]   ;;  %v20245_v28 = vld [vmem:[%s25290_s3 + $0x29c] ss:$0 sps:$4 sm:$0x11]  }
 0x727   : > { %v18319_v36 = vpop.f32.mrf.mxu1 }
 0x729   : > { %v21978_v45 = vpop.f32.mrf.mxu1 }
 0x72a   : > { %25303 = vst [vmem:[#allocation4_spill] sm:$0xff] %v21978_v45 }
 0x72f   : > { %v18332_v26 = vpop.f32.mrf.mxu1 }
 0x730   : > { %v3162_v16 = vadd.f32 %v18332_v26, %v16447_v10  ;;  %v20252_v26 = vld [vmem:[%s25291_s4 + $0x230] sm:$0xff]  }
 0x731   : > { %v3153_v50 = vpop.f32.mrf.mxu1 }
 0x732   : > { %v3154_v53 = vadd.f32 %v16441_v4, %v3153_v50  ;;  %v20239_v4 = vld [vmem:[%s25290_s3 + $0x254] ss:$12 sps:$4 sm:$0xff]   ;;  %v20253_v50 = vld [vmem:[%s25291_s4 + $0x228] sm:$0xff]  }
 0x733   : > { %v18333_v55 = vpop.f32.mrf.mxu1 }
 0x734   : > { %v3165_v33 = vadd.f32 %v18333_v55, %v16450_v57  ;;  %v20254_v57 = vld [vmem:[%s25291_s4 + $0x220] sm:$0xff]   ;;  %v20255_v55 = vld [vmem:[%s25291_s4 + $0x218] sm:$0xff]  }
 0x735   : > { %v3156_v19 = vpop.f32.mrf.mxu1 }
 0x736   : > { %v3184_v27 = vpack.c.bf16 %v3165_v33, %v3162_v16  ;;  %v3157_v20 = vadd.f32 %v16444_v23, %v3156_v19  ;;  %v20256_v23 = vld [vmem:[%s25291_s4 + $0x210] sm:$0xff]   ;;  %v20257_v19 = vld [vmem:[%s25291_s4 + $0x208] sm:$0xff]  }
 0x737   : > { %v18336_v18 = vpop.f32.mrf.mxu1 }
 0x738   : > { %v3183_v35 = vpack.c.bf16 %v3157_v20, %v3154_v53  ;;  %v3178_v36 = vadd.f32 %v18336_v18, %v16459_v22  ;;  %v20251_v22 = vld [vmem:[%s25291_s4 + $0x238] sm:$0xff]   ;;  %v20248_v20 = vld [vmem:[%s25290_s3 + $0x2a0] ss:$12 sps:$4 sm:$0xff]  }
 0x739   : > { %v3169_v37 = vpop.f32.mrf.mxu1 }
 0x73a   : > { %18354 = vmatprep.mubr.bf16.mxu0 %v3183_v35  ;;  %v3170_v38 = vadd.f32 %v16453_v1, %v3169_v37  ;;  %v3186_v14 = vpack.c.bf16 %v3178_v36, %v3178_v36  ;;  %v20240_v37 = vld [vmem:[%s25290_s3 + $0x26c] ss:$12 sps:$4 sm:$0xff]   ;;  %v20250_v1 = vld [vmem:[%s25290_s3 + $0x2a4] ss:$12 sps:$4 sm:$0xff]  }
 0x73b   : > { %v18337_v21 = vpop.f32.mrf.mxu1  ;;  %18355 = vmatmul.mubr.bf16.vlgmr.msra.gmra.mxu0 %v3184_v27  ;;  %v20258_v35 = vld [vmem:[%s25291_s4 + $0x200] sm:$0xff]  }
 0x73c   : > { %18363 = vmatpush3.bf16.msra.mxu0 %v21216_v62 }
 0x73d   : > { %18364 = vmatprep.subr.bf16.mxu0 %v21210_v30  ;;  %v3172_v25 = vpop.f32.mrf.mxu1 }
 0x73e   : > { %v3173_v41 = vadd.f32 %v16456_v29, %v3172_v25 }
 0x740   : > { %v3185_v10 = vpack.c.bf16 %v3173_v41, %v3170_v38  ;;  %18365 = vmatpush3.bf16.msra.mxu0 %v21210_v30 }
 0x741   : > { %18366 = vmatprep.subr.bf16.mxu0 %v21226_v6 }
 0x742   : > { %18358 = vmatprep.mubr.bf16.mxu0 %v3185_v10 }
 0x743   : > { %18359 = vmatmul.mubr.bf16.gmra.mxu0 %v3186_v14 }
 0x744   : > { %18367 = vmatpush3.bf16.msra.mxu0 %v21226_v6  ;;  %18372 = vmatprep.mubr.msk.bf16.mxu0 %vm953_vm2, %v20239_v4 }
 0x745   : > { %18368 = vmatprep.subr.bf16.mxu0 %v21239_v11 }
 0x748   : > { %18369 = vmatpush3.bf16.msra.mxu0 %v21239_v11 }
 0x749   : > { %18370 = vmatprep.subr.bf16.mxu0 %v21250_v17 }
 0x74c   : > { %18371 = vmatpush3.bf16.msra.mxu0 %v21250_v17 }
 0x74d   : > { %16545 = vmatprep.subr.bf16.mxu0 %v21111_v42 }
 0x74f   : > { %18373 = vmatmul.mubr.msk.bf16.vlgmr.msra.gmra.mxu0 %vm953_vm2, %v20240_v37  ;;  %v16500_v16 = vpop.f32.mrf.mxu1 }
 0x750   : > { %16546 = vmatpush3.bf16.msra.mxu0 %v21095_v44  ;;  %18376 = vmatprep.mubr.msk.bf16.mxu0 %vm953_vm2, %v20244_v9 }
 0x751   : > { %16547 = vmatprep.subr.bf16.mxu0 %v21115_v48  ;;  %v16501_v33 = vpop.f32.mrf.mxu1 }
 0x752   : > { %v16502_v27 = vadd.f32 %v16501_v33, %v16500_v16 }
 0x753   : > { %v16503_v53 = vpop.f32.mrf.mxu1 }
 0x754   : > { %16548 = vmatpush3.bf16.msra.mxu0 %v21091_v34 }
 0x755   : > { %16549 = vmatprep.subr.bf16.mxu0 %v21125_v59  ;;  %v16504_v18 = vpop.f32.mrf.mxu1 }
 0x757   : > { %18377 = vmatmul.mubr.msk.bf16.gmra.mxu0 %vm953_vm2, %v20245_v28 }
 0x758   : > { %16550 = vmatpush3.bf16.msra.mxu0 %v21087_v24  ;;  %3787 = vmatprep.mubr.bf16.mxu0 %v20250_v1 }
 0x759   : > { %16551 = vmatprep.subr.bf16.mxu0 %v21138_v7  ;;  %v16506_v21 = vpop.f32.mrf.mxu1 }
 0x75b   : > { %v16507_v29 = vpop.f32.mrf.mxu1 }
 0x75c   : > { %16552 = vmatpush3.bf16.msra.mxu0 %v21083_v15  ;;  %v16508_v36 = vadd.f32 %v16507_v29, %v16506_v21 }
 0x75d   : > { %16553 = vmatprep.subr.bf16.mxu0 %v21144_v63  ;;  %v16509_v25 = vpop.f32.mrf.mxu1 }
 0x75f   : > { %v16510_v38 = vpop.f32.mrf.mxu1 }
 0x760   : > { %16554 = vmatpush3.bf16.msra.mxu0 %v21076_v5 }
 0x761   : > { %16555 = vmatprep.subr.bf16.mxu0 %v21150_v13  ;;  %v16512_v41 = vpop.f32.mrf.mxu1 }
 0x763   : > { %v16513_v10 = vpop.f32.mrf.mxu1 }
 0x764   : > { %16556 = vmatpush3.bf16.msra.mxu0 %v21069_v58  ;;  %v16514_v37 = vadd.f32 %v16513_v10, %v16512_v41 }
 0x765   : > { %16557 = vmatprep.subr.bf16.mxu0 %v21103_v0  ;;  %v16515_v4 = vpop.f32.mrf.mxu1 }
 0x767   : > { %v16516_v14 = vpop.f32.mrf.mxu1 }
 0x768   : > { %16558 = vmatpush3.bf16.msra.mxu0 %v21065_v49 }
 0x769   : > { %16559 = vmatprep.subr.bf16.mxu0 %v21099_v54  ;;  %v16518_v9 = vpop.f32.mrf.mxu1 }
 0x76b   : > { %v16519_v28 = vpop.f32.mrf.mxu1 }
 0x76c   : > { %16560 = vmatpush3.bf16.msra.mxu0 %v21061_v40  ;;  %v16520_v1 = vadd.f32 %v16519_v28, %v16518_v9 }
 0x76d   : > { %18422 = vmatprep.subr.bf16.mxu0 %v20251_v22 }
 0x76f   : > { %3788 = vmatmul.mubr.bf16.vlgmr.msra.gmra.mxu0 %v20248_v20 }
 0x770   : > { %18423 = vmatpush3.bf16.msra.mxu0 %v20251_v22  ;;  %v16521_v22 = vpop.f32.mrf.mxu1 }
 0x771   : > { %18424 = vmatprep.subr.bf16.mxu0 %v20252_v26 }
 0x772   : > { %v16522_v20 = vpop.f32.mrf.mxu1 }
 0x774   : > { %18425 = vmatpush3.bf16.msra.mxu0 %v20252_v26  ;;  %v20261_v26 = vld [vmem:[%s25290_s3 + $0x2bc] ss:$12 sps:$4 sm:$0xff]  }
 0x775   : > { %18426 = vmatprep.subr.bf16.mxu0 %v20253_v50  ;;  %3795 = vmatprep.mubr.bf16.mxu0 %v20261_v26 }
 0x778   : > { %18427 = vmatpush3.bf16.msra.mxu0 %v20253_v50  ;;  %v20259_v50 = vld [vmem:[%s25290_s3 + $0x2b8] ss:$12 sps:$4 sm:$0xff]  }
 0x779   : > { %18428 = vmatprep.subr.bf16.mxu0 %v20254_v57  ;;  %3796 = vmatmul.mubr.bf16.gmra.mxu0 %v20259_v50 }
 0x77c   : > { %18429 = vmatpush3.bf16.msra.mxu0 %v20254_v57  ;;  %v20266_v57 = vld [vmem:[%s25290_s3 + $0x2d4] ss:$12 sps:$4 sm:$0xff]  }
 0x77d   : > { %18430 = vmatprep.subr.bf16.mxu0 %v20255_v55  ;;  %3803 = vmatprep.mubr.bf16.mxu0 %v20266_v57 }
 0x780   : > { %18431 = vmatpush3.bf16.msra.mxu0 %v20255_v55  ;;  %v20264_v55 = vld [vmem:[%s25290_s3 + $0x2d0] ss:$12 sps:$4 sm:$0xff]  }
 0x781   : > { %18432 = vmatprep.subr.bf16.mxu0 %v20256_v23  ;;  %3804 = vmatmul.mubr.bf16.gmra.mxu0 %v20264_v55  ;;  %v16511_v55 = vadd.f32 %v16510_v38, %v16509_v25 }
 0x784   : > { %18433 = vmatpush3.bf16.msra.mxu0 %v20256_v23  ;;  %v14405_v23 = vld [vmem:[%s25290_s3 + $0x2e8] sm:$0x11] }
 0x785   : > { %18434 = vmatprep.subr.bf16.mxu0 %v20257_v19  ;;  %v14417_v16 = vcombine.high %v14405_v23, %v14405_v23  ;;  %v14416_v33 = vcombine.low %v14405_v23, %v14405_v23 }
 0x787   : > { %3811 = vmatprep.mubr.bf16.mxu0 %v14417_v16  ;;  %v16505_v16 = vadd.f32 %v16504_v18, %v16503_v53 }
 0x788   : > { %18435 = vmatpush3.bf16.msra.mxu0 %v20257_v19 }
 0x789   : > { %18436 = vmatprep.subr.bf16.mxu0 %v20258_v35  ;;  %3812 = vmatmul.mubr.bf16.gmra.mxu0 %v14416_v33 }
 0x78c   : > { %18437 = vmatpush3.bf16.msra.mxu0 %v20258_v35 }
 0x78d   : > { %20007 = vmatprep.subr.msk.bf16.mxu0 %vm966_vm1, %v21205_v56 }
 0x7fb   : > { %v18356_v19 = vpop.f32.mrf.mxu0 }
 0x7fc   : > { %v22069_v35 = vadd.f32 %v18356_v19, %v21962_v52 }
 0x7fd   : > { %v3286_v21 = vpop.f32.mrf.mxu0 }
 0x7fe   : > { %v22072_v29 = vadd.f32 %v3286_v21, %v21965_v2 }
 0x7ff   : > { %v18357_v41 = vpop.f32.mrf.mxu0 }
 0x800   : > { %v22075_v10 = vadd.f32 %v18357_v41, %v21968_v32 }
 0x801   : > { %v22077_v9 = vpop.f32.mrf.mxu0 }
 0x802   : > { %25304 = vst [vmem:[#allocation5_spill] sm:$0xff] %v22077_v9 }
 0x803   : > { %v18360_v28 = vpop.f32.mrf.mxu0 }
 0x804   : > { %v22080_v22 = vadd.f32 %v18360_v28, %v21973_v31 }
 0x805   : > { %v3302_v20 = vpop.f32.mrf.mxu0 }
 0x806   : > { %v22083_v26 = vadd.f32 %v3302_v20, %v21976_v12  ;;  %v16517_v20 = vadd.f32 %v16516_v14, %v16515_v4  ;;  %v20267_v4 = vld [vmem:[%s25290_s3 + $0x2d8] ss:$12 sps:$4 sm:$0xff]   ;;  %v20268_v14 = vld [vmem:[%s25290_s3 + $0x2f0] ss:$0 sps:$4 sm:$0x11]  }
 0x807   : > { %v18361_v52 = vpop.f32.mrf.mxu0 }
 0x809   : > { %v22085_v50 = vpop.f32.mrf.mxu0 }
 0x80a   : > { %25305 = vst [vmem:[#allocation6_spill] sm:$0xff] %v22085_v50 }
 0x80f   : > { %v18374_v57 = vpop.f32.mrf.mxu0 }
 0x810   : > { %v3512_v32 = vadd.f32 %v18374_v57, %v16508_v36  ;;  %v20275_v57 = vld [vmem:[%s25291_s4 + $0x270] sm:$0xff]  }
 0x811   : > { %v3503_v2 = vpop.f32.mrf.mxu0 }
 0x812   : > { %v3504_v21 = vadd.f32 %v16502_v27, %v3503_v2  ;;  %v20262_v27 = vld [vmem:[%s25290_s3 + $0x2a8] ss:$12 sps:$4 sm:$0xff]  }
 0x813   : > { %v18375_v23 = vpop.f32.mrf.mxu0  ;;  %v20276_v2 = vld [vmem:[%s25291_s4 + $0x268] sm:$0xff]  }
 0x814   : > { %v3515_v33 = vadd.f32 %v18375_v23, %v16511_v55  ;;  %v20277_v55 = vld [vmem:[%s25291_s4 + $0x260] sm:$0xff]   ;;  %v20278_v23 = vld [vmem:[%s25291_s4 + $0x258] sm:$0xff]  }
 0x815   : > { %v3506_v19 = vpop.f32.mrf.mxu0 }
 0x816   : > { %v3534_v41 = vpack.c.bf16 %v3515_v33, %v3512_v32  ;;  %v3507_v9 = vadd.f32 %v16505_v16, %v3506_v19  ;;  %v20279_v16 = vld [vmem:[%s25291_s4 + $0x250] sm:$0xff]   ;;  %v20280_v19 = vld [vmem:[%s25291_s4 + $0x248] sm:$0xff]  }
 0x817   : > { %v18378_v31 = vpop.f32.mrf.mxu0 }
 0x818   : > { %v3533_v28 = vpack.c.bf16 %v3507_v9, %v3504_v21  ;;  %v3528_v52 = vadd.f32 %v18378_v31, %v16520_v1  ;;  %v20274_v1 = vld [vmem:[%s25291_s4 + $0x278] sm:$0xff]   ;;  %v20271_v9 = vld [vmem:[%s25290_s3 + $0x2f4] ss:$12 sps:$4 sm:$0xff]  }
 0x819   : > { %v3519_v45 = vpop.f32.mrf.mxu0 }
 0x81a   : > { %18396 = vmatprep.mubr.bf16.mxu1 %v3533_v28  ;;  %v3520_v53 = vadd.f32 %v16514_v37, %v3519_v45  ;;  %v3536_v38 = vpack.c.bf16 %v3528_v52, %v3528_v52  ;;  %v20263_v45 = vld [vmem:[%s25290_s3 + $0x2c0] ss:$12 sps:$4 sm:$0xff]   ;;  %v20273_v37 = vld [vmem:[%s25290_s3 + $0x2f8] ss:$12 sps:$4 sm:$0xff]  }
 0x81b   : > { %v18379_v12 = vpop.f32.mrf.mxu0  ;;  %18397 = vmatmul.mubr.bf16.vlgmr.msra.gmra.mxu1 %v3534_v41  ;;  %v20281_v28 = vld [vmem:[%s25291_s4 + $0x240] sm:$0xff]  }
 0x81c   : > { %18405 = vmatpush3.bf16.msra.mxu1 %v21216_v62 }
 0x81d   : > { %18406 = vmatprep.subr.bf16.mxu1 %v21210_v30  ;;  %v3522_v25 = vpop.f32.mrf.mxu0 }
 0x81e   : > { %v3523_v18 = vadd.f32 %v16517_v20, %v3522_v25 }
 0x820   : > { %v3535_v36 = vpack.c.bf16 %v3523_v18, %v3520_v53  ;;  %18407 = vmatpush3.bf16.msra.mxu1 %v21210_v30 }
 0x821   : > { %18408 = vmatprep.subr.bf16.mxu1 %v21226_v6 }
 0x822   : > { %18400 = vmatprep.mubr.bf16.mxu1 %v3535_v36 }
 0x823   : > { %18401 = vmatmul.mubr.bf16.gmra.mxu1 %v3536_v38 }
 0x824   : > { %18409 = vmatpush3.bf16.msra.mxu1 %v21226_v6  ;;  %18414 = vmatprep.mubr.msk.bf16.mxu1 %vm953_vm2, %v20262_v27 }
 0x825   : > { %18410 = vmatprep.subr.bf16.mxu1 %v21239_v11 }
 0x828   : > { %18411 = vmatpush3.bf16.msra.mxu1 %v21239_v11 }
 0x829   : > { %18412 = vmatprep.subr.bf16.mxu1 %v21250_v17 }
 0x82c   : > { %18413 = vmatpush3.bf16.msra.mxu1 %v21250_v17 }
 0x82d   : > { %16606 = vmatprep.subr.bf16.mxu1 %v21111_v42 }
 0x82f   : > { %18415 = vmatmul.mubr.msk.bf16.vlgmr.msra.gmra.mxu1 %vm953_vm2, %v20263_v45  ;;  %v16561_v32 = vpop.f32.mrf.mxu0 }
 0x830   : > { %16607 = vmatpush3.bf16.msra.mxu1 %v21095_v44  ;;  %18418 = vmatprep.mubr.msk.bf16.mxu1 %vm953_vm2, %v20267_v4 }
 0x831   : > { %16608 = vmatprep.subr.bf16.mxu1 %v21115_v48  ;;  %v16562_v33 = vpop.f32.mrf.mxu0 }
 0x832   : > { %v16563_v41 = vadd.f32 %v16562_v33, %v16561_v32 }
 0x833   : > { %v16564_v21 = vpop.f32.mrf.mxu0 }
 0x834   : > { %16609 = vmatpush3.bf16.msra.mxu1 %v21091_v34 }
 0x835   : > { %16610 = vmatprep.subr.bf16.mxu1 %v21125_v59  ;;  %v16565_v31 = vpop.f32.mrf.mxu0 }
 0x837   : > { %18419 = vmatmul.mubr.msk.bf16.gmra.mxu1 %vm953_vm2, %v20268_v14 }
 0x838   : > { %16611 = vmatpush3.bf16.msra.mxu1 %v21087_v24  ;;  %4137 = vmatprep.mubr.bf16.mxu1 %v20273_v37 }
 0x839   : > { %16612 = vmatprep.subr.bf16.mxu1 %v21138_v7  ;;  %v16567_v12 = vpop.f32.mrf.mxu0 }
 0x83b   : > { %v16568_v20 = vpop.f32.mrf.mxu0 }
 0x83c   : > { %16613 = vmatpush3.bf16.msra.mxu1 %v21083_v15  ;;  %v16569_v52 = vadd.f32 %v16568_v20, %v16567_v12 }
 0x83d   : > { %16614 = vmatprep.subr.bf16.mxu1 %v21144_v63  ;;  %v16570_v25 = vpop.f32.mrf.mxu0 }
 0x83f   : > { %v16571_v53 = vpop.f32.mrf.mxu0 }
 0x840   : > { %16615 = vmatpush3.bf16.msra.mxu1 %v21076_v5 }
 0x841   : > { %16616 = vmatprep.subr.bf16.mxu1 %v21150_v13  ;;  %v16573_v18 = vpop.f32.mrf.mxu0 }
 0x843   : > { %v16574_v36 = vpop.f32.mrf.mxu0 }
 0x844   : > { %16617 = vmatpush3.bf16.msra.mxu1 %v21069_v58  ;;  %v16575_v45 = vadd.f32 %v16574_v36, %v16573_v18 }
 0x845   : > { %16618 = vmatprep.subr.bf16.mxu1 %v21103_v0  ;;  %v16576_v27 = vpop.f32.mrf.mxu0 }
 0x847   : > { %v16577_v38 = vpop.f32.mrf.mxu0 }
 0x848   : > { %16619 = vmatpush3.bf16.msra.mxu1 %v21065_v49 }
 0x849   : > { %16620 = vmatprep.subr.bf16.mxu1 %v21099_v54  ;;  %v16579_v4 = vpop.f32.mrf.mxu0 }
 0x84b   : > { %v16580_v14 = vpop.f32.mrf.mxu0 }
 0x84c   : > { %16621 = vmatpush3.bf16.msra.mxu1 %v21061_v40  ;;  %v16581_v37 = vadd.f32 %v16580_v14, %v16579_v4 }
 0x84d   : > { %18464 = vmatprep.subr.bf16.mxu1 %v20274_v1 }
 0x84f   : > { %4138 = vmatmul.mubr.bf16.vlgmr.msra.gmra.mxu1 %v20271_v9 }
 0x850   : > { %18465 = vmatpush3.bf16.msra.mxu1 %v20274_v1  ;;  %v16582_v1 = vpop.f32.mrf.mxu0 }
 0x851   : > { %18466 = vmatprep.subr.bf16.mxu1 %v20275_v57 }
 0x852   : > { %v16583_v9 = vpop.f32.mrf.mxu0 }
 0x854   : > { %18467 = vmatpush3.bf16.msra.mxu1 %v20275_v57  ;;  %v20284_v57 = vld [vmem:[%s25290_s3 + $0x310] ss:$12 sps:$4 sm:$0xff]  }
 0x855   : > { %18468 = vmatprep.subr.bf16.mxu1 %v20276_v2  ;;  %4145 = vmatprep.mubr.bf16.mxu1 %v20284_v57 }
 0x858   : > { %18469 = vmatpush3.bf16.msra.mxu1 %v20276_v2  ;;  %v20282_v2 = vld [vmem:[%s25290_s3 + $0x30c] ss:$12 sps:$4 sm:$0xff]  }
 0x859   : > { %18470 = vmatprep.subr.bf16.mxu1 %v20277_v55  ;;  %4146 = vmatmul.mubr.bf16.gmra.mxu1 %v20282_v2 }
 0x85c   : > { %18471 = vmatpush3.bf16.msra.mxu1 %v20277_v55  ;;  %v20289_v55 = vld [vmem:[%s25290_s3 + $0x328] ss:$12 sps:$4 sm:$0xff]  }
 0x85d   : > { %18472 = vmatprep.subr.bf16.mxu1 %v20278_v23  ;;  %4153 = vmatprep.mubr.bf16.mxu1 %v20289_v55 }
 0x860   : > { %18473 = vmatpush3.bf16.msra.mxu1 %v20278_v23  ;;  %v20287_v23 = vld [vmem:[%s25290_s3 + $0x324] ss:$12 sps:$4 sm:$0xff]  }
 0x861   : > { %18474 = vmatprep.subr.bf16.mxu1 %v20279_v16  ;;  %4154 = vmatmul.mubr.bf16.gmra.mxu1 %v20287_v23  ;;  %v16572_v23 = vadd.f32 %v16571_v53, %v16570_v25 }
 0x864   : > { %18475 = vmatpush3.bf16.msra.mxu1 %v20279_v16  ;;  %v14459_v16 = vld [vmem:[%s25290_s3 + $0x33c] sm:$0x11] }
 0x865   : > { %18476 = vmatprep.subr.bf16.mxu1 %v20280_v19  ;;  %v14471_v32 = vcombine.high %v14459_v16, %v14459_v16  ;;  %v14470_v33 = vcombine.low %v14459_v16, %v14459_v16 }
 0x867   : > { %4161 = vmatprep.mubr.bf16.mxu1 %v14471_v32  ;;  %v16566_v32 = vadd.f32 %v16565_v31, %v16564_v21 }
 0x868   : > { %18477 = vmatpush3.bf16.msra.mxu1 %v20280_v19 }
 0x869   : > { %18478 = vmatprep.subr.bf16.mxu1 %v20281_v28  ;;  %4162 = vmatmul.mubr.bf16.gmra.mxu1 %v14470_v33 }
 0x86c   : > { %18479 = vmatpush3.bf16.msra.mxu1 %v20281_v28 }
 0x86d   : > { %20008 = vmatprep.subr.msk.bf16.mxu1 %vm966_vm1, %v21205_v56 }
 0x8db   : > { %v18398_v19 = vpop.f32.mrf.mxu1 }
 0x8dc   : > { %v22176_v28 = vadd.f32 %v18398_v19, %v22069_v35 }
 0x8dd   : > { %v3636_v12 = vpop.f32.mrf.mxu1 }
 0x8de   : > { %v22179_v20 = vadd.f32 %v3636_v12, %v22072_v29 }
 0x8df   : > { %v18399_v18 = vpop.f32.mrf.mxu1 }
 0x8e0   : > { %v22182_v36 = vadd.f32 %v18399_v18, %v22075_v10 }
 0x8e1   : > { %v22184_v4 = vpop.f32.mrf.mxu1 }
 0x8e2   : > { %25306 = vst [vmem:[#allocation7_spill] sm:$0xff] %v22184_v4 }
 0x8e3   : > { %v18402_v14 = vpop.f32.mrf.mxu1 }
 0x8e4   : > { %v22187_v1 = vadd.f32 %v18402_v14, %v22080_v22 }
 0x8e5   : > { %v3652_v9 = vpop.f32.mrf.mxu1 }
 0x8e6   : > { %v22190_v57 = vadd.f32 %v3652_v9, %v22083_v26  ;;  %v16578_v9 = vadd.f32 %v16577_v38, %v16576_v27  ;;  %v20290_v27 = vld [vmem:[%s25290_s3 + $0x32c] ss:$12 sps:$4 sm:$0xff]   ;;  %v20291_v38 = vld [vmem:[%s25290_s3 + $0x344] ss:$0 sps:$4 sm:$0x11]  }
 0x8e7   : > { %v18403_v35 = vpop.f32.mrf.mxu1 }
 0x8e9   : > { %v22192_v2 = vpop.f32.mrf.mxu1 }
 0x8ea   : > { %25307 = vst [vmem:[#allocation8_spill] sm:$0xff] %v22192_v2 }
 0x8ef   : > { %v18416_v55 = vpop.f32.mrf.mxu1 }
 0x8f0   : > { %v3862_v10 = vadd.f32 %v18416_v55, %v16569_v52  ;;  %v20298_v55 = vld [vmem:[%s25291_s4 + $0x2b0] sm:$0xff]  }
 0x8f1   : > { %v3853_v29 = vpop.f32.mrf.mxu1 }
 0x8f2   : > { %v3854_v12 = vadd.f32 %v16563_v41, %v3853_v29  ;;  %v20285_v41 = vld [vmem:[%s25290_s3 + $0x2fc] ss:$12 sps:$4 sm:$0xff]  }
 0x8f3   : > { %v18417_v16 = vpop.f32.mrf.mxu1  ;;  %v20299_v29 = vld [vmem:[%s25291_s4 + $0x2a8] sm:$0xff]  }
 0x8f4   : > { %v3865_v33 = vadd.f32 %v18417_v16, %v16572_v23  ;;  %v20300_v23 = vld [vmem:[%s25291_s4 + $0x2a0] sm:$0xff]   ;;  %v20301_v16 = vld [vmem:[%s25291_s4 + $0x298] sm:$0xff]  }
 0x8f5   : > { %v3856_v19 = vpop.f32.mrf.mxu1 }
 0x8f6   : > { %v3884_v18 = vpack.c.bf16 %v3865_v33, %v3862_v10  ;;  %v3857_v4 = vadd.f32 %v16566_v32, %v3856_v19  ;;  %v20302_v32 = vld [vmem:[%s25291_s4 + $0x290] sm:$0xff]   ;;  %v20303_v19 = vld [vmem:[%s25291_s4 + $0x288] sm:$0xff]  }
 0x8f7   : > { %v18420_v22 = vpop.f32.mrf.mxu1 }
 0x8f8   : > { %v3883_v14 = vpack.c.bf16 %v3857_v4, %v3854_v12  ;;  %v3878_v35 = vadd.f32 %v18420_v22, %v16581_v37  ;;  %v20297_v37 = vld [vmem:[%s25291_s4 + $0x2b8] sm:$0xff]   ;;  %v20294_v4 = vld [vmem:[%s25290_s3 + $0x348] ss:$12 sps:$4 sm:$0xff]  }
 0x8f9   : > { %v3869_v50 = vpop.f32.mrf.mxu1 }
 0x8fa   : > { %18438 = vmatprep.mubr.bf16.mxu0 %v3883_v14  ;;  %v3870_v21 = vadd.f32 %v16575_v45, %v3869_v50  ;;  %v3886_v53 = vpack.c.bf16 %v3878_v35, %v3878_v35  ;;  %v20286_v50 = vld [vmem:[%s25290_s3 + $0x314] ss:$12 sps:$4 sm:$0xff]   ;;  %v20296_v45 = vld [vmem:[%s25290_s3 + $0x34c] ss:$12 sps:$4 sm:$0xff]  }
 0x8fb   : > { %v18421_v26 = vpop.f32.mrf.mxu1  ;;  %18439 = vmatmul.mubr.bf16.vlgmr.msra.gmra.mxu0 %v3884_v18  ;;  %v20304_v14 = vld [vmem:[%s25291_s4 + $0x280] sm:$0xff]  }
 0x8fc   : > { %18447 = vmatpush3.bf16.msra.mxu0 %v21216_v62 }
 0x8fd   : > { %18448 = vmatprep.subr.bf16.mxu0 %v21210_v30  ;;  %v3872_v25 = vpop.f32.mrf.mxu1 }
 0x8fe   : > { %v3873_v31 = vadd.f32 %v16578_v9, %v3872_v25 }
 0x900   : > { %v3885_v52 = vpack.c.bf16 %v3873_v31, %v3870_v21  ;;  %18449 = vmatpush3.bf16.msra.mxu0 %v21210_v30 }
 0x901   : > { %18450 = vmatprep.subr.bf16.mxu0 %v21226_v6 }
 0x902   : > { %18442 = vmatprep.mubr.bf16.mxu0 %v3885_v52 }
 0x903   : > { %18443 = vmatmul.mubr.bf16.gmra.mxu0 %v3886_v53 }
 0x904   : > { %18451 = vmatpush3.bf16.msra.mxu0 %v21226_v6  ;;  %18456 = vmatprep.mubr.msk.bf16.mxu0 %vm953_vm2, %v20285_v41 }
 0x905   : > { %18452 = vmatprep.subr.bf16.mxu0 %v21239_v11 }
 0x908   : > { %18453 = vmatpush3.bf16.msra.mxu0 %v21239_v11 }
 0x909   : > { %18454 = vmatprep.subr.bf16.mxu0 %v21250_v17 }
 0x90c   : > { %18455 = vmatpush3.bf16.msra.mxu0 %v21250_v17 }
 0x90d   : > { %16667 = vmatprep.subr.bf16.mxu0 %v21111_v42 }
 0x90f   : > { %18457 = vmatmul.mubr.msk.bf16.vlgmr.msra.gmra.mxu0 %vm953_vm2, %v20286_v50  ;;  %v16622_v10 = vpop.f32.mrf.mxu1 }
 0x910   : > { %16668 = vmatpush3.bf16.msra.mxu0 %v21095_v44  ;;  %18460 = vmatprep.mubr.msk.bf16.mxu0 %vm953_vm2, %v20290_v27 }
 0x911   : > { %16669 = vmatprep.subr.bf16.mxu0 %v21115_v48  ;;  %v16623_v33 = vpop.f32.mrf.mxu1 }
 0x912   : > { %v16624_v18 = vadd.f32 %v16623_v33, %v16622_v10 }
 0x913   : > { %v16625_v12 = vpop.f32.mrf.mxu1 }
 0x914   : > { %16670 = vmatpush3.bf16.msra.mxu0 %v21091_v34 }
 0x915   : > { %16671 = vmatprep.subr.bf16.mxu0 %v21125_v59  ;;  %v16626_v22 = vpop.f32.mrf.mxu1 }
 0x917   : > { %18461 = vmatmul.mubr.msk.bf16.gmra.mxu0 %vm953_vm2, %v20291_v38 }
 0x918   : > { %16672 = vmatpush3.bf16.msra.mxu0 %v21087_v24  ;;  %4487 = vmatprep.mubr.bf16.mxu0 %v20296_v45 }
 0x919   : > { %16673 = vmatprep.subr.bf16.mxu0 %v21138_v7  ;;  %v16628_v26 = vpop.f32.mrf.mxu1 }
 0x91b   : > { %v16629_v9 = vpop.f32.mrf.mxu1 }
 0x91c   : > { %16674 = vmatpush3.bf16.msra.mxu0 %v21083_v15  ;;  %v16630_v35 = vadd.f32 %v16629_v9, %v16628_v26 }
 0x91d   : > { %16675 = vmatprep.subr.bf16.mxu0 %v21144_v63  ;;  %v16631_v25 = vpop.f32.mrf.mxu1 }
 0x91f   : > { %v16632_v21 = vpop.f32.mrf.mxu1 }
 0x920   : > { %16676 = vmatpush3.bf16.msra.mxu0 %v21076_v5 }
 0x921   : > { %16677 = vmatprep.subr.bf16.mxu0 %v21150_v13  ;;  %v16634_v31 = vpop.f32.mrf.mxu1 }
 0x923   : > { %v16635_v52 = vpop.f32.mrf.mxu1 }
 0x924   : > { %16678 = vmatpush3.bf16.msra.mxu0 %v21069_v58  ;;  %v16636_v50 = vadd.f32 %v16635_v52, %v16634_v31 }
 0x925   : > { %16679 = vmatprep.subr.bf16.mxu0 %v21103_v0  ;;  %v16637_v41 = vpop.f32.mrf.mxu1 }
 0x927   : > { %v16638_v53 = vpop.f32.mrf.mxu1 }
 0x928   : > { %16680 = vmatpush3.bf16.msra.mxu0 %v21065_v49 }
 0x929   : > { %16681 = vmatprep.subr.bf16.mxu0 %v21099_v54  ;;  %v16640_v27 = vpop.f32.mrf.mxu1 }
 0x92b   : > { %v16641_v38 = vpop.f32.mrf.mxu1 }
 0x92c   : > { %16682 = vmatpush3.bf16.msra.mxu0 %v21061_v40  ;;  %v16642_v45 = vadd.f32 %v16641_v38, %v16640_v27 }
 0x92d   : > { %18506 = vmatprep.subr.bf16.mxu0 %v20297_v37 }
 0x92f   : > { %4488 = vmatmul.mubr.bf16.vlgmr.msra.gmra.mxu0 %v20294_v4 }
 0x930   : > { %18507 = vmatpush3.bf16.msra.mxu0 %v20297_v37  ;;  %v16643_v37 = vpop.f32.mrf.mxu1 }
 0x931   : > { %18508 = vmatprep.subr.bf16.mxu0 %v20298_v55 }
 0x932   : > { %v16644_v4 = vpop.f32.mrf.mxu1 }
 0x934   : > { %18509 = vmatpush3.bf16.msra.mxu0 %v20298_v55  ;;  %v20307_v55 = vld [vmem:[%s25290_s3 + $0x364] ss:$12 sps:$4 sm:$0xff]  }
 0x935   : > { %18510 = vmatprep.subr.bf16.mxu0 %v20299_v29  ;;  %4495 = vmatprep.mubr.bf16.mxu0 %v20307_v55 }
 0x938   : > { %18511 = vmatpush3.bf16.msra.mxu0 %v20299_v29  ;;  %v20305_v29 = vld [vmem:[%s25290_s3 + $0x360] ss:$12 sps:$4 sm:$0xff]  }
 0x939   : > { %18512 = vmatprep.subr.bf16.mxu0 %v20300_v23  ;;  %4496 = vmatmul.mubr.bf16.gmra.mxu0 %v20305_v29 }
 0x93c   : > { %18513 = vmatpush3.bf16.msra.mxu0 %v20300_v23  ;;  %v20312_v23 = vld [vmem:[%s25290_s3 + $0x37c] ss:$12 sps:$4 sm:$0xff]  }
 0x93d   : > { %18514 = vmatprep.subr.bf16.mxu0 %v20301_v16  ;;  %4503 = vmatprep.mubr.bf16.mxu0 %v20312_v23 }
 0x940   : > { %18515 = vmatpush3.bf16.msra.mxu0 %v20301_v16  ;;  %v20310_v16 = vld [vmem:[%s25290_s3 + $0x378] ss:$12 sps:$4 sm:$0xff]  }
 0x941   : > { %18516 = vmatprep.subr.bf16.mxu0 %v20302_v32  ;;  %4504 = vmatmul.mubr.bf16.gmra.mxu0 %v20310_v16  ;;  %v16633_v16 = vadd.f32 %v16632_v21, %v16631_v25 }
 0x944   : > { %18517 = vmatpush3.bf16.msra.mxu0 %v20302_v32  ;;  %v14513_v32 = vld [vmem:[%s25290_s3 + $0x390] sm:$0x11] }
 0x945   : > { %18518 = vmatprep.subr.bf16.mxu0 %v20303_v19  ;;  %v14525_v10 = vcombine.high %v14513_v32, %v14513_v32  ;;  %v14524_v33 = vcombine.low %v14513_v32, %v14513_v32 }
 0x947   : > { %4511 = vmatprep.mubr.bf16.mxu0 %v14525_v10  ;;  %v16627_v10 = vadd.f32 %v16626_v22, %v16625_v12 }
 0x948   : > { %18519 = vmatpush3.bf16.msra.mxu0 %v20303_v19 }
 0x949   : > { %18520 = vmatprep.subr.bf16.mxu0 %v20304_v14  ;;  %4512 = vmatmul.mubr.bf16.gmra.mxu0 %v14524_v33 }
 0x94c   : > { %18521 = vmatpush3.bf16.msra.mxu0 %v20304_v14 }
 0x94d   : > { %20009 = vmatprep.subr.msk.bf16.mxu0 %vm966_vm1, %v21205_v56 }
 0x9bb   : > { %v18440_v19 = vpop.f32.mrf.mxu0 }
 0x9bc   : > { %v22283_v14 = vadd.f32 %v18440_v19, %v22176_v28 }
 0x9bd   : > { %v3986_v26 = vpop.f32.mrf.mxu0 }
 0x9be   : > { %v22286_v9 = vadd.f32 %v3986_v26, %v22179_v20 }
 0x9bf   : > { %v18441_v31 = vpop.f32.mrf.mxu0 }
 0x9c0   : > { %v22289_v52 = vadd.f32 %v18441_v31, %v22182_v36 }
 0x9c1   : > { %v22291_v27 = vpop.f32.mrf.mxu0 }
 0x9c2   : > { %25308 = vst [vmem:[#allocation9_spill] sm:$0xff] %v22291_v27 }
 0x9c3   : > { %v18444_v38 = vpop.f32.mrf.mxu0 }
 0x9c4   : > { %v22294_v37 = vadd.f32 %v18444_v38, %v22187_v1 }
 0x9c5   : > { %v4002_v4 = vpop.f32.mrf.mxu0 }
 0x9c6   : > { %v22297_v55 = vadd.f32 %v4002_v4, %v22190_v57  ;;  %v16639_v4 = vadd.f32 %v16638_v53, %v16637_v41  ;;  %v20313_v41 = vld [vmem:[%s25290_s3 + $0x380] ss:$12 sps:$4 sm:$0xff]   ;;  %v20314_v53 = vld [vmem:[%s25290_s3 + $0x398] ss:$0 sps:$4 sm:$0x11]  }
 0x9c7   : > { %v18445_v28 = vpop.f32.mrf.mxu0 }
 0x9c9   : > { %v22299_v29 = vpop.f32.mrf.mxu0 }
 0x9ca   : > { %25309 = vst [vmem:[#allocation10_spill] sm:$0xff] %v22299_v29 }
 0x9cf   : > { %v18458_v23 = vpop.f32.mrf.mxu0 }
 0x9d0   : > { %v4212_v36 = vadd.f32 %v18458_v23, %v16630_v35  ;;  %v20321_v23 = vld [vmem:[%s25291_s4 + $0x2f0] sm:$0xff]  }
 0x9d1   : > { %v4203_v20 = vpop.f32.mrf.mxu0 }
 0x9d2   : > { %v4204_v26 = vadd.f32 %v16624_v18, %v4203_v20  ;;  %v20308_v18 = vld [vmem:[%s25290_s3 + $0x350] ss:$12 sps:$4 sm:$0xff]   ;;  %v20322_v20 = vld [vmem:[%s25291_s4 + $0x2e8] sm:$0xff]  }
 0x9d3   : > { %v18459_v32 = vpop.f32.mrf.mxu0 }
 0x9d4   : > { %v4215_v33 = vadd.f32 %v18459_v32, %v16633_v16  ;;  %v20323_v16 = vld [vmem:[%s25291_s4 + $0x2e0] sm:$0xff]   ;;  %v20324_v32 = vld [vmem:[%s25291_s4 + $0x2d8] sm:$0xff]  }
 0x9d5   : > { %v4206_v19 = vpop.f32.mrf.mxu0 }
 0x9d6   : > { %v4234_v31 = vpack.c.bf16 %v4215_v33, %v4212_v36  ;;  %v4207_v27 = vadd.f32 %v16627_v10, %v4206_v19  ;;  %v20325_v10 = vld [vmem:[%s25291_s4 + $0x2d0] sm:$0xff]   ;;  %v20326_v19 = vld [vmem:[%s25291_s4 + $0x2c8] sm:$0xff]  }
 0x9d7   : > { %v18462_v1 = vpop.f32.mrf.mxu0 }
 0x9d8   : > { %v4233_v38 = vpack.c.bf16 %v4207_v27, %v4204_v26  ;;  %v4228_v28 = vadd.f32 %v18462_v1, %v16642_v45  ;;  %v20320_v45 = vld [vmem:[%s25291_s4 + $0x2f8] sm:$0xff]  }
 0x9d9   : > { %v4219_v2 = vpop.f32.mrf.mxu0  ;;  %v20317_v27 = vld [vmem:[%s25290_s3 + $0x39c] ss:$12 sps:$4 sm:$0xff]  }
 0x9da   : > { %18480 = vmatprep.mubr.bf16.mxu1 %v4233_v38  ;;  %v4220_v12 = vadd.f32 %v16636_v50, %v4219_v2  ;;  %v4236_v21 = vpack.c.bf16 %v4228_v28, %v4228_v28  ;;  %v20309_v2 = vld [vmem:[%s25290_s3 + $0x368] ss:$12 sps:$4 sm:$0xff]   ;;  %v20319_v50 = vld [vmem:[%s25290_s3 + $0x3a0] ss:$12 sps:$4 sm:$0xff]  }
 0x9db   : > { %v18463_v57 = vpop.f32.mrf.mxu0  ;;  %18481 = vmatmul.mubr.bf16.vlgmr.msra.gmra.mxu1 %v4234_v31  ;;  %v20327_v38 = vld [vmem:[%s25291_s4 + $0x2c0] sm:$0xff]  }
 0x9dc   : > { %18489 = vmatpush3.bf16.msra.mxu1 %v21216_v62 }
 0x9dd   : > { %18490 = vmatprep.subr.bf16.mxu1 %v21210_v30  ;;  %v4222_v25 = vpop.f32.mrf.mxu0 }
 0x9de   : > { %v4223_v22 = vadd.f32 %v16639_v4, %v4222_v25 }
 0x9e0   : > { %v4235_v35 = vpack.c.bf16 %v4223_v22, %v4220_v12  ;;  %18491 = vmatpush3.bf16.msra.mxu1 %v21210_v30 }
 0x9e1   : > { %18492 = vmatprep.subr.bf16.mxu1 %v21226_v6 }
 0x9e2   : > { %18484 = vmatprep.mubr.bf16.mxu1 %v4235_v35 }
 0x9e3   : > { %18485 = vmatmul.mubr.bf16.gmra.mxu1 %v4236_v21 }
 0x9e4   : > { %18493 = vmatpush3.bf16.msra.mxu1 %v21226_v6  ;;  %18498 = vmatprep.mubr.msk.bf16.mxu1 %vm953_vm2, %v20308_v18 }
 0x9e5   : > { %18494 = vmatprep.subr.bf16.mxu1 %v21239_v11 }
 0x9e8   : > { %18495 = vmatpush3.bf16.msra.mxu1 %v21239_v11 }
 0x9e9   : > { %18496 = vmatprep.subr.bf16.mxu1 %v21250_v17 }
 0x9ec   : > { %18497 = vmatpush3.bf16.msra.mxu1 %v21250_v17 }
 0x9ed   : > { %16728 = vmatprep.subr.bf16.mxu1 %v21111_v42 }
 0x9ef   : > { %18499 = vmatmul.mubr.msk.bf16.vlgmr.msra.gmra.mxu1 %vm953_vm2, %v20309_v2  ;;  %v16683_v36 = vpop.f32.mrf.mxu0 }
 0x9f0   : > { %16729 = vmatpush3.bf16.msra.mxu1 %v21095_v44  ;;  %18502 = vmatprep.mubr.msk.bf16.mxu1 %vm953_vm2, %v20313_v41 }
 0x9f1   : > { %16730 = vmatprep.subr.bf16.mxu1 %v21115_v48  ;;  %v16684_v33 = vpop.f32.mrf.mxu0 }
 0x9f2   : > { %v16685_v31 = vadd.f32 %v16684_v33, %v16683_v36 }
 0x9f3   : > { %v16686_v26 = vpop.f32.mrf.mxu0 }
 0x9f4   : > { %16731 = vmatpush3.bf16.msra.mxu1 %v21091_v34 }
 0x9f5   : > { %16732 = vmatprep.subr.bf16.mxu1 %v21125_v59  ;;  %v16687_v1 = vpop.f32.mrf.mxu0 }
 0x9f7   : > { %18503 = vmatmul.mubr.msk.bf16.gmra.mxu1 %vm953_vm2, %v20314_v53 }
 0x9f8   : > { %16733 = vmatpush3.bf16.msra.mxu1 %v21087_v24  ;;  %4837 = vmatprep.mubr.bf16.mxu1 %v20319_v50 }
 0x9f9   : > { %16734 = vmatprep.subr.bf16.mxu1 %v21138_v7  ;;  %v16689_v57 = vpop.f32.mrf.mxu0 }
 0x9fb   : > { %v16690_v4 = vpop.f32.mrf.mxu0 }
 0x9fc   : > { %16735 = vmatpush3.bf16.msra.mxu1 %v21083_v15  ;;  %v16691_v28 = vadd.f32 %v16690_v4, %v16689_v57 }
 0x9fd   : > { %16736 = vmatprep.subr.bf16.mxu1 %v21144_v63  ;;  %v16692_v25 = vpop.f32.mrf.mxu0 }
 0x9ff   : > { %v16693_v12 = vpop.f32.mrf.mxu0 }
 0xa00   : > { %16737 = vmatpush3.bf16.msra.mxu1 %v21076_v5 }
 0xa01   : > { %16738 = vmatprep.subr.bf16.mxu1 %v21150_v13  ;;  %v16695_v22 = vpop.f32.mrf.mxu0 }
 0xa03   : > { %v16696_v35 = vpop.f32.mrf.mxu0 }
 0xa04   : > { %16739 = vmatpush3.bf16.msra.mxu1 %v21069_v58  ;;  %v16697_v2 = vadd.f32 %v16696_v35, %v16695_v22 }
 0xa05   : > { %16740 = vmatprep.subr.bf16.mxu1 %v21103_v0  ;;  %v16698_v18 = vpop.f32.mrf.mxu0 }
 0xa07   : > { %v16699_v21 = vpop.f32.mrf.mxu0 }
 0xa08   : > { %16741 = vmatpush3.bf16.msra.mxu1 %v21065_v49 }
 0xa09   : > { %16742 = vmatprep.subr.bf16.mxu1 %v21099_v54  ;;  %v16701_v41 = vpop.f32.mrf.mxu0 }
 0xa0b   : > { %v16702_v53 = vpop.f32.mrf.mxu0 }
 0xa0c   : > { %16743 = vmatpush3.bf16.msra.mxu1 %v21061_v40  ;;  %v16703_v50 = vadd.f32 %v16702_v53, %v16701_v41 }
 0xa0d   : > { %18548 = vmatprep.subr.bf16.mxu1 %v20320_v45 }
 0xa0f   : > { %4838 = vmatmul.mubr.bf16.vlgmr.msra.gmra.mxu1 %v20317_v27 }
 0xa10   : > { %18549 = vmatpush3.bf16.msra.mxu1 %v20320_v45  ;;  %v16704_v45 = vpop.f32.mrf.mxu0 }
 0xa11   : > { %18550 = vmatprep.subr.bf16.mxu1 %v20321_v23 }
 0xa12   : > { %v16705_v27 = vpop.f32.mrf.mxu0 }
 0xa14   : > { %18551 = vmatpush3.bf16.msra.mxu1 %v20321_v23  ;;  %v20330_v23 = vld [vmem:[%s25290_s3 + $0x3b8] ss:$12 sps:$4 sm:$0xff]  }
 0xa15   : > { %18552 = vmatprep.subr.bf16.mxu1 %v20322_v20  ;;  %4845 = vmatprep.mubr.bf16.mxu1 %v20330_v23 }
 0xa18   : > { %18553 = vmatpush3.bf16.msra.mxu1 %v20322_v20  ;;  %v20328_v20 = vld [vmem:[%s25290_s3 + $0x3b4] ss:$12 sps:$4 sm:$0xff]  }
 0xa19   : > { %18554 = vmatprep.subr.bf16.mxu1 %v20323_v16  ;;  %4846 = vmatmul.mubr.bf16.gmra.mxu1 %v20328_v20 }
 0xa1c   : > { %18555 = vmatpush3.bf16.msra.mxu1 %v20323_v16  ;;  %v20335_v16 = vld [vmem:[%s25290_s3 + $0x3d0] ss:$12 sps:$4 sm:$0xff]  }
 0xa1d   : > { %18556 = vmatprep.subr.bf16.mxu1 %v20324_v32  ;;  %4853 = vmatprep.mubr.bf16.mxu1 %v20335_v16 }
 0xa20   : > { %18557 = vmatpush3.bf16.msra.mxu1 %v20324_v32  ;;  %v20333_v32 = vld [vmem:[%s25290_s3 + $0x3cc] ss:$12 sps:$4 sm:$0xff]  }
 0xa21   : > { %18558 = vmatprep.subr.bf16.mxu1 %v20325_v10  ;;  %4854 = vmatmul.mubr.bf16.gmra.mxu1 %v20333_v32  ;;  %v16694_v32 = vadd.f32 %v16693_v12, %v16692_v25 }
 0xa24   : > { %18559 = vmatpush3.bf16.msra.mxu1 %v20325_v10  ;;  %v14567_v10 = vld [vmem:[%s25290_s3 + $0x3e4] sm:$0x11] }
 0xa25   : > { %18560 = vmatprep.subr.bf16.mxu1 %v20326_v19  ;;  %v14579_v36 = vcombine.high %v14567_v10, %v14567_v10  ;;  %v14578_v33 = vcombine.low %v14567_v10, %v14567_v10 }
 0xa27   : > { %4861 = vmatprep.mubr.bf16.mxu1 %v14579_v36  ;;  %v16688_v36 = vadd.f32 %v16687_v1, %v16686_v26 }
 0xa28   : > { %18561 = vmatpush3.bf16.msra.mxu1 %v20326_v19 }
 0xa29   : > { %18562 = vmatprep.subr.bf16.mxu1 %v20327_v38  ;;  %4862 = vmatmul.mubr.bf16.gmra.mxu1 %v14578_v33 }
 0xa2c   : > { %18563 = vmatpush3.bf16.msra.mxu1 %v20327_v38 }
 0xa2d   : > { %20010 = vmatprep.subr.msk.bf16.mxu1 %vm966_vm1, %v21205_v56 }
 0xa9b   : > { %v18482_v19 = vpop.f32.mrf.mxu1 }
 0xa9c   : > { %v22390_v38 = vadd.f32 %v18482_v19, %v22283_v14 }
 0xa9d   : > { %v4336_v57 = vpop.f32.mrf.mxu1 }
 0xa9e   : > { %v22393_v4 = vadd.f32 %v4336_v57, %v22286_v9 }
 0xa9f   : > { %v18483_v22 = vpop.f32.mrf.mxu1 }
 0xaa0   : > { %v22396_v35 = vadd.f32 %v18483_v22, %v22289_v52 }
 0xaa1   : > { %v22398_v41 = vpop.f32.mrf.mxu1 }
 0xaa2   : > { %25310 = vst [vmem:[#allocation11_spill] sm:$0xff] %v22398_v41 }
 0xaa3   : > { %v18486_v53 = vpop.f32.mrf.mxu1 }
 0xaa4   : > { %v22401_v45 = vadd.f32 %v18486_v53, %v22294_v37 }
 0xaa5   : > { %v4352_v27 = vpop.f32.mrf.mxu1 }
 0xaa6   : > { %v22404_v23 = vadd.f32 %v4352_v27, %v22297_v55  ;;  %v16700_v27 = vadd.f32 %v16699_v21, %v16698_v18  ;;  %v20336_v18 = vld [vmem:[%s25290_s3 + $0x3d4] ss:$12 sps:$4 sm:$0xff]   ;;  %v20337_v21 = vld [vmem:[%s25290_s3 + $0x3ec] ss:$0 sps:$4 sm:$0x11]  }
 0xaa7   : > { %v18487_v14 = vpop.f32.mrf.mxu1 }
 0xaa9   : > { %v22406_v20 = vpop.f32.mrf.mxu1 }
 0xaaa   : > { %25311 = vst [vmem:[#allocation12_spill] sm:$0xff] %v22406_v20 }
 0xaaf   : > { %v18500_v16 = vpop.f32.mrf.mxu1 }
 0xab0   : > { %v4562_v52 = vadd.f32 %v18500_v16, %v16691_v28  ;;  %v20344_v16 = vld [vmem:[%s25291_s4 + $0x330] sm:$0xff]  }
 0xab1   : > { %v4553_v9 = vpop.f32.mrf.mxu1 }
 0xab2   : > { %v4554_v57 = vadd.f32 %v16685_v31, %v4553_v9  ;;  %v20331_v31 = vld [vmem:[%s25290_s3 + $0x3a4] ss:$12 sps:$4 sm:$0xff]   ;;  %v20345_v9 = vld [vmem:[%s25291_s4 + $0x328] sm:$0xff]  }
 0xab3   : > { %v18501_v10 = vpop.f32.mrf.mxu1 }
 0xab4   : > { %v4565_v33 = vadd.f32 %v18501_v10, %v16694_v32  ;;  %v20346_v32 = vld [vmem:[%s25291_s4 + $0x320] sm:$0xff]   ;;  %v20347_v10 = vld [vmem:[%s25291_s4 + $0x318] sm:$0xff]  }
 0xab5   : > { %v4556_v19 = vpop.f32.mrf.mxu1 }
 0xab6   : > { %v4584_v22 = vpack.c.bf16 %v4565_v33, %v4562_v52  ;;  %v4557_v41 = vadd.f32 %v16688_v36, %v4556_v19  ;;  %v20348_v36 = vld [vmem:[%s25291_s4 + $0x310] sm:$0xff]   ;;  %v20349_v19 = vld [vmem:[%s25291_s4 + $0x308] sm:$0xff]  }
 0xab7   : > { %v18504_v37 = vpop.f32.mrf.mxu1 }
 0xab8   : > { %v4583_v53 = vpack.c.bf16 %v4557_v41, %v4554_v57  ;;  %v4578_v14 = vadd.f32 %v18504_v37, %v16703_v50  ;;  %v20343_v50 = vld [vmem:[%s25291_s4 + $0x338] sm:$0xff]  }
 0xab9   : > { %v4569_v29 = vpop.f32.mrf.mxu1  ;;  %v20340_v41 = vld [vmem:[%s25290_s3 + $0x3f0] ss:$12 sps:$4 sm:$0xff]  }
 0xaba   : > { %18522 = vmatprep.mubr.bf16.mxu0 %v4583_v53  ;;  %v4570_v26 = vadd.f32 %v16697_v2, %v4569_v29  ;;  %v4586_v12 = vpack.c.bf16 %v4578_v14, %v4578_v14  ;;  %v20332_v29 = vld [vmem:[%s25290_s3 + $0x3bc] ss:$12 sps:$4 sm:$0xff]   ;;  %v20342_v2 = vld [vmem:[%s25290_s3 + $0x3f4] ss:$12 sps:$4 sm:$0xff]  }
 0xabb   : > { %v18505_v55 = vpop.f32.mrf.mxu1  ;;  %18523 = vmatmul.mubr.bf16.vlgmr.msra.gmra.mxu0 %v4584_v22  ;;  %v20350_v53 = vld [vmem:[%s25291_s4 + $0x300] sm:$0xff]  }
 0xabc   : > { %18531 = vmatpush3.bf16.msra.mxu0 %v21216_v62 }
 0xabd   : > { %18532 = vmatprep.subr.bf16.mxu0 %v21210_v30  ;;  %v4572_v25 = vpop.f32.mrf.mxu1 }
 0xabe   : > { %v4573_v1 = vadd.f32 %v16700_v27, %v4572_v25 }
 0xac0   : > { %v4585_v28 = vpack.c.bf16 %v4573_v1, %v4570_v26  ;;  %18533 = vmatpush3.bf16.msra.mxu0 %v21210_v30 }
 0xac1   : > { %18534 = vmatprep.subr.bf16.mxu0 %v21226_v6 }
 0xac2   : > { %18526 = vmatprep.mubr.bf16.mxu0 %v4585_v28 }
 0xac3   : > { %18527 = vmatmul.mubr.bf16.gmra.mxu0 %v4586_v12 }
 0xac4   : > { %18535 = vmatpush3.bf16.msra.mxu0 %v21226_v6  ;;  %18540 = vmatprep.mubr.msk.bf16.mxu0 %vm953_vm2, %v20331_v31 }
 0xac5   : > { %18536 = vmatprep.subr.bf16.mxu0 %v21239_v11 }
 0xac8   : > { %18537 = vmatpush3.bf16.msra.mxu0 %v21239_v11 }
 0xac9   : > { %18538 = vmatprep.subr.bf16.mxu0 %v21250_v17 }
 0xacc   : > { %18539 = vmatpush3.bf16.msra.mxu0 %v21250_v17 }
 0xacd   : > { %16789 = vmatprep.subr.bf16.mxu0 %v21111_v42 }
 0xacf   : > { %18541 = vmatmul.mubr.msk.bf16.vlgmr.msra.gmra.mxu0 %vm953_vm2, %v20332_v29  ;;  %v16744_v52 = vpop.f32.mrf.mxu1 }
 0xad0   : > { %16790 = vmatpush3.bf16.msra.mxu0 %v21095_v44  ;;  %18544 = vmatprep.mubr.msk.bf16.mxu0 %vm953_vm2, %v20336_v18 }
 0xad1   : > { %16791 = vmatprep.subr.bf16.mxu0 %v21115_v48  ;;  %v16745_v33 = vpop.f32.mrf.mxu1 }
 0xad2   : > { %v16746_v22 = vadd.f32 %v16745_v33, %v16744_v52 }
 0xad3   : > { %v16747_v57 = vpop.f32.mrf.mxu1 }
 0xad4   : > { %16792 = vmatpush3.bf16.msra.mxu0 %v21091_v34 }
 0xad5   : > { %16793 = vmatprep.subr.bf16.mxu0 %v21125_v59  ;;  %v16748_v37 = vpop.f32.mrf.mxu1 }
 0xad7   : > { %18545 = vmatmul.mubr.msk.bf16.gmra.mxu0 %vm953_vm2, %v20337_v21 }
 0xad8   : > { %16794 = vmatpush3.bf16.msra.mxu0 %v21087_v24  ;;  %5187 = vmatprep.mubr.bf16.mxu0 %v20342_v2 }
 0xad9   : > { %16795 = vmatprep.subr.bf16.mxu0 %v21138_v7  ;;  %v16750_v55 = vpop.f32.mrf.mxu1 }
 0xadb   : > { %v16751_v27 = vpop.f32.mrf.mxu1 }
 0xadc   : > { %16796 = vmatpush3.bf16.msra.mxu0 %v21083_v15  ;;  %v16752_v14 = vadd.f32 %v16751_v27, %v16750_v55 }
 0xadd   : > { %16797 = vmatprep.subr.bf16.mxu0 %v21144_v63  ;;  %v16753_v25 = vpop.f32.mrf.mxu1 }
 0xadf   : > { %v16754_v26 = vpop.f32.mrf.mxu1 }
 0xae0   : > { %16798 = vmatpush3.bf16.msra.mxu0 %v21076_v5 }
 0xae1   : > { %16799 = vmatprep.subr.bf16.mxu0 %v21150_v13  ;;  %v16756_v1 = vpop.f32.mrf.mxu1 }
 0xae3   : > { %v16757_v28 = vpop.f32.mrf.mxu1 }
 0xae4   : > { %16800 = vmatpush3.bf16.msra.mxu0 %v21069_v58  ;;  %v16758_v29 = vadd.f32 %v16757_v28, %v16756_v1 }
 0xae5   : > { %16801 = vmatprep.subr.bf16.mxu0 %v21103_v0  ;;  %v16759_v31 = vpop.f32.mrf.mxu1 }
 0xae7   : > { %v16760_v12 = vpop.f32.mrf.mxu1 }
 0xae8   : > { %16802 = vmatpush3.bf16.msra.mxu0 %v21065_v49 }
 0xae9   : > { %16803 = vmatprep.subr.bf16.mxu0 %v21099_v54  ;;  %v16762_v18 = vpop.f32.mrf.mxu1 }
 0xaeb   : > { %v16763_v21 = vpop.f32.mrf.mxu1 }
 0xaec   : > { %16804 = vmatpush3.bf16.msra.mxu0 %v21061_v40  ;;  %v16764_v2 = vadd.f32 %v16763_v21, %v16762_v18 }
 0xaed   : > { %18590 = vmatprep.subr.bf16.mxu0 %v20343_v50 }
 0xaef   : > { %5188 = vmatmul.mubr.bf16.vlgmr.msra.gmra.mxu0 %v20340_v41 }
 0xaf0   : > { %18591 = vmatpush3.bf16.msra.mxu0 %v20343_v50  ;;  %v16765_v50 = vpop.f32.mrf.mxu1 }
 0xaf1   : > { %18592 = vmatprep.subr.bf16.mxu0 %v20344_v16 }
 0xaf2   : > { %v16766_v41 = vpop.f32.mrf.mxu1 }
 0xaf4   : > { %18593 = vmatpush3.bf16.msra.mxu0 %v20344_v16  ;;  %v20353_v16 = vld [vmem:[%s25290_s3 + $0x40c] ss:$12 sps:$4 sm:$0xff]  }
 0xaf5   : > { %18594 = vmatprep.subr.bf16.mxu0 %v20345_v9  ;;  %5195 = vmatprep.mubr.bf16.mxu0 %v20353_v16 }
 0xaf8   : > { %18595 = vmatpush3.bf16.msra.mxu0 %v20345_v9  ;;  %v20351_v9 = vld [vmem:[%s25290_s3 + $0x408] ss:$12 sps:$4 sm:$0xff]  }
 0xaf9   : > { %18596 = vmatprep.subr.bf16.mxu0 %v20346_v32  ;;  %5196 = vmatmul.mubr.bf16.gmra.mxu0 %v20351_v9 }
 0xafc   : > { %18597 = vmatpush3.bf16.msra.mxu0 %v20346_v32  ;;  %v20358_v32 = vld [vmem:[%s25290_s3 + $0x424] ss:$12 sps:$4 sm:$0xff]  }
 0xafd   : > { %18598 = vmatprep.subr.bf16.mxu0 %v20347_v10  ;;  %5203 = vmatprep.mubr.bf16.mxu0 %v20358_v32 }
 0xb00   : > { %18599 = vmatpush3.bf16.msra.mxu0 %v20347_v10  ;;  %v20356_v10 = vld [vmem:[%s25290_s3 + $0x420] ss:$12 sps:$4 sm:$0xff]  }
 0xb01   : > { %18600 = vmatprep.subr.bf16.mxu0 %v20348_v36  ;;  %5204 = vmatmul.mubr.bf16.gmra.mxu0 %v20356_v10  ;;  %v16755_v10 = vadd.f32 %v16754_v26, %v16753_v25 }
 0xb04   : > { %18601 = vmatpush3.bf16.msra.mxu0 %v20348_v36  ;;  %v14621_v36 = vld [vmem:[%s25290_s3 + $0x438] sm:$0x11] }
 0xb05   : > { %18602 = vmatprep.subr.bf16.mxu0 %v20349_v19  ;;  %v14633_v52 = vcombine.high %v14621_v36, %v14621_v36  ;;  %v14632_v33 = vcombine.low %v14621_v36, %v14621_v36 }
 0xb07   : > { %5211 = vmatprep.mubr.bf16.mxu0 %v14633_v52  ;;  %v16749_v52 = vadd.f32 %v16748_v37, %v16747_v57 }
 0xb08   : > { %18603 = vmatpush3.bf16.msra.mxu0 %v20349_v19 }
 0xb09   : > { %18604 = vmatprep.subr.bf16.mxu0 %v20350_v53  ;;  %5212 = vmatmul.mubr.bf16.gmra.mxu0 %v14632_v33 }
 0xb0c   : > { %18605 = vmatpush3.bf16.msra.mxu0 %v20350_v53 }
 0xb0d   : > { %20011 = vmatprep.subr.msk.bf16.mxu0 %vm966_vm1, %v21205_v56 }
 0xb7b   : > { %v18524_v19 = vpop.f32.mrf.mxu0 }
 0xb7c   : > { %v22497_v53 = vadd.f32 %v18524_v19, %v22390_v38 }
 0xb7d   : > { %v4686_v55 = vpop.f32.mrf.mxu0 }
 0xb7e   : > { %v22500_v27 = vadd.f32 %v4686_v55, %v22393_v4 }
 0xb7f   : > { %v18525_v1 = vpop.f32.mrf.mxu0 }
 0xb80   : > { %v22503_v28 = vadd.f32 %v18525_v1, %v22396_v35 }
 0xb81   : > { %v22505_v18 = vpop.f32.mrf.mxu0 }
 0xb82   : > { %25312 = vst [vmem:[#allocation13_spill] sm:$0xff] %v22505_v18 }
 0xb83   : > { %v18528_v21 = vpop.f32.mrf.mxu0 }
 0xb84   : > { %v22508_v50 = vadd.f32 %v18528_v21, %v22401_v45 }
 0xb85   : > { %v4702_v41 = vpop.f32.mrf.mxu0 }
 0xb86   : > { %v22511_v16 = vadd.f32 %v4702_v41, %v22404_v23  ;;  %v16761_v41 = vadd.f32 %v16760_v12, %v16759_v31  ;;  %v20359_v31 = vld [vmem:[%s25290_s3 + $0x428] ss:$12 sps:$4 sm:$0xff]   ;;  %v20360_v12 = vld [vmem:[%s25290_s3 + $0x440] ss:$0 sps:$4 sm:$0x11]  }
 0xb87   : > { %v18529_v38 = vpop.f32.mrf.mxu0 }
 0xb89   : > { %v22513_v9 = vpop.f32.mrf.mxu0 }
 0xb8a   : > { %25313 = vst [vmem:[#allocation14_spill] sm:$0xff] %v22513_v9 }
 0xb8f   : > { %v18542_v32 = vpop.f32.mrf.mxu0 }
 0xb90   : > { %v4912_v35 = vadd.f32 %v18542_v32, %v16752_v14  ;;  %v20367_v32 = vld [vmem:[%s25291_s4 + $0x370] sm:$0xff]  }
 0xb91   : > { %v4903_v4 = vpop.f32.mrf.mxu0 }
 0xb92   : > { %v4904_v55 = vadd.f32 %v16746_v22, %v4903_v4  ;;  %v20354_v22 = vld [vmem:[%s25290_s3 + $0x3f8] ss:$12 sps:$4 sm:$0xff]   ;;  %v20368_v4 = vld [vmem:[%s25291_s4 + $0x368] sm:$0xff]  }
 0xb93   : > { %v18543_v36 = vpop.f32.mrf.mxu0 }
 0xb94   : > { %v4915_v33 = vadd.f32 %v18543_v36, %v16755_v10  ;;  %v20369_v10 = vld [vmem:[%s25291_s4 + $0x360] sm:$0xff]   ;;  %v20370_v36 = vld [vmem:[%s25291_s4 + $0x358] sm:$0xff]  }
 0xb95   : > { %v4906_v19 = vpop.f32.mrf.mxu0 }
 0xb96   : > { %v4934_v1 = vpack.c.bf16 %v4915_v33, %v4912_v35  ;;  %v4907_v18 = vadd.f32 %v16749_v52, %v4906_v19  ;;  %v20371_v52 = vld [vmem:[%s25291_s4 + $0x350] sm:$0xff]   ;;  %v20372_v19 = vld [vmem:[%s25291_s4 + $0x348] sm:$0xff]  }
 0xb97   : > { %v18546_v45 = vpop.f32.mrf.mxu0 }
 0xb98   : > { %v4933_v21 = vpack.c.bf16 %v4907_v18, %v4904_v55  ;;  %v4928_v38 = vadd.f32 %v18546_v45, %v16764_v2  ;;  %v20366_v2 = vld [vmem:[%s25291_s4 + $0x378] sm:$0xff]   ;;  %v20363_v18 = vld [vmem:[%s25290_s3 + $0x444] ss:$12 sps:$4 sm:$0xff]  }
 0xb99   : > { %v4919_v20 = vpop.f32.mrf.mxu0 }
 0xb9a   : > { %18564 = vmatprep.mubr.bf16.mxu1 %v4933_v21  ;;  %v4920_v57 = vadd.f32 %v16758_v29, %v4919_v20  ;;  %v4936_v26 = vpack.c.bf16 %v4928_v38, %v4928_v38  ;;  %v20355_v20 = vld [vmem:[%s25290_s3 + $0x410] ss:$12 sps:$4 sm:$0xff]   ;;  %v20365_v29 = vld [vmem:[%s25290_s3 + $0x448] ss:$12 sps:$4 sm:$0xff]   ;;  %v20373_v21 = vld [vmem:[%s25291_s4 + $0x340] sm:$0xff]  }
 0xb9b   : > { %v18547_v23 = vpop.f32.mrf.mxu0  ;;  %18565 = vmatmul.mubr.bf16.vlgmr.msra.gmra.mxu1 %v4934_v1 }
 0xb9c   : > { %18573 = vmatpush3.bf16.msra.mxu1 %v21216_v62 }
 0xb9d   : > { %18574 = vmatprep.subr.bf16.mxu1 %v21210_v30  ;;  %v4922_v25 = vpop.f32.mrf.mxu0 }
 0xb9e   : > { %v4923_v37 = vadd.f32 %v16761_v41, %v4922_v25 }
 0xba0   : > { %v4935_v14 = vpack.c.bf16 %v4923_v37, %v4920_v57  ;;  %18575 = vmatpush3.bf16.msra.mxu1 %v21210_v30 }
 0xba1   : > { %18576 = vmatprep.subr.bf16.mxu1 %v21226_v6 }
 0xba2   : > { %18568 = vmatprep.mubr.bf16.mxu1 %v4935_v14 }
 0xba3   : > { %18569 = vmatmul.mubr.bf16.gmra.mxu1 %v4936_v26 }
 0xba4   : > { %18577 = vmatpush3.bf16.msra.mxu1 %v21226_v6  ;;  %18582 = vmatprep.mubr.msk.bf16.mxu1 %vm953_vm2, %v20354_v22 }
 0xba5   : > { %18578 = vmatprep.subr.bf16.mxu1 %v21239_v11 }
 0xba8   : > { %18579 = vmatpush3.bf16.msra.mxu1 %v21239_v11 }
 0xba9   : > { %18580 = vmatprep.subr.bf16.mxu1 %v21250_v17 }
 0xbac   : > { %18581 = vmatpush3.bf16.msra.mxu1 %v21250_v17 }
 0xbad   : > { %16850 = vmatprep.subr.bf16.mxu1 %v21111_v42 }
 0xbaf   : > { %18583 = vmatmul.mubr.msk.bf16.vlgmr.msra.gmra.mxu1 %vm953_vm2, %v20355_v20  ;;  %v16805_v35 = vpop.f32.mrf.mxu0 }
 0xbb0   : > { %16851 = vmatpush3.bf16.msra.mxu1 %v21095_v44  ;;  %18586 = vmatprep.mubr.msk.bf16.mxu1 %vm953_vm2, %v20359_v31 }
 0xbb1   : > { %16852 = vmatprep.subr.bf16.mxu1 %v21115_v48  ;;  %v16806_v33 = vpop.f32.mrf.mxu0 }
 0xbb2   : > { %v16807_v1 = vadd.f32 %v16806_v33, %v16805_v35 }
 0xbb3   : > { %v16808_v55 = vpop.f32.mrf.mxu0 }
 0xbb4   : > { %16853 = vmatpush3.bf16.msra.mxu1 %v21091_v34 }
 0xbb5   : > { %16854 = vmatprep.subr.bf16.mxu1 %v21125_v59  ;;  %v16809_v45 = vpop.f32.mrf.mxu0 }
 0xbb7   : > { %18587 = vmatmul.mubr.msk.bf16.gmra.mxu1 %vm953_vm2, %v20360_v12 }
 0xbb8   : > { %16855 = vmatpush3.bf16.msra.mxu1 %v21087_v24  ;;  %5537 = vmatprep.mubr.bf16.mxu1 %v20365_v29 }
 0xbb9   : > { %16856 = vmatprep.subr.bf16.mxu1 %v21138_v7  ;;  %v16811_v23 = vpop.f32.mrf.mxu0 }
 0xbbb   : > { %v16812_v41 = vpop.f32.mrf.mxu0 }
 0xbbc   : > { %16857 = vmatpush3.bf16.msra.mxu1 %v21083_v15  ;;  %v16813_v38 = vadd.f32 %v16812_v41, %v16811_v23 }
 0xbbd   : > { %16858 = vmatprep.subr.bf16.mxu1 %v21144_v63  ;;  %v16814_v25 = vpop.f32.mrf.mxu0 }
 0xbbf   : > { %v16815_v57 = vpop.f32.mrf.mxu0 }
 0xbc0   : > { %16859 = vmatpush3.bf16.msra.mxu1 %v21076_v5 }
 0xbc1   : > { %16860 = vmatprep.subr.bf16.mxu1 %v21150_v13  ;;  %v16817_v37 = vpop.f32.mrf.mxu0 }
 0xbc3   : > { %v16818_v14 = vpop.f32.mrf.mxu0 }
 0xbc4   : > { %16861 = vmatpush3.bf16.msra.mxu1 %v21069_v58  ;;  %v16819_v20 = vadd.f32 %v16818_v14, %v16817_v37 }
 0xbc5   : > { %16862 = vmatprep.subr.bf16.mxu1 %v21103_v0  ;;  %v16820_v22 = vpop.f32.mrf.mxu0 }
 0xbc7   : > { %v16821_v26 = vpop.f32.mrf.mxu0 }
 0xbc8   : > { %16863 = vmatpush3.bf16.msra.mxu1 %v21065_v49 }
 0xbc9   : > { %16864 = vmatprep.subr.bf16.mxu1 %v21099_v54  ;;  %v16823_v31 = vpop.f32.mrf.mxu0 }
 0xbcb   : > { %v16824_v12 = vpop.f32.mrf.mxu0 }
 0xbcc   : > { %16865 = vmatpush3.bf16.msra.mxu1 %v21061_v40  ;;  %v16825_v29 = vadd.f32 %v16824_v12, %v16823_v31 }
 0xbcd   : > { %18632 = vmatprep.subr.bf16.mxu1 %v20366_v2 }
 0xbcf   : > { %5538 = vmatmul.mubr.bf16.vlgmr.msra.gmra.mxu1 %v20363_v18 }
 0xbd0   : > { %18633 = vmatpush3.bf16.msra.mxu1 %v20366_v2  ;;  %v16826_v2 = vpop.f32.mrf.mxu0 }
 0xbd1   : > { %18634 = vmatprep.subr.bf16.mxu1 %v20367_v32 }
 0xbd2   : > { %v16827_v18 = vpop.f32.mrf.mxu0 }
 0xbd4   : > { %18635 = vmatpush3.bf16.msra.mxu1 %v20367_v32  ;;  %v20376_v32 = vld [vmem:[%s25290_s3 + $0x460] ss:$12 sps:$4 sm:$0xff]  }
 0xbd5   : > { %18636 = vmatprep.subr.bf16.mxu1 %v20368_v4  ;;  %5545 = vmatprep.mubr.bf16.mxu1 %v20376_v32 }
 0xbd8   : > { %18637 = vmatpush3.bf16.msra.mxu1 %v20368_v4  ;;  %v20374_v4 = vld [vmem:[%s25290_s3 + $0x45c] ss:$12 sps:$4 sm:$0xff]  }
 0xbd9   : > { %18638 = vmatprep.subr.bf16.mxu1 %v20369_v10  ;;  %5546 = vmatmul.mubr.bf16.gmra.mxu1 %v20374_v4 }
 0xbdc   : > { %18639 = vmatpush3.bf16.msra.mxu1 %v20369_v10  ;;  %v20381_v10 = vld [vmem:[%s25290_s3 + $0x478] ss:$12 sps:$4 sm:$0xff]  }
 0xbdd   : > { %18640 = vmatprep.subr.bf16.mxu1 %v20370_v36  ;;  %5553 = vmatprep.mubr.bf16.mxu1 %v20381_v10 }
 0xbe0   : > { %18641 = vmatpush3.bf16.msra.mxu1 %v20370_v36  ;;  %v20379_v36 = vld [vmem:[%s25290_s3 + $0x474] ss:$12 sps:$4 sm:$0xff]  }
 0xbe1   : > { %18642 = vmatprep.subr.bf16.mxu1 %v20371_v52  ;;  %5554 = vmatmul.mubr.bf16.gmra.mxu1 %v20379_v36  ;;  %v16816_v36 = vadd.f32 %v16815_v57, %v16814_v25 }
 0xbe4   : > { %18643 = vmatpush3.bf16.msra.mxu1 %v20371_v52  ;;  %v14675_v52 = vld [vmem:[%s25290_s3 + $0x48c] sm:$0x11] }
 0xbe5   : > { %18644 = vmatprep.subr.bf16.mxu1 %v20372_v19  ;;  %v14687_v35 = vcombine.high %v14675_v52, %v14675_v52  ;;  %v14686_v33 = vcombine.low %v14675_v52, %v14675_v52 }
 0xbe7   : > { %5561 = vmatprep.mubr.bf16.mxu1 %v14687_v35  ;;  %v16810_v35 = vadd.f32 %v16809_v45, %v16808_v55 }
 0xbe8   : > { %18645 = vmatpush3.bf16.msra.mxu1 %v20372_v19 }
 0xbe9   : > { %18646 = vmatprep.subr.bf16.mxu1 %v20373_v21  ;;  %5562 = vmatmul.mubr.bf16.gmra.mxu1 %v14686_v33 }
 0xbec   : > { %18647 = vmatpush3.bf16.msra.mxu1 %v20373_v21 }
 0xbed   : > { %20012 = vmatprep.subr.msk.bf16.mxu1 %vm966_vm1, %v21205_v56 }
 0xc5b   : > { %v18566_v19 = vpop.f32.mrf.mxu1 }
 0xc5c   : > { %v22604_v21 = vadd.f32 %v18566_v19, %v22497_v53 }
 0xc5d   : > { %v5036_v23 = vpop.f32.mrf.mxu1 }
 0xc5e   : > { %v22607_v41 = vadd.f32 %v5036_v23, %v22500_v27 }
 0xc5f   : > { %v18567_v37 = vpop.f32.mrf.mxu1 }
 0xc60   : > { %v22610_v14 = vadd.f32 %v18567_v37, %v22503_v28 }
 0xc61   : > { %v22612_v31 = vpop.f32.mrf.mxu1 }
 0xc62   : > { %25314 = vst [vmem:[#allocation15_spill] sm:$0xff] %v22612_v31 }
 0xc63   : > { %v18570_v12 = vpop.f32.mrf.mxu1 }
 0xc64   : > { %v22615_v2 = vadd.f32 %v18570_v12, %v22508_v50 }
 0xc65   : > { %v5052_v18 = vpop.f32.mrf.mxu1 }
 0xc66   : > { %v22618_v32 = vadd.f32 %v5052_v18, %v22511_v16  ;;  %v16822_v18 = vadd.f32 %v16821_v26, %v16820_v22  ;;  %v20382_v22 = vld [vmem:[%s25290_s3 + $0x47c] ss:$12 sps:$4 sm:$0xff]   ;;  %v20383_v26 = vld [vmem:[%s25290_s3 + $0x494] ss:$0 sps:$4 sm:$0x11]  }
 0xc67   : > { %v18571_v53 = vpop.f32.mrf.mxu1 }
 0xc69   : > { %v22620_v4 = vpop.f32.mrf.mxu1 }
 0xc6a   : > { %25315 = vst [vmem:[#allocation16_spill] sm:$0xff] %v22620_v4 }
 0xc6f   : > { %v18584_v10 = vpop.f32.mrf.mxu1 }
 0xc70   : > { %v5262_v28 = vadd.f32 %v18584_v10, %v16813_v38  ;;  %v20390_v10 = vld [vmem:[%s25291_s4 + $0x3b0] sm:$0xff]  }
 0xc71   : > { %v5253_v27 = vpop.f32.mrf.mxu1 }
 0xc72   : > { %v5254_v23 = vadd.f32 %v16807_v1, %v5253_v27  ;;  %v20377_v1 = vld [vmem:[%s25290_s3 + $0x44c] ss:$12 sps:$4 sm:$0xff]  }
 0xc73   : > { %v18585_v52 = vpop.f32.mrf.mxu1  ;;  %v20391_v27 = vld [vmem:[%s25291_s4 + $0x3a8] sm:$0xff]  }
 0xc74   : > { %v5265_v33 = vadd.f32 %v18585_v52, %v16816_v36  ;;  %v20392_v36 = vld [vmem:[%s25291_s4 + $0x3a0] sm:$0xff]   ;;  %v20393_v52 = vld [vmem:[%s25291_s4 + $0x398] sm:$0xff]  }
 0xc75   : > { %v5256_v19 = vpop.f32.mrf.mxu1 }
 0xc76   : > { %v5284_v37 = vpack.c.bf16 %v5265_v33, %v5262_v28  ;;  %v5257_v31 = vadd.f32 %v16810_v35, %v5256_v19  ;;  %v20394_v35 = vld [vmem:[%s25291_s4 + $0x390] sm:$0xff]   ;;  %v20395_v19 = vld [vmem:[%s25291_s4 + $0x388] sm:$0xff]  }
 0xc77   : > { %v18588_v50 = vpop.f32.mrf.mxu1 }
 0xc78   : > { %v5283_v12 = vpack.c.bf16 %v5257_v31, %v5254_v23  ;;  %v5278_v53 = vadd.f32 %v18588_v50, %v16825_v29  ;;  %v20389_v29 = vld [vmem:[%s25291_s4 + $0x3b8] sm:$0xff]  }
 0xc79   : > { %v5269_v9 = vpop.f32.mrf.mxu1  ;;  %v20386_v31 = vld [vmem:[%s25290_s3 + $0x498] ss:$12 sps:$4 sm:$0xff]  }
 0xc7a   : > { %18606 = vmatprep.mubr.bf16.mxu0 %v5283_v12  ;;  %v5270_v55 = vadd.f32 %v16819_v20, %v5269_v9  ;;  %v5286_v57 = vpack.c.bf16 %v5278_v53, %v5278_v53  ;;  %v20378_v9 = vld [vmem:[%s25290_s3 + $0x464] ss:$12 sps:$4 sm:$0xff]   ;;  %v20388_v20 = vld [vmem:[%s25290_s3 + $0x49c] ss:$12 sps:$4 sm:$0xff]  }
 0xc7b   : > { %v18589_v16 = vpop.f32.mrf.mxu1  ;;  %18607 = vmatmul.mubr.bf16.vlgmr.msra.gmra.mxu0 %v5284_v37  ;;  %v20396_v12 = vld [vmem:[%s25291_s4 + $0x380] sm:$0xff]  }
 0xc7c   : > { %18615 = vmatpush3.bf16.msra.mxu0 %v21216_v62 }
 0xc7d   : > { %18616 = vmatprep.subr.bf16.mxu0 %v21210_v30  ;;  %v5272_v25 = vpop.f32.mrf.mxu1 }
 0xc7e   : > { %v5273_v45 = vadd.f32 %v16822_v18, %v5272_v25 }
 0xc80   : > { %v5285_v38 = vpack.c.bf16 %v5273_v45, %v5270_v55  ;;  %18617 = vmatpush3.bf16.msra.mxu0 %v21210_v30 }
 0xc81   : > { %18618 = vmatprep.subr.bf16.mxu0 %v21226_v6 }
 0xc82   : > { %18610 = vmatprep.mubr.bf16.mxu0 %v5285_v38 }
 0xc83   : > { %18611 = vmatmul.mubr.bf16.gmra.mxu0 %v5286_v57 }
 0xc84   : > { %18619 = vmatpush3.bf16.msra.mxu0 %v21226_v6  ;;  %18624 = vmatprep.mubr.msk.bf16.mxu0 %vm953_vm2, %v20377_v1 }
 0xc85   : > { %18620 = vmatprep.subr.bf16.mxu0 %v21239_v11 }
 0xc88   : > { %18621 = vmatpush3.bf16.msra.mxu0 %v21239_v11 }
 0xc89   : > { %18622 = vmatprep.subr.bf16.mxu0 %v21250_v17 }
 0xc8c   : > { %18623 = vmatpush3.bf16.msra.mxu0 %v21250_v17 }
 0xc8d   : > { %16911 = vmatprep.subr.bf16.mxu0 %v21111_v42 }
 0xc8f   : > { %18625 = vmatmul.mubr.msk.bf16.vlgmr.msra.gmra.mxu0 %vm953_vm2, %v20378_v9  ;;  %v16866_v28 = vpop.f32.mrf.mxu1 }
 0xc90   : > { %16912 = vmatpush3.bf16.msra.mxu0 %v21095_v44  ;;  %18628 = vmatprep.mubr.msk.bf16.mxu0 %vm953_vm2, %v20382_v22 }
 0xc91   : > { %16913 = vmatprep.subr.bf16.mxu0 %v21115_v48  ;;  %v16867_v33 = vpop.f32.mrf.mxu1 }
 0xc92   : > { %v16868_v37 = vadd.f32 %v16867_v33, %v16866_v28 }
 0xc93   : > { %v16869_v23 = vpop.f32.mrf.mxu1 }
 0xc94   : > { %16914 = vmatpush3.bf16.msra.mxu0 %v21091_v34 }
 0xc95   : > { %16915 = vmatprep.subr.bf16.mxu0 %v21125_v59  ;;  %v16870_v50 = vpop.f32.mrf.mxu1 }
 0xc97   : > { %18629 = vmatmul.mubr.msk.bf16.gmra.mxu0 %vm953_vm2, %v20383_v26 }
 0xc98   : > { %16916 = vmatpush3.bf16.msra.mxu0 %v21087_v24  ;;  %5887 = vmatprep.mubr.bf16.mxu0 %v20388_v20 }
 0xc99   : > { %16917 = vmatprep.subr.bf16.mxu0 %v21138_v7  ;;  %v16872_v16 = vpop.f32.mrf.mxu1 }
 0xc9b   : > { %v16873_v18 = vpop.f32.mrf.mxu1 }
 0xc9c   : > { %16918 = vmatpush3.bf16.msra.mxu0 %v21083_v15  ;;  %v16874_v53 = vadd.f32 %v16873_v18, %v16872_v16 }
 0xc9d   : > { %16919 = vmatprep.subr.bf16.mxu0 %v21144_v63  ;;  %v16875_v25 = vpop.f32.mrf.mxu1 }
 0xc9f   : > { %v16876_v55 = vpop.f32.mrf.mxu1 }
 0xca0   : > { %16920 = vmatpush3.bf16.msra.mxu0 %v21076_v5 }
 0xca1   : > { %16921 = vmatprep.subr.bf16.mxu0 %v21150_v13  ;;  %v16878_v45 = vpop.f32.mrf.mxu1 }
 0xca3   : > { %v16879_v38 = vpop.f32.mrf.mxu1 }
 0xca4   : > { %16922 = vmatpush3.bf16.msra.mxu0 %v21069_v58  ;;  %v16880_v9 = vadd.f32 %v16879_v38, %v16878_v45 }
 0xca5   : > { %16923 = vmatprep.subr.bf16.mxu0 %v21103_v0  ;;  %v16881_v1 = vpop.f32.mrf.mxu1 }
 0xca7   : > { %v16882_v57 = vpop.f32.mrf.mxu1 }
 0xca8   : > { %16924 = vmatpush3.bf16.msra.mxu0 %v21065_v49 }
 0xca9   : > { %16925 = vmatprep.subr.bf16.mxu0 %v21099_v54  ;;  %v16884_v22 = vpop.f32.mrf.mxu1 }
 0xcab   : > { %v16885_v26 = vpop.f32.mrf.mxu1 }
 0xcac   : > { %16926 = vmatpush3.bf16.msra.mxu0 %v21061_v40  ;;  %v16886_v20 = vadd.f32 %v16885_v26, %v16884_v22 }
 0xcad   : > { %18674 = vmatprep.subr.bf16.mxu0 %v20389_v29 }
 0xcaf   : > { %5888 = vmatmul.mubr.bf16.vlgmr.msra.gmra.mxu0 %v20386_v31 }
 0xcb0   : > { %18675 = vmatpush3.bf16.msra.mxu0 %v20389_v29  ;;  %v16887_v29 = vpop.f32.mrf.mxu1 }
 0xcb1   : > { %18676 = vmatprep.subr.bf16.mxu0 %v20390_v10 }
 0xcb2   : > { %v16888_v31 = vpop.f32.mrf.mxu1 }
 0xcb4   : > { %18677 = vmatpush3.bf16.msra.mxu0 %v20390_v10  ;;  %v20399_v10 = vld [vmem:[%s25290_s3 + $0x4b4] ss:$12 sps:$4 sm:$0xff]  }
 0xcb5   : > { %18678 = vmatprep.subr.bf16.mxu0 %v20391_v27  ;;  %5895 = vmatprep.mubr.bf16.mxu0 %v20399_v10 }
 0xcb8   : > { %18679 = vmatpush3.bf16.msra.mxu0 %v20391_v27  ;;  %v20397_v27 = vld [vmem:[%s25290_s3 + $0x4b0] ss:$12 sps:$4 sm:$0xff]  }
 0xcb9   : > { %18680 = vmatprep.subr.bf16.mxu0 %v20392_v36  ;;  %5896 = vmatmul.mubr.bf16.gmra.mxu0 %v20397_v27 }
 0xcbc   : > { %18681 = vmatpush3.bf16.msra.mxu0 %v20392_v36  ;;  %v20404_v36 = vld [vmem:[%s25290_s3 + $0x4cc] ss:$12 sps:$4 sm:$0xff]  }
 0xcbd   : > { %18682 = vmatprep.subr.bf16.mxu0 %v20393_v52  ;;  %5903 = vmatprep.mubr.bf16.mxu0 %v20404_v36 }
 0xcc0   : > { %18683 = vmatpush3.bf16.msra.mxu0 %v20393_v52  ;;  %v20402_v52 = vld [vmem:[%s25290_s3 + $0x4c8] ss:$12 sps:$4 sm:$0xff]  }
 0xcc1   : > { %18684 = vmatprep.subr.bf16.mxu0 %v20394_v35  ;;  %5904 = vmatmul.mubr.bf16.gmra.mxu0 %v20402_v52  ;;  %v16877_v52 = vadd.f32 %v16876_v55, %v16875_v25 }
 0xcc4   : > { %18685 = vmatpush3.bf16.msra.mxu0 %v20394_v35  ;;  %v14729_v35 = vld [vmem:[%s25290_s3 + $0x4e0] sm:$0x11] }
 0xcc5   : > { %18686 = vmatprep.subr.bf16.mxu0 %v20395_v19  ;;  %v14741_v28 = vcombine.high %v14729_v35, %v14729_v35  ;;  %v14740_v33 = vcombine.low %v14729_v35, %v14729_v35 }
 0xcc7   : > { %5911 = vmatprep.mubr.bf16.mxu0 %v14741_v28  ;;  %v16871_v28 = vadd.f32 %v16870_v50, %v16869_v23 }
 0xcc8   : > { %18687 = vmatpush3.bf16.msra.mxu0 %v20395_v19 }
 0xcc9   : > { %18688 = vmatprep.subr.bf16.mxu0 %v20396_v12  ;;  %5912 = vmatmul.mubr.bf16.gmra.mxu0 %v14740_v33 }
 0xccc   : > { %18689 = vmatpush3.bf16.msra.mxu0 %v20396_v12 }
 0xccd   : > { %20013 = vmatprep.subr.msk.bf16.mxu0 %vm966_vm1, %v21205_v56 }
 0xd3b   : > { %v18608_v19 = vpop.f32.mrf.mxu0 }
 0xd3c   : > { %v22711_v12 = vadd.f32 %v18608_v19, %v22604_v21 }
 0xd3d   : > { %v5386_v16 = vpop.f32.mrf.mxu0 }
 0xd3e   : > { %v22714_v18 = vadd.f32 %v5386_v16, %v22607_v41 }
 0xd3f   : > { %v18609_v45 = vpop.f32.mrf.mxu0 }
 0xd40   : > { %v22717_v38 = vadd.f32 %v18609_v45, %v22610_v14 }
 0xd41   : > { %v22719_v22 = vpop.f32.mrf.mxu0 }
 0xd42   : > { %25316 = vst [vmem:[#allocation17_spill] sm:$0xff] %v22719_v22 }
 0xd43   : > { %v18612_v26 = vpop.f32.mrf.mxu0 }
 0xd44   : > { %v22722_v29 = vadd.f32 %v18612_v26, %v22615_v2 }
 0xd45   : > { %v5402_v31 = vpop.f32.mrf.mxu0 }
 0xd46   : > { %v22725_v10 = vadd.f32 %v5402_v31, %v22618_v32  ;;  %v16883_v31 = vadd.f32 %v16882_v57, %v16881_v1  ;;  %v20405_v1 = vld [vmem:[%s25290_s3 + $0x4d0] ss:$12 sps:$4 sm:$0xff]   ;;  %v20406_v57 = vld [vmem:[%s25290_s3 + $0x4e8] ss:$0 sps:$4 sm:$0x11]  }
 0xd47   : > { %v18613_v21 = vpop.f32.mrf.mxu0 }
 0xd49   : > { %v22727_v27 = vpop.f32.mrf.mxu0 }
 0xd4a   : > { %25317 = vst [vmem:[#allocation18_spill] sm:$0xff] %v22727_v27 }
 0xd4f   : > { %v18626_v36 = vpop.f32.mrf.mxu0 }
 0xd50   : > { %v5612_v14 = vadd.f32 %v18626_v36, %v16874_v53  ;;  %v20413_v36 = vld [vmem:[%s25291_s4 + $0x3f0] sm:$0xff]  }
 0xd51   : > { %v5603_v41 = vpop.f32.mrf.mxu0 }
 0xd52   : > { %v5604_v16 = vadd.f32 %v16868_v37, %v5603_v41  ;;  %v20400_v37 = vld [vmem:[%s25290_s3 + $0x4a0] ss:$12 sps:$4 sm:$0xff]  }
 0xd53   : > { %v18627_v35 = vpop.f32.mrf.mxu0  ;;  %v20414_v41 = vld [vmem:[%s25291_s4 + $0x3e8] sm:$0xff]  }
 0xd54   : > { %v5615_v33 = vadd.f32 %v18627_v35, %v16877_v52  ;;  %v20415_v52 = vld [vmem:[%s25291_s4 + $0x3e0] sm:$0xff]   ;;  %v20416_v35 = vld [vmem:[%s25291_s4 + $0x3d8] sm:$0xff]  }
 0xd55   : > { %v5606_v19 = vpop.f32.mrf.mxu0 }
 0xd56   : > { %v5634_v45 = vpack.c.bf16 %v5615_v33, %v5612_v14  ;;  %v5607_v22 = vadd.f32 %v16871_v28, %v5606_v19  ;;  %v20417_v28 = vld [vmem:[%s25291_s4 + $0x3d0] sm:$0xff]   ;;  %v20418_v19 = vld [vmem:[%s25291_s4 + $0x3c8] sm:$0xff]  }
 0xd57   : > { %v18630_v2 = vpop.f32.mrf.mxu0 }
 0xd58   : > { %v5633_v26 = vpack.c.bf16 %v5607_v22, %v5604_v16  ;;  %v5628_v21 = vadd.f32 %v18630_v2, %v16886_v20  ;;  %v20412_v20 = vld [vmem:[%s25291_s4 + $0x3f8] sm:$0xff]  }
 0xd59   : > { %v5619_v4 = vpop.f32.mrf.mxu0  ;;  %v20409_v22 = vld [vmem:[%s25290_s3 + $0x4ec] ss:$12 sps:$4 sm:$0xff]  }
 0xd5a   : > { %18648 = vmatprep.mubr.bf16.mxu1 %v5633_v26  ;;  %v5620_v23 = vadd.f32 %v16880_v9, %v5619_v4  ;;  %v5636_v55 = vpack.c.bf16 %v5628_v21, %v5628_v21  ;;  %v20401_v4 = vld [vmem:[%s25290_s3 + $0x4b8] ss:$12 sps:$4 sm:$0xff]   ;;  %v20411_v9 = vld [vmem:[%s25290_s3 + $0x4f0] ss:$12 sps:$4 sm:$0xff]  }
 0xd5b   : > { %v18631_v32 = vpop.f32.mrf.mxu0  ;;  %18649 = vmatmul.mubr.bf16.vlgmr.msra.gmra.mxu1 %v5634_v45  ;;  %v20419_v26 = vld [vmem:[%s25291_s4 + $0x3c0] sm:$0xff]  }
 0xd5c   : > { %18657 = vmatpush3.bf16.msra.mxu1 %v21216_v62 }
 0xd5d   : > { %18658 = vmatprep.subr.bf16.mxu1 %v21210_v30  ;;  %v5622_v25 = vpop.f32.mrf.mxu0 }
 0xd5e   : > { %v5623_v50 = vadd.f32 %v16883_v31, %v5622_v25 }
 0xd60   : > { %v5635_v53 = vpack.c.bf16 %v5623_v50, %v5620_v23  ;;  %18659 = vmatpush3.bf16.msra.mxu1 %v21210_v30 }
 0xd61   : > { %18660 = vmatprep.subr.bf16.mxu1 %v21226_v6 }
 0xd62   : > { %18652 = vmatprep.mubr.bf16.mxu1 %v5635_v53 }
 0xd63   : > { %18653 = vmatmul.mubr.bf16.gmra.mxu1 %v5636_v55 }
 0xd64   : > { %18661 = vmatpush3.bf16.msra.mxu1 %v21226_v6  ;;  %18666 = vmatprep.mubr.msk.bf16.mxu1 %vm953_vm2, %v20400_v37 }
 0xd65   : > { %18662 = vmatprep.subr.bf16.mxu1 %v21239_v11 }
 0xd68   : > { %18663 = vmatpush3.bf16.msra.mxu1 %v21239_v11 }
 0xd69   : > { %18664 = vmatprep.subr.bf16.mxu1 %v21250_v17 }
 0xd6c   : > { %18665 = vmatpush3.bf16.msra.mxu1 %v21250_v17 }
 0xd6d   : > { %16972 = vmatprep.subr.bf16.mxu1 %v21111_v42 }
 0xd6f   : > { %18667 = vmatmul.mubr.msk.bf16.vlgmr.msra.gmra.mxu1 %vm953_vm2, %v20401_v4  ;;  %v16927_v14 = vpop.f32.mrf.mxu0 }
 0xd70   : > { %16973 = vmatpush3.bf16.msra.mxu1 %v21095_v44  ;;  %18670 = vmatprep.mubr.msk.bf16.mxu1 %vm953_vm2, %v20405_v1 }
 0xd71   : > { %16974 = vmatprep.subr.bf16.mxu1 %v21115_v48  ;;  %v16928_v33 = vpop.f32.mrf.mxu0 }
 0xd72   : > { %v16929_v45 = vadd.f32 %v16928_v33, %v16927_v14 }
 0xd73   : > { %v16930_v16 = vpop.f32.mrf.mxu0 }
 0xd74   : > { %16975 = vmatpush3.bf16.msra.mxu1 %v21091_v34 }
 0xd75   : > { %16976 = vmatprep.subr.bf16.mxu1 %v21125_v59  ;;  %v16931_v2 = vpop.f32.mrf.mxu0 }
 0xd77   : > { %18671 = vmatmul.mubr.msk.bf16.gmra.mxu1 %vm953_vm2, %v20406_v57 }
 0xd78   : > { %16977 = vmatpush3.bf16.msra.mxu1 %v21087_v24  ;;  %6237 = vmatprep.mubr.bf16.mxu1 %v20411_v9 }
 0xd79   : > { %16978 = vmatprep.subr.bf16.mxu1 %v21138_v7  ;;  %v16933_v32 = vpop.f32.mrf.mxu0 }
 0xd7b   : > { %v16934_v31 = vpop.f32.mrf.mxu0 }
 0xd7c   : > { %16979 = vmatpush3.bf16.msra.mxu1 %v21083_v15  ;;  %v16935_v21 = vadd.f32 %v16934_v31, %v16933_v32 }
 0xd7d   : > { %16980 = vmatprep.subr.bf16.mxu1 %v21144_v63  ;;  %v16936_v25 = vpop.f32.mrf.mxu0 }
 0xd7f   : > { %v16937_v23 = vpop.f32.mrf.mxu0 }
 0xd80   : > { %16981 = vmatpush3.bf16.msra.mxu1 %v21076_v5 }
 0xd81   : > { %16982 = vmatprep.subr.bf16.mxu1 %v21150_v13  ;;  %v16939_v50 = vpop.f32.mrf.mxu0 }
 0xd83   : > { %v16940_v53 = vpop.f32.mrf.mxu0 }
 0xd84   : > { %16983 = vmatpush3.bf16.msra.mxu1 %v21069_v58  ;;  %v16941_v4 = vadd.f32 %v16940_v53, %v16939_v50 }
 0xd85   : > { %16984 = vmatprep.subr.bf16.mxu1 %v21103_v0  ;;  %v16942_v37 = vpop.f32.mrf.mxu0 }
 0xd87   : > { %v16943_v55 = vpop.f32.mrf.mxu0 }
 0xd88   : > { %16985 = vmatpush3.bf16.msra.mxu1 %v21065_v49 }
 0xd89   : > { %16986 = vmatprep.subr.bf16.mxu1 %v21099_v54  ;;  %v16945_v1 = vpop.f32.mrf.mxu0 }
 0xd8b   : > { %v16946_v57 = vpop.f32.mrf.mxu0 }
 0xd8c   : > { %16987 = vmatpush3.bf16.msra.mxu1 %v21061_v40  ;;  %v16947_v9 = vadd.f32 %v16946_v57, %v16945_v1 }
 0xd8d   : > { %18716 = vmatprep.subr.bf16.mxu1 %v20412_v20 }
 0xd8f   : > { %6238 = vmatmul.mubr.bf16.vlgmr.msra.gmra.mxu1 %v20409_v22 }
 0xd90   : > { %18717 = vmatpush3.bf16.msra.mxu1 %v20412_v20  ;;  %v16948_v20 = vpop.f32.mrf.mxu0 }
 0xd91   : > { %18718 = vmatprep.subr.bf16.mxu1 %v20413_v36 }
 0xd92   : > { %v16949_v22 = vpop.f32.mrf.mxu0 }
 0xd94   : > { %18719 = vmatpush3.bf16.msra.mxu1 %v20413_v36  ;;  %v20422_v36 = vld [vmem:[%s25290_s3 + $0x508] ss:$12 sps:$4 sm:$0xff]  }
 0xd95   : > { %18720 = vmatprep.subr.bf16.mxu1 %v20414_v41  ;;  %6245 = vmatprep.mubr.bf16.mxu1 %v20422_v36 }
 0xd98   : > { %18721 = vmatpush3.bf16.msra.mxu1 %v20414_v41  ;;  %v20420_v41 = vld [vmem:[%s25290_s3 + $0x504] ss:$12 sps:$4 sm:$0xff]  }
 0xd99   : > { %18722 = vmatprep.subr.bf16.mxu1 %v20415_v52  ;;  %6246 = vmatmul.mubr.bf16.gmra.mxu1 %v20420_v41 }
 0xd9c   : > { %18723 = vmatpush3.bf16.msra.mxu1 %v20415_v52  ;;  %v20427_v52 = vld [vmem:[%s25290_s3 + $0x520] ss:$12 sps:$4 sm:$0xff]  }
 0xd9d   : > { %18724 = vmatprep.subr.bf16.mxu1 %v20416_v35  ;;  %6253 = vmatprep.mubr.bf16.mxu1 %v20427_v52 }
 0xda0   : > { %18725 = vmatpush3.bf16.msra.mxu1 %v20416_v35  ;;  %v20425_v35 = vld [vmem:[%s25290_s3 + $0x51c] ss:$12 sps:$4 sm:$0xff]  }
 0xda1   : > { %18726 = vmatprep.subr.bf16.mxu1 %v20417_v28  ;;  %6254 = vmatmul.mubr.bf16.gmra.mxu1 %v20425_v35  ;;  %v16938_v35 = vadd.f32 %v16937_v23, %v16936_v25 }
 0xda4   : > { %18727 = vmatpush3.bf16.msra.mxu1 %v20417_v28  ;;  %v14783_v28 = vld [vmem:[%s25290_s3 + $0x534] sm:$0x11] }
 0xda5   : > { %18728 = vmatprep.subr.bf16.mxu1 %v20418_v19  ;;  %v14795_v14 = vcombine.high %v14783_v28, %v14783_v28  ;;  %v14794_v33 = vcombine.low %v14783_v28, %v14783_v28 }
 0xda7   : > { %6261 = vmatprep.mubr.bf16.mxu1 %v14795_v14  ;;  %v16932_v14 = vadd.f32 %v16931_v2, %v16930_v16 }
 0xda8   : > { %18729 = vmatpush3.bf16.msra.mxu1 %v20418_v19 }
 0xda9   : > { %18730 = vmatprep.subr.bf16.mxu1 %v20419_v26  ;;  %6262 = vmatmul.mubr.bf16.gmra.mxu1 %v14794_v33 }
 0xdac   : > { %18731 = vmatpush3.bf16.msra.mxu1 %v20419_v26 }
 0xdad   : > { %20014 = vmatprep.subr.msk.bf16.mxu1 %vm966_vm1, %v21205_v56 }
 0xe1b   : > { %v18650_v19 = vpop.f32.mrf.mxu1 }
 0xe1c   : > { %v22818_v26 = vadd.f32 %v18650_v19, %v22711_v12 }
 0xe1d   : > { %v5736_v32 = vpop.f32.mrf.mxu1 }
 0xe1e   : > { %v22821_v31 = vadd.f32 %v5736_v32, %v22714_v18 }
 0xe1f   : > { %v18651_v50 = vpop.f32.mrf.mxu1 }
 0xe20   : > { %v22824_v53 = vadd.f32 %v18651_v50, %v22717_v38 }
 0xe21   : > { %v22826_v1 = vpop.f32.mrf.mxu1 }
 0xe22   : > { %25318 = vst [vmem:[#allocation19_spill] sm:$0xff] %v22826_v1 }
 0xe23   : > { %v18654_v57 = vpop.f32.mrf.mxu1 }
 0xe24   : > { %v22829_v20 = vadd.f32 %v18654_v57, %v22722_v29 }
 0xe25   : > { %v5752_v22 = vpop.f32.mrf.mxu1 }
 0xe26   : > { %v22832_v36 = vadd.f32 %v5752_v22, %v22725_v10  ;;  %v16944_v22 = vadd.f32 %v16943_v55, %v16942_v37  ;;  %v20428_v37 = vld [vmem:[%s25290_s3 + $0x524] ss:$12 sps:$4 sm:$0xff]   ;;  %v20429_v55 = vld [vmem:[%s25290_s3 + $0x53c] ss:$0 sps:$4 sm:$0x11]  }
 0xe27   : > { %v18655_v12 = vpop.f32.mrf.mxu1 }
 0xe29   : > { %v22834_v41 = vpop.f32.mrf.mxu1 }
 0xe2a   : > { %25319 = vst [vmem:[#allocation20_spill] sm:$0xff] %v22834_v41 }
 0xe2f   : > { %v18668_v52 = vpop.f32.mrf.mxu1 }
 0xe30   : > { %v5962_v38 = vadd.f32 %v18668_v52, %v16935_v21  ;;  %v20436_v52 = vld [vmem:[%s25291_s4 + $0x430] sm:$0xff]  }
 0xe31   : > { %v5953_v18 = vpop.f32.mrf.mxu1 }
 0xe32   : > { %v5954_v32 = vadd.f32 %v16929_v45, %v5953_v18  ;;  %v20423_v45 = vld [vmem:[%s25290_s3 + $0x4f4] ss:$12 sps:$4 sm:$0xff]   ;;  %v20437_v18 = vld [vmem:[%s25291_s4 + $0x428] sm:$0xff]  }
 0xe33   : > { %v18669_v28 = vpop.f32.mrf.mxu1 }
 0xe34   : > { %v5965_v33 = vadd.f32 %v18669_v28, %v16938_v35  ;;  %v20438_v35 = vld [vmem:[%s25291_s4 + $0x420] sm:$0xff]   ;;  %v20439_v28 = vld [vmem:[%s25291_s4 + $0x418] sm:$0xff]  }
 0xe35   : > { %v5956_v19 = vpop.f32.mrf.mxu1 }
 0xe36   : > { %v5984_v50 = vpack.c.bf16 %v5965_v33, %v5962_v38  ;;  %v5957_v1 = vadd.f32 %v16932_v14, %v5956_v19  ;;  %v20440_v14 = vld [vmem:[%s25291_s4 + $0x410] sm:$0xff]   ;;  %v20441_v19 = vld [vmem:[%s25291_s4 + $0x408] sm:$0xff]  }
 0xe37   : > { %v18672_v29 = vpop.f32.mrf.mxu1 }
 0xe38   : > { %v5983_v57 = vpack.c.bf16 %v5957_v1, %v5954_v32  ;;  %v5978_v12 = vadd.f32 %v18672_v29, %v16947_v9  ;;  %v20435_v9 = vld [vmem:[%s25291_s4 + $0x438] sm:$0xff]   ;;  %v20432_v1 = vld [vmem:[%s25290_s3 + $0x540] ss:$12 sps:$4 sm:$0xff]  }
 0xe39   : > { %v5969_v27 = vpop.f32.mrf.mxu1 }
 0xe3a   : > { %18690 = vmatprep.mubr.bf16.mxu0 %v5983_v57  ;;  %v5970_v16 = vadd.f32 %v16941_v4, %v5969_v27  ;;  %v5986_v23 = vpack.c.bf16 %v5978_v12, %v5978_v12  ;;  %v20424_v27 = vld [vmem:[%s25290_s3 + $0x50c] ss:$12 sps:$4 sm:$0xff]   ;;  %v20434_v4 = vld [vmem:[%s25290_s3 + $0x544] ss:$12 sps:$4 sm:$0xff]  }
 0xe3b   : > { %v18673_v10 = vpop.f32.mrf.mxu1  ;;  %18691 = vmatmul.mubr.bf16.vlgmr.msra.gmra.mxu0 %v5984_v50  ;;  %v20442_v57 = vld [vmem:[%s25291_s4 + $0x400] sm:$0xff]  }
 0xe3c   : > { %18699 = vmatpush3.bf16.msra.mxu0 %v21216_v62 }
 0xe3d   : > { %18700 = vmatprep.subr.bf16.mxu0 %v21210_v30  ;;  %v5972_v25 = vpop.f32.mrf.mxu1 }
 0xe3e   : > { %v5973_v2 = vadd.f32 %v16944_v22, %v5972_v25 }
 0xe40   : > { %v5985_v21 = vpack.c.bf16 %v5973_v2, %v5970_v16  ;;  %18701 = vmatpush3.bf16.msra.mxu0 %v21210_v30 }
 0xe41   : > { %18702 = vmatprep.subr.bf16.mxu0 %v21226_v6 }
 0xe42   : > { %18694 = vmatprep.mubr.bf16.mxu0 %v5985_v21 }
 0xe43   : > { %18695 = vmatmul.mubr.bf16.gmra.mxu0 %v5986_v23 }
 0xe44   : > { %18703 = vmatpush3.bf16.msra.mxu0 %v21226_v6  ;;  %18708 = vmatprep.mubr.msk.bf16.mxu0 %vm953_vm2, %v20423_v45 }
 0xe45   : > { %18704 = vmatprep.subr.bf16.mxu0 %v21239_v11 }
 0xe48   : > { %18705 = vmatpush3.bf16.msra.mxu0 %v21239_v11 }
 0xe49   : > { %18706 = vmatprep.subr.bf16.mxu0 %v21250_v17 }
 0xe4c   : > { %18707 = vmatpush3.bf16.msra.mxu0 %v21250_v17 }
 0xe4d   : > { %17033 = vmatprep.subr.bf16.mxu0 %v21111_v42 }
 0xe4f   : > { %18709 = vmatmul.mubr.msk.bf16.vlgmr.msra.gmra.mxu0 %vm953_vm2, %v20424_v27  ;;  %v16988_v38 = vpop.f32.mrf.mxu1 }
 0xe50   : > { %17034 = vmatpush3.bf16.msra.mxu0 %v21095_v44  ;;  %18712 = vmatprep.mubr.msk.bf16.mxu0 %vm953_vm2, %v20428_v37 }
 0xe51   : > { %17035 = vmatprep.subr.bf16.mxu0 %v21115_v48  ;;  %v16989_v33 = vpop.f32.mrf.mxu1 }
 0xe52   : > { %v16990_v50 = vadd.f32 %v16989_v33, %v16988_v38 }
 0xe53   : > { %v16991_v32 = vpop.f32.mrf.mxu1 }
 0xe54   : > { %17036 = vmatpush3.bf16.msra.mxu0 %v21091_v34 }
 0xe55   : > { %17037 = vmatprep.subr.bf16.mxu0 %v21125_v59  ;;  %v16992_v29 = vpop.f32.mrf.mxu1 }
 0xe57   : > { %18713 = vmatmul.mubr.msk.bf16.gmra.mxu0 %vm953_vm2, %v20429_v55 }
 0xe58   : > { %17038 = vmatpush3.bf16.msra.mxu0 %v21087_v24  ;;  %6587 = vmatprep.mubr.bf16.mxu0 %v20434_v4 }
 0xe59   : > { %17039 = vmatprep.subr.bf16.mxu0 %v21138_v7  ;;  %v16994_v10 = vpop.f32.mrf.mxu1 }
 0xe5b   : > { %v16995_v22 = vpop.f32.mrf.mxu1 }
 0xe5c   : > { %17040 = vmatpush3.bf16.msra.mxu0 %v21083_v15  ;;  %v16996_v12 = vadd.f32 %v16995_v22, %v16994_v10 }
 0xe5d   : > { %17041 = vmatprep.subr.bf16.mxu0 %v21144_v63  ;;  %v16997_v25 = vpop.f32.mrf.mxu1 }
 0xe5f   : > { %v16998_v16 = vpop.f32.mrf.mxu1 }
 0xe60   : > { %17042 = vmatpush3.bf16.msra.mxu0 %v21076_v5 }
 0xe61   : > { %17043 = vmatprep.subr.bf16.mxu0 %v21150_v13  ;;  %v17000_v2 = vpop.f32.mrf.mxu1 }
 0xe63   : > { %v17001_v21 = vpop.f32.mrf.mxu1 }
 0xe64   : > { %17044 = vmatpush3.bf16.msra.mxu0 %v21069_v58  ;;  %v17002_v27 = vadd.f32 %v17001_v21, %v17000_v2 }
 0xe65   : > { %17045 = vmatprep.subr.bf16.mxu0 %v21103_v0  ;;  %v17003_v45 = vpop.f32.mrf.mxu1 }
 0xe67   : > { %v17004_v23 = vpop.f32.mrf.mxu1 }
 0xe68   : > { %17046 = vmatpush3.bf16.msra.mxu0 %v21065_v49 }
 0xe69   : > { %17047 = vmatprep.subr.bf16.mxu0 %v21099_v54  ;;  %v17006_v37 = vpop.f32.mrf.mxu1 }
 0xe6b   : > { %v17007_v55 = vpop.f32.mrf.mxu1 }
 0xe6c   : > { %17048 = vmatpush3.bf16.msra.mxu0 %v21061_v40  ;;  %v17008_v4 = vadd.f32 %v17007_v55, %v17006_v37 }
 0xe6d   : > { %18758 = vmatprep.subr.bf16.mxu0 %v20435_v9 }
 0xe6f   : > { %6588 = vmatmul.mubr.bf16.vlgmr.msra.gmra.mxu0 %v20432_v1 }
 0xe70   : > { %18759 = vmatpush3.bf16.msra.mxu0 %v20435_v9  ;;  %v17009_v9 = vpop.f32.mrf.mxu1 }
 0xe71   : > { %18760 = vmatprep.subr.bf16.mxu0 %v20436_v52 }
 0xe72   : > { %v17010_v1 = vpop.f32.mrf.mxu1 }
 0xe74   : > { %18761 = vmatpush3.bf16.msra.mxu0 %v20436_v52  ;;  %v20445_v52 = vld [vmem:[%s25290_s3 + $0x55c] ss:$12 sps:$4 sm:$0xff]  }
 0xe75   : > { %18762 = vmatprep.subr.bf16.mxu0 %v20437_v18  ;;  %6595 = vmatprep.mubr.bf16.mxu0 %v20445_v52 }
 0xe78   : > { %18763 = vmatpush3.bf16.msra.mxu0 %v20437_v18  ;;  %v20443_v18 = vld [vmem:[%s25290_s3 + $0x558] ss:$12 sps:$4 sm:$0xff]  }
 0xe79   : > { %18764 = vmatprep.subr.bf16.mxu0 %v20438_v35  ;;  %6596 = vmatmul.mubr.bf16.gmra.mxu0 %v20443_v18 }
 0xe7c   : > { %18765 = vmatpush3.bf16.msra.mxu0 %v20438_v35  ;;  %v20450_v35 = vld [vmem:[%s25290_s3 + $0x574] ss:$12 sps:$4 sm:$0xff]  }
 0xe7d   : > { %18766 = vmatprep.subr.bf16.mxu0 %v20439_v28  ;;  %6603 = vmatprep.mubr.bf16.mxu0 %v20450_v35 }
 0xe80   : > { %18767 = vmatpush3.bf16.msra.mxu0 %v20439_v28  ;;  %v20448_v28 = vld [vmem:[%s25290_s3 + $0x570] ss:$12 sps:$4 sm:$0xff]  }
 0xe81   : > { %18768 = vmatprep.subr.bf16.mxu0 %v20440_v14  ;;  %6604 = vmatmul.mubr.bf16.gmra.mxu0 %v20448_v28  ;;  %v16999_v28 = vadd.f32 %v16998_v16, %v16997_v25 }
 0xe84   : > { %18769 = vmatpush3.bf16.msra.mxu0 %v20440_v14  ;;  %v14837_v14 = vld [vmem:[%s25290_s3 + $0x588] sm:$0x11] }
 0xe85   : > { %18770 = vmatprep.subr.bf16.mxu0 %v20441_v19  ;;  %v14849_v38 = vcombine.high %v14837_v14, %v14837_v14  ;;  %v14848_v33 = vcombine.low %v14837_v14, %v14837_v14 }
 0xe87   : > { %6611 = vmatprep.mubr.bf16.mxu0 %v14849_v38  ;;  %v16993_v38 = vadd.f32 %v16992_v29, %v16991_v32 }
 0xe88   : > { %18771 = vmatpush3.bf16.msra.mxu0 %v20441_v19 }
 0xe89   : > { %18772 = vmatprep.subr.bf16.mxu0 %v20442_v57  ;;  %6612 = vmatmul.mubr.bf16.gmra.mxu0 %v14848_v33 }
 0xe8c   : > { %18773 = vmatpush3.bf16.msra.mxu0 %v20442_v57 }
 0xe8d   : > { %20015 = vmatprep.subr.msk.bf16.mxu0 %vm966_vm1, %v21205_v56 }
 0xefb   : > { %v18692_v19 = vpop.f32.mrf.mxu0 }
 0xefc   : > { %v22925_v57 = vadd.f32 %v18692_v19, %v22818_v26 }
 0xefd   : > { %v6086_v10 = vpop.f32.mrf.mxu0 }
 0xefe   : > { %v22928_v22 = vadd.f32 %v6086_v10, %v22821_v31 }
 0xeff   : > { %v18693_v2 = vpop.f32.mrf.mxu0 }
 0xf00   : > { %v22931_v21 = vadd.f32 %v18693_v2, %v22824_v53 }
 0xf01   : > { %v22933_v37 = vpop.f32.mrf.mxu0 }
 0xf02   : > { %25320 = vst [vmem:[#allocation21_spill] sm:$0xff] %v22933_v37 }
 0xf03   : > { %v18696_v55 = vpop.f32.mrf.mxu0 }
 0xf04   : > { %v22936_v9 = vadd.f32 %v18696_v55, %v22829_v20 }
 0xf05   : > { %v6102_v1 = vpop.f32.mrf.mxu0 }
 0xf06   : > { %v22939_v52 = vadd.f32 %v6102_v1, %v22832_v36  ;;  %v17005_v1 = vadd.f32 %v17004_v23, %v17003_v45  ;;  %v20451_v45 = vld [vmem:[%s25290_s3 + $0x578] ss:$12 sps:$4 sm:$0xff]   ;;  %v20452_v23 = vld [vmem:[%s25290_s3 + $0x590] ss:$0 sps:$4 sm:$0x11]  }
 0xf07   : > { %v18697_v26 = vpop.f32.mrf.mxu0 }
 0xf09   : > { %v22941_v18 = vpop.f32.mrf.mxu0 }
 0xf0a   : > { %25321 = vst [vmem:[#allocation22_spill] sm:$0xff] %v22941_v18 }
 0xf0f   : > { %v18710_v35 = vpop.f32.mrf.mxu0 }
 0xf10   : > { %v6312_v53 = vadd.f32 %v18710_v35, %v16996_v12  ;;  %v20459_v35 = vld [vmem:[%s25291_s4 + $0x470] sm:$0xff]  }
 0xf11   : > { %v6303_v31 = vpop.f32.mrf.mxu0 }
 0xf12   : > { %v6304_v10 = vadd.f32 %v16990_v50, %v6303_v31  ;;  %v20446_v50 = vld [vmem:[%s25290_s3 + $0x548] ss:$12 sps:$4 sm:$0xff]  }
 0xf13   : > { %v18711_v14 = vpop.f32.mrf.mxu0  ;;  %v20460_v31 = vld [vmem:[%s25291_s4 + $0x468] sm:$0xff]  }
 0xf14   : > { %v6315_v33 = vadd.f32 %v18711_v14, %v16999_v28  ;;  %v20461_v28 = vld [vmem:[%s25291_s4 + $0x460] sm:$0xff]   ;;  %v20462_v14 = vld [vmem:[%s25291_s4 + $0x458] sm:$0xff]  }
 0xf15   : > { %v6306_v19 = vpop.f32.mrf.mxu0 }
 0xf16   : > { %v6334_v2 = vpack.c.bf16 %v6315_v33, %v6312_v53  ;;  %v6307_v37 = vadd.f32 %v16993_v38, %v6306_v19  ;;  %v20463_v38 = vld [vmem:[%s25291_s4 + $0x450] sm:$0xff]   ;;  %v20464_v19 = vld [vmem:[%s25291_s4 + $0x448] sm:$0xff]  }
 0xf17   : > { %v18714_v20 = vpop.f32.mrf.mxu0 }
 0xf18   : > { %v6333_v55 = vpack.c.bf16 %v6307_v37, %v6304_v10  ;;  %v6328_v26 = vadd.f32 %v18714_v20, %v17008_v4  ;;  %v20458_v4 = vld [vmem:[%s25291_s4 + $0x478] sm:$0xff]   ;;  %v20455_v37 = vld [vmem:[%s25290_s3 + $0x594] ss:$12 sps:$4 sm:$0xff]  }
 0xf19   : > { %v6319_v41 = vpop.f32.mrf.mxu0 }
 0xf1a   : > { %18732 = vmatprep.mubr.bf16.mxu1 %v6333_v55  ;;  %v6320_v32 = vadd.f32 %v17002_v27, %v6319_v41  ;;  %v6336_v16 = vpack.c.bf16 %v6328_v26, %v6328_v26  ;;  %v20447_v41 = vld [vmem:[%s25290_s3 + $0x560] ss:$12 sps:$4 sm:$0xff]   ;;  %v20457_v27 = vld [vmem:[%s25290_s3 + $0x598] ss:$12 sps:$4 sm:$0xff]  }
 0xf1b   : > { %v18715_v36 = vpop.f32.mrf.mxu0  ;;  %18733 = vmatmul.mubr.bf16.vlgmr.msra.gmra.mxu1 %v6334_v2  ;;  %v20465_v55 = vld [vmem:[%s25291_s4 + $0x440] sm:$0xff]  }
 0xf1c   : > { %18741 = vmatpush3.bf16.msra.mxu1 %v21216_v62 }
 0xf1d   : > { %18742 = vmatprep.subr.bf16.mxu1 %v21210_v30  ;;  %v6322_v25 = vpop.f32.mrf.mxu0 }
 0xf1e   : > { %v6323_v29 = vadd.f32 %v17005_v1, %v6322_v25 }
 0xf20   : > { %v6335_v12 = vpack.c.bf16 %v6323_v29, %v6320_v32  ;;  %18743 = vmatpush3.bf16.msra.mxu1 %v21210_v30 }
 0xf21   : > { %18744 = vmatprep.subr.bf16.mxu1 %v21226_v6 }
 0xf22   : > { %18736 = vmatprep.mubr.bf16.mxu1 %v6335_v12 }
 0xf23   : > { %18737 = vmatmul.mubr.bf16.gmra.mxu1 %v6336_v16 }
 0xf24   : > { %18745 = vmatpush3.bf16.msra.mxu1 %v21226_v6  ;;  %18750 = vmatprep.mubr.msk.bf16.mxu1 %vm953_vm2, %v20446_v50 }
 0xf25   : > { %18746 = vmatprep.subr.bf16.mxu1 %v21239_v11 }
 0xf28   : > { %18747 = vmatpush3.bf16.msra.mxu1 %v21239_v11 }
 0xf29   : > { %18748 = vmatprep.subr.bf16.mxu1 %v21250_v17 }
 0xf2c   : > { %18749 = vmatpush3.bf16.msra.mxu1 %v21250_v17 }
 0xf2d   : > { %17094 = vmatprep.subr.bf16.mxu1 %v21111_v42 }
 0xf2f   : > { %18751 = vmatmul.mubr.msk.bf16.vlgmr.msra.gmra.mxu1 %vm953_vm2, %v20447_v41  ;;  %v17049_v53 = vpop.f32.mrf.mxu0 }
 0xf30   : > { %17095 = vmatpush3.bf16.msra.mxu1 %v21095_v44  ;;  %18754 = vmatprep.mubr.msk.bf16.mxu1 %vm953_vm2, %v20451_v45 }
 0xf31   : > { %17096 = vmatprep.subr.bf16.mxu1 %v21115_v48  ;;  %v17050_v33 = vpop.f32.mrf.mxu0 }
 0xf32   : > { %v17051_v2 = vadd.f32 %v17050_v33, %v17049_v53 }
 0xf33   : > { %v17052_v10 = vpop.f32.mrf.mxu0 }
 0xf34   : > { %17097 = vmatpush3.bf16.msra.mxu1 %v21091_v34 }
 0xf35   : > { %17098 = vmatprep.subr.bf16.mxu1 %v21125_v59  ;;  %v17053_v20 = vpop.f32.mrf.mxu0 }
 0xf37   : > { %18755 = vmatmul.mubr.msk.bf16.gmra.mxu1 %vm953_vm2, %v20452_v23 }
 0xf38   : > { %17099 = vmatpush3.bf16.msra.mxu1 %v21087_v24  ;;  %6937 = vmatprep.mubr.bf16.mxu1 %v20457_v27 }
 0xf39   : > { %17100 = vmatprep.subr.bf16.mxu1 %v21138_v7  ;;  %v17055_v36 = vpop.f32.mrf.mxu0 }
 0xf3b   : > { %v17056_v1 = vpop.f32.mrf.mxu0 }
 0xf3c   : > { %17101 = vmatpush3.bf16.msra.mxu1 %v21083_v15  ;;  %v17057_v26 = vadd.f32 %v17056_v1, %v17055_v36 }
 0xf3d   : > { %17102 = vmatprep.subr.bf16.mxu1 %v21144_v63  ;;  %v17058_v25 = vpop.f32.mrf.mxu0 }
 0xf3f   : > { %v17059_v32 = vpop.f32.mrf.mxu0 }
 0xf40   : > { %17103 = vmatpush3.bf16.msra.mxu1 %v21076_v5 }
 0xf41   : > { %17104 = vmatprep.subr.bf16.mxu1 %v21150_v13  ;;  %v17061_v29 = vpop.f32.mrf.mxu0 }
 0xf43   : > { %v17062_v12 = vpop.f32.mrf.mxu0 }
 0xf44   : > { %17105 = vmatpush3.bf16.msra.mxu1 %v21069_v58  ;;  %v17063_v41 = vadd.f32 %v17062_v12, %v17061_v29 }
 0xf45   : > { %17106 = vmatprep.subr.bf16.mxu1 %v21103_v0  ;;  %v17064_v50 = vpop.f32.mrf.mxu0 }
 0xf47   : > { %v17065_v16 = vpop.f32.mrf.mxu0 }
 0xf48   : > { %17107 = vmatpush3.bf16.msra.mxu1 %v21065_v49 }
 0xf49   : > { %17108 = vmatprep.subr.bf16.mxu1 %v21099_v54  ;;  %v17067_v45 = vpop.f32.mrf.mxu0 }
 0xf4b   : > { %v17068_v23 = vpop.f32.mrf.mxu0 }
 0xf4c   : > { %17109 = vmatpush3.bf16.msra.mxu1 %v21061_v40  ;;  %v17069_v27 = vadd.f32 %v17068_v23, %v17067_v45 }
 0xf4d   : > { %18800 = vmatprep.subr.bf16.mxu1 %v20458_v4 }
 0xf4f   : > { %6938 = vmatmul.mubr.bf16.vlgmr.msra.gmra.mxu1 %v20455_v37 }
 0xf50   : > { %18801 = vmatpush3.bf16.msra.mxu1 %v20458_v4  ;;  %v17070_v4 = vpop.f32.mrf.mxu0 }
 0xf51   : > { %18802 = vmatprep.subr.bf16.mxu1 %v20459_v35 }
 0xf52   : > { %v17071_v37 = vpop.f32.mrf.mxu0 }
 0xf54   : > { %18803 = vmatpush3.bf16.msra.mxu1 %v20459_v35  ;;  %v20468_v35 = vld [vmem:[%s25290_s3 + $0x5b0] ss:$12 sps:$4 sm:$0xff]  }
 0xf55   : > { %18804 = vmatprep.subr.bf16.mxu1 %v20460_v31  ;;  %6945 = vmatprep.mubr.bf16.mxu1 %v20468_v35 }
 0xf58   : > { %18805 = vmatpush3.bf16.msra.mxu1 %v20460_v31  ;;  %v20466_v31 = vld [vmem:[%s25290_s3 + $0x5ac] ss:$12 sps:$4 sm:$0xff]  }
 0xf59   : > { %18806 = vmatprep.subr.bf16.mxu1 %v20461_v28  ;;  %6946 = vmatmul.mubr.bf16.gmra.mxu1 %v20466_v31 }
 0xf5c   : > { %18807 = vmatpush3.bf16.msra.mxu1 %v20461_v28  ;;  %v20473_v28 = vld [vmem:[%s25290_s3 + $0x5c8] ss:$12 sps:$4 sm:$0xff]  }
 0xf5d   : > { %18808 = vmatprep.subr.bf16.mxu1 %v20462_v14  ;;  %6953 = vmatprep.mubr.bf16.mxu1 %v20473_v28 }
 0xf60   : > { %18809 = vmatpush3.bf16.msra.mxu1 %v20462_v14  ;;  %v20471_v14 = vld [vmem:[%s25290_s3 + $0x5c4] ss:$12 sps:$4 sm:$0xff]  }
 0xf61   : > { %18810 = vmatprep.subr.bf16.mxu1 %v20463_v38  ;;  %6954 = vmatmul.mubr.bf16.gmra.mxu1 %v20471_v14  ;;  %v17060_v14 = vadd.f32 %v17059_v32, %v17058_v25 }
 0xf64   : > { %18811 = vmatpush3.bf16.msra.mxu1 %v20463_v38  ;;  %v14891_v38 = vld [vmem:[%s25290_s3 + $0x5dc] sm:$0x11] }
 0xf65   : > { %18812 = vmatprep.subr.bf16.mxu1 %v20464_v19  ;;  %v14903_v53 = vcombine.high %v14891_v38, %v14891_v38  ;;  %v14902_v33 = vcombine.low %v14891_v38, %v14891_v38 }
 0xf67   : > { %6961 = vmatprep.mubr.bf16.mxu1 %v14903_v53  ;;  %v17054_v53 = vadd.f32 %v17053_v20, %v17052_v10 }
 0xf68   : > { %18813 = vmatpush3.bf16.msra.mxu1 %v20464_v19 }
 0xf69   : > { %18814 = vmatprep.subr.bf16.mxu1 %v20465_v55  ;;  %6962 = vmatmul.mubr.bf16.gmra.mxu1 %v14902_v33 }
 0xf6c   : > { %18815 = vmatpush3.bf16.msra.mxu1 %v20465_v55 }
 0xf6d   : > { %20016 = vmatprep.subr.msk.bf16.mxu1 %vm966_vm1, %v21205_v56 }
 0xfdb   : > { %v18734_v19 = vpop.f32.mrf.mxu1 }
 0xfdc   : > { %v23032_v55 = vadd.f32 %v18734_v19, %v22925_v57 }
 0xfdd   : > { %v6436_v36 = vpop.f32.mrf.mxu1 }
 0xfde   : > { %v23035_v1 = vadd.f32 %v6436_v36, %v22928_v22 }
 0xfdf   : > { %v18735_v29 = vpop.f32.mrf.mxu1 }
 0xfe0   : > { %v23038_v12 = vadd.f32 %v18735_v29, %v22931_v21 }
 0xfe1   : > { %v23040_v45 = vpop.f32.mrf.mxu1 }
 0xfe2   : > { %25322 = vst [vmem:[#allocation23_spill] sm:$0xff] %v23040_v45 }
 0xfe3   : > { %v18738_v23 = vpop.f32.mrf.mxu1 }
 0xfe4   : > { %v23043_v4 = vadd.f32 %v18738_v23, %v22936_v9 }
 0xfe5   : > { %v6452_v37 = vpop.f32.mrf.mxu1 }
 0xfe6   : > { %v23046_v35 = vadd.f32 %v6452_v37, %v22939_v52  ;;  %v17066_v37 = vadd.f32 %v17065_v16, %v17064_v50  ;;  %v20474_v50 = vld [vmem:[%s25290_s3 + $0x5cc] ss:$12 sps:$4 sm:$0xff]   ;;  %v20475_v16 = vld [vmem:[%s25290_s3 + $0x5e4] ss:$0 sps:$4 sm:$0x11]  }
 0xfe7   : > { %v18739_v57 = vpop.f32.mrf.mxu1 }
 0xfe9   : > { %v23048_v31 = vpop.f32.mrf.mxu1 }
 0xfea   : > { %25323 = vst [vmem:[#allocation24_spill] sm:$0xff] %v23048_v31 }
 0xfef   : > { %v18752_v28 = vpop.f32.mrf.mxu1 }
 0xff0   : > { %v6662_v21 = vadd.f32 %v18752_v28, %v17057_v26  ;;  %v20482_v28 = vld [vmem:[%s25291_s4 + $0x4b0] sm:$0xff]  }
 0xff1   : > { %v6653_v22 = vpop.f32.mrf.mxu1 }
 0xff2   : > { %v6654_v36 = vadd.f32 %v17051_v2, %v6653_v22  ;;  %v20469_v2 = vld [vmem:[%s25290_s3 + $0x59c] ss:$12 sps:$4 sm:$0xff]  }
 0xff3   : > { %v18753_v38 = vpop.f32.mrf.mxu1  ;;  %v20483_v22 = vld [vmem:[%s25291_s4 + $0x4a8] sm:$0xff]  }
 0xff4   : > { %v6665_v33 = vadd.f32 %v18753_v38, %v17060_v14  ;;  %v20484_v14 = vld [vmem:[%s25291_s4 + $0x4a0] sm:$0xff]   ;;  %v20485_v38 = vld [vmem:[%s25291_s4 + $0x498] sm:$0xff]  }
 0xff5   : > { %v6656_v19 = vpop.f32.mrf.mxu1 }
 0xff6   : > { %v6684_v29 = vpack.c.bf16 %v6665_v33, %v6662_v21  ;;  %v6657_v45 = vadd.f32 %v17054_v53, %v6656_v19  ;;  %v20486_v53 = vld [vmem:[%s25291_s4 + $0x490] sm:$0xff]   ;;  %v20487_v19 = vld [vmem:[%s25291_s4 + $0x488] sm:$0xff]  }
 0xff7   : > { %v18756_v9 = vpop.f32.mrf.mxu1 }
 0xff8   : > { %v6683_v23 = vpack.c.bf16 %v6657_v45, %v6654_v36  ;;  %v6678_v57 = vadd.f32 %v18756_v9, %v17069_v27  ;;  %v20481_v27 = vld [vmem:[%s25291_s4 + $0x4b8] sm:$0xff]   ;;  %v20478_v45 = vld [vmem:[%s25290_s3 + $0x5e8] ss:$12 sps:$4 sm:$0xff]  }
 0xff9   : > { %v6669_v18 = vpop.f32.mrf.mxu1 }
 0xffa   : > { %18774 = vmatprep.mubr.bf16.mxu0 %v6683_v23  ;;  %v6670_v10 = vadd.f32 %v17063_v41, %v6669_v18  ;;  %v6686_v32 = vpack.c.bf16 %v6678_v57, %v6678_v57  ;;  %v20470_v18 = vld [vmem:[%s25290_s3 + $0x5b4] ss:$12 sps:$4 sm:$0xff]   ;;  %v20480_v41 = vld [vmem:[%s25290_s3 + $0x5ec] ss:$12 sps:$4 sm:$0xff]  }
 0xffb   : > { %v18757_v52 = vpop.f32.mrf.mxu1  ;;  %18775 = vmatmul.mubr.bf16.vlgmr.msra.gmra.mxu0 %v6684_v29  ;;  %v20488_v23 = vld [vmem:[%s25291_s4 + $0x480] sm:$0xff]  }
 0xffc   : > { %18783 = vmatpush3.bf16.msra.mxu0 %v21216_v62 }
 0xffd   : > { %18784 = vmatprep.subr.bf16.mxu0 %v21210_v30  ;;  %v6672_v25 = vpop.f32.mrf.mxu1 }
 0xffe   : > { %v6673_v20 = vadd.f32 %v17066_v37, %v6672_v25 }
0x1000   : > { %v6685_v26 = vpack.c.bf16 %v6673_v20, %v6670_v10  ;;  %18785 = vmatpush3.bf16.msra.mxu0 %v21210_v30 }
0x1001   : > { %18786 = vmatprep.subr.bf16.mxu0 %v21226_v6 }
0x1002   : > { %18778 = vmatprep.mubr.bf16.mxu0 %v6685_v26 }
0x1003   : > { %18779 = vmatmul.mubr.bf16.gmra.mxu0 %v6686_v32 }
0x1004   : > { %18787 = vmatpush3.bf16.msra.mxu0 %v21226_v6  ;;  %18792 = vmatprep.mubr.msk.bf16.mxu0 %vm953_vm2, %v20469_v2 }
0x1005   : > { %18788 = vmatprep.subr.bf16.mxu0 %v21239_v11 }
0x1008   : > { %18789 = vmatpush3.bf16.msra.mxu0 %v21239_v11 }
0x1009   : > { %18790 = vmatprep.subr.bf16.mxu0 %v21250_v17 }
0x100c   : > { %18791 = vmatpush3.bf16.msra.mxu0 %v21250_v17 }
0x100d   : > { %17155 = vmatprep.subr.bf16.mxu0 %v21111_v42 }
0x100f   : > { %18793 = vmatmul.mubr.msk.bf16.vlgmr.msra.gmra.mxu0 %vm953_vm2, %v20470_v18  ;;  %v17110_v21 = vpop.f32.mrf.mxu1 }
0x1010   : > { %17156 = vmatpush3.bf16.msra.mxu0 %v21095_v44  ;;  %18796 = vmatprep.mubr.msk.bf16.mxu0 %vm953_vm2, %v20474_v50 }
0x1011   : > { %17157 = vmatprep.subr.bf16.mxu0 %v21115_v48  ;;  %v17111_v33 = vpop.f32.mrf.mxu1 }
0x1012   : > { %v17112_v29 = vadd.f32 %v17111_v33, %v17110_v21 }
0x1013   : > { %v17113_v36 = vpop.f32.mrf.mxu1 }
0x1014   : > { %17158 = vmatpush3.bf16.msra.mxu0 %v21091_v34 }
0x1015   : > { %17159 = vmatprep.subr.bf16.mxu0 %v21125_v59  ;;  %v17114_v9 = vpop.f32.mrf.mxu1 }
0x1017   : > { %18797 = vmatmul.mubr.msk.bf16.gmra.mxu0 %vm953_vm2, %v20475_v16 }
0x1018   : > { %17160 = vmatpush3.bf16.msra.mxu0 %v21087_v24  ;;  %7287 = vmatprep.mubr.bf16.mxu0 %v20480_v41 }
0x1019   : > { %17161 = vmatprep.subr.bf16.mxu0 %v21138_v7  ;;  %v17116_v52 = vpop.f32.mrf.mxu1 }
0x101b   : > { %v17117_v37 = vpop.f32.mrf.mxu1 }
0x101c   : > { %17162 = vmatpush3.bf16.msra.mxu0 %v21083_v15  ;;  %v17118_v57 = vadd.f32 %v17117_v37, %v17116_v52 }
0x101d   : > { %17163 = vmatprep.subr.bf16.mxu0 %v21144_v63  ;;  %v17119_v25 = vpop.f32.mrf.mxu1 }
0x101f   : > { %v17120_v10 = vpop.f32.mrf.mxu1 }
0x1020   : > { %17164 = vmatpush3.bf16.msra.mxu0 %v21076_v5 }
0x1021   : > { %17165 = vmatprep.subr.bf16.mxu0 %v21150_v13  ;;  %v17122_v20 = vpop.f32.mrf.mxu1 }
0x1023   : > { %v17123_v26 = vpop.f32.mrf.mxu1 }
0x1024   : > { %17166 = vmatpush3.bf16.msra.mxu0 %v21069_v58  ;;  %v17124_v18 = vadd.f32 %v17123_v26, %v17122_v20 }
0x1025   : > { %17167 = vmatprep.subr.bf16.mxu0 %v21103_v0  ;;  %v17125_v2 = vpop.f32.mrf.mxu1 }
0x1027   : > { %v17126_v32 = vpop.f32.mrf.mxu1 }
0x1028   : > { %17168 = vmatpush3.bf16.msra.mxu0 %v21065_v49 }
0x1029   : > { %17169 = vmatprep.subr.bf16.mxu0 %v21099_v54  ;;  %v17128_v50 = vpop.f32.mrf.mxu1 }
0x102b   : > { %v17129_v16 = vpop.f32.mrf.mxu1 }
0x102c   : > { %17170 = vmatpush3.bf16.msra.mxu0 %v21061_v40  ;;  %v17130_v41 = vadd.f32 %v17129_v16, %v17128_v50 }
0x102d   : > { %18842 = vmatprep.subr.bf16.mxu0 %v20481_v27 }
0x102f   : > { %7288 = vmatmul.mubr.bf16.vlgmr.msra.gmra.mxu0 %v20478_v45 }
0x1030   : > { %18843 = vmatpush3.bf16.msra.mxu0 %v20481_v27  ;;  %v17131_v27 = vpop.f32.mrf.mxu1 }
0x1031   : > { %18844 = vmatprep.subr.bf16.mxu0 %v20482_v28 }
0x1032   : > { %v17132_v45 = vpop.f32.mrf.mxu1 }
0x1034   : > { %18845 = vmatpush3.bf16.msra.mxu0 %v20482_v28  ;;  %v20491_v28 = vld [vmem:[%s25290_s3 + $0x604] ss:$12 sps:$4 sm:$0xff]  }
0x1035   : > { %18846 = vmatprep.subr.bf16.mxu0 %v20483_v22  ;;  %7295 = vmatprep.mubr.bf16.mxu0 %v20491_v28 }
0x1038   : > { %18847 = vmatpush3.bf16.msra.mxu0 %v20483_v22  ;;  %v20489_v22 = vld [vmem:[%s25290_s3 + $0x600] ss:$12 sps:$4 sm:$0xff]  }
0x1039   : > { %18848 = vmatprep.subr.bf16.mxu0 %v20484_v14  ;;  %7296 = vmatmul.mubr.bf16.gmra.mxu0 %v20489_v22 }
0x103c   : > { %18849 = vmatpush3.bf16.msra.mxu0 %v20484_v14  ;;  %v20496_v14 = vld [vmem:[%s25290_s3 + $0x61c] ss:$12 sps:$4 sm:$0xff]  }
0x103d   : > { %18850 = vmatprep.subr.bf16.mxu0 %v20485_v38  ;;  %7303 = vmatprep.mubr.bf16.mxu0 %v20496_v14 }
0x1040   : > { %18851 = vmatpush3.bf16.msra.mxu0 %v20485_v38  ;;  %v20494_v38 = vld [vmem:[%s25290_s3 + $0x618] ss:$12 sps:$4 sm:$0xff]  }
0x1041   : > { %18852 = vmatprep.subr.bf16.mxu0 %v20486_v53  ;;  %7304 = vmatmul.mubr.bf16.gmra.mxu0 %v20494_v38  ;;  %v17121_v38 = vadd.f32 %v17120_v10, %v17119_v25 }
0x1044   : > { %18853 = vmatpush3.bf16.msra.mxu0 %v20486_v53  ;;  %v14945_v53 = vld [vmem:[%s25290_s3 + $0x630] sm:$0x11] }
0x1045   : > { %18854 = vmatprep.subr.bf16.mxu0 %v20487_v19  ;;  %v14957_v21 = vcombine.high %v14945_v53, %v14945_v53  ;;  %v14956_v33 = vcombine.low %v14945_v53, %v14945_v53 }
0x1047   : > { %7311 = vmatprep.mubr.bf16.mxu0 %v14957_v21  ;;  %v17115_v21 = vadd.f32 %v17114_v9, %v17113_v36 }
0x1048   : > { %18855 = vmatpush3.bf16.msra.mxu0 %v20487_v19 }
0x1049   : > { %18856 = vmatprep.subr.bf16.mxu0 %v20488_v23  ;;  %7312 = vmatmul.mubr.bf16.gmra.mxu0 %v14956_v33 }
0x104c   : > { %18857 = vmatpush3.bf16.msra.mxu0 %v20488_v23 }
0x104d   : > { %20017 = vmatprep.subr.msk.bf16.mxu0 %vm966_vm1, %v21205_v56 }
0x10bb   : > { %v18776_v19 = vpop.f32.mrf.mxu0 }
0x10bc   : > { %v23139_v23 = vadd.f32 %v18776_v19, %v23032_v55 }
0x10bd   : > { %v6786_v52 = vpop.f32.mrf.mxu0 }
0x10be   : > { %v23142_v37 = vadd.f32 %v6786_v52, %v23035_v1 }
0x10bf   : > { %v18777_v20 = vpop.f32.mrf.mxu0 }
0x10c0   : > { %v23145_v26 = vadd.f32 %v18777_v20, %v23038_v12 }
0x10c1   : > { %v23147_v50 = vpop.f32.mrf.mxu0 }
0x10c2   : > { %25324 = vst [vmem:[#allocation25_spill] sm:$0xff] %v23147_v50 }
0x10c3   : > { %v18780_v16 = vpop.f32.mrf.mxu0 }
0x10c4   : > { %v23150_v27 = vadd.f32 %v18780_v16, %v23043_v4 }
0x10c5   : > { %v6802_v45 = vpop.f32.mrf.mxu0 }
0x10c6   : > { %v23153_v28 = vadd.f32 %v6802_v45, %v23046_v35  ;;  %v17127_v45 = vadd.f32 %v17126_v32, %v17125_v2  ;;  %v20497_v2 = vld [vmem:[%s25290_s3 + $0x620] ss:$12 sps:$4 sm:$0xff]   ;;  %v20498_v32 = vld [vmem:[%s25290_s3 + $0x638] ss:$0 sps:$4 sm:$0x11]  }
0x10c7   : > { %v18781_v55 = vpop.f32.mrf.mxu0 }
0x10c9   : > { %v23155_v22 = vpop.f32.mrf.mxu0 }
0x10ca   : > { %25325 = vst [vmem:[#allocation26_spill] sm:$0xff] %v23155_v22 }
0x10cf   : > { %v18794_v14 = vpop.f32.mrf.mxu0 }
0x10d0   : > { %v7012_v12 = vadd.f32 %v18794_v14, %v17118_v57  ;;  %v20505_v14 = vld [vmem:[%s25291_s4 + $0x4f0] sm:$0xff]  }
0x10d1   : > { %v7003_v1 = vpop.f32.mrf.mxu0 }
0x10d2   : > { %v7004_v52 = vadd.f32 %v17112_v29, %v7003_v1  ;;  %v20492_v29 = vld [vmem:[%s25290_s3 + $0x5f0] ss:$12 sps:$4 sm:$0xff]   ;;  %v20506_v1 = vld [vmem:[%s25291_s4 + $0x4e8] sm:$0xff]  }
0x10d3   : > { %v18795_v53 = vpop.f32.mrf.mxu0 }
0x10d4   : > { %v7015_v33 = vadd.f32 %v18795_v53, %v17121_v38  ;;  %v20507_v38 = vld [vmem:[%s25291_s4 + $0x4e0] sm:$0xff]   ;;  %v20508_v53 = vld [vmem:[%s25291_s4 + $0x4d8] sm:$0xff]  }
0x10d5   : > { %v7006_v19 = vpop.f32.mrf.mxu0 }
0x10d6   : > { %v7034_v20 = vpack.c.bf16 %v7015_v33, %v7012_v12  ;;  %v7007_v50 = vadd.f32 %v17115_v21, %v7006_v19  ;;  %v20509_v21 = vld [vmem:[%s25291_s4 + $0x4d0] sm:$0xff]   ;;  %v20510_v19 = vld [vmem:[%s25291_s4 + $0x4c8] sm:$0xff]  }
0x10d7   : > { %v18798_v4 = vpop.f32.mrf.mxu0 }
0x10d8   : > { %v7033_v16 = vpack.c.bf16 %v7007_v50, %v7004_v52  ;;  %v7028_v55 = vadd.f32 %v18798_v4, %v17130_v41  ;;  %v20504_v41 = vld [vmem:[%s25291_s4 + $0x4f8] sm:$0xff]  }
0x10d9   : > { %v7019_v31 = vpop.f32.mrf.mxu0  ;;  %v20501_v50 = vld [vmem:[%s25290_s3 + $0x63c] ss:$12 sps:$4 sm:$0xff]  }
0x10da   : > { %18816 = vmatprep.mubr.bf16.mxu1 %v7033_v16  ;;  %v7020_v36 = vadd.f32 %v17124_v18, %v7019_v31  ;;  %v7036_v10 = vpack.c.bf16 %v7028_v55, %v7028_v55  ;;  %v20493_v31 = vld [vmem:[%s25290_s3 + $0x608] ss:$12 sps:$4 sm:$0xff]   ;;  %v20503_v18 = vld [vmem:[%s25290_s3 + $0x640] ss:$12 sps:$4 sm:$0xff]  }
0x10db   : > { %v18799_v35 = vpop.f32.mrf.mxu0  ;;  %18817 = vmatmul.mubr.bf16.vlgmr.msra.gmra.mxu1 %v7034_v20  ;;  %v20511_v16 = vld [vmem:[%s25291_s4 + $0x4c0] sm:$0xff]  }
0x10dc   : > { %18825 = vmatpush3.bf16.msra.mxu1 %v21216_v62 }
0x10dd   : > { %18826 = vmatprep.subr.bf16.mxu1 %v21210_v30  ;;  %v7022_v25 = vpop.f32.mrf.mxu0 }
0x10de   : > { %v7023_v9 = vadd.f32 %v17127_v45, %v7022_v25 }
0x10e0   : > { %v7035_v57 = vpack.c.bf16 %v7023_v9, %v7020_v36  ;;  %18827 = vmatpush3.bf16.msra.mxu1 %v21210_v30 }
0x10e1   : > { %18828 = vmatprep.subr.bf16.mxu1 %v21226_v6 }
0x10e2   : > { %18820 = vmatprep.mubr.bf16.mxu1 %v7035_v57 }
0x10e3   : > { %18821 = vmatmul.mubr.bf16.gmra.mxu1 %v7036_v10 }
0x10e4   : > { %18829 = vmatpush3.bf16.msra.mxu1 %v21226_v6  ;;  %18834 = vmatprep.mubr.msk.bf16.mxu1 %vm953_vm2, %v20492_v29 }
0x10e5   : > { %18830 = vmatprep.subr.bf16.mxu1 %v21239_v11 }
0x10e8   : > { %18831 = vmatpush3.bf16.msra.mxu1 %v21239_v11 }
0x10e9   : > { %18832 = vmatprep.subr.bf16.mxu1 %v21250_v17 }
0x10ec   : > { %18833 = vmatpush3.bf16.msra.mxu1 %v21250_v17 }
0x10ed   : > { %17216 = vmatprep.subr.bf16.mxu1 %v21111_v42 }
0x10ef   : > { %18835 = vmatmul.mubr.msk.bf16.vlgmr.msra.gmra.mxu1 %vm953_vm2, %v20493_v31  ;;  %v17171_v12 = vpop.f32.mrf.mxu0 }
0x10f0   : > { %17217 = vmatpush3.bf16.msra.mxu1 %v21095_v44  ;;  %18838 = vmatprep.mubr.msk.bf16.mxu1 %vm953_vm2, %v20497_v2 }
0x10f1   : > { %17218 = vmatprep.subr.bf16.mxu1 %v21115_v48  ;;  %v17172_v33 = vpop.f32.mrf.mxu0 }
0x10f2   : > { %v17173_v20 = vadd.f32 %v17172_v33, %v17171_v12 }
0x10f3   : > { %v17174_v52 = vpop.f32.mrf.mxu0 }
0x10f4   : > { %17219 = vmatpush3.bf16.msra.mxu1 %v21091_v34 }
0x10f5   : > { %17220 = vmatprep.subr.bf16.mxu1 %v21125_v59  ;;  %v17175_v4 = vpop.f32.mrf.mxu0 }
0x10f7   : > { %18839 = vmatmul.mubr.msk.bf16.gmra.mxu1 %vm953_vm2, %v20498_v32 }
0x10f8   : > { %17221 = vmatpush3.bf16.msra.mxu1 %v21087_v24  ;;  %7637 = vmatprep.mubr.bf16.mxu1 %v20503_v18 }
0x10f9   : > { %17222 = vmatprep.subr.bf16.mxu1 %v21138_v7  ;;  %v17177_v35 = vpop.f32.mrf.mxu0 }
0x10fb   : > { %v17178_v45 = vpop.f32.mrf.mxu0 }
0x10fc   : > { %17223 = vmatpush3.bf16.msra.mxu1 %v21083_v15  ;;  %v17179_v55 = vadd.f32 %v17178_v45, %v17177_v35 }
0x10fd   : > { %17224 = vmatprep.subr.bf16.mxu1 %v21144_v63  ;;  %v17180_v25 = vpop.f32.mrf.mxu0 }
0x10ff   : > { %v17181_v36 = vpop.f32.mrf.mxu0 }
0x1100   : > { %17225 = vmatpush3.bf16.msra.mxu1 %v21076_v5 }
0x1101   : > { %17226 = vmatprep.subr.bf16.mxu1 %v21150_v13  ;;  %v17183_v9 = vpop.f32.mrf.mxu0 }
0x1103   : > { %v17184_v57 = vpop.f32.mrf.mxu0 }
0x1104   : > { %17227 = vmatpush3.bf16.msra.mxu1 %v21069_v58  ;;  %v17185_v31 = vadd.f32 %v17184_v57, %v17183_v9 }
0x1105   : > { %17228 = vmatprep.subr.bf16.mxu1 %v21103_v0  ;;  %v17186_v29 = vpop.f32.mrf.mxu0 }
0x1107   : > { %v17187_v10 = vpop.f32.mrf.mxu0 }
0x1108   : > { %17229 = vmatpush3.bf16.msra.mxu1 %v21065_v49 }
0x1109   : > { %17230 = vmatprep.subr.bf16.mxu1 %v21099_v54  ;;  %v17189_v2 = vpop.f32.mrf.mxu0 }
0x110b   : > { %v17190_v32 = vpop.f32.mrf.mxu0 }
0x110c   : > { %17231 = vmatpush3.bf16.msra.mxu1 %v21061_v40  ;;  %v17191_v18 = vadd.f32 %v17190_v32, %v17189_v2 }
0x110d   : > { %18884 = vmatprep.subr.bf16.mxu1 %v20504_v41 }
0x110f   : > { %7638 = vmatmul.mubr.bf16.vlgmr.msra.gmra.mxu1 %v20501_v50 }
0x1110   : > { %18885 = vmatpush3.bf16.msra.mxu1 %v20504_v41  ;;  %v17192_v41 = vpop.f32.mrf.mxu0 }
0x1111   : > { %18886 = vmatprep.subr.bf16.mxu1 %v20505_v14 }
0x1112   : > { %v17193_v50 = vpop.f32.mrf.mxu0 }
0x1114   : > { %18887 = vmatpush3.bf16.msra.mxu1 %v20505_v14  ;;  %v20514_v14 = vld [vmem:[%s25290_s3 + $0x658] ss:$12 sps:$4 sm:$0xff]  }
0x1115   : > { %18888 = vmatprep.subr.bf16.mxu1 %v20506_v1  ;;  %7645 = vmatprep.mubr.bf16.mxu1 %v20514_v14 }
0x1118   : > { %18889 = vmatpush3.bf16.msra.mxu1 %v20506_v1  ;;  %v20512_v1 = vld [vmem:[%s25290_s3 + $0x654] ss:$12 sps:$4 sm:$0xff]  }
0x1119   : > { %18890 = vmatprep.subr.bf16.mxu1 %v20507_v38  ;;  %7646 = vmatmul.mubr.bf16.gmra.mxu1 %v20512_v1 }
0x111c   : > { %18891 = vmatpush3.bf16.msra.mxu1 %v20507_v38  ;;  %v20519_v38 = vld [vmem:[%s25290_s3 + $0x670] ss:$12 sps:$4 sm:$0xff]  }
0x111d   : > { %18892 = vmatprep.subr.bf16.mxu1 %v20508_v53  ;;  %7653 = vmatprep.mubr.bf16.mxu1 %v20519_v38 }
0x1120   : > { %18893 = vmatpush3.bf16.msra.mxu1 %v20508_v53  ;;  %v20517_v53 = vld [vmem:[%s25290_s3 + $0x66c] ss:$12 sps:$4 sm:$0xff]  }
0x1121   : > { %18894 = vmatprep.subr.bf16.mxu1 %v20509_v21  ;;  %7654 = vmatmul.mubr.bf16.gmra.mxu1 %v20517_v53  ;;  %v17182_v53 = vadd.f32 %v17181_v36, %v17180_v25 }
0x1124   : > { %18895 = vmatpush3.bf16.msra.mxu1 %v20509_v21  ;;  %v14999_v21 = vld [vmem:[%s25290_s3 + $0x684] sm:$0x11] }
0x1125   : > { %18896 = vmatprep.subr.bf16.mxu1 %v20510_v19  ;;  %v15011_v12 = vcombine.high %v14999_v21, %v14999_v21  ;;  %v15010_v33 = vcombine.low %v14999_v21, %v14999_v21 }
0x1127   : > { %7661 = vmatprep.mubr.bf16.mxu1 %v15011_v12  ;;  %v17176_v12 = vadd.f32 %v17175_v4, %v17174_v52 }
0x1128   : > { %18897 = vmatpush3.bf16.msra.mxu1 %v20510_v19 }
0x1129   : > { %18898 = vmatprep.subr.bf16.mxu1 %v20511_v16  ;;  %7662 = vmatmul.mubr.bf16.gmra.mxu1 %v15010_v33 }
0x112c   : > { %18899 = vmatpush3.bf16.msra.mxu1 %v20511_v16 }
0x112d   : > { %20018 = vmatprep.subr.msk.bf16.mxu1 %vm966_vm1, %v21205_v56 }
0x119b   : > { %v18818_v19 = vpop.f32.mrf.mxu1 }
0x119c   : > { %v23246_v16 = vadd.f32 %v18818_v19, %v23139_v23 }
0x119d   : > { %v7136_v35 = vpop.f32.mrf.mxu1 }
0x119e   : > { %v23249_v45 = vadd.f32 %v7136_v35, %v23142_v37 }
0x119f   : > { %v18819_v9 = vpop.f32.mrf.mxu1 }
0x11a0   : > { %v23252_v57 = vadd.f32 %v18819_v9, %v23145_v26 }
0x11a1   : > { %v23254_v2 = vpop.f32.mrf.mxu1 }
0x11a2   : > { %25326 = vst [vmem:[#allocation27_spill] sm:$0xff] %v23254_v2 }
0x11a3   : > { %v18822_v32 = vpop.f32.mrf.mxu1 }
0x11a4   : > { %v23257_v41 = vadd.f32 %v18822_v32, %v23150_v27 }
0x11a5   : > { %v7152_v50 = vpop.f32.mrf.mxu1 }
0x11a6   : > { %v23260_v14 = vadd.f32 %v7152_v50, %v23153_v28  ;;  %v17188_v50 = vadd.f32 %v17187_v10, %v17186_v29  ;;  %v20520_v29 = vld [vmem:[%s25290_s3 + $0x674] ss:$12 sps:$4 sm:$0xff]   ;;  %v20521_v10 = vld [vmem:[%s25290_s3 + $0x68c] ss:$0 sps:$4 sm:$0x11]  }
0x11a7   : > { %v18823_v23 = vpop.f32.mrf.mxu1 }
0x11a9   : > { %v23262_v1 = vpop.f32.mrf.mxu1 }
0x11aa   : > { %25327 = vst [vmem:[#allocation28_spill] sm:$0xff] %v23262_v1 }
0x11af   : > { %v18836_v38 = vpop.f32.mrf.mxu1 }
0x11b0   : > { %v7362_v26 = vadd.f32 %v18836_v38, %v17179_v55  ;;  %v20528_v38 = vld [vmem:[%s25291_s4 + $0x530] sm:$0xff]  }
0x11b1   : > { %v7353_v37 = vpop.f32.mrf.mxu1 }
0x11b2   : > { %v7354_v35 = vadd.f32 %v17173_v20, %v7353_v37  ;;  %v20515_v20 = vld [vmem:[%s25290_s3 + $0x644] ss:$12 sps:$4 sm:$0xff]   ;;  %v20529_v37 = vld [vmem:[%s25291_s4 + $0x528] sm:$0xff]  }
0x11b3   : > { %v18837_v21 = vpop.f32.mrf.mxu1 }
0x11b4   : > { %v7365_v33 = vadd.f32 %v18837_v21, %v17182_v53  ;;  %v20530_v53 = vld [vmem:[%s25291_s4 + $0x520] sm:$0xff]   ;;  %v20531_v21 = vld [vmem:[%s25291_s4 + $0x518] sm:$0xff]  }
0x11b5   : > { %v7356_v19 = vpop.f32.mrf.mxu1 }
0x11b6   : > { %v7384_v9 = vpack.c.bf16 %v7365_v33, %v7362_v26  ;;  %v7357_v2 = vadd.f32 %v17176_v12, %v7356_v19  ;;  %v20532_v12 = vld [vmem:[%s25291_s4 + $0x510] sm:$0xff]   ;;  %v20533_v19 = vld [vmem:[%s25291_s4 + $0x508] sm:$0xff]  }
0x11b7   : > { %v18840_v27 = vpop.f32.mrf.mxu1 }
0x11b8   : > { %v7383_v32 = vpack.c.bf16 %v7357_v2, %v7354_v35  ;;  %v7378_v23 = vadd.f32 %v18840_v27, %v17191_v18  ;;  %v20527_v18 = vld [vmem:[%s25291_s4 + $0x538] sm:$0xff]  }
0x11b9   : > { %v7369_v22 = vpop.f32.mrf.mxu1  ;;  %v20524_v2 = vld [vmem:[%s25290_s3 + $0x690] ss:$12 sps:$4 sm:$0xff]  }
0x11ba   : > { %18858 = vmatprep.mubr.bf16.mxu0 %v7383_v32  ;;  %v7370_v52 = vadd.f32 %v17185_v31, %v7369_v22  ;;  %v7386_v36 = vpack.c.bf16 %v7378_v23, %v7378_v23  ;;  %v20516_v22 = vld [vmem:[%s25290_s3 + $0x65c] ss:$12 sps:$4 sm:$0xff]   ;;  %v20526_v31 = vld [vmem:[%s25290_s3 + $0x694] ss:$12 sps:$4 sm:$0xff]  }
0x11bb   : > { %v18841_v28 = vpop.f32.mrf.mxu1  ;;  %18859 = vmatmul.mubr.bf16.vlgmr.msra.gmra.mxu0 %v7384_v9  ;;  %v20534_v32 = vld [vmem:[%s25291_s4 + $0x500] sm:$0xff]  }
0x11bc   : > { %18867 = vmatpush3.bf16.msra.mxu0 %v21216_v62 }
0x11bd   : > { %18868 = vmatprep.subr.bf16.mxu0 %v21210_v30  ;;  %v7372_v25 = vpop.f32.mrf.mxu1 }
0x11be   : > { %v7373_v4 = vadd.f32 %v17188_v50, %v7372_v25 }
0x11c0   : > { %v7385_v55 = vpack.c.bf16 %v7373_v4, %v7370_v52  ;;  %18869 = vmatpush3.bf16.msra.mxu0 %v21210_v30 }
0x11c1   : > { %18870 = vmatprep.subr.bf16.mxu0 %v21226_v6 }
0x11c2   : > { %18862 = vmatprep.mubr.bf16.mxu0 %v7385_v55 }
0x11c3   : > { %18863 = vmatmul.mubr.bf16.gmra.mxu0 %v7386_v36 }
0x11c4   : > { %18871 = vmatpush3.bf16.msra.mxu0 %v21226_v6  ;;  %18876 = vmatprep.mubr.msk.bf16.mxu0 %vm953_vm2, %v20515_v20 }
0x11c5   : > { %18872 = vmatprep.subr.bf16.mxu0 %v21239_v11 }
0x11c8   : > { %18873 = vmatpush3.bf16.msra.mxu0 %v21239_v11 }
0x11c9   : > { %18874 = vmatprep.subr.bf16.mxu0 %v21250_v17 }
0x11cc   : > { %18875 = vmatpush3.bf16.msra.mxu0 %v21250_v17 }
0x11cd   : > { %17277 = vmatprep.subr.bf16.mxu0 %v21111_v42 }
0x11cf   : > { %18877 = vmatmul.mubr.msk.bf16.vlgmr.msra.gmra.mxu0 %vm953_vm2, %v20516_v22  ;;  %v17232_v26 = vpop.f32.mrf.mxu1 }
0x11d0   : > { %17278 = vmatpush3.bf16.msra.mxu0 %v21095_v44  ;;  %18880 = vmatprep.mubr.msk.bf16.mxu0 %vm953_vm2, %v20520_v29 }
0x11d1   : > { %17279 = vmatprep.subr.bf16.mxu0 %v21115_v48  ;;  %v17233_v33 = vpop.f32.mrf.mxu1 }
0x11d2   : > { %v17234_v9 = vadd.f32 %v17233_v33, %v17232_v26 }
0x11d3   : > { %v17235_v35 = vpop.f32.mrf.mxu1 }
0x11d4   : > { %17280 = vmatpush3.bf16.msra.mxu0 %v21091_v34 }
0x11d5   : > { %17281 = vmatprep.subr.bf16.mxu0 %v21125_v59  ;;  %v17236_v27 = vpop.f32.mrf.mxu1 }
0x11d7   : > { %18881 = vmatmul.mubr.msk.bf16.gmra.mxu0 %vm953_vm2, %v20521_v10 }
0x11d8   : > { %17282 = vmatpush3.bf16.msra.mxu0 %v21087_v24  ;;  %7987 = vmatprep.mubr.bf16.mxu0 %v20526_v31 }
0x11d9   : > { %17283 = vmatprep.subr.bf16.mxu0 %v21138_v7  ;;  %v17238_v28 = vpop.f32.mrf.mxu1 }
0x11db   : > { %v17239_v50 = vpop.f32.mrf.mxu1 }
0x11dc   : > { %17284 = vmatpush3.bf16.msra.mxu0 %v21083_v15  ;;  %v17240_v23 = vadd.f32 %v17239_v50, %v17238_v28 }
0x11dd   : > { %17285 = vmatprep.subr.bf16.mxu0 %v21144_v63  ;;  %v17241_v25 = vpop.f32.mrf.mxu1 }
0x11df   : > { %v17242_v52 = vpop.f32.mrf.mxu1 }
0x11e0   : > { %17286 = vmatpush3.bf16.msra.mxu0 %v21076_v5 }
0x11e1   : > { %17287 = vmatprep.subr.bf16.mxu0 %v21150_v13  ;;  %v17244_v4 = vpop.f32.mrf.mxu1 }
0x11e3   : > { %v17245_v55 = vpop.f32.mrf.mxu1 }
0x11e4   : > { %17288 = vmatpush3.bf16.msra.mxu0 %v21069_v58  ;;  %v17246_v22 = vadd.f32 %v17245_v55, %v17244_v4 }
0x11e5   : > { %17289 = vmatprep.subr.bf16.mxu0 %v21103_v0  ;;  %v17247_v20 = vpop.f32.mrf.mxu1 }
0x11e7   : > { %v17248_v36 = vpop.f32.mrf.mxu1 }
0x11e8   : > { %17290 = vmatpush3.bf16.msra.mxu0 %v21065_v49 }
0x11e9   : > { %17291 = vmatprep.subr.bf16.mxu0 %v21099_v54  ;;  %v17250_v29 = vpop.f32.mrf.mxu1 }
0x11eb   : > { %v17251_v10 = vpop.f32.mrf.mxu1 }
0x11ec   : > { %17292 = vmatpush3.bf16.msra.mxu0 %v21061_v40  ;;  %v17252_v31 = vadd.f32 %v17251_v10, %v17250_v29 }
0x11ed   : > { %18926 = vmatprep.subr.bf16.mxu0 %v20527_v18 }
0x11ef   : > { %7988 = vmatmul.mubr.bf16.vlgmr.msra.gmra.mxu0 %v20524_v2 }
0x11f0   : > { %18927 = vmatpush3.bf16.msra.mxu0 %v20527_v18  ;;  %v17253_v18 = vpop.f32.mrf.mxu1 }
0x11f1   : > { %18928 = vmatprep.subr.bf16.mxu0 %v20528_v38 }
0x11f2   : > { %v17254_v2 = vpop.f32.mrf.mxu1 }
0x11f4   : > { %18929 = vmatpush3.bf16.msra.mxu0 %v20528_v38  ;;  %v20537_v38 = vld [vmem:[%s25290_s3 + $0x6ac] ss:$12 sps:$4 sm:$0xff]  }
0x11f5   : > { %18930 = vmatprep.subr.bf16.mxu0 %v20529_v37  ;;  %7995 = vmatprep.mubr.bf16.mxu0 %v20537_v38 }
0x11f8   : > { %18931 = vmatpush3.bf16.msra.mxu0 %v20529_v37  ;;  %v20535_v37 = vld [vmem:[%s25290_s3 + $0x6a8] ss:$12 sps:$4 sm:$0xff]  }
0x11f9   : > { %18932 = vmatprep.subr.bf16.mxu0 %v20530_v53  ;;  %7996 = vmatmul.mubr.bf16.gmra.mxu0 %v20535_v37 }
0x11fc   : > { %18933 = vmatpush3.bf16.msra.mxu0 %v20530_v53  ;;  %v20542_v53 = vld [vmem:[%s25290_s3 + $0x6c4] ss:$12 sps:$4 sm:$0xff]  }
0x11fd   : > { %18934 = vmatprep.subr.bf16.mxu0 %v20531_v21  ;;  %8003 = vmatprep.mubr.bf16.mxu0 %v20542_v53 }
0x1200   : > { %18935 = vmatpush3.bf16.msra.mxu0 %v20531_v21  ;;  %v20540_v21 = vld [vmem:[%s25290_s3 + $0x6c0] ss:$12 sps:$4 sm:$0xff]  }
0x1201   : > { %18936 = vmatprep.subr.bf16.mxu0 %v20532_v12  ;;  %8004 = vmatmul.mubr.bf16.gmra.mxu0 %v20540_v21  ;;  %v17243_v21 = vadd.f32 %v17242_v52, %v17241_v25 }
0x1204   : > { %18937 = vmatpush3.bf16.msra.mxu0 %v20532_v12  ;;  %v15053_v12 = vld [vmem:[%s25290_s3 + $0x6d8] sm:$0x11] }
0x1205   : > { %18938 = vmatprep.subr.bf16.mxu0 %v20533_v19  ;;  %v15065_v26 = vcombine.high %v15053_v12, %v15053_v12  ;;  %v15064_v33 = vcombine.low %v15053_v12, %v15053_v12 }
0x1207   : > { %8011 = vmatprep.mubr.bf16.mxu0 %v15065_v26  ;;  %v17237_v26 = vadd.f32 %v17236_v27, %v17235_v35 }
0x1208   : > { %18939 = vmatpush3.bf16.msra.mxu0 %v20533_v19 }
0x1209   : > { %18940 = vmatprep.subr.bf16.mxu0 %v20534_v32  ;;  %8012 = vmatmul.mubr.bf16.gmra.mxu0 %v15064_v33 }
0x120c   : > { %18941 = vmatpush3.bf16.msra.mxu0 %v20534_v32 }
0x120d   : > { %20019 = vmatprep.subr.msk.bf16.mxu0 %vm966_vm1, %v21205_v56 }
0x127b   : > { %v18860_v19 = vpop.f32.mrf.mxu0 }
0x127c   : > { %v23353_v32 = vadd.f32 %v18860_v19, %v23246_v16 }
0x127d   : > { %v7486_v28 = vpop.f32.mrf.mxu0 }
0x127e   : > { %v23356_v50 = vadd.f32 %v7486_v28, %v23249_v45 }
0x127f   : > { %v18861_v4 = vpop.f32.mrf.mxu0 }
0x1280   : > { %v23359_v55 = vadd.f32 %v18861_v4, %v23252_v57 }
0x1281   : > { %v23361_v29 = vpop.f32.mrf.mxu0 }
0x1282   : > { %25328 = vst [vmem:[#allocation29_spill] sm:$0xff] %v23361_v29 }
0x1283   : > { %v18864_v10 = vpop.f32.mrf.mxu0 }
0x1284   : > { %v23364_v18 = vadd.f32 %v18864_v10, %v23257_v41 }
0x1285   : > { %v7502_v2 = vpop.f32.mrf.mxu0 }
0x1286   : > { %v23367_v38 = vadd.f32 %v7502_v2, %v23260_v14  ;;  %v17249_v2 = vadd.f32 %v17248_v36, %v17247_v20  ;;  %v20543_v20 = vld [vmem:[%s25290_s3 + $0x6c8] ss:$12 sps:$4 sm:$0xff]   ;;  %v20544_v36 = vld [vmem:[%s25290_s3 + $0x6e0] ss:$0 sps:$4 sm:$0x11]  }
0x1287   : > { %v18865_v16 = vpop.f32.mrf.mxu0 }
0x1289   : > { %v23369_v37 = vpop.f32.mrf.mxu0 }
0x128a   : > { %25329 = vst [vmem:[#allocation30_spill] sm:$0xff] %v23369_v37 }
0x128f   : > { %v18878_v53 = vpop.f32.mrf.mxu0 }
0x1290   : > { %v7712_v57 = vadd.f32 %v18878_v53, %v17240_v23  ;;  %v20551_v53 = vld [vmem:[%s25291_s4 + $0x570] sm:$0xff]  }
0x1291   : > { %v7703_v45 = vpop.f32.mrf.mxu0 }
0x1292   : > { %v7704_v28 = vadd.f32 %v17234_v9, %v7703_v45  ;;  %v20538_v9 = vld [vmem:[%s25290_s3 + $0x698] ss:$12 sps:$4 sm:$0xff]   ;;  %v20552_v45 = vld [vmem:[%s25291_s4 + $0x568] sm:$0xff]  }
0x1293   : > { %v18879_v12 = vpop.f32.mrf.mxu0 }
0x1294   : > { %v7715_v33 = vadd.f32 %v18879_v12, %v17243_v21  ;;  %v20553_v21 = vld [vmem:[%s25291_s4 + $0x560] sm:$0xff]   ;;  %v20554_v12 = vld [vmem:[%s25291_s4 + $0x558] sm:$0xff]  }
0x1295   : > { %v7706_v19 = vpop.f32.mrf.mxu0 }
0x1296   : > { %v7734_v4 = vpack.c.bf16 %v7715_v33, %v7712_v57  ;;  %v7707_v29 = vadd.f32 %v17237_v26, %v7706_v19  ;;  %v20555_v26 = vld [vmem:[%s25291_s4 + $0x550] sm:$0xff]   ;;  %v20556_v19 = vld [vmem:[%s25291_s4 + $0x548] sm:$0xff]  }
0x1297   : > { %v18882_v41 = vpop.f32.mrf.mxu0 }
0x1298   : > { %v7733_v10 = vpack.c.bf16 %v7707_v29, %v7704_v28  ;;  %v7728_v16 = vadd.f32 %v18882_v41, %v17252_v31  ;;  %v20550_v31 = vld [vmem:[%s25291_s4 + $0x578] sm:$0xff]   ;;  %v20547_v29 = vld [vmem:[%s25290_s3 + $0x6e4] ss:$12 sps:$4 sm:$0xff]  }
0x1299   : > { %v7719_v1 = vpop.f32.mrf.mxu0 }
0x129a   : > { %18900 = vmatprep.mubr.bf16.mxu1 %v7733_v10  ;;  %v7720_v35 = vadd.f32 %v17246_v22, %v7719_v1  ;;  %v7736_v52 = vpack.c.bf16 %v7728_v16, %v7728_v16  ;;  %v20539_v1 = vld [vmem:[%s25290_s3 + $0x6b0] ss:$12 sps:$4 sm:$0xff]   ;;  %v20549_v22 = vld [vmem:[%s25290_s3 + $0x6e8] ss:$12 sps:$4 sm:$0xff]   ;;  %v20557_v10 = vld [vmem:[%s25291_s4 + $0x540] sm:$0xff]  }
0x129b   : > { %v18883_v14 = vpop.f32.mrf.mxu0  ;;  %18901 = vmatmul.mubr.bf16.vlgmr.msra.gmra.mxu1 %v7734_v4 }
0x129c   : > { %18909 = vmatpush3.bf16.msra.mxu1 %v21216_v62 }
0x129d   : > { %18910 = vmatprep.subr.bf16.mxu1 %v21210_v30  ;;  %v7722_v25 = vpop.f32.mrf.mxu0 }
0x129e   : > { %v7723_v27 = vadd.f32 %v17249_v2, %v7722_v25 }
0x12a0   : > { %v7735_v23 = vpack.c.bf16 %v7723_v27, %v7720_v35  ;;  %18911 = vmatpush3.bf16.msra.mxu1 %v21210_v30 }
0x12a1   : > { %18912 = vmatprep.subr.bf16.mxu1 %v21226_v6 }
0x12a2   : > { %18904 = vmatprep.mubr.bf16.mxu1 %v7735_v23 }
0x12a3   : > { %18905 = vmatmul.mubr.bf16.gmra.mxu1 %v7736_v52 }
0x12a4   : > { %18913 = vmatpush3.bf16.msra.mxu1 %v21226_v6  ;;  %18918 = vmatprep.mubr.msk.bf16.mxu1 %vm953_vm2, %v20538_v9 }
0x12a5   : > { %18914 = vmatprep.subr.bf16.mxu1 %v21239_v11 }
0x12a8   : > { %18915 = vmatpush3.bf16.msra.mxu1 %v21239_v11 }
0x12a9   : > { %18916 = vmatprep.subr.bf16.mxu1 %v21250_v17 }
0x12ac   : > { %18917 = vmatpush3.bf16.msra.mxu1 %v21250_v17 }
0x12ad   : > { %17338 = vmatprep.subr.bf16.mxu1 %v21111_v42 }
0x12af   : > { %18919 = vmatmul.mubr.msk.bf16.vlgmr.msra.gmra.mxu1 %vm953_vm2, %v20539_v1  ;;  %v17293_v57 = vpop.f32.mrf.mxu0 }
0x12b0   : > { %17339 = vmatpush3.bf16.msra.mxu1 %v21095_v44  ;;  %18922 = vmatprep.mubr.msk.bf16.mxu1 %vm953_vm2, %v20543_v20 }
0x12b1   : > { %17340 = vmatprep.subr.bf16.mxu1 %v21115_v48  ;;  %v17294_v33 = vpop.f32.mrf.mxu0 }
0x12b2   : > { %v17295_v4 = vadd.f32 %v17294_v33, %v17293_v57 }
0x12b3   : > { %v17296_v28 = vpop.f32.mrf.mxu0 }
0x12b4   : > { %17341 = vmatpush3.bf16.msra.mxu1 %v21091_v34 }
0x12b5   : > { %17342 = vmatprep.subr.bf16.mxu1 %v21125_v59  ;;  %v17297_v41 = vpop.f32.mrf.mxu0 }
0x12b7   : > { %18923 = vmatmul.mubr.msk.bf16.gmra.mxu1 %vm953_vm2, %v20544_v36 }
0x12b8   : > { %17343 = vmatpush3.bf16.msra.mxu1 %v21087_v24  ;;  %8337 = vmatprep.mubr.bf16.mxu1 %v20549_v22 }
0x12b9   : > { %17344 = vmatprep.subr.bf16.mxu1 %v21138_v7  ;;  %v17299_v14 = vpop.f32.mrf.mxu0 }
0x12bb   : > { %v17300_v2 = vpop.f32.mrf.mxu0 }
0x12bc   : > { %17345 = vmatpush3.bf16.msra.mxu1 %v21083_v15  ;;  %v17301_v16 = vadd.f32 %v17300_v2, %v17299_v14 }
0x12bd   : > { %17346 = vmatprep.subr.bf16.mxu1 %v21144_v63  ;;  %v17302_v25 = vpop.f32.mrf.mxu0 }
0x12bf   : > { %v17303_v35 = vpop.f32.mrf.mxu0 }
0x12c0   : > { %17347 = vmatpush3.bf16.msra.mxu1 %v21076_v5 }
0x12c1   : > { %17348 = vmatprep.subr.bf16.mxu1 %v21150_v13  ;;  %v17305_v27 = vpop.f32.mrf.mxu0 }
0x12c3   : > { %v17306_v23 = vpop.f32.mrf.mxu0 }
0x12c4   : > { %17349 = vmatpush3.bf16.msra.mxu1 %v21069_v58  ;;  %v17307_v1 = vadd.f32 %v17306_v23, %v17305_v27 }
0x12c5   : > { %17350 = vmatprep.subr.bf16.mxu1 %v21103_v0  ;;  %v17308_v9 = vpop.f32.mrf.mxu0 }
0x12c7   : > { %v17309_v52 = vpop.f32.mrf.mxu0 }
0x12c8   : > { %17351 = vmatpush3.bf16.msra.mxu1 %v21065_v49 }
0x12c9   : > { %17352 = vmatprep.subr.bf16.mxu1 %v21099_v54  ;;  %v17311_v20 = vpop.f32.mrf.mxu0 }
0x12cb   : > { %v17312_v36 = vpop.f32.mrf.mxu0 }
0x12cc   : > { %17353 = vmatpush3.bf16.msra.mxu1 %v21061_v40  ;;  %v17313_v22 = vadd.f32 %v17312_v36, %v17311_v20 }
0x12cd   : > { %18968 = vmatprep.subr.bf16.mxu1 %v20550_v31 }
0x12cf   : > { %8338 = vmatmul.mubr.bf16.vlgmr.msra.gmra.mxu1 %v20547_v29 }
0x12d0   : > { %18969 = vmatpush3.bf16.msra.mxu1 %v20550_v31  ;;  %v17314_v31 = vpop.f32.mrf.mxu0 }
0x12d1   : > { %18970 = vmatprep.subr.bf16.mxu1 %v20551_v53 }
0x12d2   : > { %v17315_v29 = vpop.f32.mrf.mxu0 }
0x12d4   : > { %18971 = vmatpush3.bf16.msra.mxu1 %v20551_v53  ;;  %v20560_v53 = vld [vmem:[%s25290_s3 + $0x700] ss:$12 sps:$4 sm:$0xff]  }
0x12d5   : > { %18972 = vmatprep.subr.bf16.mxu1 %v20552_v45  ;;  %8345 = vmatprep.mubr.bf16.mxu1 %v20560_v53 }
0x12d8   : > { %18973 = vmatpush3.bf16.msra.mxu1 %v20552_v45  ;;  %v20558_v45 = vld [vmem:[%s25290_s3 + $0x6fc] ss:$12 sps:$4 sm:$0xff]  }
0x12d9   : > { %18974 = vmatprep.subr.bf16.mxu1 %v20553_v21  ;;  %8346 = vmatmul.mubr.bf16.gmra.mxu1 %v20558_v45 }
0x12dc   : > { %18975 = vmatpush3.bf16.msra.mxu1 %v20553_v21  ;;  %v20565_v21 = vld [vmem:[%s25290_s3 + $0x718] ss:$12 sps:$4 sm:$0xff]  }
0x12dd   : > { %18976 = vmatprep.subr.bf16.mxu1 %v20554_v12  ;;  %8353 = vmatprep.mubr.bf16.mxu1 %v20565_v21 }
0x12e0   : > { %18977 = vmatpush3.bf16.msra.mxu1 %v20554_v12  ;;  %v20563_v12 = vld [vmem:[%s25290_s3 + $0x714] ss:$12 sps:$4 sm:$0xff]  }
0x12e1   : > { %18978 = vmatprep.subr.bf16.mxu1 %v20555_v26  ;;  %8354 = vmatmul.mubr.bf16.gmra.mxu1 %v20563_v12  ;;  %v17304_v12 = vadd.f32 %v17303_v35, %v17302_v25 }
0x12e4   : > { %18979 = vmatpush3.bf16.msra.mxu1 %v20555_v26  ;;  %v15107_v26 = vld [vmem:[%s25290_s3 + $0x72c] sm:$0x11] }
0x12e5   : > { %18980 = vmatprep.subr.bf16.mxu1 %v20556_v19  ;;  %v15119_v57 = vcombine.high %v15107_v26, %v15107_v26  ;;  %v15118_v33 = vcombine.low %v15107_v26, %v15107_v26 }
0x12e7   : > { %8361 = vmatprep.mubr.bf16.mxu1 %v15119_v57  ;;  %v17298_v57 = vadd.f32 %v17297_v41, %v17296_v28 }
0x12e8   : > { %18981 = vmatpush3.bf16.msra.mxu1 %v20556_v19 }
0x12e9   : > { %18982 = vmatprep.subr.bf16.mxu1 %v20557_v10  ;;  %8362 = vmatmul.mubr.bf16.gmra.mxu1 %v15118_v33 }
0x12ec   : > { %18983 = vmatpush3.bf16.msra.mxu1 %v20557_v10 }
0x12ed   : > { %20020 = vmatprep.subr.msk.bf16.mxu1 %vm966_vm1, %v21205_v56 }
0x135b   : > { %v18902_v19 = vpop.f32.mrf.mxu1 }
0x135c   : > { %v23460_v10 = vadd.f32 %v18902_v19, %v23353_v32 }
0x135d   : > { %v7836_v14 = vpop.f32.mrf.mxu1 }
0x135e   : > { %v23463_v2 = vadd.f32 %v7836_v14, %v23356_v50 }
0x135f   : > { %v18903_v27 = vpop.f32.mrf.mxu1 }
0x1360   : > { %v23466_v23 = vadd.f32 %v18903_v27, %v23359_v55 }
0x1361   : > { %v23468_v20 = vpop.f32.mrf.mxu1 }
0x1362   : > { %25330 = vst [vmem:[#allocation31_spill] sm:$0xff] %v23468_v20 }
0x1363   : > { %v18906_v36 = vpop.f32.mrf.mxu1 }
0x1364   : > { %v23471_v31 = vadd.f32 %v18906_v36, %v23364_v18 }
0x1365   : > { %v7852_v29 = vpop.f32.mrf.mxu1 }
0x1366   : > { %v23474_v53 = vadd.f32 %v7852_v29, %v23367_v38  ;;  %v17310_v29 = vadd.f32 %v17309_v52, %v17308_v9  ;;  %v20566_v9 = vld [vmem:[%s25290_s3 + $0x71c] ss:$12 sps:$4 sm:$0xff]   ;;  %v20567_v52 = vld [vmem:[%s25290_s3 + $0x734] ss:$0 sps:$4 sm:$0x11]  }
0x1367   : > { %v18907_v32 = vpop.f32.mrf.mxu1 }
0x1369   : > { %v23476_v45 = vpop.f32.mrf.mxu1 }
0x136a   : > { %25331 = vst [vmem:[#allocation32_spill] sm:$0xff] %v23476_v45 }
0x136f   : > { %v18920_v21 = vpop.f32.mrf.mxu1 }
0x1370   : > { %v8062_v55 = vadd.f32 %v18920_v21, %v17301_v16  ;;  %v20574_v21 = vld [vmem:[%s25291_s4 + $0x5b0] sm:$0xff]  }
0x1371   : > { %v8053_v50 = vpop.f32.mrf.mxu1 }
0x1372   : > { %v8054_v14 = vadd.f32 %v17295_v4, %v8053_v50  ;;  %v20561_v4 = vld [vmem:[%s25290_s3 + $0x6ec] ss:$12 sps:$4 sm:$0xff]  }
0x1373   : > { %v18921_v26 = vpop.f32.mrf.mxu1  ;;  %v20575_v50 = vld [vmem:[%s25291_s4 + $0x5a8] sm:$0xff]  }
0x1374   : > { %v8065_v33 = vadd.f32 %v18921_v26, %v17304_v12  ;;  %v20576_v12 = vld [vmem:[%s25291_s4 + $0x5a0] sm:$0xff]   ;;  %v20577_v26 = vld [vmem:[%s25291_s4 + $0x598] sm:$0xff]  }
0x1375   : > { %v8056_v19 = vpop.f32.mrf.mxu1 }
0x1376   : > { %v8084_v27 = vpack.c.bf16 %v8065_v33, %v8062_v55  ;;  %v8057_v20 = vadd.f32 %v17298_v57, %v8056_v19  ;;  %v20578_v57 = vld [vmem:[%s25291_s4 + $0x590] sm:$0xff]   ;;  %v20579_v19 = vld [vmem:[%s25291_s4 + $0x588] sm:$0xff]  }
0x1377   : > { %v18924_v18 = vpop.f32.mrf.mxu1 }
0x1378   : > { %v8083_v36 = vpack.c.bf16 %v8057_v20, %v8054_v14  ;;  %v8078_v32 = vadd.f32 %v18924_v18, %v17313_v22  ;;  %v20573_v22 = vld [vmem:[%s25291_s4 + $0x5b8] sm:$0xff]  }
0x1379   : > { %v8069_v37 = vpop.f32.mrf.mxu1  ;;  %v20570_v20 = vld [vmem:[%s25290_s3 + $0x738] ss:$12 sps:$4 sm:$0xff]  }
0x137a   : > { %18942 = vmatprep.mubr.bf16.mxu0 %v8083_v36  ;;  %v8070_v28 = vadd.f32 %v17307_v1, %v8069_v37  ;;  %v8086_v35 = vpack.c.bf16 %v8078_v32, %v8078_v32  ;;  %v20562_v37 = vld [vmem:[%s25290_s3 + $0x704] ss:$12 sps:$4 sm:$0xff]   ;;  %v20572_v1 = vld [vmem:[%s25290_s3 + $0x73c] ss:$12 sps:$4 sm:$0xff]  }
0x137b   : > { %v18925_v38 = vpop.f32.mrf.mxu1  ;;  %18943 = vmatmul.mubr.bf16.vlgmr.msra.gmra.mxu0 %v8084_v27  ;;  %v20580_v36 = vld [vmem:[%s25291_s4 + $0x580] sm:$0xff]  }
0x137c   : > { %18951 = vmatpush3.bf16.msra.mxu0 %v21216_v62 }
0x137d   : > { %18952 = vmatprep.subr.bf16.mxu0 %v21210_v30  ;;  %v8072_v25 = vpop.f32.mrf.mxu1 }
0x137e   : > { %v8073_v41 = vadd.f32 %v17310_v29, %v8072_v25 }
0x1380   : > { %v8085_v16 = vpack.c.bf16 %v8073_v41, %v8070_v28  ;;  %18953 = vmatpush3.bf16.msra.mxu0 %v21210_v30 }
0x1381   : > { %18954 = vmatprep.subr.bf16.mxu0 %v21226_v6 }
0x1382   : > { %18946 = vmatprep.mubr.bf16.mxu0 %v8085_v16 }
0x1383   : > { %18947 = vmatmul.mubr.bf16.gmra.mxu0 %v8086_v35 }
0x1384   : > { %18955 = vmatpush3.bf16.msra.mxu0 %v21226_v6  ;;  %18960 = vmatprep.mubr.msk.bf16.mxu0 %vm953_vm2, %v20561_v4 }
0x1385   : > { %18956 = vmatprep.subr.bf16.mxu0 %v21239_v11 }
0x1388   : > { %18957 = vmatpush3.bf16.msra.mxu0 %v21239_v11 }
0x1389   : > { %18958 = vmatprep.subr.bf16.mxu0 %v21250_v17 }
0x138c   : > { %18959 = vmatpush3.bf16.msra.mxu0 %v21250_v17 }
0x138d   : > { %17399 = vmatprep.subr.bf16.mxu0 %v21111_v42 }
0x138f   : > { %18961 = vmatmul.mubr.msk.bf16.vlgmr.msra.gmra.mxu0 %vm953_vm2, %v20562_v37  ;;  %v17354_v55 = vpop.f32.mrf.mxu1 }
0x1390   : > { %17400 = vmatpush3.bf16.msra.mxu0 %v21095_v44  ;;  %18964 = vmatprep.mubr.msk.bf16.mxu0 %vm953_vm2, %v20566_v9 }
0x1391   : > { %17401 = vmatprep.subr.bf16.mxu0 %v21115_v48  ;;  %v17355_v33 = vpop.f32.mrf.mxu1 }
0x1392   : > { %v17356_v27 = vadd.f32 %v17355_v33, %v17354_v55 }
0x1393   : > { %v17357_v14 = vpop.f32.mrf.mxu1 }
0x1394   : > { %17402 = vmatpush3.bf16.msra.mxu0 %v21091_v34 }
0x1395   : > { %17403 = vmatprep.subr.bf16.mxu0 %v21125_v59  ;;  %v17358_v18 = vpop.f32.mrf.mxu1 }
0x1397   : > { %18965 = vmatmul.mubr.msk.bf16.gmra.mxu0 %vm953_vm2, %v20567_v52 }
0x1398   : > { %17404 = vmatpush3.bf16.msra.mxu0 %v21087_v24  ;;  %8687 = vmatprep.mubr.bf16.mxu0 %v20572_v1 }
0x1399   : > { %17405 = vmatprep.subr.bf16.mxu0 %v21138_v7  ;;  %v17360_v38 = vpop.f32.mrf.mxu1 }
0x139b   : > { %v17361_v29 = vpop.f32.mrf.mxu1 }
0x139c   : > { %17406 = vmatpush3.bf16.msra.mxu0 %v21083_v15  ;;  %v17362_v32 = vadd.f32 %v17361_v29, %v17360_v38 }
0x139d   : > { %17407 = vmatprep.subr.bf16.mxu0 %v21144_v63  ;;  %v17363_v25 = vpop.f32.mrf.mxu1 }
0x139f   : > { %v17364_v28 = vpop.f32.mrf.mxu1 }
0x13a0   : > { %17408 = vmatpush3.bf16.msra.mxu0 %v21076_v5 }
0x13a1   : > { %17409 = vmatprep.subr.bf16.mxu0 %v21150_v13  ;;  %v17366_v41 = vpop.f32.mrf.mxu1 }
0x13a3   : > { %v17367_v16 = vpop.f32.mrf.mxu1 }
0x13a4   : > { %17410 = vmatpush3.bf16.msra.mxu0 %v21069_v58  ;;  %v17368_v37 = vadd.f32 %v17367_v16, %v17366_v41 }
0x13a5   : > { %17411 = vmatprep.subr.bf16.mxu0 %v21103_v0  ;;  %v17369_v4 = vpop.f32.mrf.mxu1 }
0x13a7   : > { %v17370_v35 = vpop.f32.mrf.mxu1 }
0x13a8   : > { %17412 = vmatpush3.bf16.msra.mxu0 %v21065_v49 }
0x13a9   : > { %17413 = vmatprep.subr.bf16.mxu0 %v21099_v54  ;;  %v17372_v9 = vpop.f32.mrf.mxu1 }
0x13ab   : > { %v17373_v52 = vpop.f32.mrf.mxu1 }
0x13ac   : > { %17414 = vmatpush3.bf16.msra.mxu0 %v21061_v40  ;;  %v17374_v1 = vadd.f32 %v17373_v52, %v17372_v9 }
0x13ad   : > { %19010 = vmatprep.subr.bf16.mxu0 %v20573_v22 }
0x13af   : > { %8688 = vmatmul.mubr.bf16.vlgmr.msra.gmra.mxu0 %v20570_v20 }
0x13b0   : > { %19011 = vmatpush3.bf16.msra.mxu0 %v20573_v22  ;;  %v17375_v22 = vpop.f32.mrf.mxu1 }
0x13b1   : > { %19012 = vmatprep.subr.bf16.mxu0 %v20574_v21 }
0x13b2   : > { %v17376_v20 = vpop.f32.mrf.mxu1 }
0x13b4   : > { %19013 = vmatpush3.bf16.msra.mxu0 %v20574_v21  ;;  %v20583_v21 = vld [vmem:[%s25290_s3 + $0x754] ss:$12 sps:$4 sm:$0xff]  }
0x13b5   : > { %19014 = vmatprep.subr.bf16.mxu0 %v20575_v50  ;;  %8695 = vmatprep.mubr.bf16.mxu0 %v20583_v21 }
0x13b8   : > { %19015 = vmatpush3.bf16.msra.mxu0 %v20575_v50  ;;  %v20581_v50 = vld [vmem:[%s25290_s3 + $0x750] ss:$12 sps:$4 sm:$0xff]  }
0x13b9   : > { %19016 = vmatprep.subr.bf16.mxu0 %v20576_v12  ;;  %8696 = vmatmul.mubr.bf16.gmra.mxu0 %v20581_v50 }
0x13bc   : > { %19017 = vmatpush3.bf16.msra.mxu0 %v20576_v12  ;;  %v20588_v12 = vld [vmem:[%s25290_s3 + $0x76c] ss:$12 sps:$4 sm:$0xff]  }
0x13bd   : > { %19018 = vmatprep.subr.bf16.mxu0 %v20577_v26  ;;  %8703 = vmatprep.mubr.bf16.mxu0 %v20588_v12 }
0x13c0   : > { %19019 = vmatpush3.bf16.msra.mxu0 %v20577_v26  ;;  %v20586_v26 = vld [vmem:[%s25290_s3 + $0x768] ss:$12 sps:$4 sm:$0xff]  }
0x13c1   : > { %19020 = vmatprep.subr.bf16.mxu0 %v20578_v57  ;;  %8704 = vmatmul.mubr.bf16.gmra.mxu0 %v20586_v26  ;;  %v17365_v26 = vadd.f32 %v17364_v28, %v17363_v25 }
0x13c4   : > { %19021 = vmatpush3.bf16.msra.mxu0 %v20578_v57  ;;  %v15161_v57 = vld [vmem:[%s25290_s3 + $0x780] sm:$0x11] }
0x13c5   : > { %19022 = vmatprep.subr.bf16.mxu0 %v20579_v19  ;;  %v15173_v55 = vcombine.high %v15161_v57, %v15161_v57  ;;  %v15172_v33 = vcombine.low %v15161_v57, %v15161_v57 }
0x13c7   : > { %8711 = vmatprep.mubr.bf16.mxu0 %v15173_v55  ;;  %v17359_v55 = vadd.f32 %v17358_v18, %v17357_v14 }
0x13c8   : > { %19023 = vmatpush3.bf16.msra.mxu0 %v20579_v19 }
0x13c9   : > { %19024 = vmatprep.subr.bf16.mxu0 %v20580_v36  ;;  %8712 = vmatmul.mubr.bf16.gmra.mxu0 %v15172_v33 }
0x13cc   : > { %19025 = vmatpush3.bf16.msra.mxu0 %v20580_v36 }
0x13cd   : > { %20021 = vmatprep.subr.msk.bf16.mxu0 %vm966_vm1, %v21205_v56 }
0x143b   : > { %v18944_v19 = vpop.f32.mrf.mxu0 }
0x143c   : > { %v23567_v36 = vadd.f32 %v18944_v19, %v23460_v10 }
0x143d   : > { %v8186_v38 = vpop.f32.mrf.mxu0 }
0x143e   : > { %v23570_v29 = vadd.f32 %v8186_v38, %v23463_v2 }
0x143f   : > { %v18945_v41 = vpop.f32.mrf.mxu0 }
0x1440   : > { %v23573_v16 = vadd.f32 %v18945_v41, %v23466_v23 }
0x1441   : > { %v23575_v9 = vpop.f32.mrf.mxu0 }
0x1442   : > { %25332 = vst [vmem:[#allocation33_spill] sm:$0xff] %v23575_v9 }
0x1443   : > { %v18948_v52 = vpop.f32.mrf.mxu0 }
0x1444   : > { %v23578_v22 = vadd.f32 %v18948_v52, %v23471_v31 }
0x1445   : > { %v8202_v20 = vpop.f32.mrf.mxu0 }
0x1446   : > { %v23581_v21 = vadd.f32 %v8202_v20, %v23474_v53  ;;  %v17371_v20 = vadd.f32 %v17370_v35, %v17369_v4  ;;  %v20589_v4 = vld [vmem:[%s25290_s3 + $0x770] ss:$12 sps:$4 sm:$0xff]   ;;  %v20590_v35 = vld [vmem:[%s25290_s3 + $0x788] ss:$0 sps:$4 sm:$0x11]  }
0x1447   : > { %v18949_v10 = vpop.f32.mrf.mxu0 }
0x1449   : > { %v23583_v50 = vpop.f32.mrf.mxu0 }
0x144f   : > { %v18962_v12 = vpop.f32.mrf.mxu0 }
0x1450   : > { %v8412_v23 = vadd.f32 %v18962_v12, %v17362_v32  ;;  %v20597_v12 = vld [vmem:[%s25291_s4 + $0x5f0] sm:$0xff]  }
0x1451   : > { %v8403_v2 = vpop.f32.mrf.mxu0 }
0x1452   : > { %v8404_v38 = vadd.f32 %v17356_v27, %v8403_v2  ;;  %v20584_v27 = vld [vmem:[%s25290_s3 + $0x740] ss:$12 sps:$4 sm:$0xff]  }
0x1453   : > { %v18963_v57 = vpop.f32.mrf.mxu0  ;;  %v20598_v2 = vld [vmem:[%s25291_s4 + $0x5e8] sm:$0xff]  }
0x1454   : > { %v8415_v33 = vadd.f32 %v18963_v57, %v17365_v26  ;;  %v20599_v26 = vld [vmem:[%s25291_s4 + $0x5e0] sm:$0xff]   ;;  %v20600_v57 = vld [vmem:[%s25291_s4 + $0x5d8] sm:$0xff]  }
0x1455   : > { %v8406_v19 = vpop.f32.mrf.mxu0 }
0x1456   : > { %v8434_v41 = vpack.c.bf16 %v8415_v33, %v8412_v23  ;;  %v8407_v9 = vadd.f32 %v17359_v55, %v8406_v19  ;;  %v20601_v55 = vld [vmem:[%s25291_s4 + $0x5d0] sm:$0xff]   ;;  %v20602_v19 = vld [vmem:[%s25291_s4 + $0x5c8] sm:$0xff]  }
0x1457   : > { %v18966_v31 = vpop.f32.mrf.mxu0 }
0x1458   : > { %v8433_v52 = vpack.c.bf16 %v8407_v9, %v8404_v38  ;;  %v8428_v10 = vadd.f32 %v18966_v31, %v17374_v1  ;;  %v20596_v1 = vld [vmem:[%s25291_s4 + $0x5f8] sm:$0xff]  }
0x1459   : > { %v8419_v45 = vpop.f32.mrf.mxu0  ;;  %v20593_v9 = vld [vmem:[%s25290_s3 + $0x78c] ss:$12 sps:$4 sm:$0xff]  }
0x145a   : > { %18984 = vmatprep.mubr.bf16.mxu1 %v8433_v52  ;;  %v8420_v14 = vadd.f32 %v17368_v37, %v8419_v45  ;;  %v8436_v28 = vpack.c.bf16 %v8428_v10, %v8428_v10  ;;  %v20585_v45 = vld [vmem:[%s25290_s3 + $0x758] ss:$12 sps:$4 sm:$0xff]   ;;  %v20595_v37 = vld [vmem:[%s25290_s3 + $0x790] ss:$12 sps:$4 sm:$0xff]  }
0x145b   : > { %v18967_v53 = vpop.f32.mrf.mxu0  ;;  %18985 = vmatmul.mubr.bf16.vlgmr.msra.gmra.mxu1 %v8434_v41  ;;  %v20603_v52 = vld [vmem:[%s25291_s4 + $0x5c0] sm:$0xff]  }
0x145c   : > { %18993 = vmatpush3.bf16.msra.mxu1 %v21216_v62 }
0x145d   : > { %18994 = vmatprep.subr.bf16.mxu1 %v21210_v30  ;;  %v8422_v25 = vpop.f32.mrf.mxu0 }
0x145e   : > { %v8423_v18 = vadd.f32 %v17371_v20, %v8422_v25 }
0x1460   : > { %v8435_v32 = vpack.c.bf16 %v8423_v18, %v8420_v14  ;;  %18995 = vmatpush3.bf16.msra.mxu1 %v21210_v30 }
0x1461   : > { %18996 = vmatprep.subr.bf16.mxu1 %v21226_v6 }
0x1462   : > { %18988 = vmatprep.mubr.bf16.mxu1 %v8435_v32 }
0x1463   : > { %18989 = vmatmul.mubr.bf16.gmra.mxu1 %v8436_v28 }
0x1464   : > { %18997 = vmatpush3.bf16.msra.mxu1 %v21226_v6  ;;  %19002 = vmatprep.mubr.msk.bf16.mxu1 %vm953_vm2, %v20584_v27 }
0x1465   : > { %18998 = vmatprep.subr.bf16.mxu1 %v21239_v11 }
0x1468   : > { %18999 = vmatpush3.bf16.msra.mxu1 %v21239_v11 }
0x1469   : > { %19000 = vmatprep.subr.bf16.mxu1 %v21250_v17 }
0x146c   : > { %19001 = vmatpush3.bf16.msra.mxu1 %v21250_v17 }
0x146d   : > { %17460 = vmatprep.subr.bf16.mxu1 %v21111_v42 }
0x146f   : > { %19003 = vmatmul.mubr.msk.bf16.vlgmr.msra.gmra.mxu1 %vm953_vm2, %v20585_v45  ;;  %v17415_v23 = vpop.f32.mrf.mxu0 }
0x1470   : > { %17461 = vmatpush3.bf16.msra.mxu1 %v21095_v44  ;;  %19006 = vmatprep.mubr.msk.bf16.mxu1 %vm953_vm2, %v20589_v4 }
0x1471   : > { %17462 = vmatprep.subr.bf16.mxu1 %v21115_v48  ;;  %v17416_v33 = vpop.f32.mrf.mxu0 }
0x1472   : > { %v17417_v41 = vadd.f32 %v17416_v33, %v17415_v23 }
0x1473   : > { %v17418_v38 = vpop.f32.mrf.mxu0 }
0x1474   : > { %17463 = vmatpush3.bf16.msra.mxu1 %v21091_v34 }
0x1475   : > { %17464 = vmatprep.subr.bf16.mxu1 %v21125_v59  ;;  %v17419_v31 = vpop.f32.mrf.mxu0 }
0x1477   : > { %19007 = vmatmul.mubr.msk.bf16.gmra.mxu1 %vm953_vm2, %v20590_v35 }
0x1478   : > { %17465 = vmatpush3.bf16.msra.mxu1 %v21087_v24  ;;  %9037 = vmatprep.mubr.bf16.mxu1 %v20595_v37 }
0x1479   : > { %17466 = vmatprep.subr.bf16.mxu1 %v21138_v7  ;;  %v17421_v53 = vpop.f32.mrf.mxu0 }
0x147b   : > { %v17422_v20 = vpop.f32.mrf.mxu0 }
0x147c   : > { %17467 = vmatpush3.bf16.msra.mxu1 %v21083_v15  ;;  %v17423_v10 = vadd.f32 %v17422_v20, %v17421_v53 }
0x147d   : > { %17468 = vmatprep.subr.bf16.mxu1 %v21144_v63  ;;  %v17424_v25 = vpop.f32.mrf.mxu0 }
0x147f   : > { %v17425_v14 = vpop.f32.mrf.mxu0 }
0x1480   : > { %17469 = vmatpush3.bf16.msra.mxu1 %v21076_v5 }
0x1481   : > { %17470 = vmatprep.subr.bf16.mxu1 %v21150_v13  ;;  %v17427_v18 = vpop.f32.mrf.mxu0 }
0x1483   : > { %v17428_v32 = vpop.f32.mrf.mxu0 }
0x1484   : > { %17471 = vmatpush3.bf16.msra.mxu1 %v21069_v58  ;;  %v17429_v45 = vadd.f32 %v17428_v32, %v17427_v18 }
0x1485   : > { %17472 = vmatprep.subr.bf16.mxu1 %v21103_v0  ;;  %v17430_v27 = vpop.f32.mrf.mxu0 }
0x1487   : > { %v17431_v28 = vpop.f32.mrf.mxu0 }
0x1488   : > { %17473 = vmatpush3.bf16.msra.mxu1 %v21065_v49 }
0x1489   : > { %17474 = vmatprep.subr.bf16.mxu1 %v21099_v54  ;;  %v17433_v4 = vpop.f32.mrf.mxu0 }
0x148b   : > { %v17434_v35 = vpop.f32.mrf.mxu0 }
0x148c   : > { %17475 = vmatpush3.bf16.msra.mxu1 %v21061_v40  ;;  %v17435_v37 = vadd.f32 %v17434_v35, %v17433_v4 }
0x148d   : > { %19052 = vmatprep.subr.bf16.mxu1 %v20596_v1 }
0x148f   : > { %9038 = vmatmul.mubr.bf16.vlgmr.msra.gmra.mxu1 %v20593_v9 }
0x1490   : > { %19053 = vmatpush3.bf16.msra.mxu1 %v20596_v1  ;;  %v17436_v1 = vpop.f32.mrf.mxu0 }
0x1491   : > { %19054 = vmatprep.subr.bf16.mxu1 %v20597_v12 }
0x1492   : > { %v17437_v9 = vpop.f32.mrf.mxu0 }
0x1494   : > { %19055 = vmatpush3.bf16.msra.mxu1 %v20597_v12  ;;  %v20606_v12 = vld [vmem:[%s25290_s3 + $0x7a8] ss:$12 sps:$4 sm:$0xff]  }
0x1495   : > { %19056 = vmatprep.subr.bf16.mxu1 %v20598_v2  ;;  %9045 = vmatprep.mubr.bf16.mxu1 %v20606_v12 }
0x1498   : > { %19057 = vmatpush3.bf16.msra.mxu1 %v20598_v2  ;;  %v20604_v2 = vld [vmem:[%s25290_s3 + $0x7a4] ss:$12 sps:$4 sm:$0xff]  }
0x1499   : > { %19058 = vmatprep.subr.bf16.mxu1 %v20599_v26  ;;  %9046 = vmatmul.mubr.bf16.gmra.mxu1 %v20604_v2 }
0x149c   : > { %19059 = vmatpush3.bf16.msra.mxu1 %v20599_v26  ;;  %v20609_v26 = vld [vmem:[%s25290_s3 + $0x7bc] ss:$12 sps:$4 sm:$0xff]  }
0x149d   : > { %19060 = vmatprep.subr.bf16.mxu1 %v20600_v57 }
0x14a0   : > { %19061 = vmatpush3.bf16.msra.mxu1 %v20600_v57  ;;  %v15215_v57 = vld [vmem:[%s25290_s3 + $0x7d4] sm:$0x11] }
0x14a1   : > { %19062 = vmatprep.subr.bf16.mxu1 %v20601_v55  ;;  %v15226_v23 = vcombine.low %v15215_v57, %v15215_v57 }
0x14a4   : > { %19063 = vmatpush3.bf16.msra.mxu1 %v20601_v55  ;;  %v15227_v55 = vcombine.high %v15215_v57, %v15215_v57  ;;  %v17420_v57 = vadd.f32 %v17419_v31, %v17418_v38 }
0x14a5   : > { %19064 = vmatprep.subr.bf16.mxu1 %v20602_v19 }
0x14a8   : > { %19065 = vmatpush3.bf16.msra.mxu1 %v20602_v19 }
0x14a9   : > { %19066 = vmatprep.subr.bf16.mxu1 %v20603_v52 }
0x14ac   : > { %19067 = vmatpush3.bf16.msra.mxu1 %v20603_v52 }
0x14ad   : > { %20022 = vmatprep.subr.msk.bf16.mxu1 %vm966_vm1, %v21205_v56  ;;  %v20611_v56 = vld [vmem:[%s25290_s3 + $0x7c0] ss:$12 sps:$4 sm:$0xff]  }
0x14ae   : > { %9053 = vmatprep.mubr.bf16.mxu1 %v20611_v56  ;;  %v17426_v56 = vadd.f32 %v17425_v14, %v17424_v25 }
0x14af   : > { %9054 = vmatmul.mubr.bf16.gmra.mxu1 %v20609_v26 }
0x14b0   : > { %9061 = vmatprep.mubr.bf16.mxu1 %v15227_v55 }
0x14b7   : > { %9062 = vmatmul.mubr.bf16.gmra.mxu1 %v15226_v23 }
0x151b   : > { %v18986_v33 = vpop.f32.mrf.mxu1 }
0x151c   : > { %v23674_v19 = vadd.f32 %v18986_v33, %v23567_v36 }
0x151d   : > { %v8536_v52 = vpop.f32.mrf.mxu1 }
0x151e   : > { %v23677_v53 = vadd.f32 %v8536_v52, %v23570_v29 }
0x151f   : > { %v18987_v20 = vpop.f32.mrf.mxu1 }
0x1520   : > { %v23680_v18 = vadd.f32 %v18987_v20, %v23573_v16 }
0x1521   : > { %v23682_v32 = vpop.f32.mrf.mxu1 }
0x1522   : > { %25333 = vst [vmem:[#allocation34_spill] sm:$0xff] %v23682_v32 }
0x1523   : > { %v18990_v4 = vpop.f32.mrf.mxu1 }
0x1524   : > { %v23685_v35 = vadd.f32 %v18990_v4, %v23578_v22 }
0x1525   : > { %v8552_v1 = vpop.f32.mrf.mxu1 }
0x1526   : > { %v23688_v9 = vadd.f32 %v8552_v1, %v23581_v21  ;;  %v17432_v1 = vadd.f32 %v17431_v28, %v17430_v27  ;;  %v20608_v27 = vld [vmem:[%s25290_s3 + $0x7ac] ss:$12 sps:$4 sm:$0xff]   ;;  %v20612_v28 = vld [vmem:[%s25290_s3 + $0x7c4] ss:$12 sps:$4 sm:$0xff]  }
0x1527   : > { %v18991_v36 = vpop.f32.mrf.mxu1 }
0x1529   : > { %v23690_v12 = vpop.f32.mrf.mxu1 }
0x152f   : > { %v19004_v2 = vpop.f32.mrf.mxu1 }
0x1530   : > { %v8762_v16 = vadd.f32 %v19004_v2, %v17423_v10  ;;  %v20616_v2 = vld [vmem:[%s25290_s3 + $0x7e0] ss:$12 sps:$4 sm:$0xff]  }
0x1531   : > { %v8753_v29 = vpop.f32.mrf.mxu1 }
0x1532   : > { %v8754_v33 = vadd.f32 %v17417_v41, %v8753_v29  ;;  %v20607_v41 = vld [vmem:[%s25290_s3 + $0x794] ss:$12 sps:$4 sm:$0xff]  }
0x1533   : > { %v19005_v26 = vpop.f32.mrf.mxu1 }
0x1534   : > { %v8765_v55 = vadd.f32 %v19005_v26, %v17426_v56 }
0x1535   : > { %v8756_v23 = vpop.f32.mrf.mxu1 }
0x1536   : > { %v8784_v52 = vpack.c.bf16 %v8765_v55, %v8762_v16  ;;  %v8757_v20 = vadd.f32 %v17420_v57, %v8756_v23  ;;  %v20621_v57 = vld [vmem:[%s25290_s3 + $0x7fc] ss:$12 sps:$4 sm:$0xff]   ;;  %v20619_v16 = vld [vmem:[%s25290_s3 + $0x7f8] ss:$12 sps:$4 sm:$0xff]   ;;  %v20624_v55 = vld [vmem:[%s25290_s3 + $0x814] ss:$12 sps:$4 sm:$0xff]  }
0x1537   : > { %v19008_v22 = vpop.f32.mrf.mxu1  ;;  %v20622_v23 = vld [vmem:[%s25290_s3 + $0x810] ss:$12 sps:$4 sm:$0xff]  }
0x1538   : > { %v8783_v4 = vpack.c.bf16 %v8757_v20, %v8754_v33  ;;  %v8778_v36 = vadd.f32 %v19008_v22, %v17435_v37  ;;  %v15269_v33 = vld [vmem:[%s25290_s3 + $0x828] sm:$0x11]  ;;  %v20631_v22 = vld [vmem:[%s25291_s4 + $0x638] sm:$0xff]  }
0x1539   : > { %v8769_v32 = vpop.f32.mrf.mxu1  ;;  %v15281_v20 = vcombine.high %v15269_v33, %v15269_v33 }
0x153a   : > { %19026 = vmatprep.mubr.bf16.mxu0 %v8783_v4  ;;  %v8770_v38 = vadd.f32 %v17429_v45, %v8769_v32  ;;  %v8786_v14 = vpack.c.bf16 %v8778_v36, %v8778_v36  ;;  %v20613_v45 = vld [vmem:[%s25290_s3 + $0x7dc] ss:$0 sps:$4 sm:$0x11]  }
0x153b   : > { %v19009_v21 = vpop.f32.mrf.mxu1  ;;  %19027 = vmatmul.mubr.bf16.vlgmr.msra.gmra.mxu0 %v8784_v52  ;;  %v15280_v52 = vcombine.low %v15269_v33, %v15269_v33 }
0x153c   : > { %19035 = vmatpush3.bf16.msra.mxu0 %v21216_v62 }
0x153d   : > { %19036 = vmatprep.subr.bf16.mxu0 %v21210_v30  ;;  %v8772_v25 = vpop.f32.mrf.mxu1 }
0x153e   : > { %v8773_v31 = vadd.f32 %v17432_v1, %v8772_v25 }
0x1540   : > { %v8785_v10 = vpack.c.bf16 %v8773_v31, %v8770_v38  ;;  %19037 = vmatpush3.bf16.msra.mxu0 %v21210_v30 }
0x1541   : > { %19038 = vmatprep.subr.bf16.mxu0 %v21226_v6 }
0x1542   : > { %19030 = vmatprep.mubr.bf16.mxu0 %v8785_v10 }
0x1543   : > { %19031 = vmatmul.mubr.bf16.gmra.mxu0 %v8786_v14 }
0x1544   : > { %19039 = vmatpush3.bf16.msra.mxu0 %v21226_v6  ;;  %19044 = vmatprep.mubr.msk.bf16.mxu0 %vm953_vm2, %v20607_v41 }
0x1545   : > { %19040 = vmatprep.subr.bf16.mxu0 %v21239_v11 }
0x1548   : > { %19041 = vmatpush3.bf16.msra.mxu0 %v21239_v11 }
0x1549   : > { %19042 = vmatprep.subr.bf16.mxu0 %v21250_v17 }
0x154c   : > { %19043 = vmatpush3.bf16.msra.mxu0 %v21250_v17 }
0x154d   : > { %17521 = vmatprep.subr.bf16.mxu0 %v21111_v42 }
0x154f   : > { %19045 = vmatmul.mubr.msk.bf16.vlgmr.msra.gmra.mxu0 %vm953_vm2, %v20608_v27 }
0x1550   : > { %17522 = vmatpush3.bf16.msra.mxu0 %v21095_v44  ;;  %19048 = vmatprep.mubr.msk.bf16.mxu0 %vm953_vm2, %v20612_v28 }
0x1551   : > { %17523 = vmatprep.subr.bf16.mxu0 %v21115_v48 }
0x1554   : > { %17524 = vmatpush3.bf16.msra.mxu0 %v21091_v34 }
0x1555   : > { %17525 = vmatprep.subr.bf16.mxu0 %v21125_v59 }
0x1557   : > { %19049 = vmatmul.mubr.msk.bf16.gmra.mxu0 %vm953_vm2, %v20613_v45 }
0x1558   : > { %17526 = vmatpush3.bf16.msra.mxu0 %v21087_v24  ;;  %v17476_v24 = vpop.f32.mrf.mxu1 }
0x1559   : > { %17527 = vmatprep.subr.bf16.mxu0 %v21138_v7 }
0x155a   : > { %v17477_v34 = vpop.f32.mrf.mxu1 }
0x155c   : > { %17528 = vmatpush3.bf16.msra.mxu0 %v21083_v15  ;;  %v17479_v44 = vpop.f32.mrf.mxu1  ;;  %v17478_v15 = vadd.f32 %v17477_v34, %v17476_v24 }
0x155d   : > { %17529 = vmatprep.subr.bf16.mxu0 %v21144_v63 }
0x155e   : > { %v17480_v42 = vpop.f32.mrf.mxu1 }
0x1560   : > { %17530 = vmatpush3.bf16.msra.mxu0 %v21076_v5  ;;  %v17482_v48 = vpop.f32.mrf.mxu1 }
0x1561   : > { %17531 = vmatprep.subr.bf16.mxu0 %v21150_v13 }
0x1562   : > { %v17483_v59 = vpop.f32.mrf.mxu1 }
0x1563   : > { %v17484_v5 = vadd.f32 %v17483_v59, %v17482_v48  ;;  %v17481_v48 = vadd.f32 %v17480_v42, %v17479_v44 }
0x1564   : > { %17532 = vmatpush3.bf16.msra.mxu0 %v21069_v58  ;;  %v17485_v7 = vpop.f32.mrf.mxu1 }
0x1565   : > { %17533 = vmatprep.subr.bf16.mxu0 %v21103_v0 }
0x1566   : > { %v17486_v63 = vpop.f32.mrf.mxu1 }
0x1567   : > { %v17487_v24 = vadd.f32 %v17486_v63, %v17485_v7 }
0x1568   : > { %17534 = vmatpush3.bf16.msra.mxu0 %v21065_v49 }
0x1569   : > { %17535 = vmatprep.subr.bf16.mxu0 %v21099_v54 }
0x156c   : > { %17536 = vmatpush3.bf16.msra.mxu0 %v21061_v40  ;;  %v20618_v40 = vld [vmem:[%s25290_s3 + $0x7e4] ss:$12 sps:$4 sm:$0xff]  }
0x156d   : > { %9387 = vmatprep.mubr.bf16.mxu0 %v20618_v40  ;;  %19094 = vmatprep.subr.bf16.mxu0 %v20631_v22 }
0x156f   : > { %v17488_v13 = vpop.f32.mrf.mxu1  ;;  %9388 = vmatmul.mubr.bf16.vlgmr.msra.gmra.mxu0 %v20616_v2 }
0x1570   : > { %9395 = vmatprep.mubr.bf16.mxu0 %v20621_v57  ;;  %19095 = vmatpush3.bf16.msra.mxu0 %v20631_v22  ;;  %v20633_v57 = vld [vmem:[%s25291_s4 + $0x628] sm:$0xff]   ;;  %v20635_v22 = vld [vmem:[%s25291_s4 + $0x618] sm:$0xff]  }
0x1571   : > { %v17489_v58 = vpop.f32.mrf.mxu1 }
0x1572   : > { %v17490_v32 = vadd.f32 %v17489_v58, %v17488_v13 }
0x1573   : > { %v17491_v37 = vpop.f32.mrf.mxu1 }
0x1575   : > { %v17492_v0 = vpop.f32.mrf.mxu1 }
0x1577   : > { %v17494_v49 = vpop.f32.mrf.mxu1  ;;  %9396 = vmatmul.mubr.bf16.gmra.mxu0 %v20619_v16 }
0x1578   : > { %9403 = vmatprep.mubr.bf16.mxu0 %v20624_v55 }
0x1579   : > { %v17495_v54 = vpop.f32.mrf.mxu1 }
0x157a   : > { %v17496_v29 = vadd.f32 %v17495_v54, %v17494_v49 }
0x157b   : > { %v17497_v56 = vpop.f32.mrf.mxu1 }
0x157c   : > { %v17493_v56 = vadd.f32 %v17492_v0, %v17491_v37  ;;  %v25334_v37 = vmov 0.0  }
0x157d   : > { %v17498_v26 = vpop.f32.mrf.mxu1 }
0x157f   : > { %9404 = vmatmul.mubr.bf16.gmra.mxu0 %v20622_v23  ;;  %v20634_v23 = vld [vmem:[%s25291_s4 + $0x620] sm:$0xff]  }
0x1580   : > { %9411 = vmatprep.mubr.bf16.mxu0 %v15281_v20 }
0x1587   : > { %9412 = vmatmul.mubr.bf16.gmra.mxu0 %v15280_v52 }
0x15fb   : > { %v19028_v4 = vpop.f32.mrf.mxu0 }
0x15fc   : > { %v23758_v21 = vadd.f32 %v19028_v4, %v23674_v19 }
0x15fd   : > { %v8886_v1 = vpop.f32.mrf.mxu0 }
0x15fe   : > { %v23761_v36 = vadd.f32 %v8886_v1, %v23677_v53 }
0x15ff   : > { %v19029_v25 = vpop.f32.mrf.mxu0 }
0x1600   : > { %v23764_v38 = vadd.f32 %v19029_v25, %v23680_v18  ;;  %v20636_v25 = vld [vmem:[%s25291_s4 + $0x610] sm:$0xff]  }
0x1601   : > { %v23766_v31 = vpop.f32.mrf.mxu0 }
0x1603   : > { %v19032_v10 = vpop.f32.mrf.mxu0 }
0x1604   : > { %v23769_v41 = vadd.f32 %v19032_v10, %v23685_v35 }
0x1605   : > { %v8902_v14 = vpop.f32.mrf.mxu0 }
0x1606   : > { %v23772_v27 = vadd.f32 %v8902_v14, %v23688_v9 }
0x1607   : > { %v19033_v19 = vpop.f32.mrf.mxu0 }
0x1609   : > { %v23774_v28 = vpop.f32.mrf.mxu0 }
0x160f   : > { %v19046_v45 = vpop.f32.mrf.mxu0 }
0x1610   : > { %v9112_v18 = vadd.f32 %v19046_v45, %v17484_v5  ;;  %v20637_v45 = vld [vmem:[%s25291_s4 + $0x608] sm:$0xff]  }
0x1611   : > { %v9103_v53 = vpop.f32.mrf.mxu0 }
0x1612   : > { %v9104_v58 = vadd.f32 %v17478_v15, %v9103_v53  ;;  %v20625_v15 = vld [vmem:[%s25290_s3 + $0x7e8] ss:$12 sps:$4 sm:$0xff]  }
0x1613   : > { %v19047_v34 = vpop.f32.mrf.mxu0 }
0x1614   : > { %v9115_v59 = vadd.f32 %v19047_v34, %v17487_v24  ;;  %v20638_v34 = vld [vmem:[%s25291_s4 + $0x600] sm:$0xff]  }
0x1615   : > { %v9106_v13 = vpop.f32.mrf.mxu0 }
0x1616   : > { %v9134_v49 = vpack.c.bf16 %v9115_v59, %v9112_v18  ;;  %v9107_v40 = vadd.f32 %v17481_v48, %v9106_v13 }
0x1617   : > { %v19050_v35 = vpop.f32.mrf.mxu0 }
0x1618   : > { %v9133_v54 = vpack.c.bf16 %v9107_v40, %v9104_v58  ;;  %v9128_v26 = vadd.f32 %v19050_v35, %v17496_v29 }
0x1619   : > { %v9119_v2 = vpop.f32.mrf.mxu0 }
0x161a   : > { %19068 = vmatprep.mubr.bf16.mxu1 %v9133_v54  ;;  %v9120_v44 = vadd.f32 %v17490_v32, %v9119_v2  ;;  %v9136_v63 = vpack.c.bf16 %v9128_v26, %v9128_v26 }
0x161b   : > { %v19051_v9 = vpop.f32.mrf.mxu0  ;;  %19069 = vmatmul.mubr.bf16.vlgmr.msra.gmra.mxu1 %v9134_v49 }
0x161c   : > { %19077 = vmatpush3.bf16.msra.mxu1 %v21216_v62  ;;  %v20629_v62 = vld [vmem:[%s25290_s3 + $0x818] ss:$12 sps:$4 sm:$0xff]  }
0x161d   : > { %19078 = vmatprep.subr.bf16.mxu1 %v21210_v30  ;;  %v9122_v7 = vpop.f32.mrf.mxu0 }
0x161e   : > { %v9123_v42 = vadd.f32 %v17493_v56, %v9122_v7 }
0x1620   : > { %v9135_v5 = vpack.c.bf16 %v9123_v42, %v9120_v44  ;;  %19079 = vmatpush3.bf16.msra.mxu1 %v21210_v30  ;;  %v20626_v30 = vld [vmem:[%s25290_s3 + $0x800] ss:$12 sps:$4 sm:$0xff]  }
0x1621   : > { %19080 = vmatprep.subr.bf16.mxu1 %v21226_v6 }
0x1622   : > { %19072 = vmatprep.mubr.bf16.mxu1 %v9135_v5 }
0x1623   : > { %19073 = vmatmul.mubr.bf16.gmra.mxu1 %v9136_v63 }
0x1624   : > { %19081 = vmatpush3.bf16.msra.mxu1 %v21226_v6  ;;  %19086 = vmatprep.mubr.msk.bf16.mxu1 %vm953_vm2, %v20625_v15  ;;  %v20630_v6 = vld [vmem:[%s25290_s3 + $0x830] ss:$0 sps:$4 sm:$0x11]  }
0x1625   : > { %19082 = vmatprep.subr.bf16.mxu1 %v21239_v11 }
0x1628   : > { %19083 = vmatpush3.bf16.msra.mxu1 %v21239_v11 }
0x1629   : > { %19084 = vmatprep.subr.bf16.mxu1 %v21250_v17 }
0x162c   : > { %19085 = vmatpush3.bf16.msra.mxu1 %v21250_v17  ;;  %v20632_v17 = vld [vmem:[%s25291_s4 + $0x630] sm:$0xff]  }
0x162d   : > { %19130 = vmatprep.subr.bf16.mxu1 %v25334_v37  ;;  %19096 = vmatprep.subr.bf16.mxu0 %v20632_v17 }
0x162e   : > { %19097 = vmatpush3.bf16.msra.mxu0 %v20632_v17 }
0x162f   : > { %19087 = vmatmul.mubr.msk.bf16.vlgmr.msra.gmra.mxu1 %vm953_vm2, %v20626_v30  ;;  %v17537_v11 = vpop.f32.mrf.mxu0  ;;  %19098 = vmatprep.subr.bf16.mxu0 %v20633_v57 }
0x1630   : > { %19090 = vmatprep.mubr.msk.bf16.mxu1 %vm953_vm2, %v20629_v62 }
0x1631   : > { %v17538_v0 = vpop.f32.mrf.mxu0 }
0x1632   : > { %v17539_v29 = vadd.f32 %v17538_v0, %v17537_v11  ;;  %19099 = vmatpush3.bf16.msra.mxu0 %v20633_v57 }
0x1633   : > { %v17540_v32 = vpop.f32.mrf.mxu0  ;;  %19100 = vmatprep.subr.bf16.mxu0 %v20634_v23 }
0x1635   : > { %v17541_v16 = vpop.f32.mrf.mxu0 }
0x1636   : > { %19101 = vmatpush3.bf16.msra.mxu0 %v20634_v23  ;;  %v17542_v30 = vadd.f32 %v17541_v16, %v17540_v32  ;;  %v1563_v32 = vadd.f32 %v21548_v3, %v21534_v8  ;;  %v25338_v8 = vld [vmem:[#allocation6_spill] sm:$0xff] }
0x1637   : > { %19091 = vmatmul.mubr.msk.bf16.gmra.mxu1 %vm953_vm2, %v20630_v6  ;;  %v17543_v55 = vpop.f32.mrf.mxu0  ;;  %19102 = vmatprep.subr.bf16.mxu0 %v20635_v22 }
0x1638   : > { %19138 = vmatprep.mubr.msk.bf16.mxu1 %vm20881_vm0, %v25334_v37  ;;  %v1921_v16 = vadd.f32 %v21657_v61, %v1563_v32 }
0x1639   : > { %v17544_v33 = vpop.f32.mrf.mxu0 }
0x163a   : > { %v17545_v52 = vadd.f32 %v17544_v33, %v17543_v55  ;;  %19103 = vmatpush3.bf16.msra.mxu0 %v20635_v22 }
0x163b   : > { %v17546_v20 = vpop.f32.mrf.mxu0  ;;  %19104 = vmatprep.subr.bf16.mxu0 %v20636_v25 }
0x163d   : > { %v17547_v4 = vpop.f32.mrf.mxu0 }
0x163e   : > { %19105 = vmatpush3.bf16.msra.mxu0 %v20636_v25  ;;  %v17548_v15 = vadd.f32 %v17547_v4, %v17546_v20 }
0x163f   : > { %v17549_v1 = vpop.f32.mrf.mxu0  ;;  %19106 = vmatprep.subr.bf16.mxu0 %v20637_v45 }
0x1641   : > { %v17550_v10 = vpop.f32.mrf.mxu0 }
0x1642   : > { %v17551_v19 = vadd.f32 %v17550_v10, %v17549_v1  ;;  %19107 = vmatpush3.bf16.msra.mxu0 %v20637_v45  ;;  %v2271_v10 = vadd.f32 %v21764_v43, %v1921_v16  ;;  %v25335_v45 = vld [vmem:[#allocation2_spill] sm:$0xff] }
0x1643   : > { %v17552_v14 = vpop.f32.mrf.mxu0  ;;  %19108 = vmatprep.subr.bf16.mxu0 %v20638_v34 }
0x1645   : > { %v17553_v53 = vpop.f32.mrf.mxu0 }
0x1646   : > { %19109 = vmatpush3.bf16.msra.mxu0 %v20638_v34  ;;  %v17554_v23 = vadd.f32 %v17553_v53, %v17552_v14 }
0x1647   : > { %v17555_v24 = vpop.f32.mrf.mxu0  ;;  %19118 = vmatprep.subr.bf16.mxu0 %v25334_v37 }
0x1649   : > { %v17556_v48 = vpop.f32.mrf.mxu0 }
0x164a   : > { %v17557_v18 = vadd.f32 %v17556_v48, %v17555_v24  ;;  %v25336_v24 = vld [vmem:[#allocation4_spill] sm:$0xff]  ;;  %v25337_v48 = vld [vmem:[#allocation3_spill] sm:$0xff] }
0x164b   : > { %v17558_v59 = vpop.f32.mrf.mxu0 }
0x164c   : > { %v25339_v59 = vld [vmem:[#allocation5_spill] sm:$0xff] }
0x164d   : > { %v17559_v13 = vpop.f32.mrf.mxu0 }
0x164e   : > { %v25341_v13 = vld [vmem:[#allocation7_spill] sm:$0xff] }
0x16db   : > { %v19070_v58 = vpop.f32.mrf.mxu1 }
0x16dc   : > { %v23827_v49 = vadd.f32 %v19070_v58, %v23758_v21  ;;  %v25342_v58 = vld [vmem:[#allocation10_spill] sm:$0xff] }
0x16dd   : > { %v9236_v40 = vpop.f32.mrf.mxu1 }
0x16de   : > { %v23830_v35 = vadd.f32 %v9236_v40, %v23761_v36  ;;  %v25343_v40 = vld [vmem:[#allocation9_spill] sm:$0xff] }
0x16df   : > { %v19071_v54 = vpop.f32.mrf.mxu1 }
0x16e0   : > { %v23833_v2 = vadd.f32 %v19071_v54, %v23764_v38  ;;  %v25344_v54 = vld [vmem:[#allocation12_spill] sm:$0xff] }
0x16e1   : > { %v23835_v9 = vpop.f32.mrf.mxu1 }
0x16e3   : > { %v19074_v56 = vpop.f32.mrf.mxu1 }
0x16e4   : > { %v23838_v26 = vadd.f32 %v19074_v56, %v23769_v41  ;;  %v25345_v56 = vld [vmem:[#allocation11_spill] sm:$0xff] }
0x16e5   : > { %v9252_v7 = vpop.f32.mrf.mxu1 }
0x16e6   : > { %v23841_v44 = vadd.f32 %v9252_v7, %v23772_v27 }
0x16e7   : > { %v19075_v21 = vpop.f32.mrf.mxu1 }
0x16e8   : > { %v25346_v21 = vld [vmem:[#allocation14_spill] sm:$0xff] }
0x16e9   : > { %v23843_v42 = vpop.f32.mrf.mxu1 }
0x16ef   : > { %v19088_v5 = vpop.f32.mrf.mxu1 }
0x16f0   : > { %v9462_v38 = vadd.f32 %v19088_v5, %v17545_v52 }
0x16f1   : > { %v9453_v36 = vpop.f32.mrf.mxu1 }
0x16f2   : > { %v9454_v11 = vadd.f32 %v17539_v29, %v9453_v36  ;;  %v1547_v29 = vadd.f32 %v21542_v39, %v21532_v46  ;;  %v25340_v39 = vld [vmem:[#allocation8_spill] sm:$0xff]  ;;  %v25347_v36 = vld [vmem:[#allocation13_spill] sm:$0xff] }
0x16f3   : > { %v19089_v63 = vpop.f32.mrf.mxu1 }
0x16f4   : > { %v9465_v62 = vadd.f32 %v19089_v63, %v17548_v15  ;;  %v1917_v52 = vadd.f32 %v21649_v51, %v1547_v29  ;;  %v25348_v63 = vld [vmem:[#allocation16_spill] sm:$0xff]  ;;  %v25358_v29 = vld [vmem:[#allocation26_spill] sm:$0xff] }
0x16f5   : > { %v9456_v6 = vpop.f32.mrf.mxu1 }
0x16f6   : > { %v9484_v17 = vpack.c.bf16 %v9465_v62, %v9462_v38  ;;  %v9457_v0 = vadd.f32 %v17542_v30, %v9456_v6  ;;  %v2267_v14 = vadd.f32 %v21756_v60, %v1917_v52  ;;  %v25349_v38 = vld [vmem:[#allocation15_spill] sm:$0xff]  ;;  %v25350_v6 = vld [vmem:[#allocation18_spill] sm:$0xff]  ;;  %v25359_v52 = vld [vmem:[#allocation25_spill] sm:$0xff] }
0x16f7   : > { %v19092_v41 = vpop.f32.mrf.mxu1 }
0x16f8   : > { %v9483_v57 = vpack.c.bf16 %v9457_v0, %v9454_v11  ;;  %v9478_v33 = vadd.f32 %v19092_v41, %v17557_v18  ;;  %v2617_v53 = vadd.f32 %v25335_v45, %v2267_v14  ;;  %v25352_v41 = vld [vmem:[#allocation20_spill] sm:$0xff] }
0x16f9   : > { %v9469_v55 = vpop.f32.mrf.mxu1  ;;  %v25360_v14 = vld [vmem:[#allocation28_spill] sm:$0xff] }
0x16fa   : > { %19110 = vmatprep.mubr.bf16.mxu0 %v9483_v57  ;;  %v9470_v1 = vadd.f32 %v17551_v19, %v9469_v55  ;;  %v9486_v4 = vpack.c.bf16 %v9478_v33, %v9478_v33  ;;  %v2621_v19 = vadd.f32 %v21871_v47, %v2271_v10  ;;  %v2967_v18 = vadd.f32 %v25337_v48, %v2617_v53  ;;  %v25353_v55 = vld [vmem:[#allocation19_spill] sm:$0xff]  ;;  %v25362_v48 = vld [vmem:[#allocation30_spill] sm:$0xff] }
0x16fb   : > { %v19093_v27 = vpop.f32.mrf.mxu1  ;;  %19111 = vmatmul.mubr.bf16.vlgmr.msra.gmra.mxu0 %v9484_v17  ;;  %v25351_v17 = vld [vmem:[#allocation17_spill] sm:$0xff] }
0x16fc   : > { %v2971_v34 = vadd.f32 %v25336_v24, %v2621_v19  ;;  %v3317_v46 = vadd.f32 %v25339_v59, %v2967_v18  ;;  %v25361_v24 = vld [vmem:[#allocation27_spill] sm:$0xff]  ;;  %v25363_v59 = vld [vmem:[#allocation29_spill] sm:$0xff] }
0x16fd   : > { %v9472_v22 = vpop.f32.mrf.mxu1 }
0x16fe   : > { %v9473_v25 = vadd.f32 %v17554_v23, %v9472_v22  ;;  %v3321_v3 = vadd.f32 %v25338_v8, %v2971_v34  ;;  %v3667_v51 = vadd.f32 %v25341_v13, %v3317_v46  ;;  %v25354_v23 = vld [vmem:[#allocation22_spill] sm:$0xff]  ;;  %v25355_v22 = vld [vmem:[#allocation21_spill] sm:$0xff] }
0x16ff   : > { %v15311_v8 = vld [vmem:[%s25292_s5] ss:$0 sm:$0xff] }
0x1700   : > { %v9485_v20 = vpack.c.bf16 %v9473_v25, %v9470_v1  ;;  %v3671_v61 = vadd.f32 %v25340_v39, %v3321_v3  ;;  %v4017_v60 = vadd.f32 %v25343_v40, %v3667_v51  ;;  %v25356_v25 = vld [vmem:[#allocation24_spill] sm:$0xff] }
0x1701   : > { %v25364_v39 = vld [vmem:[#allocation32_spill] sm:$0xff] }
0x1702   : > { %19114 = vmatprep.mubr.bf16.mxu0 %v9485_v20  ;;  %v4021_v43 = vadd.f32 %v25342_v58, %v3671_v61  ;;  %v4367_v7 = vadd.f32 %v25345_v56, %v4017_v60 }
0x1703   : > { %19115 = vmatmul.mubr.bf16.gmra.mxu0 %v9486_v4  ;;  %v25357_v4 = vld [vmem:[#allocation23_spill] sm:$0xff] }
0x1704   : > { %19126 = vmatprep.mubr.msk.bf16.mxu0 %vm20881_vm0, %v25334_v37  ;;  %v4371_v47 = vadd.f32 %v25344_v54, %v4021_v43  ;;  %v4717_v15 = vadd.f32 %v25347_v36, %v4367_v7  ;;  %v25365_v43 = vld [vmem:[#allocation31_spill] sm:$0xff] }
0x1706   : > { %v4721_v5 = vadd.f32 %v25346_v21, %v4371_v47  ;;  %v5067_v62 = vadd.f32 %v25349_v38, %v4717_v15  ;;  %v25366_v47 = vld [vmem:[#allocation33_spill] sm:$0xff] }
0x1708   : > { %v5071_v30 = vadd.f32 %v25348_v63, %v4721_v5  ;;  %v5417_v0 = vadd.f32 %v25351_v17, %v5067_v62  ;;  %v25367_v63 = vld [vmem:[#allocation34_spill] sm:$0xff] }
0x170a   : > { %v5421_v11 = vadd.f32 %v25350_v6, %v5071_v30  ;;  %v5767_v27 = vadd.f32 %v25353_v55, %v5417_v0 }
0x170c   : > { %v5771_v57 = vadd.f32 %v25352_v41, %v5421_v11  ;;  %v6117_v1 = vadd.f32 %v25355_v22, %v5767_v27  ;;  %v20882_v41 = vmov 0  }
0x170e   : > { %v6121_v33 = vadd.f32 %v25354_v23, %v5771_v57  ;;  %v6467_v32 = vadd.f32 %v25357_v4, %v6117_v1  ;;  %v9655_v57 = vsel %vm9653_vm3, 65535, %v20882_v41  ;;  %v20668_v41 = vld [vmem:[%s25294_s7 + $0xd0] sm:$0xff]  }
0x1710   : > { %v6471_v20 = vadd.f32 %v25356_v25, %v6121_v33  ;;  %v6817_v10 = vadd.f32 %v25359_v52, %v6467_v32  ;;  %v20639_v52 = vld [vmem:[%s25294_s7 + $0x78] sm:$0xff]  }
0x1712   : > { %v6821_v16 = vadd.f32 %v25358_v29, %v6471_v20  ;;  %v7167_v34 = vadd.f32 %v25361_v24, %v6817_v10  ;;  %v15313_v29 = vld [vmem:[%s25293_s6 + $0x2] sm:$0x3]  ;;  %v20641_v10 = vld [vmem:[%s25294_s7 + $0x38] sm:$0xff]  }
0x1713   : > { %v20644_v24 = vld [vmem:[%s25294_s7 + $0x60] sm:$0xff]  }
0x1714   : > { %v7171_v19 = vadd.f32 %v25360_v14, %v6821_v16  ;;  %v7517_v46 = vadd.f32 %v25363_v59, %v7167_v34  ;;  %v9648_v16 = vld [vmem:[%s25293_s6] sm:$0x3]  ;;  %v20640_v14 = vld [vmem:[%s25294_s7 + $0x70] sm:$0xff]   ;;  %v20650_v59 = vld [vmem:[%s25294_s7 + $0x48] sm:$0xff]  }
0x1715   : > { %v20647_v34 = vld [vmem:[%s25294_s7 + $0x20] sm:$0xff]  }
0x1716   : > { %v7521_v18 = vadd.f32 %v25362_v48, %v7171_v19  ;;  %v7867_v40 = vadd.f32 %v25365_v43, %v7517_v46  ;;  %v20643_v19 = vld [vmem:[%s25294_s7 + $0x30] sm:$0xff]   ;;  %v20646_v48 = vld [vmem:[%s25294_s7 + $0x58] sm:$0xff]   ;;  %v20652_v46 = vld [vmem:[%s25294_s7 + $0x40] sm:$0xff]  }
0x1718   : > { %v7871_v61 = vadd.f32 %v25364_v39, %v7521_v18  ;;  %v8217_v56 = vadd.f32 %v25366_v47, %v7867_v40  ;;  %v20649_v18 = vld [vmem:[%s25294_s7 + $0x18] sm:$0xff]   ;;  %v20653_v39 = vld [vmem:[%s25294_s7 + $0x8] sm:$0xff]  }
0x1719   : > { %v20655_v40 = vld [vmem:[%s25294_s7 + $0xb8] sm:$0xff]  }
0x171a   : > { %v8567_v30 = vadd.f32 %v25367_v63, %v8217_v56  ;;  %v20656_v56 = vld [vmem:[%s25294_s7 + $0xb0] sm:$0xff]   ;;  %v15373_v63 = vld [vmem:[%s25293_s6 + $0x6] sm:$0x3] }
0x171c   : > { %v8917_v17 = vadd.f32 %v23766_v31, %v8567_v30  ;;  %v20659_v30 = vld [vmem:[%s25294_s7 + $0x98] sm:$0xff]  }
0x171e   : > { %v9267_v55 = vadd.f32 %v23835_v9, %v8917_v17  ;;  %v20665_v17 = vld [vmem:[%s25294_s7 + $0x80] sm:$0xff]  }
0x17bb   : > { %v19112_v45 = vpop.f32.mrf.mxu0 }
0x17bc   : > { %v9618_v53 = vadd.f32 %v19112_v45, %v23827_v49  ;;  %v8221_v49 = vadd.f32 %v23583_v50, %v7871_v61  ;;  %v20642_v45 = vld [vmem:[%s25294_s7 + $0x68] sm:$0xff]   ;;  %v20654_v61 = vld [vmem:[%s25294_s7] sm:$0xff]  }
0x17bd   : > { %v9586_v3 = vpop.f32.mrf.mxu0 }
0x17be   : > { %v9632_v51 = vadd.f32 %v15311_v8, %v9618_v53  ;;  %v8571_v7 = vadd.f32 %v23690_v12, %v8221_v49  ;;  %v20645_v53 = vld [vmem:[%s25294_s7 + $0x28] sm:$0xff]  }
0x17bf   : > { %v19113_v13 = vpop.f32.mrf.mxu0 }
0x17c0   : > { %v9619_v58 = vadd.f32 %v19113_v13, %v23833_v2  ;;  %v9639_v5 = vmax.f32 %v9632_v51, 0.0  ;;  %v8921_v38 = vadd.f32 %v23774_v28, %v8571_v7 }
0x17c1   : > { %v9589_v60 = vpop.f32.mrf.mxu0 }
0x17c2   : > { %v9633_v54 = vadd.f32 %v15311_v8, %v9619_v58  ;;  %v9271_v12 = vadd.f32 %v23843_v42, %v8921_v38  ;;  %v9617_v33 = vadd.f32 %v9589_v60, %v9267_v55  ;;  %v20660_v38 = vld [vmem:[%s25294_s7 + $0xf8] sm:$0xff]  }
0x17c3   : > { %v19116_v21 = vpop.f32.mrf.mxu0 }
0x17c4   : > { %v9640_v36 = vmax.f32 %v9633_v54, 0.0  ;;  %v9622_v15 = vadd.f32 %v19116_v21, %v23838_v26  ;;  %v9631_v31 = vadd.f32 %v15311_v8, %v9617_v33 }
0x17c5   : > { %v9602_v2 = vpop.f32.mrf.mxu0 }
0x17c6   : > { %v23898_v62 = vpack.c.bf16 %v9640_v36, %v9639_v5  ;;  %v9636_v50 = vadd.f32 %v15311_v8, %v9622_v15  ;;  %v9620_v6 = vadd.f32 %v9602_v2, %v23841_v44  ;;  %v9616_v44 = vadd.f32 %v9586_v3, %v23830_v35  ;;  %v20651_v3 = vld [vmem:[%s25294_s7 + $0x10] sm:$0xff]   ;;  %v20657_v5 = vld [vmem:[%s25294_s7 + $0xa8] sm:$0xff]   ;;  %v20658_v36 = vld [vmem:[%s25294_s7 + $0xa0] sm:$0xff]  }
0x17c7   : > { %v19117_v11 = vpop.f32.mrf.mxu0  ;;  %v9638_v35 = vmax.f32 %v9631_v31, 0.0  ;;  %v15347_v15 = vld [vmem:[%s25293_s6 + $0x4] sm:$0x3]  ;;  %v20661_v2 = vld [vmem:[%s25294_s7 + $0x90] sm:$0xff]  }
0x17c8   : > { %v9643_v0 = vmax.f32 %v9636_v50, 0.0  ;;  %v9634_v28 = vadd.f32 %v15311_v8, %v9620_v6  ;;  %v9630_v42 = vadd.f32 %v15311_v8, %v9616_v44  ;;  %v20662_v50 = vld [vmem:[%s25294_s7 + $0xf0] sm:$0xff]   ;;  %v20663_v6 = vld [vmem:[%s25294_s7 + $0x88] sm:$0xff]  }
0x17c9   : > { %v9605_v26 = vpop.f32.mrf.mxu0  ;;  %v20664_v11 = vld [vmem:[%s25294_s7 + $0xe8] sm:$0xff]  }
0x17ca   : > { %v9647_v27 = vpack.c.bf16 %v9643_v0, %v9643_v0  ;;  %v9621_v23 = vadd.f32 %v9605_v26, %v9271_v12  ;;  %v9641_v25 = vmax.f32 %v9634_v28, 0.0  ;;  %v9637_v4 = vmax.f32 %v9630_v42, 0.0  ;;  %v20666_v12 = vld [vmem:[%s25294_s7 + $0xe0] sm:$0xff]   ;;  %v20667_v0 = vld [vmem:[%s25294_s7 + $0xd8] sm:$0xff]  }
0x17cb   : > { %v20670_v26 = vld [vmem:[%s25294_s7 + $0xc0] sm:$0xff]  }
0x17cc   : > { %v23904_v22 = vand.u32 %v9655_v57, %v9647_v27  ;;  %v9635_v1 = vadd.f32 %v15311_v8, %v9621_v23  ;;  %v23921_v32 = vpack.c.bf16 %v9638_v35, %v9637_v4  ;;  %v20648_v8 = vld [vmem:[%s25294_s7 + $0x50] sm:$0xff]   ;;  %v20669_v57 = vld [vmem:[%s25294_s7 + $0xc8] sm:$0xff]  }
0x17ce   : > { %v9642_v20 = vmax.f32 %v9635_v1, 0.0  ;;  %19119 = vmatpush3.bf16.msra.mxu0 %v23904_v22  ;;  %19131 = vmatpush3.bf16.msra.mxu1 %v23904_v22 }
0x17cf   : > { %19120 = vmatprep.subr.bf16.mxu0 %v25334_v37  ;;  %19132 = vmatprep.subr.bf16.mxu1 %v25334_v37 }
0x17d0   : > { %v23911_v9 = vpack.c.bf16 %v9642_v20, %v9641_v25 }
0x17d2   : > { %19121 = vmatpush3.bf16.msra.mxu0 %v23911_v9  ;;  %19133 = vmatpush3.bf16.msra.mxu1 %v23911_v9 }
0x17d3   : > { %19122 = vmatprep.subr.bf16.mxu0 %v25334_v37  ;;  %19134 = vmatprep.subr.bf16.mxu1 %v25334_v37 }
0x17d6   : > { %19123 = vmatpush3.bf16.msra.mxu0 %v23898_v62  ;;  %19135 = vmatpush3.bf16.msra.mxu1 %v23898_v62 }
0x17d7   : > { %19124 = vmatprep.subr.bf16.mxu0 %v25334_v37  ;;  %19136 = vmatprep.subr.bf16.mxu1 %v25334_v37 }
0x17da   : > { %19125 = vmatpush3.bf16.msra.mxu0 %v23921_v32  ;;  %19137 = vmatpush3.bf16.msra.mxu1 %v23921_v32 }
0x17db   : > { %19142 = vmatprep.subr.bf16.mxu0 %v25334_v37  ;;  %19162 = vmatprep.subr.bf16.mxu1 %v25334_v37 }
0x17dd   : > { %19139 = vmatmul.mubr.msk.bf16.vlgmr.msra.gmra.mxu1 %vm9649_vm4, %v15313_v29  ;;  %19127 = vmatmul.mubr.msk.bf16.vlgmr.msra.gmra.mxu0 %vm9649_vm4, %v9648_v16 }
0x17de   : > { %19143 = vmatpush3.bf16.msra.mxu0 %v20639_v52  ;;  %19163 = vmatpush3.bf16.msra.mxu1 %v20641_v10  ;;  %v15399_v52 = vld [vmem:[%s25293_s6 + $0x8] sm:$0x3] }
0x17df   : > { %19144 = vmatprep.subr.bf16.mxu0 %v25334_v37  ;;  %19164 = vmatprep.subr.bf16.mxu1 %v25334_v37 }
0x17e0   : > { %19158 = vmatprep.mubr.msk.bf16.mxu0 %vm20881_vm0, %v25334_v37  ;;  %19178 = vmatprep.mubr.msk.bf16.mxu1 %vm20881_vm0, %v25334_v37 }
0x17e2   : > { %19145 = vmatpush3.bf16.msra.mxu0 %v20640_v14  ;;  %19165 = vmatpush3.bf16.msra.mxu1 %v20643_v19  ;;  %v20671_v14 = vld [vmem:[%s25294_s7 + $0x138] sm:$0xff]  }
0x17e3   : > { %19146 = vmatprep.subr.bf16.mxu0 %v25334_v37  ;;  %19166 = vmatprep.subr.bf16.mxu1 %v25334_v37 }
0x17e6   : > { %19147 = vmatpush3.bf16.msra.mxu0 %v20642_v45  ;;  %19167 = vmatpush3.bf16.msra.mxu1 %v20645_v53  ;;  %v20672_v53 = vld [vmem:[%s25294_s7 + $0x130] sm:$0xff]  }
0x17e7   : > { %19148 = vmatprep.subr.bf16.mxu0 %v25334_v37  ;;  %19168 = vmatprep.subr.bf16.mxu1 %v25334_v37 }
0x17ea   : > { %19149 = vmatpush3.bf16.msra.mxu0 %v20644_v24  ;;  %19169 = vmatpush3.bf16.msra.mxu1 %v20647_v34  ;;  %v20673_v34 = vld [vmem:[%s25294_s7 + $0x128] sm:$0xff]  }
0x17eb   : > { %19150 = vmatprep.subr.bf16.mxu0 %v25334_v37  ;;  %19170 = vmatprep.subr.bf16.mxu1 %v25334_v37 }
0x17ee   : > { %19151 = vmatpush3.bf16.msra.mxu0 %v20646_v48  ;;  %19171 = vmatpush3.bf16.msra.mxu1 %v20649_v18  ;;  %v20674_v48 = vld [vmem:[%s25294_s7 + $0x120] sm:$0xff]   ;;  %v15425_v18 = vld [vmem:[%s25293_s6 + $0xa] sm:$0x3] }
0x17ef   : > { %19152 = vmatprep.subr.bf16.mxu0 %v25334_v37  ;;  %19172 = vmatprep.subr.bf16.mxu1 %v25334_v37 }
0x17f2   : > { %19153 = vmatpush3.bf16.msra.mxu0 %v20648_v8  ;;  %19173 = vmatpush3.bf16.msra.mxu1 %v20651_v3  ;;  %v20675_v8 = vld [vmem:[%s25294_s7 + $0x118] sm:$0xff]  }
0x17f3   : > { %19154 = vmatprep.subr.bf16.mxu0 %v25334_v37  ;;  %19174 = vmatprep.subr.bf16.mxu1 %v25334_v37  ;;  %v20676_v3 = vld [vmem:[%s25294_s7 + $0x178] sm:$0xff]  }
0x17f6   : > { %19155 = vmatpush3.bf16.msra.mxu0 %v20650_v59  ;;  %19175 = vmatpush3.bf16.msra.mxu1 %v20653_v39  ;;  %v20677_v59 = vld [vmem:[%s25294_s7 + $0x110] sm:$0xff]   ;;  %v20679_v39 = vld [vmem:[%s25294_s7 + $0x108] sm:$0xff]  }
0x17f7   : > { %19156 = vmatprep.subr.bf16.mxu0 %v25334_v37  ;;  %19176 = vmatprep.subr.bf16.mxu1 %v25334_v37 }
0x17fa   : > { %19157 = vmatpush3.bf16.msra.mxu0 %v20652_v46  ;;  %19177 = vmatpush3.bf16.msra.mxu1 %v20654_v61  ;;  %v20678_v46 = vld [vmem:[%s25294_s7 + $0x170] sm:$0xff]   ;;  %v20680_v61 = vld [vmem:[%s25294_s7 + $0x168] sm:$0xff]  }
0x17fb   : > { %19182 = vmatprep.subr.bf16.mxu0 %v25334_v37  ;;  %19194 = vmatprep.subr.bf16.mxu1 %v25334_v37 }
0x189d   : > { %v9755_v13 = vpop.f32.mrf.mxu1  ;;  %v9693_v51 = vpop.f32.mrf.mxu0 }
0x189e   : > { %v9761_v58 = vpack.c.bf16 %v9755_v13, %v9755_v13  ;;  %v9699_v43 = vpack.c.bf16 %v9693_v51, %v9693_v51  ;;  %v20681_v13 = vld [vmem:[%s25294_s7 + $0x100] sm:$0xff]  }
0x189f   : > { %v19140_v49 = vpop.f32.mrf.mxu1  ;;  %v19128_v60 = vpop.f32.mrf.mxu0  ;;  %v20682_v51 = vld [vmem:[%s25294_s7 + $0x160] sm:$0xff]  }
0x18a0   : > { %19159 = vmatmul.mubr.bf16.vlgmr.msra.gmra.mxu0 %v9761_v58  ;;  %19179 = vmatmul.mubr.bf16.vlgmr.msra.gmra.mxu1 %v9699_v43  ;;  %v20683_v58 = vld [vmem:[%s25294_s7 + $0x158] sm:$0xff]   ;;  %v20684_v43 = vld [vmem:[%s25294_s7 + $0x150] sm:$0xff]   ;;  %v20686_v49 = vld [vmem:[%s25294_s7 + $0x140] sm:$0xff]  }
0x18a1   : > { %19183 = vmatpush3.bf16.msra.mxu0 %v23904_v22  ;;  %v9758_v54 = vpop.f32.mrf.mxu1  ;;  %19190 = vmatprep.mubr.msk.bf16.mxu0 %vm20881_vm0, %v25334_v37  ;;  %v9696_v47 = vpop.f32.mrf.mxu0 }
0x18a2   : > { %19184 = vmatprep.subr.bf16.mxu0 %v25334_v37  ;;  %19195 = vmatpush3.bf16.msra.mxu1 %v20655_v40  ;;  %v20685_v40 = vld [vmem:[%s25294_s7 + $0x148] sm:$0xff]  }
0x18a3   : > { %v19141_v7 = vpop.f32.mrf.mxu1  ;;  %v19129_v21 = vpop.f32.mrf.mxu0  ;;  %19196 = vmatprep.subr.bf16.mxu1 %v25334_v37  ;;  %19210 = vmatprep.mubr.msk.bf16.mxu1 %vm20881_vm0, %v25334_v37 }
0x18a5   : > { %19185 = vmatpush3.bf16.msra.mxu0 %v23911_v9 }
0x18a6   : > { %19186 = vmatprep.subr.bf16.mxu0 %v25334_v37  ;;  %19197 = vmatpush3.bf16.msra.mxu1 %v20656_v56 }
0x18a7   : > { %19198 = vmatprep.subr.bf16.mxu1 %v25334_v37 }
0x18a9   : > { %19187 = vmatpush3.bf16.msra.mxu0 %v23898_v62 }
0x18aa   : > { %19188 = vmatprep.subr.bf16.mxu0 %v25334_v37  ;;  %19199 = vmatpush3.bf16.msra.mxu1 %v20657_v5 }
0x18ab   : > { %19200 = vmatprep.subr.bf16.mxu1 %v25334_v37 }
0x18ad   : > { %19189 = vmatpush3.bf16.msra.mxu0 %v23921_v32 }
0x18ae   : > { %19214 = vmatprep.subr.bf16.mxu0 %v25334_v37  ;;  %19201 = vmatpush3.bf16.msra.mxu1 %v20658_v36 }
0x18af   : > { %19202 = vmatprep.subr.bf16.mxu1 %v25334_v37 }
0x18b0   : > { %19191 = vmatmul.mubr.msk.bf16.vlgmr.msra.gmra.mxu0 %vm9649_vm4, %v15347_v15 }
0x18b1   : > { %19215 = vmatpush3.bf16.msra.mxu0 %v23904_v22  ;;  %19222 = vmatprep.mubr.msk.bf16.mxu0 %vm20881_vm0, %v25334_v37 }
0x18b2   : > { %19216 = vmatprep.subr.bf16.mxu0 %v25334_v37  ;;  %19203 = vmatpush3.bf16.msra.mxu1 %v20659_v30 }
0x18b3   : > { %19204 = vmatprep.subr.bf16.mxu1 %v25334_v37 }
0x18b5   : > { %19217 = vmatpush3.bf16.msra.mxu0 %v23911_v9 }
0x18b6   : > { %19218 = vmatprep.subr.bf16.mxu0 %v25334_v37  ;;  %19205 = vmatpush3.bf16.msra.mxu1 %v20661_v2 }
0x18b7   : > { %19206 = vmatprep.subr.bf16.mxu1 %v25334_v37 }
0x18b9   : > { %19219 = vmatpush3.bf16.msra.mxu0 %v23898_v62 }
0x18ba   : > { %19220 = vmatprep.subr.bf16.mxu0 %v25334_v37  ;;  %19207 = vmatpush3.bf16.msra.mxu1 %v20663_v6 }
0x18bb   : > { %19208 = vmatprep.subr.bf16.mxu1 %v25334_v37 }
0x18bd   : > { %19221 = vmatpush3.bf16.msra.mxu0 %v23921_v32 }
0x18be   : > { %19226 = vmatprep.subr.bf16.mxu0 %v25334_v37  ;;  %19209 = vmatpush3.bf16.msra.mxu1 %v20665_v17  ;;  %v15451_v17 = vld [vmem:[%s25293_s6 + $0xc] sm:$0x3] }
0x18bf   : > { %19246 = vmatprep.subr.bf16.mxu1 %v25334_v37 }
0x18c0   : > { %19223 = vmatmul.mubr.msk.bf16.vlgmr.msra.gmra.mxu0 %vm9649_vm4, %v15373_v63 }
0x18c1   : > { %19242 = vmatprep.mubr.msk.bf16.mxu0 %vm20881_vm0, %v25334_v37  ;;  %19227 = vmatpush3.bf16.msra.mxu0 %v20660_v38 }
0x18c2   : > { %19228 = vmatprep.subr.bf16.mxu0 %v25334_v37 }
0x18c5   : > { %19229 = vmatpush3.bf16.msra.mxu0 %v20662_v50 }
0x18c6   : > { %19230 = vmatprep.subr.bf16.mxu0 %v25334_v37 }
0x18c9   : > { %19231 = vmatpush3.bf16.msra.mxu0 %v20664_v11 }
0x18ca   : > { %19232 = vmatprep.subr.bf16.mxu0 %v25334_v37 }
0x18cd   : > { %19233 = vmatpush3.bf16.msra.mxu0 %v20666_v12 }
0x18ce   : > { %19234 = vmatprep.subr.bf16.mxu0 %v25334_v37 }
0x18d1   : > { %19235 = vmatpush3.bf16.msra.mxu0 %v20667_v0  ;;  %v20687_v0 = vld [vmem:[%s25294_s7 + $0x1b8] sm:$0xff]  }
0x18d2   : > { %19236 = vmatprep.subr.bf16.mxu0 %v25334_v37 }
0x18d5   : > { %19237 = vmatpush3.bf16.msra.mxu0 %v20668_v41 }
0x18d6   : > { %19238 = vmatprep.subr.bf16.mxu0 %v25334_v37 }
0x18d9   : > { %19239 = vmatpush3.bf16.msra.mxu0 %v20669_v57 }
0x18da   : > { %19240 = vmatprep.subr.bf16.mxu0 %v25334_v37 }
0x18dd   : > { %19241 = vmatpush3.bf16.msra.mxu0 %v20670_v26  ;;  %v20688_v26 = vld [vmem:[%s25294_s7 + $0x1b0] sm:$0xff]  }
0x18de   : > { %19278 = vmatprep.subr.bf16.mxu0 %v25334_v37 }
0x1960   : > { %v9861_v55 = vpop.f32.mrf.mxu0  ;;  %v9949_v27 = vpop.f32.mrf.mxu1 }
0x1961   : > { %v24099_v28 = vadd.f32 %v9949_v27, %v9861_v55  ;;  %v20689_v27 = vld [vmem:[%s25294_s7 + $0x1a8] sm:$0xff]  }
0x1962   : > { %v19160_v23 = vpop.f32.mrf.mxu0  ;;  %v19180_v33 = vpop.f32.mrf.mxu1 }
0x1963   : > { %v15477_v23 = vld [vmem:[%s25293_s6 + $0xe] sm:$0x3]  ;;  %v20691_v33 = vld [vmem:[%s25294_s7 + $0x198] sm:$0xff]  }
0x1964   : > { %v9864_v1 = vpop.f32.mrf.mxu0  ;;  %v9952_v44 = vpop.f32.mrf.mxu1 }
0x1965   : > { %v20692_v1 = vld [vmem:[%s25294_s7 + $0x1f8] sm:$0xff]   ;;  %v20693_v44 = vld [vmem:[%s25294_s7 + $0x190] sm:$0xff]  }
0x1966   : > { %v19161_v25 = vpop.f32.mrf.mxu0  ;;  %v19181_v20 = vpop.f32.mrf.mxu1 }
0x1967   : > { %v20694_v25 = vld [vmem:[%s25294_s7 + $0x1f0] sm:$0xff]   ;;  %v20695_v20 = vld [vmem:[%s25294_s7 + $0x188] sm:$0xff]  }
0x1970   : > { %v9994_v31 = vpop.f32.mrf.mxu0 }
0x1971   : > { %v10000_v42 = vpack.c.bf16 %v9994_v31, %v9994_v31  ;;  %v20696_v31 = vld [vmem:[%s25294_s7 + $0x1e8] sm:$0xff]  }
0x1972   : > { %v19192_v35 = vpop.f32.mrf.mxu0 }
0x1973   : > { %19211 = vmatmul.mubr.bf16.vlgmr.msra.gmra.mxu1 %v10000_v42  ;;  %v20697_v42 = vld [vmem:[%s25294_s7 + $0x180] sm:$0xff]  }
0x1974   : > { %19247 = vmatpush3.bf16.msra.mxu1 %v23904_v22  ;;  %v9997_v4 = vpop.f32.mrf.mxu0  ;;  %19254 = vmatprep.mubr.msk.bf16.mxu1 %vm20881_vm0, %v25334_v37  ;;  %v20698_v35 = vld [vmem:[%s25294_s7 + $0x1e0] sm:$0xff]  }
0x1975   : > { %19248 = vmatprep.subr.bf16.mxu1 %v25334_v37  ;;  %v20699_v4 = vld [vmem:[%s25294_s7 + $0x1d8] sm:$0xff]  }
0x1976   : > { %v19193_v29 = vpop.f32.mrf.mxu0 }
0x1977   : > { %v20700_v29 = vld [vmem:[%s25294_s7 + $0x1d0] sm:$0xff]  }
0x1978   : > { %19249 = vmatpush3.bf16.msra.mxu1 %v23911_v9 }
0x1979   : > { %19250 = vmatprep.subr.bf16.mxu1 %v25334_v37 }
0x197c   : > { %19251 = vmatpush3.bf16.msra.mxu1 %v23898_v62 }
0x197d   : > { %19252 = vmatprep.subr.bf16.mxu1 %v25334_v37 }
0x1980   : > { %19253 = vmatpush3.bf16.msra.mxu1 %v23921_v32  ;;  %v10146_v16 = vpop.f32.mrf.mxu0 }
0x1981   : > { %v10152_v10 = vpack.c.bf16 %v10146_v16, %v10146_v16  ;;  %19258 = vmatprep.subr.bf16.mxu1 %v25334_v37  ;;  %v20701_v16 = vld [vmem:[%s25294_s7 + $0x1c8] sm:$0xff]  }
0x1982   : > { %v19224_v19 = vpop.f32.mrf.mxu0 }
0x1983   : > { %19255 = vmatmul.mubr.msk.bf16.vlgmr.msra.gmra.mxu1 %vm9649_vm4, %v15399_v52  ;;  %19243 = vmatmul.mubr.bf16.vlgmr.msra.gmra.mxu0 %v10152_v10  ;;  %v20702_v52 = vld [vmem:[%s25294_s7 + $0x1c0] sm:$0xff]  }
0x1984   : > { %19279 = vmatpush3.bf16.msra.mxu0 %v23904_v22  ;;  %19286 = vmatprep.mubr.msk.bf16.mxu0 %vm20881_vm0, %v25334_v37  ;;  %v10149_v45 = vpop.f32.mrf.mxu0 }
0x1985   : > { %19280 = vmatprep.subr.bf16.mxu0 %v25334_v37  ;;  %19259 = vmatpush3.bf16.msra.mxu1 %v20671_v14 }
0x1986   : > { %19260 = vmatprep.subr.bf16.mxu1 %v25334_v37  ;;  %v19225_v24 = vpop.f32.mrf.mxu0  ;;  %19274 = vmatprep.mubr.msk.bf16.mxu1 %vm20881_vm0, %v25334_v37 }
0x1988   : > { %19281 = vmatpush3.bf16.msra.mxu0 %v23911_v9 }
0x1989   : > { %19282 = vmatprep.subr.bf16.mxu0 %v25334_v37  ;;  %19261 = vmatpush3.bf16.msra.mxu1 %v20672_v53 }
0x198a   : > { %19262 = vmatprep.subr.bf16.mxu1 %v25334_v37 }
0x198c   : > { %19283 = vmatpush3.bf16.msra.mxu0 %v23898_v62 }
0x198d   : > { %19284 = vmatprep.subr.bf16.mxu0 %v25334_v37  ;;  %19263 = vmatpush3.bf16.msra.mxu1 %v20673_v34 }
0x198e   : > { %19264 = vmatprep.subr.bf16.mxu1 %v25334_v37 }
0x1990   : > { %19285 = vmatpush3.bf16.msra.mxu0 %v23921_v32 }
0x1991   : > { %19265 = vmatpush3.bf16.msra.mxu1 %v20674_v48  ;;  %19290 = vmatprep.subr.bf16.mxu0 %v25334_v37 }
0x1992   : > { %19266 = vmatprep.subr.bf16.mxu1 %v25334_v37 }
0x1993   : > { %19287 = vmatmul.mubr.msk.bf16.vlgmr.msra.gmra.mxu0 %vm9649_vm4, %v15425_v18 }
0x1994   : > { %19306 = vmatprep.mubr.msk.bf16.mxu0 %vm20881_vm0, %v25334_v37  ;;  %19291 = vmatpush3.bf16.msra.mxu0 %v20676_v3 }
0x1995   : > { %19267 = vmatpush3.bf16.msra.mxu1 %v20675_v8  ;;  %19292 = vmatprep.subr.bf16.mxu0 %v25334_v37 }
0x1996   : > { %19268 = vmatprep.subr.bf16.mxu1 %v25334_v37 }
0x1998   : > { %19293 = vmatpush3.bf16.msra.mxu0 %v20678_v46 }
0x1999   : > { %19269 = vmatpush3.bf16.msra.mxu1 %v20677_v59  ;;  %19294 = vmatprep.subr.bf16.mxu0 %v25334_v37 }
0x199a   : > { %19270 = vmatprep.subr.bf16.mxu1 %v25334_v37 }
0x199c   : > { %19295 = vmatpush3.bf16.msra.mxu0 %v20680_v61 }
0x199d   : > { %19271 = vmatpush3.bf16.msra.mxu1 %v20679_v39  ;;  %19296 = vmatprep.subr.bf16.mxu0 %v25334_v37 }
0x199e   : > { %19272 = vmatprep.subr.bf16.mxu1 %v25334_v37 }
0x19a0   : > { %19297 = vmatpush3.bf16.msra.mxu0 %v20682_v51  ;;  %v15503_v51 = vld [vmem:[%s25293_s6 + $0x10] sm:$0x3] }
0x19a1   : > { %19273 = vmatpush3.bf16.msra.mxu1 %v20681_v13  ;;  %19298 = vmatprep.subr.bf16.mxu0 %v25334_v37 }
0x19a2   : > { %19310 = vmatprep.subr.bf16.mxu1 %v25334_v37 }
0x19a4   : > { %19299 = vmatpush3.bf16.msra.mxu0 %v20683_v58 }
0x19a5   : > { %19300 = vmatprep.subr.bf16.mxu0 %v25334_v37 }
0x19a8   : > { %19301 = vmatpush3.bf16.msra.mxu0 %v20684_v43  ;;  %v20703_v43 = vld [vmem:[%s25294_s7 + $0x238] sm:$0xff]  }
0x19a9   : > { %19302 = vmatprep.subr.bf16.mxu0 %v25334_v37 }
0x19ac   : > { %19303 = vmatpush3.bf16.msra.mxu0 %v20685_v40 }
0x19ad   : > { %19304 = vmatprep.subr.bf16.mxu0 %v25334_v37 }
0x19b0   : > { %19305 = vmatpush3.bf16.msra.mxu0 %v20686_v49 }
0x19b1   : > { %19342 = vmatprep.subr.bf16.mxu0 %v25334_v37 }
0x1a33   : > { %v10100_v60 = vpop.f32.mrf.mxu1 }
0x1a34   : > { %v10106_v54 = vadd.f32 %v10100_v60, %v24099_v28  ;;  %v20690_v28 = vld [vmem:[%s25294_s7 + $0x1a0] sm:$0xff]   ;;  %v20704_v60 = vld [vmem:[%s25294_s7 + $0x230] sm:$0xff]  }
0x1a35   : > { %v19212_v47 = vpop.f32.mrf.mxu1 }
0x1a36   : > { %v20705_v47 = vld [vmem:[%s25294_s7 + $0x228] sm:$0xff]  }
0x1a37   : > { %v10103_v56 = vpop.f32.mrf.mxu1 }
0x1a38   : > { %v20706_v56 = vld [vmem:[%s25294_s7 + $0x220] sm:$0xff]  }
0x1a39   : > { %v19213_v7 = vpop.f32.mrf.mxu1 }
0x1a3a   : > { %v15529_v7 = vld [vmem:[%s25293_s6 + $0x12] sm:$0x3] }
0x1a43   : > { %v10298_v21 = vpop.f32.mrf.mxu1  ;;  %v10252_v5 = vpop.f32.mrf.mxu0 }
0x1a44   : > { %v10304_v36 = vpack.c.bf16 %v10298_v21, %v10298_v21  ;;  %v24198_v15 = vadd.f32 %v10252_v5, %v10106_v54  ;;  %v20707_v21 = vld [vmem:[%s25294_s7 + $0x218] sm:$0xff]  }
0x1a45   : > { %v19256_v63 = vpop.f32.mrf.mxu1  ;;  %v19244_v30 = vpop.f32.mrf.mxu0  ;;  %v20708_v5 = vld [vmem:[%s25294_s7 + $0x278] sm:$0xff]  }
0x1a46   : > { %19275 = vmatmul.mubr.bf16.vlgmr.msra.gmra.mxu1 %v10304_v36  ;;  %v20709_v36 = vld [vmem:[%s25294_s7 + $0x210] sm:$0xff]   ;;  %v20711_v63 = vld [vmem:[%s25294_s7 + $0x208] sm:$0xff]  }
0x1a47   : > { %19311 = vmatpush3.bf16.msra.mxu1 %v23904_v22  ;;  %v10301_v38 = vpop.f32.mrf.mxu1  ;;  %v10255_v2 = vpop.f32.mrf.mxu0  ;;  %19318 = vmatprep.mubr.msk.bf16.mxu1 %vm20881_vm0, %v25334_v37  ;;  %v20712_v30 = vld [vmem:[%s25294_s7 + $0x268] sm:$0xff]  }
0x1a48   : > { %19312 = vmatprep.subr.bf16.mxu1 %v25334_v37  ;;  %v20713_v38 = vld [vmem:[%s25294_s7 + $0x200] sm:$0xff]  }
0x1a49   : > { %v19257_v50 = vpop.f32.mrf.mxu1  ;;  %v19245_v6 = vpop.f32.mrf.mxu0  ;;  %v20714_v2 = vld [vmem:[%s25294_s7 + $0x260] sm:$0xff]  }
0x1a4a   : > { %v20715_v50 = vld [vmem:[%s25294_s7 + $0x258] sm:$0xff]   ;;  %v20716_v6 = vld [vmem:[%s25294_s7 + $0x250] sm:$0xff]  }
0x1a4b   : > { %19313 = vmatpush3.bf16.msra.mxu1 %v23911_v9 }
0x1a4c   : > { %19314 = vmatprep.subr.bf16.mxu1 %v25334_v37 }
0x1a4f   : > { %19315 = vmatpush3.bf16.msra.mxu1 %v23898_v62 }
0x1a50   : > { %19316 = vmatprep.subr.bf16.mxu1 %v25334_v37 }
0x1a53   : > { %19317 = vmatpush3.bf16.msra.mxu1 %v23921_v32  ;;  %v10450_v11 = vpop.f32.mrf.mxu0 }
0x1a54   : > { %v10456_v12 = vpack.c.bf16 %v10450_v11, %v10450_v11  ;;  %19322 = vmatprep.subr.bf16.mxu1 %v25334_v37  ;;  %v20717_v11 = vld [vmem:[%s25294_s7 + $0x248] sm:$0xff]  }
0x1a55   : > { %v19288_v41 = vpop.f32.mrf.mxu0 }
0x1a56   : > { %19319 = vmatmul.mubr.msk.bf16.vlgmr.msra.gmra.mxu1 %vm9649_vm4, %v15451_v17  ;;  %19307 = vmatmul.mubr.bf16.vlgmr.msra.gmra.mxu0 %v10456_v12  ;;  %v20718_v17 = vld [vmem:[%s25294_s7 + $0x240] sm:$0xff]  }
0x1a57   : > { %19343 = vmatpush3.bf16.msra.mxu0 %v23904_v22  ;;  %19350 = vmatprep.mubr.msk.bf16.mxu0 %vm20881_vm0, %v25334_v37  ;;  %v10453_v57 = vpop.f32.mrf.mxu0 }
0x1a58   : > { %19344 = vmatprep.subr.bf16.mxu0 %v25334_v37  ;;  %19323 = vmatpush3.bf16.msra.mxu1 %v20687_v0 }
0x1a59   : > { %19324 = vmatprep.subr.bf16.mxu1 %v25334_v37  ;;  %v19289_v55 = vpop.f32.mrf.mxu0  ;;  %19338 = vmatprep.mubr.msk.bf16.mxu1 %vm20881_vm0, %v25334_v37 }
0x1a5b   : > { %19345 = vmatpush3.bf16.msra.mxu0 %v23911_v9 }
0x1a5c   : > { %19346 = vmatprep.subr.bf16.mxu0 %v25334_v37  ;;  %19325 = vmatpush3.bf16.msra.mxu1 %v20688_v26 }
0x1a5d   : > { %19326 = vmatprep.subr.bf16.mxu1 %v25334_v37 }
0x1a5f   : > { %19347 = vmatpush3.bf16.msra.mxu0 %v23898_v62 }
0x1a60   : > { %19348 = vmatprep.subr.bf16.mxu0 %v25334_v37  ;;  %19327 = vmatpush3.bf16.msra.mxu1 %v20689_v27 }
0x1a61   : > { %19328 = vmatprep.subr.bf16.mxu1 %v25334_v37 }
0x1a63   : > { %19349 = vmatpush3.bf16.msra.mxu0 %v23921_v32 }
0x1a64   : > { %19329 = vmatpush3.bf16.msra.mxu1 %v20690_v28  ;;  %19354 = vmatprep.subr.bf16.mxu0 %v25334_v37 }
0x1a65   : > { %19330 = vmatprep.subr.bf16.mxu1 %v25334_v37 }
0x1a66   : > { %19351 = vmatmul.mubr.msk.bf16.vlgmr.msra.gmra.mxu0 %vm9649_vm4, %v15477_v23 }
0x1a67   : > { %19370 = vmatprep.mubr.msk.bf16.mxu0 %vm20881_vm0, %v25334_v37  ;;  %19355 = vmatpush3.bf16.msra.mxu0 %v20692_v1 }
0x1a68   : > { %19331 = vmatpush3.bf16.msra.mxu1 %v20691_v33  ;;  %19356 = vmatprep.subr.bf16.mxu0 %v25334_v37 }
0x1a69   : > { %19332 = vmatprep.subr.bf16.mxu1 %v25334_v37 }
0x1a6b   : > { %19357 = vmatpush3.bf16.msra.mxu0 %v20694_v25 }
0x1a6c   : > { %19333 = vmatpush3.bf16.msra.mxu1 %v20693_v44  ;;  %19358 = vmatprep.subr.bf16.mxu0 %v25334_v37 }
0x1a6d   : > { %19334 = vmatprep.subr.bf16.mxu1 %v25334_v37 }
0x1a6f   : > { %19359 = vmatpush3.bf16.msra.mxu0 %v20696_v31 }
0x1a70   : > { %19335 = vmatpush3.bf16.msra.mxu1 %v20695_v20  ;;  %19360 = vmatprep.subr.bf16.mxu0 %v25334_v37 }
0x1a71   : > { %19336 = vmatprep.subr.bf16.mxu1 %v25334_v37 }
0x1a73   : > { %19361 = vmatpush3.bf16.msra.mxu0 %v20698_v35  ;;  %v15555_v35 = vld [vmem:[%s25293_s6 + $0x14] sm:$0x3] }
0x1a74   : > { %19337 = vmatpush3.bf16.msra.mxu1 %v20697_v42  ;;  %19362 = vmatprep.subr.bf16.mxu0 %v25334_v37 }
0x1a75   : > { %19374 = vmatprep.subr.bf16.mxu1 %v25334_v37 }
0x1a77   : > { %19363 = vmatpush3.bf16.msra.mxu0 %v20699_v4 }
0x1a78   : > { %19364 = vmatprep.subr.bf16.mxu0 %v25334_v37 }
0x1a7b   : > { %19365 = vmatpush3.bf16.msra.mxu0 %v20700_v29  ;;  %v20719_v29 = vld [vmem:[%s25294_s7 + $0x2b8] sm:$0xff]  }
0x1a7c   : > { %19366 = vmatprep.subr.bf16.mxu0 %v25334_v37 }
0x1a7f   : > { %19367 = vmatpush3.bf16.msra.mxu0 %v20701_v16 }
0x1a80   : > { %19368 = vmatprep.subr.bf16.mxu0 %v25334_v37 }
0x1a83   : > { %19369 = vmatpush3.bf16.msra.mxu0 %v20702_v52 }
0x1a84   : > { %19406 = vmatprep.subr.bf16.mxu0 %v25334_v37 }
0x1b06   : > { %v10404_v10 = vpop.f32.mrf.mxu1 }
0x1b07   : > { %v10410_v14 = vadd.f32 %v10404_v10, %v24198_v15  ;;  %v20710_v15 = vld [vmem:[%s25294_s7 + $0x270] sm:$0xff]  }
0x1b08   : > { %v19276_v19 = vpop.f32.mrf.mxu1  ;;  %v20720_v10 = vld [vmem:[%s25294_s7 + $0x2b0] sm:$0xff]  }
0x1b09   : > { %v20721_v19 = vld [vmem:[%s25294_s7 + $0x2a8] sm:$0xff]  }
0x1b0a   : > { %v10407_v45 = vpop.f32.mrf.mxu1 }
0x1b0b   : > { %v20722_v45 = vld [vmem:[%s25294_s7 + $0x2a0] sm:$0xff]  }
0x1b0c   : > { %v19277_v53 = vpop.f32.mrf.mxu1 }
0x1b0d   : > { %v15581_v53 = vld [vmem:[%s25293_s6 + $0x16] sm:$0x3] }
0x1b16   : > { %v10602_v24 = vpop.f32.mrf.mxu1  ;;  %v10556_v34 = vpop.f32.mrf.mxu0 }
0x1b17   : > { %v10608_v48 = vpack.c.bf16 %v10602_v24, %v10602_v24  ;;  %v24297_v18 = vadd.f32 %v10556_v34, %v10410_v14  ;;  %v20723_v24 = vld [vmem:[%s25294_s7 + $0x298] sm:$0xff]  }
0x1b18   : > { %v19320_v8 = vpop.f32.mrf.mxu1  ;;  %v19308_v3 = vpop.f32.mrf.mxu0  ;;  %v20724_v34 = vld [vmem:[%s25294_s7 + $0x2f8] sm:$0xff]  }
0x1b19   : > { %19339 = vmatmul.mubr.bf16.vlgmr.msra.gmra.mxu1 %v10608_v48  ;;  %v20725_v48 = vld [vmem:[%s25294_s7 + $0x290] sm:$0xff]   ;;  %v20727_v8 = vld [vmem:[%s25294_s7 + $0x288] sm:$0xff]  }
0x1b1a   : > { %19375 = vmatpush3.bf16.msra.mxu1 %v23904_v22  ;;  %v10605_v59 = vpop.f32.mrf.mxu1  ;;  %v10559_v46 = vpop.f32.mrf.mxu0  ;;  %19382 = vmatprep.mubr.msk.bf16.mxu1 %vm20881_vm0, %v25334_v37  ;;  %v20728_v3 = vld [vmem:[%s25294_s7 + $0x2e8] sm:$0xff]  }
0x1b1b   : > { %19376 = vmatprep.subr.bf16.mxu1 %v25334_v37  ;;  %v20729_v59 = vld [vmem:[%s25294_s7 + $0x280] sm:$0xff]  }
0x1b1c   : > { %v19321_v39 = vpop.f32.mrf.mxu1  ;;  %v19309_v61 = vpop.f32.mrf.mxu0  ;;  %v20730_v46 = vld [vmem:[%s25294_s7 + $0x2e0] sm:$0xff]  }
0x1b1d   : > { %v20731_v39 = vld [vmem:[%s25294_s7 + $0x2d8] sm:$0xff]   ;;  %v20732_v61 = vld [vmem:[%s25294_s7 + $0x2d0] sm:$0xff]  }
0x1b1e   : > { %19377 = vmatpush3.bf16.msra.mxu1 %v23911_v9 }
0x1b1f   : > { %19378 = vmatprep.subr.bf16.mxu1 %v25334_v37 }
0x1b22   : > { %19379 = vmatpush3.bf16.msra.mxu1 %v23898_v62 }
0x1b23   : > { %19380 = vmatprep.subr.bf16.mxu1 %v25334_v37 }
0x1b26   : > { %19381 = vmatpush3.bf16.msra.mxu1 %v23921_v32  ;;  %v10754_v13 = vpop.f32.mrf.mxu0 }
0x1b27   : > { %v10760_v58 = vpack.c.bf16 %v10754_v13, %v10754_v13  ;;  %19386 = vmatprep.subr.bf16.mxu1 %v25334_v37  ;;  %v20733_v13 = vld [vmem:[%s25294_s7 + $0x2c8] sm:$0xff]  }
0x1b28   : > { %v19352_v40 = vpop.f32.mrf.mxu0 }
0x1b29   : > { %19383 = vmatmul.mubr.msk.bf16.vlgmr.msra.gmra.mxu1 %vm9649_vm4, %v15503_v51  ;;  %19371 = vmatmul.mubr.bf16.vlgmr.msra.gmra.mxu0 %v10760_v58  ;;  %v20734_v51 = vld [vmem:[%s25294_s7 + $0x2c0] sm:$0xff]  }
0x1b2a   : > { %19407 = vmatpush3.bf16.msra.mxu0 %v23904_v22  ;;  %19414 = vmatprep.mubr.msk.bf16.mxu0 %vm20881_vm0, %v25334_v37  ;;  %v10757_v49 = vpop.f32.mrf.mxu0 }
0x1b2b   : > { %19408 = vmatprep.subr.bf16.mxu0 %v25334_v37  ;;  %19387 = vmatpush3.bf16.msra.mxu1 %v20703_v43 }
0x1b2c   : > { %19388 = vmatprep.subr.bf16.mxu1 %v25334_v37  ;;  %v19353_v54 = vpop.f32.mrf.mxu0  ;;  %19402 = vmatprep.mubr.msk.bf16.mxu1 %vm20881_vm0, %v25334_v37 }
0x1b2e   : > { %19409 = vmatpush3.bf16.msra.mxu0 %v23911_v9 }
0x1b2f   : > { %19410 = vmatprep.subr.bf16.mxu0 %v25334_v37  ;;  %19389 = vmatpush3.bf16.msra.mxu1 %v20704_v60 }
0x1b30   : > { %19390 = vmatprep.subr.bf16.mxu1 %v25334_v37 }
0x1b32   : > { %19411 = vmatpush3.bf16.msra.mxu0 %v23898_v62 }
0x1b33   : > { %19412 = vmatprep.subr.bf16.mxu0 %v25334_v37  ;;  %19391 = vmatpush3.bf16.msra.mxu1 %v20705_v47 }
0x1b34   : > { %19392 = vmatprep.subr.bf16.mxu1 %v25334_v37 }
0x1b36   : > { %19413 = vmatpush3.bf16.msra.mxu0 %v23921_v32 }
0x1b37   : > { %19393 = vmatpush3.bf16.msra.mxu1 %v20706_v56  ;;  %19418 = vmatprep.subr.bf16.mxu0 %v25334_v37 }
0x1b38   : > { %19394 = vmatprep.subr.bf16.mxu1 %v25334_v37 }
0x1b39   : > { %19415 = vmatmul.mubr.msk.bf16.vlgmr.msra.gmra.mxu0 %vm9649_vm4, %v15529_v7 }
0x1b3a   : > { %19434 = vmatprep.mubr.msk.bf16.mxu0 %vm20881_vm0, %v25334_v37  ;;  %19419 = vmatpush3.bf16.msra.mxu0 %v20708_v5 }
0x1b3b   : > { %19395 = vmatpush3.bf16.msra.mxu1 %v20707_v21  ;;  %19420 = vmatprep.subr.bf16.mxu0 %v25334_v37 }
0x1b3c   : > { %19396 = vmatprep.subr.bf16.mxu1 %v25334_v37 }
0x1b3e   : > { %19421 = vmatpush3.bf16.msra.mxu0 %v20710_v15 }
0x1b3f   : > { %19397 = vmatpush3.bf16.msra.mxu1 %v20709_v36  ;;  %19422 = vmatprep.subr.bf16.mxu0 %v25334_v37 }
0x1b40   : > { %19398 = vmatprep.subr.bf16.mxu1 %v25334_v37 }
0x1b42   : > { %19423 = vmatpush3.bf16.msra.mxu0 %v20712_v30 }
0x1b43   : > { %19399 = vmatpush3.bf16.msra.mxu1 %v20711_v63  ;;  %19424 = vmatprep.subr.bf16.mxu0 %v25334_v37 }
0x1b44   : > { %19400 = vmatprep.subr.bf16.mxu1 %v25334_v37 }
0x1b46   : > { %19425 = vmatpush3.bf16.msra.mxu0 %v20714_v2  ;;  %v15607_v2 = vld [vmem:[%s25293_s6 + $0x18] sm:$0x3] }
0x1b47   : > { %19401 = vmatpush3.bf16.msra.mxu1 %v20713_v38  ;;  %19426 = vmatprep.subr.bf16.mxu0 %v25334_v37 }
0x1b48   : > { %19438 = vmatprep.subr.bf16.mxu1 %v25334_v37 }
0x1b4a   : > { %19427 = vmatpush3.bf16.msra.mxu0 %v20715_v50 }
0x1b4b   : > { %19428 = vmatprep.subr.bf16.mxu0 %v25334_v37 }
0x1b4e   : > { %19429 = vmatpush3.bf16.msra.mxu0 %v20716_v6  ;;  %v20735_v6 = vld [vmem:[%s25294_s7 + $0x338] sm:$0xff]  }
0x1b4f   : > { %19430 = vmatprep.subr.bf16.mxu0 %v25334_v37 }
0x1b52   : > { %19431 = vmatpush3.bf16.msra.mxu0 %v20717_v11 }
0x1b53   : > { %19432 = vmatprep.subr.bf16.mxu0 %v25334_v37 }
0x1b56   : > { %19433 = vmatpush3.bf16.msra.mxu0 %v20718_v17 }
0x1b57   : > { %19470 = vmatprep.subr.bf16.mxu0 %v25334_v37 }
0x1bd9   : > { %v10708_v12 = vpop.f32.mrf.mxu1 }
0x1bda   : > { %v10714_v0 = vadd.f32 %v10708_v12, %v24297_v18  ;;  %v20726_v18 = vld [vmem:[%s25294_s7 + $0x2f0] sm:$0xff]  }
0x1bdb   : > { %v19340_v41 = vpop.f32.mrf.mxu1  ;;  %v20736_v12 = vld [vmem:[%s25294_s7 + $0x330] sm:$0xff]  }
0x1bdc   : > { %v20737_v41 = vld [vmem:[%s25294_s7 + $0x328] sm:$0xff]  }
0x1bdd   : > { %v10711_v57 = vpop.f32.mrf.mxu1 }
0x1bde   : > { %v20738_v57 = vld [vmem:[%s25294_s7 + $0x320] sm:$0xff]  }
0x1bdf   : > { %v19341_v26 = vpop.f32.mrf.mxu1 }
0x1be0   : > { %v15633_v26 = vld [vmem:[%s25293_s6 + $0x1a] sm:$0x3] }
0x1be9   : > { %v10906_v55 = vpop.f32.mrf.mxu1  ;;  %v10860_v27 = vpop.f32.mrf.mxu0 }
0x1bea   : > { %v10912_v28 = vpack.c.bf16 %v10906_v55, %v10906_v55  ;;  %v24396_v23 = vadd.f32 %v10860_v27, %v10714_v0  ;;  %v20739_v55 = vld [vmem:[%s25294_s7 + $0x318] sm:$0xff]  }
0x1beb   : > { %v19384_v33 = vpop.f32.mrf.mxu1  ;;  %v19372_v1 = vpop.f32.mrf.mxu0  ;;  %v20740_v27 = vld [vmem:[%s25294_s7 + $0x378] sm:$0xff]  }
0x1bec   : > { %19403 = vmatmul.mubr.bf16.vlgmr.msra.gmra.mxu1 %v10912_v28  ;;  %v20741_v28 = vld [vmem:[%s25294_s7 + $0x310] sm:$0xff]   ;;  %v20743_v33 = vld [vmem:[%s25294_s7 + $0x308] sm:$0xff]  }
0x1bed   : > { %19439 = vmatpush3.bf16.msra.mxu1 %v23904_v22  ;;  %v10909_v44 = vpop.f32.mrf.mxu1  ;;  %v10863_v25 = vpop.f32.mrf.mxu0  ;;  %19446 = vmatprep.mubr.msk.bf16.mxu1 %vm20881_vm0, %v25334_v37  ;;  %v20744_v1 = vld [vmem:[%s25294_s7 + $0x368] sm:$0xff]  }
0x1bee   : > { %19440 = vmatprep.subr.bf16.mxu1 %v25334_v37  ;;  %v20745_v44 = vld [vmem:[%s25294_s7 + $0x300] sm:$0xff]  }
0x1bef   : > { %v19385_v20 = vpop.f32.mrf.mxu1  ;;  %v19373_v31 = vpop.f32.mrf.mxu0  ;;  %v20746_v25 = vld [vmem:[%s25294_s7 + $0x360] sm:$0xff]  }
0x1bf0   : > { %v20747_v20 = vld [vmem:[%s25294_s7 + $0x358] sm:$0xff]   ;;  %v20748_v31 = vld [vmem:[%s25294_s7 + $0x350] sm:$0xff]  }
0x1bf1   : > { %19441 = vmatpush3.bf16.msra.mxu1 %v23911_v9 }
0x1bf2   : > { %19442 = vmatprep.subr.bf16.mxu1 %v25334_v37 }
0x1bf5   : > { %19443 = vmatpush3.bf16.msra.mxu1 %v23898_v62 }
0x1bf6   : > { %19444 = vmatprep.subr.bf16.mxu1 %v25334_v37 }
0x1bf9   : > { %19445 = vmatpush3.bf16.msra.mxu1 %v23921_v32  ;;  %v11058_v42 = vpop.f32.mrf.mxu0 }
0x1bfa   : > { %v11064_v4 = vpack.c.bf16 %v11058_v42, %v11058_v42  ;;  %19450 = vmatprep.subr.bf16.mxu1 %v25334_v37  ;;  %v20749_v42 = vld [vmem:[%s25294_s7 + $0x348] sm:$0xff]  }
0x1bfb   : > { %v19416_v16 = vpop.f32.mrf.mxu0 }
0x1bfc   : > { %19447 = vmatmul.mubr.msk.bf16.vlgmr.msra.gmra.mxu1 %vm9649_vm4, %v15555_v35  ;;  %19435 = vmatmul.mubr.bf16.vlgmr.msra.gmra.mxu0 %v11064_v4  ;;  %v20750_v35 = vld [vmem:[%s25294_s7 + $0x340] sm:$0xff]  }
0x1bfd   : > { %19471 = vmatpush3.bf16.msra.mxu0 %v23904_v22  ;;  %19478 = vmatprep.mubr.msk.bf16.mxu0 %vm20881_vm0, %v25334_v37  ;;  %v11061_v52 = vpop.f32.mrf.mxu0 }
0x1bfe   : > { %19472 = vmatprep.subr.bf16.mxu0 %v25334_v37  ;;  %19451 = vmatpush3.bf16.msra.mxu1 %v20719_v29 }
0x1bff   : > { %19452 = vmatprep.subr.bf16.mxu1 %v25334_v37  ;;  %v19417_v14 = vpop.f32.mrf.mxu0  ;;  %19466 = vmatprep.mubr.msk.bf16.mxu1 %vm20881_vm0, %v25334_v37 }
0x1c01   : > { %19473 = vmatpush3.bf16.msra.mxu0 %v23911_v9 }
0x1c02   : > { %19474 = vmatprep.subr.bf16.mxu0 %v25334_v37  ;;  %19453 = vmatpush3.bf16.msra.mxu1 %v20720_v10 }
0x1c03   : > { %19454 = vmatprep.subr.bf16.mxu1 %v25334_v37 }
0x1c05   : > { %19475 = vmatpush3.bf16.msra.mxu0 %v23898_v62 }
0x1c06   : > { %19476 = vmatprep.subr.bf16.mxu0 %v25334_v37  ;;  %19455 = vmatpush3.bf16.msra.mxu1 %v20721_v19 }
0x1c07   : > { %19456 = vmatprep.subr.bf16.mxu1 %v25334_v37 }
0x1c09   : > { %19477 = vmatpush3.bf16.msra.mxu0 %v23921_v32 }
0x1c0a   : > { %19457 = vmatpush3.bf16.msra.mxu1 %v20722_v45  ;;  %19482 = vmatprep.subr.bf16.mxu0 %v25334_v37 }
0x1c0b   : > { %19458 = vmatprep.subr.bf16.mxu1 %v25334_v37 }
0x1c0c   : > { %19479 = vmatmul.mubr.msk.bf16.vlgmr.msra.gmra.mxu0 %vm9649_vm4, %v15581_v53 }
0x1c0d   : > { %19498 = vmatprep.mubr.msk.bf16.mxu0 %vm20881_vm0, %v25334_v37  ;;  %19483 = vmatpush3.bf16.msra.mxu0 %v20724_v34 }
0x1c0e   : > { %19459 = vmatpush3.bf16.msra.mxu1 %v20723_v24  ;;  %19484 = vmatprep.subr.bf16.mxu0 %v25334_v37 }
0x1c0f   : > { %19460 = vmatprep.subr.bf16.mxu1 %v25334_v37 }
0x1c11   : > { %19485 = vmatpush3.bf16.msra.mxu0 %v20726_v18 }
0x1c12   : > { %19461 = vmatpush3.bf16.msra.mxu1 %v20725_v48  ;;  %19486 = vmatprep.subr.bf16.mxu0 %v25334_v37 }
0x1c13   : > { %19462 = vmatprep.subr.bf16.mxu1 %v25334_v37 }
0x1c15   : > { %19487 = vmatpush3.bf16.msra.mxu0 %v20728_v3 }
0x1c16   : > { %19463 = vmatpush3.bf16.msra.mxu1 %v20727_v8  ;;  %19488 = vmatprep.subr.bf16.mxu0 %v25334_v37 }
0x1c17   : > { %19464 = vmatprep.subr.bf16.mxu1 %v25334_v37 }
0x1c19   : > { %19489 = vmatpush3.bf16.msra.mxu0 %v20730_v46  ;;  %v15659_v46 = vld [vmem:[%s25293_s6 + $0x1c] sm:$0x3] }
0x1c1a   : > { %19465 = vmatpush3.bf16.msra.mxu1 %v20729_v59  ;;  %19490 = vmatprep.subr.bf16.mxu0 %v25334_v37 }
0x1c1b   : > { %19502 = vmatprep.subr.bf16.mxu1 %v25334_v37 }
0x1c1d   : > { %19491 = vmatpush3.bf16.msra.mxu0 %v20731_v39 }
0x1c1e   : > { %19492 = vmatprep.subr.bf16.mxu0 %v25334_v37 }
0x1c21   : > { %19493 = vmatpush3.bf16.msra.mxu0 %v20732_v61  ;;  %v20751_v61 = vld [vmem:[%s25294_s7 + $0x3b8] sm:$0xff]  }
0x1c22   : > { %19494 = vmatprep.subr.bf16.mxu0 %v25334_v37 }
0x1c25   : > { %19495 = vmatpush3.bf16.msra.mxu0 %v20733_v13 }
0x1c26   : > { %19496 = vmatprep.subr.bf16.mxu0 %v25334_v37 }
0x1c29   : > { %19497 = vmatpush3.bf16.msra.mxu0 %v20734_v51 }
0x1c2a   : > { %19534 = vmatprep.subr.bf16.mxu0 %v25334_v37 }
0x1cac   : > { %v11012_v58 = vpop.f32.mrf.mxu1 }
0x1cad   : > { %v11018_v43 = vadd.f32 %v11012_v58, %v24396_v23  ;;  %v20742_v23 = vld [vmem:[%s25294_s7 + $0x370] sm:$0xff]  }
0x1cae   : > { %v19404_v40 = vpop.f32.mrf.mxu1  ;;  %v20752_v58 = vld [vmem:[%s25294_s7 + $0x3b0] sm:$0xff]  }
0x1caf   : > { %v20753_v40 = vld [vmem:[%s25294_s7 + $0x3a8] sm:$0xff]  }
0x1cb0   : > { %v11015_v49 = vpop.f32.mrf.mxu1 }
0x1cb1   : > { %v20754_v49 = vld [vmem:[%s25294_s7 + $0x3a0] sm:$0xff]  }
0x1cb2   : > { %v19405_v60 = vpop.f32.mrf.mxu1 }
0x1cb3   : > { %v15685_v60 = vld [vmem:[%s25293_s6 + $0x1e] sm:$0x3] }
0x1cbc   : > { %v11210_v54 = vpop.f32.mrf.mxu1  ;;  %v11164_v47 = vpop.f32.mrf.mxu0 }
0x1cbd   : > { %v11216_v56 = vpack.c.bf16 %v11210_v54, %v11210_v54  ;;  %v24495_v7 = vadd.f32 %v11164_v47, %v11018_v43  ;;  %v20755_v54 = vld [vmem:[%s25294_s7 + $0x398] sm:$0xff]  }
0x1cbe   : > { %v19448_v21 = vpop.f32.mrf.mxu1  ;;  %v19436_v5 = vpop.f32.mrf.mxu0  ;;  %v20756_v47 = vld [vmem:[%s25294_s7 + $0x3f8] sm:$0xff]  }
0x1cbf   : > { %19467 = vmatmul.mubr.bf16.vlgmr.msra.gmra.mxu1 %v11216_v56  ;;  %v20757_v56 = vld [vmem:[%s25294_s7 + $0x390] sm:$0xff]   ;;  %v20759_v21 = vld [vmem:[%s25294_s7 + $0x388] sm:$0xff]  }
0x1cc0   : > { %19503 = vmatpush3.bf16.msra.mxu1 %v23904_v22  ;;  %v11213_v36 = vpop.f32.mrf.mxu1  ;;  %v11167_v15 = vpop.f32.mrf.mxu0  ;;  %19510 = vmatprep.mubr.msk.bf16.mxu1 %vm20881_vm0, %v25334_v37  ;;  %v20760_v5 = vld [vmem:[%s25294_s7 + $0x3e8] sm:$0xff]  }
0x1cc1   : > { %19504 = vmatprep.subr.bf16.mxu1 %v25334_v37  ;;  %v20761_v36 = vld [vmem:[%s25294_s7 + $0x380] sm:$0xff]  }
0x1cc2   : > { %v19449_v63 = vpop.f32.mrf.mxu1  ;;  %v19437_v30 = vpop.f32.mrf.mxu0  ;;  %v20762_v15 = vld [vmem:[%s25294_s7 + $0x3e0] sm:$0xff]  }
0x1cc3   : > { %v20763_v63 = vld [vmem:[%s25294_s7 + $0x3d8] sm:$0xff]   ;;  %v20764_v30 = vld [vmem:[%s25294_s7 + $0x3d0] sm:$0xff]  }
0x1cc4   : > { %19505 = vmatpush3.bf16.msra.mxu1 %v23911_v9 }
0x1cc5   : > { %19506 = vmatprep.subr.bf16.mxu1 %v25334_v37 }
0x1cc8   : > { %19507 = vmatpush3.bf16.msra.mxu1 %v23898_v62 }
0x1cc9   : > { %19508 = vmatprep.subr.bf16.mxu1 %v25334_v37 }
0x1ccc   : > { %19509 = vmatpush3.bf16.msra.mxu1 %v23921_v32  ;;  %v11362_v38 = vpop.f32.mrf.mxu0 }
0x1ccd   : > { %v11368_v50 = vpack.c.bf16 %v11362_v38, %v11362_v38  ;;  %19514 = vmatprep.subr.bf16.mxu1 %v25334_v37  ;;  %v20765_v38 = vld [vmem:[%s25294_s7 + $0x3c8] sm:$0xff]  }
0x1cce   : > { %v19480_v11 = vpop.f32.mrf.mxu0 }
0x1ccf   : > { %19511 = vmatmul.mubr.msk.bf16.vlgmr.msra.gmra.mxu1 %vm9649_vm4, %v15607_v2  ;;  %19499 = vmatmul.mubr.bf16.vlgmr.msra.gmra.mxu0 %v11368_v50  ;;  %v20766_v2 = vld [vmem:[%s25294_s7 + $0x3c0] sm:$0xff]  }
0x1cd0   : > { %19535 = vmatpush3.bf16.msra.mxu0 %v23904_v22  ;;  %19542 = vmatprep.mubr.msk.bf16.mxu0 %vm20881_vm0, %v25334_v37  ;;  %v11365_v17 = vpop.f32.mrf.mxu0 }
0x1cd1   : > { %19536 = vmatprep.subr.bf16.mxu0 %v25334_v37  ;;  %19515 = vmatpush3.bf16.msra.mxu1 %v20735_v6 }
0x1cd2   : > { %19516 = vmatprep.subr.bf16.mxu1 %v25334_v37  ;;  %v19481_v0 = vpop.f32.mrf.mxu0  ;;  %19530 = vmatprep.mubr.msk.bf16.mxu1 %vm20881_vm0, %v25334_v37 }
0x1cd4   : > { %19537 = vmatpush3.bf16.msra.mxu0 %v23911_v9 }
0x1cd5   : > { %19538 = vmatprep.subr.bf16.mxu0 %v25334_v37  ;;  %19517 = vmatpush3.bf16.msra.mxu1 %v20736_v12 }
0x1cd6   : > { %19518 = vmatprep.subr.bf16.mxu1 %v25334_v37 }
0x1cd8   : > { %19539 = vmatpush3.bf16.msra.mxu0 %v23898_v62 }
0x1cd9   : > { %19540 = vmatprep.subr.bf16.mxu0 %v25334_v37  ;;  %19519 = vmatpush3.bf16.msra.mxu1 %v20737_v41 }
0x1cda   : > { %19520 = vmatprep.subr.bf16.mxu1 %v25334_v37 }
0x1cdc   : > { %19541 = vmatpush3.bf16.msra.mxu0 %v23921_v32 }
0x1cdd   : > { %19521 = vmatpush3.bf16.msra.mxu1 %v20738_v57  ;;  %19546 = vmatprep.subr.bf16.mxu0 %v25334_v37 }
0x1cde   : > { %19522 = vmatprep.subr.bf16.mxu1 %v25334_v37 }
0x1cdf   : > { %19543 = vmatmul.mubr.msk.bf16.vlgmr.msra.gmra.mxu0 %vm9649_vm4, %v15633_v26 }
0x1ce0   : > { %19562 = vmatprep.mubr.msk.bf16.mxu0 %vm20881_vm0, %v25334_v37  ;;  %19547 = vmatpush3.bf16.msra.mxu0 %v20740_v27 }
0x1ce1   : > { %19523 = vmatpush3.bf16.msra.mxu1 %v20739_v55  ;;  %19548 = vmatprep.subr.bf16.mxu0 %v25334_v37 }
0x1ce2   : > { %19524 = vmatprep.subr.bf16.mxu1 %v25334_v37 }
0x1ce4   : > { %19549 = vmatpush3.bf16.msra.mxu0 %v20742_v23 }
0x1ce5   : > { %19525 = vmatpush3.bf16.msra.mxu1 %v20741_v28  ;;  %19550 = vmatprep.subr.bf16.mxu0 %v25334_v37 }
0x1ce6   : > { %19526 = vmatprep.subr.bf16.mxu1 %v25334_v37 }
0x1ce8   : > { %19551 = vmatpush3.bf16.msra.mxu0 %v20744_v1 }
0x1ce9   : > { %19527 = vmatpush3.bf16.msra.mxu1 %v20743_v33  ;;  %19552 = vmatprep.subr.bf16.mxu0 %v25334_v37 }
0x1cea   : > { %19528 = vmatprep.subr.bf16.mxu1 %v25334_v37 }
0x1cec   : > { %19553 = vmatpush3.bf16.msra.mxu0 %v20746_v25  ;;  %v15711_v25 = vld [vmem:[%s25293_s6 + $0x20] sm:$0x3] }
0x1ced   : > { %19529 = vmatpush3.bf16.msra.mxu1 %v20745_v44  ;;  %19554 = vmatprep.subr.bf16.mxu0 %v25334_v37 }
0x1cee   : > { %19566 = vmatprep.subr.bf16.mxu1 %v25334_v37 }
0x1cf0   : > { %19555 = vmatpush3.bf16.msra.mxu0 %v20747_v20 }
0x1cf1   : > { %19556 = vmatprep.subr.bf16.mxu0 %v25334_v37 }
0x1cf4   : > { %19557 = vmatpush3.bf16.msra.mxu0 %v20748_v31  ;;  %v20767_v31 = vld [vmem:[%s25294_s7 + $0x438] sm:$0xff]  }
0x1cf5   : > { %19558 = vmatprep.subr.bf16.mxu0 %v25334_v37 }
0x1cf8   : > { %19559 = vmatpush3.bf16.msra.mxu0 %v20749_v42 }
0x1cf9   : > { %19560 = vmatprep.subr.bf16.mxu0 %v25334_v37 }
0x1cfc   : > { %19561 = vmatpush3.bf16.msra.mxu0 %v20750_v35 }
0x1cfd   : > { %19598 = vmatprep.subr.bf16.mxu0 %v25334_v37 }
0x1d7f   : > { %v11316_v4 = vpop.f32.mrf.mxu1 }
0x1d80   : > { %v11322_v29 = vadd.f32 %v11316_v4, %v24495_v7  ;;  %v20758_v7 = vld [vmem:[%s25294_s7 + $0x3f0] sm:$0xff]  }
0x1d81   : > { %v19468_v16 = vpop.f32.mrf.mxu1  ;;  %v20768_v4 = vld [vmem:[%s25294_s7 + $0x430] sm:$0xff]  }
0x1d82   : > { %v20769_v16 = vld [vmem:[%s25294_s7 + $0x428] sm:$0xff]  }
0x1d83   : > { %v11319_v52 = vpop.f32.mrf.mxu1 }
0x1d84   : > { %v20770_v52 = vld [vmem:[%s25294_s7 + $0x420] sm:$0xff]  }
0x1d85   : > { %v19469_v10 = vpop.f32.mrf.mxu1 }
0x1d86   : > { %v15737_v10 = vld [vmem:[%s25293_s6 + $0x22] sm:$0x3] }
0x1d8f   : > { %v11514_v14 = vpop.f32.mrf.mxu1  ;;  %v11468_v19 = vpop.f32.mrf.mxu0 }
0x1d90   : > { %v11520_v45 = vpack.c.bf16 %v11514_v14, %v11514_v14  ;;  %v24594_v53 = vadd.f32 %v11468_v19, %v11322_v29  ;;  %v20771_v14 = vld [vmem:[%s25294_s7 + $0x418] sm:$0xff]  }
0x1d91   : > { %v19512_v24 = vpop.f32.mrf.mxu1  ;;  %v19500_v34 = vpop.f32.mrf.mxu0  ;;  %v20772_v19 = vld [vmem:[%s25294_s7 + $0x478] sm:$0xff]  }
0x1d92   : > { %19531 = vmatmul.mubr.bf16.vlgmr.msra.gmra.mxu1 %v11520_v45  ;;  %v20773_v45 = vld [vmem:[%s25294_s7 + $0x410] sm:$0xff]   ;;  %v20775_v24 = vld [vmem:[%s25294_s7 + $0x408] sm:$0xff]  }
0x1d93   : > { %19567 = vmatpush3.bf16.msra.mxu1 %v23904_v22  ;;  %v11517_v48 = vpop.f32.mrf.mxu1  ;;  %v11471_v18 = vpop.f32.mrf.mxu0  ;;  %19574 = vmatprep.mubr.msk.bf16.mxu1 %vm20881_vm0, %v25334_v37  ;;  %v20776_v34 = vld [vmem:[%s25294_s7 + $0x468] sm:$0xff]  }
0x1d94   : > { %19568 = vmatprep.subr.bf16.mxu1 %v25334_v37  ;;  %v20777_v48 = vld [vmem:[%s25294_s7 + $0x400] sm:$0xff]  }
0x1d95   : > { %v19513_v8 = vpop.f32.mrf.mxu1  ;;  %v19501_v3 = vpop.f32.mrf.mxu0  ;;  %v20778_v18 = vld [vmem:[%s25294_s7 + $0x460] sm:$0xff]  }
0x1d96   : > { %v20779_v8 = vld [vmem:[%s25294_s7 + $0x458] sm:$0xff]   ;;  %v20780_v3 = vld [vmem:[%s25294_s7 + $0x450] sm:$0xff]  }
0x1d97   : > { %19569 = vmatpush3.bf16.msra.mxu1 %v23911_v9 }
0x1d98   : > { %19570 = vmatprep.subr.bf16.mxu1 %v25334_v37 }
0x1d9b   : > { %19571 = vmatpush3.bf16.msra.mxu1 %v23898_v62 }
0x1d9c   : > { %19572 = vmatprep.subr.bf16.mxu1 %v25334_v37 }
0x1d9f   : > { %19573 = vmatpush3.bf16.msra.mxu1 %v23921_v32  ;;  %v11666_v59 = vpop.f32.mrf.mxu0 }
0x1da0   : > { %v11672_v39 = vpack.c.bf16 %v11666_v59, %v11666_v59  ;;  %19578 = vmatprep.subr.bf16.mxu1 %v25334_v37  ;;  %v20781_v59 = vld [vmem:[%s25294_s7 + $0x448] sm:$0xff]  }
0x1da1   : > { %v19544_v13 = vpop.f32.mrf.mxu0 }
0x1da2   : > { %19575 = vmatmul.mubr.msk.bf16.vlgmr.msra.gmra.mxu1 %vm9649_vm4, %v15659_v46  ;;  %19563 = vmatmul.mubr.bf16.vlgmr.msra.gmra.mxu0 %v11672_v39  ;;  %v20782_v46 = vld [vmem:[%s25294_s7 + $0x440] sm:$0xff]  }
0x1da3   : > { %19599 = vmatpush3.bf16.msra.mxu0 %v23904_v22  ;;  %19606 = vmatprep.mubr.msk.bf16.mxu0 %vm20881_vm0, %v25334_v37  ;;  %v11669_v51 = vpop.f32.mrf.mxu0 }
0x1da4   : > { %19600 = vmatprep.subr.bf16.mxu0 %v25334_v37  ;;  %19579 = vmatpush3.bf16.msra.mxu1 %v20751_v61 }
0x1da5   : > { %19580 = vmatprep.subr.bf16.mxu1 %v25334_v37  ;;  %v19545_v43 = vpop.f32.mrf.mxu0  ;;  %19594 = vmatprep.mubr.msk.bf16.mxu1 %vm20881_vm0, %v25334_v37 }
0x1da7   : > { %19601 = vmatpush3.bf16.msra.mxu0 %v23911_v9 }
0x1da8   : > { %19602 = vmatprep.subr.bf16.mxu0 %v25334_v37  ;;  %19581 = vmatpush3.bf16.msra.mxu1 %v20752_v58 }
0x1da9   : > { %19582 = vmatprep.subr.bf16.mxu1 %v25334_v37 }
0x1dab   : > { %19603 = vmatpush3.bf16.msra.mxu0 %v23898_v62 }
0x1dac   : > { %19604 = vmatprep.subr.bf16.mxu0 %v25334_v37  ;;  %19583 = vmatpush3.bf16.msra.mxu1 %v20753_v40 }
0x1dad   : > { %19584 = vmatprep.subr.bf16.mxu1 %v25334_v37 }
0x1daf   : > { %19605 = vmatpush3.bf16.msra.mxu0 %v23921_v32 }
0x1db0   : > { %19585 = vmatpush3.bf16.msra.mxu1 %v20754_v49  ;;  %19610 = vmatprep.subr.bf16.mxu0 %v25334_v37 }
0x1db1   : > { %19586 = vmatprep.subr.bf16.mxu1 %v25334_v37 }
0x1db2   : > { %19607 = vmatmul.mubr.msk.bf16.vlgmr.msra.gmra.mxu0 %vm9649_vm4, %v15685_v60 }
0x1db3   : > { %19626 = vmatprep.mubr.msk.bf16.mxu0 %vm20881_vm0, %v25334_v37  ;;  %19611 = vmatpush3.bf16.msra.mxu0 %v20756_v47 }
0x1db4   : > { %19587 = vmatpush3.bf16.msra.mxu1 %v20755_v54  ;;  %19612 = vmatprep.subr.bf16.mxu0 %v25334_v37 }
0x1db5   : > { %19588 = vmatprep.subr.bf16.mxu1 %v25334_v37 }
0x1db7   : > { %19613 = vmatpush3.bf16.msra.mxu0 %v20758_v7 }
0x1db8   : > { %19589 = vmatpush3.bf16.msra.mxu1 %v20757_v56  ;;  %19614 = vmatprep.subr.bf16.mxu0 %v25334_v37 }
0x1db9   : > { %19590 = vmatprep.subr.bf16.mxu1 %v25334_v37 }
0x1dbb   : > { %19615 = vmatpush3.bf16.msra.mxu0 %v20760_v5 }
0x1dbc   : > { %19591 = vmatpush3.bf16.msra.mxu1 %v20759_v21  ;;  %19616 = vmatprep.subr.bf16.mxu0 %v25334_v37 }
0x1dbd   : > { %19592 = vmatprep.subr.bf16.mxu1 %v25334_v37 }
0x1dbf   : > { %19617 = vmatpush3.bf16.msra.mxu0 %v20762_v15  ;;  %v15763_v15 = vld [vmem:[%s25293_s6 + $0x24] sm:$0x3] }
0x1dc0   : > { %19593 = vmatpush3.bf16.msra.mxu1 %v20761_v36  ;;  %19618 = vmatprep.subr.bf16.mxu0 %v25334_v37 }
0x1dc1   : > { %19630 = vmatprep.subr.bf16.mxu1 %v25334_v37 }
0x1dc3   : > { %19619 = vmatpush3.bf16.msra.mxu0 %v20763_v63 }
0x1dc4   : > { %19620 = vmatprep.subr.bf16.mxu0 %v25334_v37 }
0x1dc7   : > { %19621 = vmatpush3.bf16.msra.mxu0 %v20764_v30  ;;  %v20783_v30 = vld [vmem:[%s25294_s7 + $0x4b8] sm:$0xff]  }
0x1dc8   : > { %19622 = vmatprep.subr.bf16.mxu0 %v25334_v37 }
0x1dcb   : > { %19623 = vmatpush3.bf16.msra.mxu0 %v20765_v38 }
0x1dcc   : > { %19624 = vmatprep.subr.bf16.mxu0 %v25334_v37 }
0x1dcf   : > { %19625 = vmatpush3.bf16.msra.mxu0 %v20766_v2 }
0x1dd0   : > { %19662 = vmatprep.subr.bf16.mxu0 %v25334_v37 }
0x1e52   : > { %v11620_v50 = vpop.f32.mrf.mxu1 }
0x1e53   : > { %v11626_v6 = vadd.f32 %v11620_v50, %v24594_v53  ;;  %v20774_v53 = vld [vmem:[%s25294_s7 + $0x470] sm:$0xff]  }
0x1e54   : > { %v19532_v11 = vpop.f32.mrf.mxu1  ;;  %v20784_v50 = vld [vmem:[%s25294_s7 + $0x4b0] sm:$0xff]  }
0x1e55   : > { %v20785_v11 = vld [vmem:[%s25294_s7 + $0x4a8] sm:$0xff]  }
0x1e56   : > { %v11623_v17 = vpop.f32.mrf.mxu1 }
0x1e57   : > { %v20786_v17 = vld [vmem:[%s25294_s7 + $0x4a0] sm:$0xff]  }
0x1e58   : > { %v19533_v12 = vpop.f32.mrf.mxu1 }
0x1e59   : > { %v15789_v12 = vld [vmem:[%s25293_s6 + $0x26] sm:$0x3] }
0x1e62   : > { %v11818_v0 = vpop.f32.mrf.mxu1  ;;  %v11772_v41 = vpop.f32.mrf.mxu0 }
0x1e63   : > { %v11824_v57 = vpack.c.bf16 %v11818_v0, %v11818_v0  ;;  %v24693_v26 = vadd.f32 %v11772_v41, %v11626_v6  ;;  %v20787_v0 = vld [vmem:[%s25294_s7 + $0x498] sm:$0xff]  }
0x1e64   : > { %v19576_v55 = vpop.f32.mrf.mxu1  ;;  %v19564_v27 = vpop.f32.mrf.mxu0  ;;  %v20788_v41 = vld [vmem:[%s25294_s7 + $0x4f8] sm:$0xff]  }
0x1e65   : > { %19595 = vmatmul.mubr.bf16.vlgmr.msra.gmra.mxu1 %v11824_v57  ;;  %v20789_v57 = vld [vmem:[%s25294_s7 + $0x490] sm:$0xff]   ;;  %v20791_v55 = vld [vmem:[%s25294_s7 + $0x488] sm:$0xff]  }
0x1e66   : > { %19631 = vmatpush3.bf16.msra.mxu1 %v23904_v22  ;;  %v11821_v28 = vpop.f32.mrf.mxu1  ;;  %v11775_v23 = vpop.f32.mrf.mxu0  ;;  %19638 = vmatprep.mubr.msk.bf16.mxu1 %vm20881_vm0, %v25334_v37  ;;  %v20792_v27 = vld [vmem:[%s25294_s7 + $0x4e8] sm:$0xff]  }
0x1e67   : > { %19632 = vmatprep.subr.bf16.mxu1 %v25334_v37  ;;  %v20793_v28 = vld [vmem:[%s25294_s7 + $0x480] sm:$0xff]  }
0x1e68   : > { %v19577_v33 = vpop.f32.mrf.mxu1  ;;  %v19565_v1 = vpop.f32.mrf.mxu0  ;;  %v20794_v23 = vld [vmem:[%s25294_s7 + $0x4e0] sm:$0xff]  }
0x1e69   : > { %v20795_v33 = vld [vmem:[%s25294_s7 + $0x4d8] sm:$0xff]   ;;  %v20796_v1 = vld [vmem:[%s25294_s7 + $0x4d0] sm:$0xff]  }
0x1e6a   : > { %19633 = vmatpush3.bf16.msra.mxu1 %v23911_v9 }
0x1e6b   : > { %19634 = vmatprep.subr.bf16.mxu1 %v25334_v37 }
0x1e6e   : > { %19635 = vmatpush3.bf16.msra.mxu1 %v23898_v62 }
0x1e6f   : > { %19636 = vmatprep.subr.bf16.mxu1 %v25334_v37 }
0x1e72   : > { %19637 = vmatpush3.bf16.msra.mxu1 %v23921_v32  ;;  %v11970_v44 = vpop.f32.mrf.mxu0 }
0x1e73   : > { %v11976_v20 = vpack.c.bf16 %v11970_v44, %v11970_v44  ;;  %19642 = vmatprep.subr.bf16.mxu1 %v25334_v37  ;;  %v20797_v44 = vld [vmem:[%s25294_s7 + $0x4c8] sm:$0xff]  }
0x1e74   : > { %v19608_v42 = vpop.f32.mrf.mxu0 }
0x1e75   : > { %19639 = vmatmul.mubr.msk.bf16.vlgmr.msra.gmra.mxu1 %vm9649_vm4, %v15711_v25  ;;  %19627 = vmatmul.mubr.bf16.vlgmr.msra.gmra.mxu0 %v11976_v20  ;;  %v20798_v25 = vld [vmem:[%s25294_s7 + $0x4c0] sm:$0xff]  }
0x1e76   : > { %19663 = vmatpush3.bf16.msra.mxu0 %v23904_v22  ;;  %19670 = vmatprep.mubr.msk.bf16.mxu0 %vm20881_vm0, %v25334_v37  ;;  %v11973_v35 = vpop.f32.mrf.mxu0 }
0x1e77   : > { %19664 = vmatprep.subr.bf16.mxu0 %v25334_v37  ;;  %19643 = vmatpush3.bf16.msra.mxu1 %v20767_v31 }
0x1e78   : > { %19644 = vmatprep.subr.bf16.mxu1 %v25334_v37  ;;  %v19609_v29 = vpop.f32.mrf.mxu0  ;;  %19658 = vmatprep.mubr.msk.bf16.mxu1 %vm20881_vm0, %v25334_v37 }
0x1e7a   : > { %19665 = vmatpush3.bf16.msra.mxu0 %v23911_v9 }
0x1e7b   : > { %19666 = vmatprep.subr.bf16.mxu0 %v25334_v37  ;;  %19645 = vmatpush3.bf16.msra.mxu1 %v20768_v4 }
0x1e7c   : > { %19646 = vmatprep.subr.bf16.mxu1 %v25334_v37 }
0x1e7e   : > { %19667 = vmatpush3.bf16.msra.mxu0 %v23898_v62 }
0x1e7f   : > { %19668 = vmatprep.subr.bf16.mxu0 %v25334_v37  ;;  %19647 = vmatpush3.bf16.msra.mxu1 %v20769_v16 }
0x1e80   : > { %19648 = vmatprep.subr.bf16.mxu1 %v25334_v37 }
0x1e82   : > { %19669 = vmatpush3.bf16.msra.mxu0 %v23921_v32 }
0x1e83   : > { %19649 = vmatpush3.bf16.msra.mxu1 %v20770_v52  ;;  %19674 = vmatprep.subr.bf16.mxu0 %v25334_v37 }
0x1e84   : > { %19650 = vmatprep.subr.bf16.mxu1 %v25334_v37 }
0x1e85   : > { %19671 = vmatmul.mubr.msk.bf16.vlgmr.msra.gmra.mxu0 %vm9649_vm4, %v15737_v10 }
0x1e86   : > { %19690 = vmatprep.mubr.msk.bf16.mxu0 %vm20881_vm0, %v25334_v37  ;;  %19675 = vmatpush3.bf16.msra.mxu0 %v20772_v19 }
0x1e87   : > { %19651 = vmatpush3.bf16.msra.mxu1 %v20771_v14  ;;  %19676 = vmatprep.subr.bf16.mxu0 %v25334_v37 }
0x1e88   : > { %19652 = vmatprep.subr.bf16.mxu1 %v25334_v37 }
0x1e8a   : > { %19677 = vmatpush3.bf16.msra.mxu0 %v20774_v53 }
0x1e8b   : > { %19653 = vmatpush3.bf16.msra.mxu1 %v20773_v45  ;;  %19678 = vmatprep.subr.bf16.mxu0 %v25334_v37 }
0x1e8c   : > { %19654 = vmatprep.subr.bf16.mxu1 %v25334_v37 }
0x1e8e   : > { %19679 = vmatpush3.bf16.msra.mxu0 %v20776_v34 }
0x1e8f   : > { %19655 = vmatpush3.bf16.msra.mxu1 %v20775_v24  ;;  %19680 = vmatprep.subr.bf16.mxu0 %v25334_v37 }
0x1e90   : > { %19656 = vmatprep.subr.bf16.mxu1 %v25334_v37 }
0x1e92   : > { %19681 = vmatpush3.bf16.msra.mxu0 %v20778_v18  ;;  %v15815_v18 = vld [vmem:[%s25293_s6 + $0x28] sm:$0x3] }
0x1e93   : > { %19657 = vmatpush3.bf16.msra.mxu1 %v20777_v48  ;;  %19682 = vmatprep.subr.bf16.mxu0 %v25334_v37 }
0x1e94   : > { %19694 = vmatprep.subr.bf16.mxu1 %v25334_v37 }
0x1e96   : > { %19683 = vmatpush3.bf16.msra.mxu0 %v20779_v8 }
0x1e97   : > { %19684 = vmatprep.subr.bf16.mxu0 %v25334_v37 }
0x1e9a   : > { %19685 = vmatpush3.bf16.msra.mxu0 %v20780_v3  ;;  %v20799_v3 = vld [vmem:[%s25294_s7 + $0x538] sm:$0xff]  }
0x1e9b   : > { %19686 = vmatprep.subr.bf16.mxu0 %v25334_v37 }
0x1e9e   : > { %19687 = vmatpush3.bf16.msra.mxu0 %v20781_v59 }
0x1e9f   : > { %19688 = vmatprep.subr.bf16.mxu0 %v25334_v37 }
0x1ea2   : > { %19689 = vmatpush3.bf16.msra.mxu0 %v20782_v46 }
0x1ea3   : > { %19726 = vmatprep.subr.bf16.mxu0 %v25334_v37 }
0x1f25   : > { %v11924_v39 = vpop.f32.mrf.mxu1 }
0x1f26   : > { %v11930_v61 = vadd.f32 %v11924_v39, %v24693_v26  ;;  %v20790_v26 = vld [vmem:[%s25294_s7 + $0x4f0] sm:$0xff]  }
0x1f27   : > { %v19596_v13 = vpop.f32.mrf.mxu1  ;;  %v20800_v39 = vld [vmem:[%s25294_s7 + $0x530] sm:$0xff]  }
0x1f28   : > { %v20801_v13 = vld [vmem:[%s25294_s7 + $0x528] sm:$0xff]  }
0x1f29   : > { %v11927_v51 = vpop.f32.mrf.mxu1 }
0x1f2a   : > { %v20802_v51 = vld [vmem:[%s25294_s7 + $0x520] sm:$0xff]  }
0x1f2b   : > { %v19597_v58 = vpop.f32.mrf.mxu1 }
0x1f2c   : > { %v15841_v58 = vld [vmem:[%s25293_s6 + $0x2a] sm:$0x3] }
0x1f35   : > { %v12122_v43 = vpop.f32.mrf.mxu1  ;;  %v12076_v40 = vpop.f32.mrf.mxu0 }
0x1f36   : > { %v12128_v49 = vpack.c.bf16 %v12122_v43, %v12122_v43  ;;  %v24792_v60 = vadd.f32 %v12076_v40, %v11930_v61  ;;  %v20803_v43 = vld [vmem:[%s25294_s7 + $0x518] sm:$0xff]  }
0x1f37   : > { %v19640_v54 = vpop.f32.mrf.mxu1  ;;  %v19628_v47 = vpop.f32.mrf.mxu0  ;;  %v20804_v40 = vld [vmem:[%s25294_s7 + $0x578] sm:$0xff]  }
0x1f38   : > { %19659 = vmatmul.mubr.bf16.vlgmr.msra.gmra.mxu1 %v12128_v49  ;;  %v20805_v49 = vld [vmem:[%s25294_s7 + $0x510] sm:$0xff]   ;;  %v20807_v54 = vld [vmem:[%s25294_s7 + $0x508] sm:$0xff]  }
0x1f39   : > { %19695 = vmatpush3.bf16.msra.mxu1 %v23904_v22  ;;  %v12125_v56 = vpop.f32.mrf.mxu1  ;;  %v12079_v7 = vpop.f32.mrf.mxu0  ;;  %19702 = vmatprep.mubr.msk.bf16.mxu1 %vm20881_vm0, %v25334_v37  ;;  %v20808_v47 = vld [vmem:[%s25294_s7 + $0x568] sm:$0xff]  }
0x1f3a   : > { %19696 = vmatprep.subr.bf16.mxu1 %v25334_v37  ;;  %v20809_v56 = vld [vmem:[%s25294_s7 + $0x500] sm:$0xff]  }
0x1f3b   : > { %v19641_v21 = vpop.f32.mrf.mxu1  ;;  %v19629_v5 = vpop.f32.mrf.mxu0  ;;  %v20810_v7 = vld [vmem:[%s25294_s7 + $0x560] sm:$0xff]  }
0x1f3c   : > { %v20811_v21 = vld [vmem:[%s25294_s7 + $0x558] sm:$0xff]   ;;  %v20812_v5 = vld [vmem:[%s25294_s7 + $0x550] sm:$0xff]  }
0x1f3d   : > { %19697 = vmatpush3.bf16.msra.mxu1 %v23911_v9 }
0x1f3e   : > { %19698 = vmatprep.subr.bf16.mxu1 %v25334_v37 }
0x1f41   : > { %19699 = vmatpush3.bf16.msra.mxu1 %v23898_v62 }
0x1f42   : > { %19700 = vmatprep.subr.bf16.mxu1 %v25334_v37 }
0x1f45   : > { %19701 = vmatpush3.bf16.msra.mxu1 %v23921_v32  ;;  %v12274_v36 = vpop.f32.mrf.mxu0 }
0x1f46   : > { %v12280_v63 = vpack.c.bf16 %v12274_v36, %v12274_v36  ;;  %19706 = vmatprep.subr.bf16.mxu1 %v25334_v37  ;;  %v20813_v36 = vld [vmem:[%s25294_s7 + $0x548] sm:$0xff]  }
0x1f47   : > { %v19672_v38 = vpop.f32.mrf.mxu0 }
0x1f48   : > { %19703 = vmatmul.mubr.msk.bf16.vlgmr.msra.gmra.mxu1 %vm9649_vm4, %v15763_v15  ;;  %19691 = vmatmul.mubr.bf16.vlgmr.msra.gmra.mxu0 %v12280_v63  ;;  %v20814_v15 = vld [vmem:[%s25294_s7 + $0x540] sm:$0xff]  }
0x1f49   : > { %19727 = vmatpush3.bf16.msra.mxu0 %v23904_v22  ;;  %19734 = vmatprep.mubr.msk.bf16.mxu0 %vm20881_vm0, %v25334_v37  ;;  %v12277_v2 = vpop.f32.mrf.mxu0 }
0x1f4a   : > { %19728 = vmatprep.subr.bf16.mxu0 %v25334_v37  ;;  %19707 = vmatpush3.bf16.msra.mxu1 %v20783_v30 }
0x1f4b   : > { %19708 = vmatprep.subr.bf16.mxu1 %v25334_v37  ;;  %v19673_v6 = vpop.f32.mrf.mxu0  ;;  %19722 = vmatprep.mubr.msk.bf16.mxu1 %vm20881_vm0, %v25334_v37 }
0x1f4d   : > { %19729 = vmatpush3.bf16.msra.mxu0 %v23911_v9 }
0x1f4e   : > { %19730 = vmatprep.subr.bf16.mxu0 %v25334_v37  ;;  %19709 = vmatpush3.bf16.msra.mxu1 %v20784_v50 }
0x1f4f   : > { %19710 = vmatprep.subr.bf16.mxu1 %v25334_v37 }
0x1f51   : > { %19731 = vmatpush3.bf16.msra.mxu0 %v23898_v62 }
0x1f52   : > { %19732 = vmatprep.subr.bf16.mxu0 %v25334_v37  ;;  %19711 = vmatpush3.bf16.msra.mxu1 %v20785_v11 }
0x1f53   : > { %19712 = vmatprep.subr.bf16.mxu1 %v25334_v37 }
0x1f55   : > { %19733 = vmatpush3.bf16.msra.mxu0 %v23921_v32 }
0x1f56   : > { %19713 = vmatpush3.bf16.msra.mxu1 %v20786_v17  ;;  %19738 = vmatprep.subr.bf16.mxu0 %v25334_v37 }
0x1f57   : > { %19714 = vmatprep.subr.bf16.mxu1 %v25334_v37 }
0x1f58   : > { %19735 = vmatmul.mubr.msk.bf16.vlgmr.msra.gmra.mxu0 %vm9649_vm4, %v15789_v12 }
0x1f59   : > { %19754 = vmatprep.mubr.msk.bf16.mxu0 %vm20881_vm0, %v25334_v37  ;;  %19739 = vmatpush3.bf16.msra.mxu0 %v20788_v41 }
0x1f5a   : > { %19715 = vmatpush3.bf16.msra.mxu1 %v20787_v0  ;;  %19740 = vmatprep.subr.bf16.mxu0 %v25334_v37 }
0x1f5b   : > { %19716 = vmatprep.subr.bf16.mxu1 %v25334_v37 }
0x1f5d   : > { %19741 = vmatpush3.bf16.msra.mxu0 %v20790_v26 }
0x1f5e   : > { %19717 = vmatpush3.bf16.msra.mxu1 %v20789_v57  ;;  %19742 = vmatprep.subr.bf16.mxu0 %v25334_v37 }
0x1f5f   : > { %19718 = vmatprep.subr.bf16.mxu1 %v25334_v37 }
0x1f61   : > { %19743 = vmatpush3.bf16.msra.mxu0 %v20792_v27 }
0x1f62   : > { %19719 = vmatpush3.bf16.msra.mxu1 %v20791_v55  ;;  %19744 = vmatprep.subr.bf16.mxu0 %v25334_v37 }
0x1f63   : > { %19720 = vmatprep.subr.bf16.mxu1 %v25334_v37 }
0x1f65   : > { %19745 = vmatpush3.bf16.msra.mxu0 %v20794_v23  ;;  %v15867_v23 = vld [vmem:[%s25293_s6 + $0x2c] sm:$0x3] }
0x1f66   : > { %19721 = vmatpush3.bf16.msra.mxu1 %v20793_v28  ;;  %19746 = vmatprep.subr.bf16.mxu0 %v25334_v37 }
0x1f67   : > { %19758 = vmatprep.subr.bf16.mxu1 %v25334_v37 }
0x1f69   : > { %19747 = vmatpush3.bf16.msra.mxu0 %v20795_v33 }
0x1f6a   : > { %19748 = vmatprep.subr.bf16.mxu0 %v25334_v37 }
0x1f6d   : > { %19749 = vmatpush3.bf16.msra.mxu0 %v20796_v1  ;;  %v20815_v1 = vld [vmem:[%s25294_s7 + $0x5b8] sm:$0xff]  }
0x1f6e   : > { %19750 = vmatprep.subr.bf16.mxu0 %v25334_v37 }
0x1f71   : > { %19751 = vmatpush3.bf16.msra.mxu0 %v20797_v44 }
0x1f72   : > { %19752 = vmatprep.subr.bf16.mxu0 %v25334_v37 }
0x1f75   : > { %19753 = vmatpush3.bf16.msra.mxu0 %v20798_v25 }
0x1f76   : > { %19790 = vmatprep.subr.bf16.mxu0 %v25334_v37 }
0x1ff8   : > { %v12228_v20 = vpop.f32.mrf.mxu1 }
0x1ff9   : > { %v12234_v31 = vadd.f32 %v12228_v20, %v24792_v60  ;;  %v20806_v60 = vld [vmem:[%s25294_s7 + $0x570] sm:$0xff]  }
0x1ffa   : > { %v19660_v42 = vpop.f32.mrf.mxu1  ;;  %v20816_v20 = vld [vmem:[%s25294_s7 + $0x5b0] sm:$0xff]  }
0x1ffb   : > { %v20817_v42 = vld [vmem:[%s25294_s7 + $0x5a8] sm:$0xff]  }
0x1ffc   : > { %v12231_v35 = vpop.f32.mrf.mxu1 }
0x1ffd   : > { %v20818_v35 = vld [vmem:[%s25294_s7 + $0x5a0] sm:$0xff]  }
0x1ffe   : > { %v19661_v4 = vpop.f32.mrf.mxu1 }
0x1fff   : > { %v15893_v4 = vld [vmem:[%s25293_s6 + $0x2e] sm:$0x3] }
0x2008   : > { %v12426_v29 = vpop.f32.mrf.mxu1  ;;  %v12380_v16 = vpop.f32.mrf.mxu0 }
0x2009   : > { %v12432_v52 = vpack.c.bf16 %v12426_v29, %v12426_v29  ;;  %v24891_v10 = vadd.f32 %v12380_v16, %v12234_v31  ;;  %v20819_v29 = vld [vmem:[%s25294_s7 + $0x598] sm:$0xff]  }
0x200a   : > { %v19704_v14 = vpop.f32.mrf.mxu1  ;;  %v19692_v19 = vpop.f32.mrf.mxu0  ;;  %v20820_v16 = vld [vmem:[%s25294_s7 + $0x5f8] sm:$0xff]  }
0x200b   : > { %19723 = vmatmul.mubr.bf16.vlgmr.msra.gmra.mxu1 %v12432_v52  ;;  %v20821_v52 = vld [vmem:[%s25294_s7 + $0x590] sm:$0xff]   ;;  %v20823_v14 = vld [vmem:[%s25294_s7 + $0x588] sm:$0xff]  }
0x200c   : > { %19759 = vmatpush3.bf16.msra.mxu1 %v23904_v22  ;;  %v12429_v45 = vpop.f32.mrf.mxu1  ;;  %v12383_v53 = vpop.f32.mrf.mxu0  ;;  %19766 = vmatprep.mubr.msk.bf16.mxu1 %vm20881_vm0, %v25334_v37  ;;  %v20824_v19 = vld [vmem:[%s25294_s7 + $0x5e8] sm:$0xff]  }
0x200d   : > { %19760 = vmatprep.subr.bf16.mxu1 %v25334_v37  ;;  %v20825_v45 = vld [vmem:[%s25294_s7 + $0x580] sm:$0xff]  }
0x200e   : > { %v19705_v24 = vpop.f32.mrf.mxu1  ;;  %v19693_v34 = vpop.f32.mrf.mxu0  ;;  %v20826_v53 = vld [vmem:[%s25294_s7 + $0x5e0] sm:$0xff]  }
0x200f   : > { %v20827_v24 = vld [vmem:[%s25294_s7 + $0x5d8] sm:$0xff]   ;;  %v20828_v34 = vld [vmem:[%s25294_s7 + $0x5d0] sm:$0xff]  }
0x2010   : > { %19761 = vmatpush3.bf16.msra.mxu1 %v23911_v9 }
0x2011   : > { %19762 = vmatprep.subr.bf16.mxu1 %v25334_v37 }
0x2014   : > { %19763 = vmatpush3.bf16.msra.mxu1 %v23898_v62 }
0x2015   : > { %19764 = vmatprep.subr.bf16.mxu1 %v25334_v37 }
0x2018   : > { %19765 = vmatpush3.bf16.msra.mxu1 %v23921_v32  ;;  %v12578_v48 = vpop.f32.mrf.mxu0 }
0x2019   : > { %v12584_v8 = vpack.c.bf16 %v12578_v48, %v12578_v48  ;;  %19770 = vmatprep.subr.bf16.mxu1 %v25334_v37  ;;  %v20829_v48 = vld [vmem:[%s25294_s7 + $0x5c8] sm:$0xff]  }
0x201a   : > { %v19736_v59 = vpop.f32.mrf.mxu0 }
0x201b   : > { %19767 = vmatmul.mubr.msk.bf16.vlgmr.msra.gmra.mxu1 %vm9649_vm4, %v15815_v18  ;;  %19755 = vmatmul.mubr.bf16.vlgmr.msra.gmra.mxu0 %v12584_v8  ;;  %v20830_v18 = vld [vmem:[%s25294_s7 + $0x5c0] sm:$0xff]  }
0x201c   : > { %19791 = vmatpush3.bf16.msra.mxu0 %v23904_v22  ;;  %19798 = vmatprep.mubr.msk.bf16.mxu0 %vm20881_vm0, %v25334_v37  ;;  %v12581_v46 = vpop.f32.mrf.mxu0 }
0x201d   : > { %19792 = vmatprep.subr.bf16.mxu0 %v25334_v37  ;;  %19771 = vmatpush3.bf16.msra.mxu1 %v20799_v3 }
0x201e   : > { %19772 = vmatprep.subr.bf16.mxu1 %v25334_v37  ;;  %v19737_v61 = vpop.f32.mrf.mxu0  ;;  %19786 = vmatprep.mubr.msk.bf16.mxu1 %vm20881_vm0, %v25334_v37 }
0x2020   : > { %19793 = vmatpush3.bf16.msra.mxu0 %v23911_v9 }
0x2021   : > { %19794 = vmatprep.subr.bf16.mxu0 %v25334_v37  ;;  %19773 = vmatpush3.bf16.msra.mxu1 %v20800_v39 }
0x2022   : > { %19774 = vmatprep.subr.bf16.mxu1 %v25334_v37 }
0x2024   : > { %19795 = vmatpush3.bf16.msra.mxu0 %v23898_v62 }
0x2025   : > { %19796 = vmatprep.subr.bf16.mxu0 %v25334_v37  ;;  %19775 = vmatpush3.bf16.msra.mxu1 %v20801_v13 }
0x2026   : > { %19776 = vmatprep.subr.bf16.mxu1 %v25334_v37 }
0x2028   : > { %19797 = vmatpush3.bf16.msra.mxu0 %v23921_v32 }
0x2029   : > { %19777 = vmatpush3.bf16.msra.mxu1 %v20802_v51  ;;  %19802 = vmatprep.subr.bf16.mxu0 %v25334_v37 }
0x202a   : > { %19778 = vmatprep.subr.bf16.mxu1 %v25334_v37 }
0x202b   : > { %19799 = vmatmul.mubr.msk.bf16.vlgmr.msra.gmra.mxu0 %vm9649_vm4, %v15841_v58 }
0x202c   : > { %19818 = vmatprep.mubr.msk.bf16.mxu0 %vm20881_vm0, %v25334_v37  ;;  %19803 = vmatpush3.bf16.msra.mxu0 %v20804_v40 }
0x202d   : > { %19779 = vmatpush3.bf16.msra.mxu1 %v20803_v43  ;;  %19804 = vmatprep.subr.bf16.mxu0 %v25334_v37 }
0x202e   : > { %19780 = vmatprep.subr.bf16.mxu1 %v25334_v37 }
0x2030   : > { %19805 = vmatpush3.bf16.msra.mxu0 %v20806_v60 }
0x2031   : > { %19781 = vmatpush3.bf16.msra.mxu1 %v20805_v49  ;;  %19806 = vmatprep.subr.bf16.mxu0 %v25334_v37 }
0x2032   : > { %19782 = vmatprep.subr.bf16.mxu1 %v25334_v37 }
0x2034   : > { %19807 = vmatpush3.bf16.msra.mxu0 %v20808_v47 }
0x2035   : > { %19783 = vmatpush3.bf16.msra.mxu1 %v20807_v54  ;;  %19808 = vmatprep.subr.bf16.mxu0 %v25334_v37 }
0x2036   : > { %19784 = vmatprep.subr.bf16.mxu1 %v25334_v37 }
0x2038   : > { %19809 = vmatpush3.bf16.msra.mxu0 %v20810_v7  ;;  %v20831_v7 = vld [vmem:[%s25294_s7 + $0x638] sm:$0xff]  }
0x2039   : > { %19785 = vmatpush3.bf16.msra.mxu1 %v20809_v56  ;;  %19810 = vmatprep.subr.bf16.mxu0 %v25334_v37  ;;  %v15919_v56 = vld [vmem:[%s25293_s6 + $0x30] sm:$0x3] }
0x203a   : > { %19822 = vmatprep.subr.bf16.mxu1 %v25334_v37 }
0x203c   : > { %19811 = vmatpush3.bf16.msra.mxu0 %v20811_v21 }
0x203d   : > { %19812 = vmatprep.subr.bf16.mxu0 %v25334_v37 }
0x2040   : > { %19813 = vmatpush3.bf16.msra.mxu0 %v20812_v5 }
0x2041   : > { %19814 = vmatprep.subr.bf16.mxu0 %v25334_v37 }
0x2044   : > { %19815 = vmatpush3.bf16.msra.mxu0 %v20813_v36  ;;  %v20833_v36 = vld [vmem:[%s25294_s7 + $0x628] sm:$0xff]  }
0x2045   : > { %19816 = vmatprep.subr.bf16.mxu0 %v25334_v37 }
0x2048   : > { %19817 = vmatpush3.bf16.msra.mxu0 %v20814_v15  ;;  %v20834_v15 = vld [vmem:[%s25294_s7 + $0x620] sm:$0xff]  }
0x2049   : > { %19854 = vmatprep.subr.bf16.mxu0 %v25334_v37 }
0x20cb   : > { %v12532_v63 = vpop.f32.mrf.mxu1 }
0x20cc   : > { %v12538_v30 = vadd.f32 %v12532_v63, %v24891_v10  ;;  %v20822_v10 = vld [vmem:[%s25294_s7 + $0x5f0] sm:$0xff]   ;;  %v20835_v63 = vld [vmem:[%s25294_s7 + $0x618] sm:$0xff]  }
0x20cd   : > { %v19724_v38 = vpop.f32.mrf.mxu1 }
0x20ce   : > { %v20837_v38 = vld [vmem:[%s25294_s7 + $0x608] sm:$0xff]  }
0x20cf   : > { %v12535_v2 = vpop.f32.mrf.mxu1 }
0x20d0   : > { %v20838_v2 = vld [vmem:[%s25294_s7 + $0x600] sm:$0xff]  }
0x20d1   : > { %v19725_v50 = vpop.f32.mrf.mxu1 }
0x20d2   : > { %v20839_v50 = vld [vmem:[%s25296_s9 + $0x38] sm:$0xff]  }
0x20db   : > { %v12730_v6 = vpop.f32.mrf.mxu1  ;;  %v12684_v11 = vpop.f32.mrf.mxu0 }
0x20dc   : > { %v12736_v17 = vpack.c.bf16 %v12730_v6, %v12730_v6  ;;  %v24990_v12 = vadd.f32 %v12684_v11, %v12538_v30  ;;  %v20836_v30 = vld [vmem:[%s25294_s7 + $0x610] sm:$0xff]   ;;  %v20843_v11 = vld [vmem:[%s25296_s9 + $0x28] sm:$0xff]  }
0x20dd   : > { %v19768_v0 = vpop.f32.mrf.mxu1  ;;  %v19756_v41 = vpop.f32.mrf.mxu0  ;;  %v20841_v6 = vld [vmem:[%s25296_s9 + $0x30] sm:$0xff]  }
0x20de   : > { %19787 = vmatmul.mubr.bf16.vlgmr.msra.gmra.mxu1 %v12736_v17  ;;  %v20845_v17 = vld [vmem:[%s25296_s9 + $0x20] sm:$0xff]   ;;  %v20849_v0 = vld [vmem:[%s25296_s9 + $0x10] sm:$0xff]  }
0x20df   : > { %19823 = vmatpush3.bf16.msra.mxu1 %v23904_v22  ;;  %v12733_v57 = vpop.f32.mrf.mxu1  ;;  %v12687_v26 = vpop.f32.mrf.mxu0  ;;  %19830 = vmatprep.mubr.msk.bf16.mxu1 %vm20881_vm0, %v25334_v37 }
0x20e0   : > { %19824 = vmatprep.subr.bf16.mxu1 %v25334_v37 }
0x20e1   : > { %v19769_v55 = vpop.f32.mrf.mxu1  ;;  %v19757_v27 = vpop.f32.mrf.mxu0 }
0x20e3   : > { %19825 = vmatpush3.bf16.msra.mxu1 %v23911_v9 }
0x20e4   : > { %19826 = vmatprep.subr.bf16.mxu1 %v25334_v37 }
0x20e7   : > { %19827 = vmatpush3.bf16.msra.mxu1 %v23898_v62 }
0x20e8   : > { %19828 = vmatprep.subr.bf16.mxu1 %v25334_v37 }
0x20eb   : > { %19829 = vmatpush3.bf16.msra.mxu1 %v23921_v32  ;;  %v12882_v28 = vpop.f32.mrf.mxu0 }
0x20ec   : > { %v12888_v33 = vpack.c.bf16 %v12882_v28, %v12882_v28  ;;  %19834 = vmatprep.subr.bf16.mxu1 %v25334_v37 }
0x20ed   : > { %v19800_v44 = vpop.f32.mrf.mxu0 }
0x20ee   : > { %19831 = vmatmul.mubr.msk.bf16.vlgmr.msra.gmra.mxu1 %vm9649_vm4, %v15867_v23  ;;  %19819 = vmatmul.mubr.bf16.vlgmr.msra.gmra.mxu0 %v12888_v33  ;;  %v20840_v33 = vld [vmem:[%s25296_s9 + $0x78] sm:$0xff]  }
0x20ef   : > { %19855 = vmatpush3.bf16.msra.mxu0 %v23904_v22  ;;  %19862 = vmatprep.mubr.msk.bf16.mxu0 %vm20881_vm0, %v25334_v37  ;;  %v12885_v25 = vpop.f32.mrf.mxu0 }
0x20f0   : > { %19856 = vmatprep.subr.bf16.mxu0 %v25334_v37  ;;  %19835 = vmatpush3.bf16.msra.mxu1 %v20815_v1 }
0x20f1   : > { %19836 = vmatprep.subr.bf16.mxu1 %v25334_v37  ;;  %v19801_v31 = vpop.f32.mrf.mxu0  ;;  %19850 = vmatprep.mubr.msk.bf16.mxu1 %vm20881_vm0, %v25334_v37 }
0x20f3   : > { %19857 = vmatpush3.bf16.msra.mxu0 %v23911_v9 }
0x20f4   : > { %19858 = vmatprep.subr.bf16.mxu0 %v25334_v37  ;;  %19837 = vmatpush3.bf16.msra.mxu1 %v20816_v20 }
0x20f5   : > { %19838 = vmatprep.subr.bf16.mxu1 %v25334_v37 }
0x20f7   : > { %19859 = vmatpush3.bf16.msra.mxu0 %v23898_v62 }
0x20f8   : > { %19860 = vmatprep.subr.bf16.mxu0 %v25334_v37  ;;  %19839 = vmatpush3.bf16.msra.mxu1 %v20817_v42  ;;  %v20842_v42 = vld [vmem:[%s25296_s9 + $0x70] sm:$0xff]  }
0x20f9   : > { %19840 = vmatprep.subr.bf16.mxu1 %v25334_v37 }
0x20fb   : > { %19861 = vmatpush3.bf16.msra.mxu0 %v23921_v32 }
0x20fc   : > { %19841 = vmatpush3.bf16.msra.mxu1 %v20818_v35  ;;  %19866 = vmatprep.subr.bf16.mxu0 %v25334_v37 }
0x20fd   : > { %19842 = vmatprep.subr.bf16.mxu1 %v25334_v37 }
0x20fe   : > { %19863 = vmatmul.mubr.msk.bf16.vlgmr.msra.gmra.mxu0 %vm9649_vm4, %v15893_v4 }
0x20ff   : > { %19882 = vmatprep.mubr.msk.bf16.mxu0 %vm20881_vm0, %v25334_v37  ;;  %19867 = vmatpush3.bf16.msra.mxu0 %v20820_v16  ;;  %v20844_v16 = vld [vmem:[%s25296_s9 + $0x68] sm:$0xff]  }
0x2100   : > { %19843 = vmatpush3.bf16.msra.mxu1 %v20819_v29  ;;  %19868 = vmatprep.subr.bf16.mxu0 %v25334_v37 }
0x2101   : > { %19844 = vmatprep.subr.bf16.mxu1 %v25334_v37 }
0x2103   : > { %19869 = vmatpush3.bf16.msra.mxu0 %v20822_v10  ;;  %v20848_v10 = vld [vmem:[%s25296_s9 + $0x58] sm:$0xff]  }
0x2104   : > { %19845 = vmatpush3.bf16.msra.mxu1 %v20821_v52  ;;  %19870 = vmatprep.subr.bf16.mxu0 %v25334_v37  ;;  %v20846_v52 = vld [vmem:[%s25296_s9 + $0x60] sm:$0xff]  }
0x2105   : > { %19846 = vmatprep.subr.bf16.mxu1 %v25334_v37 }
0x2107   : > { %19871 = vmatpush3.bf16.msra.mxu0 %v20824_v19  ;;  %v20851_v19 = vld [vmem:[%s25296_s9 + $0x8] sm:$0xff]  }
0x2108   : > { %19847 = vmatpush3.bf16.msra.mxu1 %v20823_v14  ;;  %19872 = vmatprep.subr.bf16.mxu0 %v25334_v37  ;;  %v20850_v14 = vld [vmem:[%s25296_s9 + $0x50] sm:$0xff]  }
0x2109   : > { %19848 = vmatprep.subr.bf16.mxu1 %v25334_v37 }
0x210b   : > { %19873 = vmatpush3.bf16.msra.mxu0 %v20826_v53  ;;  %v20853_v53 = vld [vmem:[%s25296_s9] sm:$0xff]  }
0x210c   : > { %19849 = vmatpush3.bf16.msra.mxu1 %v20825_v45  ;;  %19874 = vmatprep.subr.bf16.mxu0 %v25334_v37  ;;  %v20852_v45 = vld [vmem:[%s25296_s9 + $0x48] sm:$0xff]  }
0x210d   : > { %19886 = vmatprep.subr.bf16.mxu1 %v25334_v37 }
0x210f   : > { %19875 = vmatpush3.bf16.msra.mxu0 %v20827_v24  ;;  %v20854_v24 = vld [vmem:[%s25296_s9 + $0x40] sm:$0xff]  }
0x2110   : > { %19876 = vmatprep.subr.bf16.mxu0 %v25334_v37 }
0x2113   : > { %19877 = vmatpush3.bf16.msra.mxu0 %v20828_v34 }
0x2114   : > { %19878 = vmatprep.subr.bf16.mxu0 %v25334_v37 }
0x2117   : > { %19879 = vmatpush3.bf16.msra.mxu0 %v20829_v48  ;;  %v15945_v48 = vld [vmem:[%s25295_s8] ss:$0 sm:$0xff] }
0x2118   : > { %19880 = vmatprep.subr.bf16.mxu0 %v25334_v37 }
0x211b   : > { %19881 = vmatpush3.bf16.msra.mxu0 %v20830_v18 }
0x211c   : > { %19918 = vmatprep.subr.bf16.mxu0 %v25334_v37 }
0x219e   : > { %v12836_v8 = vpop.f32.mrf.mxu1 }
0x219f   : > { %v12842_v3 = vadd.f32 %v12836_v8, %v24990_v12  ;;  %v20847_v12 = vld [vmem:[%s25296_s9 + $0x18] sm:$0xff]  }
0x21a0   : > { %v19788_v59 = vpop.f32.mrf.mxu1 }
0x21a2   : > { %v12839_v46 = vpop.f32.mrf.mxu1 }
0x21a4   : > { %v19789_v39 = vpop.f32.mrf.mxu1 }
0x21ae   : > { %v13034_v61 = vpop.f32.mrf.mxu1  ;;  %v12988_v13 = vpop.f32.mrf.mxu0 }
0x21af   : > { %v13040_v51 = vpack.c.bf16 %v13034_v61, %v13034_v61  ;;  %v25089_v58 = vadd.f32 %v12988_v13, %v12842_v3  ;;  %v20855_v61 = vld [vmem:[%s25296_s9 + $0xb8] sm:$0xff]  }
0x21b0   : > { %v19832_v43 = vpop.f32.mrf.mxu1  ;;  %v19820_v40 = vpop.f32.mrf.mxu0 }
0x21b1   : > { %19851 = vmatmul.mubr.bf16.vlgmr.msra.gmra.mxu1 %v13040_v51  ;;  %v20856_v51 = vld [vmem:[%s25296_s9 + $0xf8] sm:$0xff]   ;;  %v20857_v43 = vld [vmem:[%s25296_s9 + $0xb0] sm:$0xff]  }
0x21b2   : > { %19887 = vmatpush3.bf16.msra.mxu1 %v23904_v22  ;;  %v13037_v49 = vpop.f32.mrf.mxu1  ;;  %v12991_v60 = vpop.f32.mrf.mxu0  ;;  %19894 = vmatprep.mubr.msk.bf16.mxu1 %vm20881_vm0, %v25334_v37  ;;  %v20858_v40 = vld [vmem:[%s25296_s9 + $0xf0] sm:$0xff]  }
0x21b3   : > { %19888 = vmatprep.subr.bf16.mxu1 %v25334_v37  ;;  %v20859_v49 = vld [vmem:[%s25296_s9 + $0xa8] sm:$0xff]  }
0x21b4   : > { %v19833_v54 = vpop.f32.mrf.mxu1  ;;  %v19821_v47 = vpop.f32.mrf.mxu0  ;;  %v20860_v60 = vld [vmem:[%s25296_s9 + $0xe8] sm:$0xff]  }
0x21b5   : > { %v20861_v54 = vld [vmem:[%s25296_s9 + $0xa0] sm:$0xff]  }
0x21b6   : > { %19889 = vmatpush3.bf16.msra.mxu1 %v23911_v9  ;;  %v20862_v47 = vld [vmem:[%s25296_s9 + $0xe0] sm:$0xff]  }
0x21b7   : > { %19890 = vmatprep.subr.bf16.mxu1 %v25334_v37 }
0x21ba   : > { %19891 = vmatpush3.bf16.msra.mxu1 %v23898_v62  ;;  %v20832_v62 = vld [vmem:[%s25294_s7 + $0x630] sm:$0xff]  }
0x21bb   : > { %19892 = vmatprep.subr.bf16.mxu1 %v25334_v37 }
0x21be   : > { %19893 = vmatpush3.bf16.msra.mxu1 %v23921_v32  ;;  %v13186_v22 = vpop.f32.mrf.mxu0 }
0x21bf   : > { %v13192_v21 = vpack.c.bf16 %v13186_v22, %v13186_v22  ;;  %19898 = vmatprep.subr.bf16.mxu1 %v25334_v37  ;;  %v20863_v22 = vld [vmem:[%s25296_s9 + $0x98] sm:$0xff]  }
0x21c0   : > { %v19864_v9 = vpop.f32.mrf.mxu0 }
0x21c1   : > { %19895 = vmatmul.mubr.msk.bf16.vlgmr.msra.gmra.mxu1 %vm9649_vm4, %v15919_v56  ;;  %19883 = vmatmul.mubr.bf16.vlgmr.msra.gmra.mxu0 %v13192_v21  ;;  %v20864_v56 = vld [vmem:[%s25296_s9 + $0xd8] sm:$0xff]   ;;  %v20866_v21 = vld [vmem:[%s25296_s9 + $0xd0] sm:$0xff]   ;;  %v20867_v9 = vld [vmem:[%s25296_s9 + $0x88] sm:$0xff]  }
0x21c2   : > { %19899 = vmatpush3.bf16.msra.mxu1 %v20831_v7  ;;  %v13189_v32 = vpop.f32.mrf.mxu0  ;;  %19914 = vmatprep.mubr.msk.bf16.mxu1 %vm20881_vm0, %v25334_v37  ;;  %v20865_v7 = vld [vmem:[%s25296_s9 + $0x90] sm:$0xff]  }
0x21c3   : > { %19900 = vmatprep.subr.bf16.mxu1 %v25334_v37  ;;  %19934 = vmatprep.mubr.msk.bf16.mxu0 %vm20881_vm0, %v25334_v37  ;;  %v20869_v32 = vld [vmem:[%s25296_s9 + $0x80] sm:$0xff]  }
0x21c4   : > { %v19865_v5 = vpop.f32.mrf.mxu0  ;;  %19919 = vmatpush3.bf16.msra.mxu0 %v20839_v50 }
0x21c5   : > { %19920 = vmatprep.subr.bf16.mxu0 %v25334_v37  ;;  %v20870_v5 = vld [vmem:[%s25296_s9 + $0xc0] sm:$0xff]  }
0x21c6   : > { %19901 = vmatpush3.bf16.msra.mxu1 %v20832_v62  ;;  %v20868_v62 = vld [vmem:[%s25296_s9 + $0xc8] sm:$0xff]  }
0x21c7   : > { %19902 = vmatprep.subr.bf16.mxu1 %v25334_v37 }
0x21c8   : > { %19921 = vmatpush3.bf16.msra.mxu0 %v20841_v6 }
0x21c9   : > { %19922 = vmatprep.subr.bf16.mxu0 %v25334_v37 }
0x21ca   : > { %19903 = vmatpush3.bf16.msra.mxu1 %v20833_v36 }
0x21cb   : > { %19904 = vmatprep.subr.bf16.mxu1 %v25334_v37 }
0x21cc   : > { %19923 = vmatpush3.bf16.msra.mxu0 %v20843_v11 }
0x21cd   : > { %19924 = vmatprep.subr.bf16.mxu0 %v25334_v37 }
0x21ce   : > { %19905 = vmatpush3.bf16.msra.mxu1 %v20834_v15 }
0x21cf   : > { %19906 = vmatprep.subr.bf16.mxu1 %v25334_v37 }
0x21d0   : > { %19925 = vmatpush3.bf16.msra.mxu0 %v20845_v17 }
0x21d1   : > { %19926 = vmatprep.subr.bf16.mxu0 %v25334_v37 }
0x21d2   : > { %19907 = vmatpush3.bf16.msra.mxu1 %v20835_v63 }
0x21d3   : > { %19908 = vmatprep.subr.bf16.mxu1 %v25334_v37 }
0x21d4   : > { %19927 = vmatpush3.bf16.msra.mxu0 %v20847_v12  ;;  %v13461_v12 = vld [vmem:[%s25297_s10] sm:$0x1] }
0x21d5   : > { %19928 = vmatprep.subr.bf16.mxu0 %v25334_v37 }
0x21d6   : > { %19909 = vmatpush3.bf16.msra.mxu1 %v20836_v30 }
0x21d7   : > { %19910 = vmatprep.subr.bf16.mxu1 %v25334_v37 }
0x21d8   : > { %19929 = vmatpush3.bf16.msra.mxu0 %v20849_v0 }
0x21d9   : > { %19930 = vmatprep.subr.bf16.mxu0 %v25334_v37 }
0x21da   : > { %19911 = vmatpush3.bf16.msra.mxu1 %v20837_v38 }
0x21db   : > { %19912 = vmatprep.subr.bf16.mxu1 %v25334_v37 }
0x21dc   : > { %19931 = vmatpush3.bf16.msra.mxu0 %v20851_v19 }
0x21dd   : > { %19932 = vmatprep.subr.bf16.mxu0 %v25334_v37 }
0x21de   : > { %19913 = vmatpush3.bf16.msra.mxu1 %v20838_v2 }
0x21df   : > { %19938 = vmatprep.subr.bf16.mxu1 %v25334_v37 }
0x21e0   : > { %19933 = vmatpush3.bf16.msra.mxu0 %v20853_v53 }
0x21e1   : > { %19958 = vmatprep.subr.bf16.mxu0 %v25334_v37 }
0x2271   : > { %v13140_v41 = vpop.f32.mrf.mxu1 }
0x2272   : > { %v13146_v57 = vadd.f32 %v13140_v41, %v25089_v58 }
0x2273   : > { %v19852_v26 = vpop.f32.mrf.mxu1 }
0x2275   : > { %v13143_v55 = vpop.f32.mrf.mxu1 }
0x2277   : > { %v19853_v27 = vpop.f32.mrf.mxu1 }
0x2281   : > { %v13338_v28 = vpop.f32.mrf.mxu1  ;;  %v13292_v23 = vpop.f32.mrf.mxu0 }
0x2282   : > { %v13344_v1 = vpack.c.bf16 %v13338_v28, %v13338_v28  ;;  %v13298_v44 = vadd.f32 %v13292_v23, %v13146_v57 }
0x2283   : > { %v19896_v25 = vpop.f32.mrf.mxu1  ;;  %v19884_v20 = vpop.f32.mrf.mxu0 }
0x2284   : > { %19915 = vmatmul.mubr.bf16.vlgmr.msra.gmra.mxu1 %v13344_v1 }
0x2285   : > { %v13341_v31 = vpop.f32.mrf.mxu1  ;;  %19939 = vmatpush3.bf16.msra.mxu1 %v20840_v33  ;;  %v13295_v35 = vpop.f32.mrf.mxu0  ;;  %19954 = vmatprep.mubr.msk.bf16.mxu1 %vm20881_vm0, %v25334_v37 }
0x2286   : > { %19940 = vmatprep.subr.bf16.mxu1 %v25334_v37 }
0x2287   : > { %v19897_v4 = vpop.f32.mrf.mxu1  ;;  %v19885_v29 = vpop.f32.mrf.mxu0 }
0x2289   : > { %19941 = vmatpush3.bf16.msra.mxu1 %v20842_v42 }
0x228a   : > { %19942 = vmatprep.subr.bf16.mxu1 %v25334_v37 }
0x228d   : > { %19943 = vmatpush3.bf16.msra.mxu1 %v20844_v16 }
0x228e   : > { %19944 = vmatprep.subr.bf16.mxu1 %v25334_v37 }
0x2291   : > { %19945 = vmatpush3.bf16.msra.mxu1 %v20846_v52 }
0x2292   : > { %19946 = vmatprep.subr.bf16.mxu1 %v25334_v37 }
0x2295   : > { %19947 = vmatpush3.bf16.msra.mxu1 %v20848_v10 }
0x2296   : > { %19948 = vmatprep.subr.bf16.mxu1 %v25334_v37 }
0x2299   : > { %19949 = vmatpush3.bf16.msra.mxu1 %v20850_v14 }
0x229a   : > { %19950 = vmatprep.subr.bf16.mxu1 %v25334_v37 }
0x229d   : > { %19951 = vmatpush3.bf16.msra.mxu1 %v20852_v45 }
0x229e   : > { %19952 = vmatprep.subr.bf16.mxu1 %v25334_v37 }
0x22a1   : > { %19953 = vmatpush3.bf16.msra.mxu1 %v20854_v24 }
0x22a2   : > { %19978 = vmatprep.subr.bf16.mxu1 %v25334_v37 }
0x2344   : > { %v13444_v34 = vpop.f32.mrf.mxu1 }
0x2345   : > { %v13450_v18 = vadd.f32 %v13444_v34, %v13298_v44 }
0x2346   : > { %v19916_v8 = vpop.f32.mrf.mxu1 }
0x2347   : > { %v13458_v3 = vadd.f32 %v15945_v48, %v13450_v18 }
0x2348   : > { %v13447_v59 = vpop.f32.mrf.mxu1 }
0x2349   : > { %v13459_v46 = vmax.f32 %v13458_v3, 0.0 }
0x234a   : > { %v19917_v39 = vpop.f32.mrf.mxu1 }
0x234b   : > { %v13460_v13 = vpack.c.bf16 %v13459_v46, %v13459_v46 }
0x234d   : > { %v13585_v58 = vshrl.u32 %v13460_v13, 16  ;;  %19935 = vmatmul.mubr.bf16.vlgmr.msra.gmra.mxu0 %v13460_v13  ;;  %v13695_v36 = vrot.slane %v13460_v13, 1 }
0x234e   : > { %19959 = vmatpush3.bf16.msra.mxu0 %v20855_v61  ;;  %19974 = vmatprep.mubr.msk.bf16.mxu0 %vm20881_vm0, %v25334_v37 }
0x234f   : > { %19955 = vmatmul.mubr.bf16.vlgmr.msra.gmra.mxu1 %v13585_v58  ;;  %19960 = vmatprep.subr.bf16.mxu0 %v25334_v37  ;;  %v13803_v15 = vrot.slane %v13585_v58, 1 }
0x2350   : > { %19979 = vmatpush3.bf16.msra.mxu1 %v20856_v51  ;;  %19994 = vmatprep.mubr.msk.bf16.mxu1 %vm20881_vm0, %v25334_v37 }
0x2351   : > { %19980 = vmatprep.subr.bf16.mxu1 %v25334_v37 }
0x2352   : > { %19961 = vmatpush3.bf16.msra.mxu0 %v20857_v43 }
0x2353   : > { %19962 = vmatprep.subr.bf16.mxu0 %v25334_v37 }
0x2354   : > { %19981 = vmatpush3.bf16.msra.mxu1 %v20858_v40 }
0x2355   : > { %19982 = vmatprep.subr.bf16.mxu1 %v25334_v37 }
0x2356   : > { %19963 = vmatpush3.bf16.msra.mxu0 %v20859_v49 }
0x2357   : > { %19964 = vmatprep.subr.bf16.mxu0 %v25334_v37 }
0x2358   : > { %19983 = vmatpush3.bf16.msra.mxu1 %v20860_v60 }
0x2359   : > { %19984 = vmatprep.subr.bf16.mxu1 %v25334_v37 }
0x235a   : > { %19965 = vmatpush3.bf16.msra.mxu0 %v20861_v54 }
0x235b   : > { %19966 = vmatprep.subr.bf16.mxu0 %v25334_v37 }
0x235c   : > { %19985 = vmatpush3.bf16.msra.mxu1 %v20862_v47 }
0x235d   : > { %19986 = vmatprep.subr.bf16.mxu1 %v25334_v37 }
0x235e   : > { %19967 = vmatpush3.bf16.msra.mxu0 %v20863_v22 }
0x235f   : > { %19968 = vmatprep.subr.bf16.mxu0 %v25334_v37 }
0x2360   : > { %19987 = vmatpush3.bf16.msra.mxu1 %v20864_v56 }
0x2361   : > { %19988 = vmatprep.subr.bf16.mxu1 %v25334_v37 }
0x2362   : > { %19969 = vmatpush3.bf16.msra.mxu0 %v20865_v7 }
0x2363   : > { %19970 = vmatprep.subr.bf16.mxu0 %v25334_v37 }
0x2364   : > { %19989 = vmatpush3.bf16.msra.mxu1 %v20866_v21 }
0x2365   : > { %19990 = vmatprep.subr.bf16.mxu1 %v25334_v37 }
0x2366   : > { %19971 = vmatpush3.bf16.msra.mxu0 %v20867_v9 }
0x2367   : > { %19972 = vmatprep.subr.bf16.mxu0 %v25334_v37 }
0x2368   : > { %19991 = vmatpush3.bf16.msra.mxu1 %v20868_v62 }
0x2369   : > { %19992 = vmatprep.subr.bf16.mxu1 %v25334_v37  ;;  %v13895_v37 = vlaneseq }
0x236a   : > { %19973 = vmatpush3.bf16.msra.mxu0 %v20869_v32 }
0x236b   : > { %v13896_v41 = vshrl.u32 %v13895_v37, 7 }
0x236c   : > { %19993 = vmatpush3.bf16.msra.mxu1 %v20870_v5 }
0x236d   : > { %19975 = vmatmul.mubr.bf16.vlgmr.msra.gmra.mxu0 %v13695_v36  ;;  %v13897_v27 = vsub.s32 0, %v13896_v41 }
0x236f   : > { %19995 = vmatmul.mubr.bf16.vlgmr.msra.gmra.mxu1 %v13803_v15 }
0x240d   : > { %v13560_v63 = vpop.f32.mrf.mxu0 }
0x240e   : > { %v13566_v0 = vadd.f32 %v13560_v63, %v13461_v12 }
0x240f   : > { %v19936_v30 = vpop.f32.mrf.mxu0  ;;  %v13670_v38 = vpop.f32.mrf.mxu1 }
0x2410   : > { %v13676_v57 = vadd.f32 %v13670_v38, %v13566_v0 }
0x2411   : > { %v13563_v2 = vpop.f32.mrf.mxu0  ;;  %v19956_v50 = vpop.f32.mrf.mxu1 }
0x2413   : > { %v19937_v6 = vpop.f32.mrf.mxu0  ;;  %v13673_v11 = vpop.f32.mrf.mxu1 }
0x2415   : > { %v19957_v17 = vpop.f32.mrf.mxu1 }
0x242d   : > { %v13779_v26 = vpop.f32.mrf.mxu0 }
0x242e   : > { %v13785_v55 = vadd.f32 %v13779_v26, %v13676_v57 }
0x242f   : > { %v19976_v28 = vpop.f32.mrf.mxu0  ;;  %v13887_v23 = vpop.f32.mrf.mxu1 }
0x2430   : > { %v13893_v33 = vadd.f32 %v13887_v23, %v13785_v55 }
0x2431   : > { %v13782_v1 = vpop.f32.mrf.mxu0  ;;  %v19996_v44 = vpop.f32.mrf.mxu1 }
0x2432   : > { %v13898_v25 = vrot.slane %v13893_v33, %v13897_v27 }
0x2433   : > { %v19977_v20 = vpop.f32.mrf.mxu0  ;;  %v13890_v31 = vpop.f32.mrf.mxu1 }
0x2434   : > { %13900 = vst [vmem:[%s384_s20] sm:$0xff] %v13898_v25 }
0x2435   : > { %v19997_v42 = vpop.f32.mrf.mxu1 }
0x2436 PF: > { %s21_s17 = sadd.s32 1, %s20878_s17  }
0x2437   : > { %p18_p4 = scmp.ge.s32.totalorder %s21_s17, 4  }
0x2439   :  { %20 = sbr.rel (!%p18_p4) target bundleno = 1 (0x1), region = 193 }

</bundles_post_ra>
